<compile_context>
chip_gen: v7x
topology: tpu7x:2x2x1
jax: 0.10.0
libtpu: 0.0.40
codegen_flags: <defaults>
</compile_context>

<pallas_src>
import math
import functools

import jax
import jax.numpy as jnp
from jax.experimental import pallas as pl
from jax.experimental.pallas import tpu as pltpu

D_FEAT = 768          # width of each pooler_output half (text / image)
D_AUG = 769           # [class-index scalar, image features]
D_PAD = 896           # 769 zero-padded up to 7*128 -> dense (8,128)-aligned tiles
LOG_2PI = math.log(2.0 * math.pi)


def _gelu_exact(x):
    # matches torch.nn.GELU() (erf formulation)
    return 0.5 * x * (1.0 + jax.lax.erf(x * (1.0 / math.sqrt(2.0))))


def _softplus_torch(x):
    # matches torch.nn.Softplus(beta=1, threshold=20); the x < -15 branch keeps the
    # result strictly positive (softplus(x) ~= exp(x)) instead of underflowing to 0,
    # which would give Inf/-Inf in diff^2/var and log(var).
    exp_x = jnp.exp(jnp.minimum(x, 20.0))
    return jnp.where(x > 20.0, x,
                     jnp.where(x < -15.0, exp_x, jnp.log(1.0 + exp_x)))


def _gaussian_logprob_kernel(
    base_ref, txt_ref, cls0_ref, ws0_ref,
    wm1_ref, bm1_ref, wm2_ref, bm2_ref,
    wc1_ref, bc1_ref, wc2_ref, bc2_ref,
    lp_ref, *, cb,
):
    # grid axis 0 = class-block index; rows are (class, batch) pairs, class-major:
    # row r of this block <-> (class = c*cb + r//bs, batch = r%bs).
    c = pl.program_id(0)
    cls = cls0_ref[...] + (c * cb).astype(jnp.float32)             # (rows, 1) class index

    # shared_layer: the class-independent projection (img @ W_s[1:] + b_s) was hoisted
    # to the wrapper (`base`); only the class-index column (row 0 of W_s) varies here.
    h = _gelu_exact(base_ref[...] + cls * ws0_ref[...])            # Dropout -> identity (eval)
    h16 = h.astype(jnp.bfloat16)                                   # bf16 into the MXU, f32 accum

    # mean_layer: Linear(769,769) -> GELU -> Dropout -> Linear(769,768)
    hm = _gelu_exact(
        jnp.dot(h16, wm1_ref[...], preferred_element_type=jnp.float32) + bm1_ref[...])
    mean = (jnp.dot(hm.astype(jnp.bfloat16), wm2_ref[...],
                    preferred_element_type=jnp.float32) + bm2_ref[...])        # (rows, 768)

    # cov_diag_layer: Linear(769,769) -> GELU -> Dropout -> Linear(769,768) -> Softplus
    hc = _gelu_exact(
        jnp.dot(h16, wc1_ref[...], preferred_element_type=jnp.float32) + bc1_ref[...])
    var = _softplus_torch(
        jnp.dot(hc.astype(jnp.bfloat16), wc2_ref[...],
                preferred_element_type=jnp.float32) + bc2_ref[...])            # (rows, 768)

    # MultivariateNormal(mean, diag_embed(var)).log_prob(text)
    diff = txt_ref[...] - mean
    inv_var = pl.reciprocal(var, approx=False)
    maha = jnp.sum(diff * diff * inv_var, axis=-1, keepdims=True)              # (rows, 1)
    logdet = jnp.sum(jnp.log(var), axis=-1, keepdims=True)                     # (rows, 1)
    # Disjoint per-block output column: plain store, no accumulation, no lane mask.
    lp_ref[...] = -0.5 * (maha + logdet + D_FEAT * LOG_2PI)


def gaussian_logprob_pallas(image_feats, text_feats, p, num_classes):
    """Per-class diagonal-Gaussian log_prob of text_feats.  Returns (bs, num_classes)."""
    bs = image_feats.shape[0]

    # Hoisted class-independent projection of the shared layer: ONE matmul total
    # instead of one per class inside the kernel grid.
    base = image_feats @ p["wsi_pad"] + p["b_shared_pad"]          # (bs, D_PAD) f32

    # Pack Cb classes into the matmul M dimension so the MXU sees Cb*bs rows per step.
    rows_target = 256                                              # fills v6e/v7x MXU rows (>=128 on v5e)
    cb = max(1, min(num_classes, max(1, rows_target // bs)))
    while cb < num_classes and (cb * bs) % 8 != 0:                 # keep row blocks sublane-aligned
        cb += 1
    n_blocks = -(-num_classes // cb)
    c_pad = n_blocks * cb
    rows = cb * bs

    # Class-major row layout (replication done once, outside the kernel).
    base_rep = jnp.tile(base, (cb, 1))                             # (rows, D_PAD)
    txt_rep = jnp.tile(text_feats, (cb, 1))                        # (rows, D_FEAT)
    cls0 = jnp.repeat(jnp.arange(cb, dtype=jnp.float32), bs).reshape(rows, 1)

    def full(a):
        nd = a.ndim
        return pl.BlockSpec(a.shape, lambda c, _nd=nd: (0,) * _nd)  # resident across the grid

    args = (base_rep, txt_rep, cls0, p["ws0_pad"],
            p["wm1"], p["bm1"], p["wm2"], p["bm2"],
            p["wc1"], p["bc1"], p["wc2"], p["bc2"])

    lp_flat = pl.pallas_call(
        functools.partial(_gaussian_logprob_kernel, cb=cb),
        out_shape=jax.ShapeDtypeStruct((c_pad * bs, 1), jnp.float32),
        grid_spec=pltpu.PrefetchScalarGridSpec(
            num_scalar_prefetch=0,
            grid=(n_blocks,),
            in_specs=[full(a) for a in args],
            out_specs=pl.BlockSpec((rows, 1), lambda c: (c, 0)),
        ),
        compiler_params=pltpu.CompilerParams(
            # No cross-step accumulation -> class axis is parallel (2x on v7x's 2 TCs).
            dimension_semantics=("parallel",),
            # ~6 MB bf16 weights (double-buffered ~12.5 MB) + <5 MB activations.
            vmem_limit_bytes=32 * 1024 * 1024,
        ),
    )(*args)

    # rows are (class, batch) class-major -> (num_classes, bs) -> (bs, num_classes)
    return lp_flat.reshape(c_pad, bs).T[:, :num_classes]


def gaussian_approx_forward(params, num_classes, image_inputs, text_inputs):
    bs = image_inputs.shape[0]

    # ---- frozen MTL backbone + classification heads (plain-JAX glue) ----
    # TODO(synk): the real frozen MTL_net / head_mm / head_image come from a torch
    # checkpoint that cannot be loaded; replaced by deterministic stand-in projections
    # that produce the same shapes (pooler_output of width 1536 = 768 text + 768 image).
    img_flat = image_inputs.reshape(bs, -1)                     # NCHW flattened
    txt_flat = text_inputs.reshape(bs, -1)
    pooler_text = jnp.tanh(txt_flat @ params["w_bb_txt"] + params["b_bb_txt"])
    pooler_img = jnp.tanh(img_flat @ params["w_bb_img"] + params["b_bb_img"])
    vllf = jnp.concatenate([pooler_text, pooler_img], axis=1)   # (bs, 1536)
    text_feats, image_feats = vllf[:, :D_FEAT], vllf[:, D_FEAT:]

    multimodal_probs = jax.nn.softmax(vllf @ params["w_head_mm"] + params["b_head_mm"], axis=1)
    unimodal_probs = jax.nn.softmax(image_feats @ params["w_head_img"] + params["b_head_img"], axis=1)
    ratio = multimodal_probs / unimodal_probs

    # ---- hot path: per-class Gaussian approximation (Pallas kernel) ----
    log_probs = gaussian_logprob_pallas(image_feats, text_feats, params, num_classes)  # (bs, C)

    preds = jnp.exp(log_probs)                                  # torch.exp(log_prob) per class
    lp_last = log_probs[:, -1:]                                 # `log_prob` after the last loop iter
    # NOTE: intentionally replicates the reference's broadcast of the LAST class'
    # (bs,1) log_prob against log(unimodal_probs) (bs,C) before the sum.
    marginal = jnp.sum(lp_last + jnp.log(unimodal_probs), axis=1)
    preds = preds - marginal[:, None]
    loss = jnp.mean((jnp.log(ratio) - preds) ** 2)              # nn.MSELoss (mean reduction)
    return loss, preds


def _pad2(x, rows, cols):
    return jnp.pad(x, ((0, rows - x.shape[0]), (0, cols - x.shape[1])))


def init_params(key, num_classes, img_in_dim, txt_in_dim):
    keys = iter(jax.random.split(key, 32))

    def linear(fan_in, fan_out):
        # torch.nn.Linear default init, stored (in, out) so the kernel does x @ W + b
        bound = 1.0 / math.sqrt(fan_in)
        w = jax.random.uniform(next(keys), (fan_in, fan_out), jnp.float32, -bound, bound)
        b = jax.random.uniform(next(keys), (1, fan_out), jnp.float32, -bound, bound)
        return w, b

    p = {}
    # stand-in frozen backbone + heads (see TODO(synk) above)
    p["w_bb_img"], p["b_bb_img"] = linear(img_in_dim, D_FEAT)
    p["w_bb_txt"], p["b_bb_txt"] = linear(txt_in_dim, D_FEAT)
    p["w_head_mm"], p["b_head_mm"] = linear(2 * D_FEAT, num_classes)
    p["w_head_img"], p["b_head_img"] = linear(D_FEAT, num_classes)

    # shared_layer: Linear(769,769).  Row 0 multiplies the class-index scalar; rows 1:
    # multiply the image features.  Zero-padding 769 -> 896 is exact (padded lanes are
    # 0 after GELU and hit zero weight rows downstream).
    w_s, b_s = linear(D_AUG, D_AUG)
    p["ws0_pad"] = _pad2(w_s[:1, :], 1, D_PAD)
    p["wsi_pad"] = _pad2(w_s[1:, :], D_FEAT, D_PAD)
    p["b_shared_pad"] = _pad2(b_s, 1, D_PAD)

    # mean_layer / cov_diag_layer MLPs: pad to 896, weights in bf16 (f32 accumulation).
    wm1, bm1 = linear(D_AUG, D_AUG)
    wm2, bm2 = linear(D_AUG, D_FEAT)
    wc1, bc1 = linear(D_AUG, D_AUG)
    wc2, bc2 = linear(D_AUG, D_FEAT)
    p["wm1"] = _pad2(wm1, D_PAD, D_PAD).astype(jnp.bfloat16)
    p["bm1"] = _pad2(bm1, 1, D_PAD)
    p["wm2"] = _pad2(wm2, D_PAD, D_FEAT).astype(jnp.bfloat16)
    p["bm2"] = bm2
    p["wc1"] = _pad2(wc1, D_PAD, D_PAD).astype(jnp.bfloat16)
    p["bc1"] = _pad2(bc1, 1, D_PAD)
    p["wc2"] = _pad2(wc2, D_PAD, D_FEAT).astype(jnp.bfloat16)
    p["bc2"] = bc2
    return p


if __name__ == "__main__":
    num_classes = 4
    batch = 2
    root = jax.random.PRNGKey(0)
    k_img, k_txt, k_par = jax.random.split(root, 3)

    image_inputs = jax.random.normal(k_img, (batch, 4, 16, 16), jnp.float32)   # NCHW
    text_inputs = jax.random.normal(k_txt, (batch, 8, 32), jnp.float32)        # (bs, seq, hidden)
    params = init_params(k_par, num_classes, img_in_dim=4 * 16 * 16, txt_in_dim=8 * 32)

    fwd = jax.jit(functools.partial(gaussian_approx_forward, params, num_classes))
    loss, preds = fwd(image_inputs, text_inputs)
    jax.block_until_ready((loss, preds))
    assert preds.shape == (batch, num_classes)
    assert bool(jnp.isfinite(loss))
    print("KERNEL_OK")
</pallas_src>

<mosaic_0001>
module attributes {stable_mosaic.version = 11 : i64} {
  func.func @_gaussian_logprob_kernel(%arg0: i32, %arg1: memref<8x896xf32, #tpu.memory_space<vmem>>, %arg2: memref<8x768xf32, #tpu.memory_space<vmem>>, %arg3: memref<8x1xf32, #tpu.memory_space<vmem>>, %arg4: memref<1x896xf32, #tpu.memory_space<vmem>>, %arg5: memref<896x896xbf16, #tpu.memory_space<vmem>>, %arg6: memref<1x896xf32, #tpu.memory_space<vmem>>, %arg7: memref<896x768xbf16, #tpu.memory_space<vmem>>, %arg8: memref<1x768xf32, #tpu.memory_space<vmem>>, %arg9: memref<896x896xbf16, #tpu.memory_space<vmem>>, %arg10: memref<1x896xf32, #tpu.memory_space<vmem>>, %arg11: memref<896x768xbf16, #tpu.memory_space<vmem>>, %arg12: memref<1x768xf32, #tpu.memory_space<vmem>>, %arg13: memref<8x1xf32, #tpu.memory_space<vmem>>) attributes {dimension_semantics = [#tpu.dimension_semantics<parallel>], iteration_bounds = array<i64: 1>, scalar_prefetch = 0 : i64, scratch_operands = 0 : i64, tpu.core_type = #tpu.core_type<tc>, window_params = [{pipeline_mode = #tpu.pipeline_mode<synchronous>, transform_indices = @transform_0, window_bounds = array<i64: 8, 896>}, {pipeline_mode = #tpu.pipeline_mode<synchronous>, transform_indices = @transform_1, window_bounds = array<i64: 8, 768>}, {pipeline_mode = #tpu.pipeline_mode<synchronous>, transform_indices = @transform_2, window_bounds = array<i64: 8, 1>}, {pipeline_mode = #tpu.pipeline_mode<synchronous>, transform_indices = @transform_3, window_bounds = array<i64: 1, 896>}, {pipeline_mode = #tpu.pipeline_mode<synchronous>, transform_indices = @transform_4, window_bounds = array<i64: 896, 896>}, {pipeline_mode = #tpu.pipeline_mode<synchronous>, transform_indices = @transform_5, window_bounds = array<i64: 1, 896>}, {pipeline_mode = #tpu.pipeline_mode<synchronous>, transform_indices = @transform_6, window_bounds = array<i64: 896, 768>}, {pipeline_mode = #tpu.pipeline_mode<synchronous>, transform_indices = @transform_7, window_bounds = array<i64: 1, 768>}, {pipeline_mode = #tpu.pipeline_mode<synchronous>, transform_indices = @transform_8, window_bounds = array<i64: 896, 896>}, {pipeline_mode = #tpu.pipeline_mode<synchronous>, transform_indices = @transform_9, window_bounds = array<i64: 1, 896>}, {pipeline_mode = #tpu.pipeline_mode<synchronous>, transform_indices = @transform_10, window_bounds = array<i64: 896, 768>}, {pipeline_mode = #tpu.pipeline_mode<synchronous>, transform_indices = @transform_11, window_bounds = array<i64: 1, 768>}, {transform_indices = @transform_12, window_bounds = array<i64: 8, 1>}]} {
    %c0 = arith.constant 0 : index
    %c0_0 = arith.constant 0 : index
    %0 = vector.load %arg3[%c0, %c0_0] : memref<8x1xf32, #tpu.memory_space<vmem>>, vector<8x1xf32>
    %c4_i32 = arith.constant 4 : i32
    %1 = arith.muli %arg0, %c4_i32 : i32
    %2 = arith.sitofp %1 : i32 to f32
    %3 = vector.broadcast %2 : f32 to vector<8x1xf32>
    %4 = arith.addf %0, %3 : vector<8x1xf32>
    %c0_1 = arith.constant 0 : index
    %c0_2 = arith.constant 0 : index
    %5 = vector.load %arg1[%c0_1, %c0_2] : memref<8x896xf32, #tpu.memory_space<vmem>>, vector<8x896xf32>
    %c0_3 = arith.constant 0 : index
    %c0_4 = arith.constant 0 : index
    %6 = vector.load %arg4[%c0_3, %c0_4] : memref<1x896xf32, #tpu.memory_space<vmem>>, vector<1x896xf32>
    %7 = vector.broadcast %4 : vector<8x1xf32> to vector<8x896xf32>
    %8 = vector.broadcast %6 : vector<1x896xf32> to vector<8x896xf32>
    %9 = arith.mulf %7, %8 : vector<8x896xf32>
    %10 = arith.addf %5, %9 : vector<8x896xf32>
    %cst = arith.constant 5.000000e-01 : f32
    %11 = vector.broadcast %cst : f32 to vector<8x896xf32>
    %12 = arith.mulf %11, %10 : vector<8x896xf32>
    %cst_5 = arith.constant 0.707106769 : f32
    %13 = vector.broadcast %cst_5 : f32 to vector<8x896xf32>
    %14 = arith.mulf %10, %13 : vector<8x896xf32>
    %15 = math.erf %14 : vector<8x896xf32>
    %cst_6 = arith.constant 1.000000e+00 : f32
    %16 = vector.broadcast %cst_6 : f32 to vector<8x896xf32>
    %17 = arith.addf %16, %15 : vector<8x896xf32>
    %18 = arith.mulf %12, %17 : vector<8x896xf32>
    %19 = arith.truncf %18 : vector<8x896xf32> to vector<8x896xbf16>
    %c0_7 = arith.constant 0 : index
    %c0_8 = arith.constant 0 : index
    %20 = vector.load %arg5[%c0_7, %c0_8] : memref<896x896xbf16, #tpu.memory_space<vmem>>, vector<896x896xbf16>
    %cst_9 = arith.constant dense<0.000000e+00> : vector<8x896xf32>
    %21 = tpu.matmul %19, %20, %cst_9 {dimension_numbers = #tpu.dot_dimension_numbers<[1], [0], [0], [1], [0, 0, 1, 1], [], []>} : vector<8x896xbf16>, vector<896x896xbf16>, vector<8x896xf32> -> vector<8x896xf32>
    %c0_10 = arith.constant 0 : index
    %c0_11 = arith.constant 0 : index
    %22 = vector.load %arg6[%c0_10, %c0_11] : memref<1x896xf32, #tpu.memory_space<vmem>>, vector<1x896xf32>
    %23 = vector.broadcast %22 : vector<1x896xf32> to vector<8x896xf32>
    %24 = arith.addf %21, %23 : vector<8x896xf32>
    %cst_12 = arith.constant 5.000000e-01 : f32
    %25 = vector.broadcast %cst_12 : f32 to vector<8x896xf32>
    %26 = arith.mulf %25, %24 : vector<8x896xf32>
    %cst_13 = arith.constant 0.707106769 : f32
    %27 = vector.broadcast %cst_13 : f32 to vector<8x896xf32>
    %28 = arith.mulf %24, %27 : vector<8x896xf32>
    %29 = math.erf %28 : vector<8x896xf32>
    %cst_14 = arith.constant 1.000000e+00 : f32
    %30 = vector.broadcast %cst_14 : f32 to vector<8x896xf32>
    %31 = arith.addf %30, %29 : vector<8x896xf32>
    %32 = arith.mulf %26, %31 : vector<8x896xf32>
    %33 = arith.truncf %32 : vector<8x896xf32> to vector<8x896xbf16>
    %c0_15 = arith.constant 0 : index
    %c0_16 = arith.constant 0 : index
    %34 = vector.load %arg7[%c0_15, %c0_16] : memref<896x768xbf16, #tpu.memory_space<vmem>>, vector<896x768xbf16>
    %cst_17 = arith.constant dense<0.000000e+00> : vector<8x768xf32>
    %35 = tpu.matmul %33, %34, %cst_17 {dimension_numbers = #tpu.dot_dimension_numbers<[1], [0], [0], [1], [0, 0, 1, 1], [], []>} : vector<8x896xbf16>, vector<896x768xbf16>, vector<8x768xf32> -> vector<8x768xf32>
    %c0_18 = arith.constant 0 : index
    %c0_19 = arith.constant 0 : index
    %36 = vector.load %arg8[%c0_18, %c0_19] : memref<1x768xf32, #tpu.memory_space<vmem>>, vector<1x768xf32>
    %37 = vector.broadcast %36 : vector<1x768xf32> to vector<8x768xf32>
    %38 = arith.addf %35, %37 : vector<8x768xf32>
    %c0_20 = arith.constant 0 : index
    %c0_21 = arith.constant 0 : index
    %39 = vector.load %arg9[%c0_20, %c0_21] : memref<896x896xbf16, #tpu.memory_space<vmem>>, vector<896x896xbf16>
    %cst_22 = arith.constant dense<0.000000e+00> : vector<8x896xf32>
    %40 = tpu.matmul %19, %39, %cst_22 {dimension_numbers = #tpu.dot_dimension_numbers<[1], [0], [0], [1], [0, 0, 1, 1], [], []>} : vector<8x896xbf16>, vector<896x896xbf16>, vector<8x896xf32> -> vector<8x896xf32>
    %c0_23 = arith.constant 0 : index
    %c0_24 = arith.constant 0 : index
    %41 = vector.load %arg10[%c0_23, %c0_24] : memref<1x896xf32, #tpu.memory_space<vmem>>, vector<1x896xf32>
    %42 = vector.broadcast %41 : vector<1x896xf32> to vector<8x896xf32>
    %43 = arith.addf %40, %42 : vector<8x896xf32>
    %cst_25 = arith.constant 5.000000e-01 : f32
    %44 = vector.broadcast %cst_25 : f32 to vector<8x896xf32>
    %45 = arith.mulf %44, %43 : vector<8x896xf32>
    %cst_26 = arith.constant 0.707106769 : f32
    %46 = vector.broadcast %cst_26 : f32 to vector<8x896xf32>
    %47 = arith.mulf %43, %46 : vector<8x896xf32>
    %48 = math.erf %47 : vector<8x896xf32>
    %cst_27 = arith.constant 1.000000e+00 : f32
    %49 = vector.broadcast %cst_27 : f32 to vector<8x896xf32>
    %50 = arith.addf %49, %48 : vector<8x896xf32>
    %51 = arith.mulf %45, %50 : vector<8x896xf32>
    %52 = arith.truncf %51 : vector<8x896xf32> to vector<8x896xbf16>
    %c0_28 = arith.constant 0 : index
    %c0_29 = arith.constant 0 : index
    %53 = vector.load %arg11[%c0_28, %c0_29] : memref<896x768xbf16, #tpu.memory_space<vmem>>, vector<896x768xbf16>
    %cst_30 = arith.constant dense<0.000000e+00> : vector<8x768xf32>
    %54 = tpu.matmul %52, %53, %cst_30 {dimension_numbers = #tpu.dot_dimension_numbers<[1], [0], [0], [1], [0, 0, 1, 1], [], []>} : vector<8x896xbf16>, vector<896x768xbf16>, vector<8x768xf32> -> vector<8x768xf32>
    %c0_31 = arith.constant 0 : index
    %c0_32 = arith.constant 0 : index
    %55 = vector.load %arg12[%c0_31, %c0_32] : memref<1x768xf32, #tpu.memory_space<vmem>>, vector<1x768xf32>
    %56 = vector.broadcast %55 : vector<1x768xf32> to vector<8x768xf32>
    %57 = arith.addf %54, %56 : vector<8x768xf32>
    %cst_33 = arith.constant 2.000000e+01 : f32
    %58 = vector.broadcast %cst_33 : f32 to vector<8x768xf32>
    %59 = arith.minimumf %57, %58 : vector<8x768xf32>
    %60 = math.exp %59 : vector<8x768xf32>
    %cst_34 = arith.constant 2.000000e+01 : f32
    %61 = vector.broadcast %cst_34 : f32 to vector<8x768xf32>
    %62 = arith.cmpf ogt, %57, %61 : vector<8x768xf32>
    %cst_35 = arith.constant -1.500000e+01 : f32
    %63 = vector.broadcast %cst_35 : f32 to vector<8x768xf32>
    %64 = arith.cmpf olt, %57, %63 : vector<8x768xf32>
    %cst_36 = arith.constant 1.000000e+00 : f32
    %65 = vector.broadcast %cst_36 : f32 to vector<8x768xf32>
    %66 = arith.addf %65, %60 : vector<8x768xf32>
    %67 = math.log %66 : vector<8x768xf32>
    %68 = arith.select %64, %60, %67 : vector<8x768xi1>, vector<8x768xf32>
    %69 = arith.select %62, %57, %68 : vector<8x768xi1>, vector<8x768xf32>
    %c0_37 = arith.constant 0 : index
    %c0_38 = arith.constant 0 : index
    %70 = vector.load %arg2[%c0_37, %c0_38] : memref<8x768xf32, #tpu.memory_space<vmem>>, vector<8x768xf32>
    %71 = arith.subf %70, %38 : vector<8x768xf32>
    %72 = tpu.reciprocal %69 : vector<8x768xf32> -> vector<8x768xf32>
    %73 = arith.mulf %71, %71 : vector<8x768xf32>
    %74 = arith.mulf %73, %72 : vector<8x768xf32>
    %cst_39 = arith.constant dense<0.000000e+00> : vector<8xf32>
    %75 = vector.multi_reduction <add>, %74, %cst_39 [1] : vector<8x768xf32> to vector<8xf32>
    %76 = vector.shape_cast %75 : vector<8xf32> to vector<8x1xf32>
    %77 = math.log %69 : vector<8x768xf32>
    %cst_40 = arith.constant dense<0.000000e+00> : vector<8xf32>
    %78 = vector.multi_reduction <add>, %77, %cst_40 [1] : vector<8x768xf32> to vector<8xf32>
    %79 = vector.shape_cast %78 : vector<8xf32> to vector<8x1xf32>
    %80 = arith.addf %76, %79 : vector<8x1xf32>
    %cst_41 = arith.constant 1411.48962 : f32
    %81 = vector.broadcast %cst_41 : f32 to vector<8x1xf32>
    %82 = arith.addf %80, %81 : vector<8x1xf32>
    %cst_42 = arith.constant -5.000000e-01 : f32
    %83 = vector.broadcast %cst_42 : f32 to vector<8x1xf32>
    %84 = arith.mulf %83, %82 : vector<8x1xf32>
    %c0_43 = arith.constant 0 : index
    %c0_44 = arith.constant 0 : index
    %85 = vector.load %arg13[%c0_43, %c0_44] : memref<8x1xf32, #tpu.memory_space<vmem>>, vector<8x1xf32>
    tpu.vector_store %arg13[%c0_43, %c0_44], %84 {strides = array<i32>} : memref<8x1xf32, #tpu.memory_space<vmem>>, vector<8x1xf32>,
    return
  }
  func.func @transform_0(%arg0: i32) -> (i32, i32) {
    %c0_i32 = arith.constant 0 : i32
    %c0_i32_0 = arith.constant 0 : i32
    %c0_i32_1 = arith.constant 0 : i32
    return %c0_i32, %c0_i32_0 : i32, i32
  }
  func.func @transform_1(%arg0: i32) -> (i32, i32) {
    %c0_i32 = arith.constant 0 : i32
    %c0_i32_0 = arith.constant 0 : i32
    %c0_i32_1 = arith.constant 0 : i32
    return %c0_i32, %c0_i32_0 : i32, i32
  }
  func.func @transform_2(%arg0: i32) -> (i32, i32) {
    %c0_i32 = arith.constant 0 : i32
    %c0_i32_0 = arith.constant 0 : i32
    %c0_i32_1 = arith.constant 0 : i32
    return %c0_i32, %c0_i32_0 : i32, i32
  }
  func.func @transform_3(%arg0: i32) -> (i32, i32) {
    %c0_i32 = arith.constant 0 : i32
    %c0_i32_0 = arith.constant 0 : i32
    %c0_i32_1 = arith.constant 0 : i32
    return %c0_i32, %c0_i32_0 : i32, i32
  }
  func.func @transform_4(%arg0: i32) -> (i32, i32) {
    %c0_i32 = arith.constant 0 : i32
    %c0_i32_0 = arith.constant 0 : i32
    %c0_i32_1 = arith.constant 0 : i32
    return %c0_i32, %c0_i32_0 : i32, i32
  }
  func.func @transform_5(%arg0: i32) -> (i32, i32) {
    %c0_i32 = arith.constant 0 : i32
    %c0_i32_0 = arith.constant 0 : i32
    %c0_i32_1 = arith.constant 0 : i32
    return %c0_i32, %c0_i32_0 : i32, i32
  }
  func.func @transform_6(%arg0: i32) -> (i32, i32) {
    %c0_i32 = arith.constant 0 : i32
    %c0_i32_0 = arith.constant 0 : i32
    %c0_i32_1 = arith.constant 0 : i32
    return %c0_i32, %c0_i32_0 : i32, i32
  }
  func.func @transform_7(%arg0: i32) -> (i32, i32) {
    %c0_i32 = arith.constant 0 : i32
    %c0_i32_0 = arith.constant 0 : i32
    %c0_i32_1 = arith.constant 0 : i32
    return %c0_i32, %c0_i32_0 : i32, i32
  }
  func.func @transform_8(%arg0: i32) -> (i32, i32) {
    %c0_i32 = arith.constant 0 : i32
    %c0_i32_0 = arith.constant 0 : i32
    %c0_i32_1 = arith.constant 0 : i32
    return %c0_i32, %c0_i32_0 : i32, i32
  }
  func.func @transform_9(%arg0: i32) -> (i32, i32) {
    %c0_i32 = arith.constant 0 : i32
    %c0_i32_0 = arith.constant 0 : i32
    %c0_i32_1 = arith.constant 0 : i32
    return %c0_i32, %c0_i32_0 : i32, i32
  }
  func.func @transform_10(%arg0: i32) -> (i32, i32) {
    %c0_i32 = arith.constant 0 : i32
    %c0_i32_0 = arith.constant 0 : i32
    %c0_i32_1 = arith.constant 0 : i32
    return %c0_i32, %c0_i32_0 : i32, i32
  }
  func.func @transform_11(%arg0: i32) -> (i32, i32) {
    %c0_i32 = arith.constant 0 : i32
    %c0_i32_0 = arith.constant 0 : i32
    %c0_i32_1 = arith.constant 0 : i32
    return %c0_i32, %c0_i32_0 : i32, i32
  }
  func.func @transform_12(%arg0: i32) -> (i32, i32) {
    %c0_i32 = arith.constant 0 : i32
    %c0_i32_0 = arith.constant 0 : i32
    return %arg0, %c0_i32 : i32, i32
  }
}

</mosaic_0001>

<bundles_post_ra>
// kernel: tile.14
= control target key start
LH: loop header
LB: loop body
LE: loop exit
PB: predicated region body
PF: predicated region fallthrough
CT: control target
= control target key end

     0   :  { %s508_s0 = inlined_call_operand.vmem [shape: f32[4,2,896], index: 0, kind: input, shape index: {}]   ;;  %s509_s1 = inlined_call_operand.vmem [shape: f32[8,896], index: 1, kind: output, shape index: {}]  }
   0x1   :  { %v276_v0 = vld [vmem:[%s508_s0 + $0x36] sm:$0x3]  ;;  %v277_v1 = vld [vmem:[%s508_s0 + $0x34] sm:$0x3]  ;;  %v278_v2 = vld [vmem:[%s508_s0 + $0x32] sm:$0x3] }
   0x2   :  { %8 = vst [vmem:[#allocation0 + $0xd8] sm:$0x3] %v276_v0  ;;  %13 = vst [vmem:[#allocation0 + $0xd0] sm:$0x3] %v277_v1  ;;  %v279_v3 = vld [vmem:[%s508_s0 + $0x30] sm:$0x3] }
   0x3   :  { %18 = vst [vmem:[#allocation0 + $0xc8] sm:$0x3] %v278_v2  ;;  %v280_v4 = vld [vmem:[%s508_s0 + $0x2e] sm:$0x3]  ;;  %v281_v5 = vld [vmem:[%s508_s0 + $0x2c] sm:$0x3] }
   0x4   :  { %23 = vst [vmem:[#allocation0 + $0xc0] sm:$0x3] %v279_v3  ;;  %28 = vst [vmem:[#allocation0 + $0xb8] sm:$0x3] %v280_v4  ;;  %v282_v6 = vld [vmem:[%s508_s0 + $0x2a] sm:$0x3] }
   0x5   :  { %33 = vst [vmem:[#allocation0 + $0xb0] sm:$0x3] %v281_v5  ;;  %v283_v7 = vld [vmem:[%s508_s0 + $0x28] sm:$0x3]  ;;  %v284_v8 = vld [vmem:[%s508_s0 + $0x26] sm:$0x3] }
   0x6   :  { %38 = vst [vmem:[#allocation0 + $0xa8] sm:$0x3] %v282_v6  ;;  %43 = vst [vmem:[#allocation0 + $0xa0] sm:$0x3] %v283_v7  ;;  %v285_v9 = vld [vmem:[%s508_s0 + $0x24] sm:$0x3] }
   0x7   :  { %48 = vst [vmem:[#allocation0 + $0x98] sm:$0x3] %v284_v8  ;;  %v286_v10 = vld [vmem:[%s508_s0 + $0x22] sm:$0x3]  ;;  %v287_v11 = vld [vmem:[%s508_s0 + $0x20] sm:$0x3] }
   0x8   :  { %53 = vst [vmem:[#allocation0 + $0x90] sm:$0x3] %v285_v9  ;;  %58 = vst [vmem:[#allocation0 + $0x88] sm:$0x3] %v286_v10  ;;  %v288_v12 = vld [vmem:[%s508_s0 + $0x1e] sm:$0x3] }
   0x9   :  { %63 = vst [vmem:[#allocation0 + $0x80] sm:$0x3] %v287_v11  ;;  %v289_v13 = vld [vmem:[%s508_s0 + $0x1c] sm:$0x3]  ;;  %v290_v14 = vld [vmem:[%s508_s0 + $0x1a] sm:$0x3] }
   0xa   :  { %68 = vst [vmem:[#allocation0 + $0x78] sm:$0x3] %v288_v12  ;;  %73 = vst [vmem:[#allocation0 + $0x70] sm:$0x3] %v289_v13  ;;  %v291_v15 = vld [vmem:[%s508_s0 + $0x18] sm:$0x3] }
   0xb   :  { %78 = vst [vmem:[#allocation0 + $0x68] sm:$0x3] %v290_v14  ;;  %v292_v16 = vld [vmem:[%s508_s0 + $0x16] sm:$0x3]  ;;  %v293_v17 = vld [vmem:[%s508_s0 + $0x14] sm:$0x3] }
   0xc   :  { %83 = vst [vmem:[#allocation0 + $0x60] sm:$0x3] %v291_v15  ;;  %88 = vst [vmem:[#allocation0 + $0x58] sm:$0x3] %v292_v16  ;;  %v294_v18 = vld [vmem:[%s508_s0 + $0x12] sm:$0x3] }
   0xd   :  { %93 = vst [vmem:[#allocation0 + $0x50] sm:$0x3] %v293_v17  ;;  %v295_v19 = vld [vmem:[%s508_s0 + $0x10] sm:$0x3]  ;;  %v296_v20 = vld [vmem:[%s508_s0 + $0xe] sm:$0x3] }
   0xe   :  { %98 = vst [vmem:[#allocation0 + $0x48] sm:$0x3] %v294_v18  ;;  %103 = vst [vmem:[#allocation0 + $0x40] sm:$0x3] %v295_v19  ;;  %v297_v21 = vld [vmem:[%s508_s0 + $0xc] sm:$0x3] }
   0xf   :  { %108 = vst [vmem:[#allocation0 + $0x38] sm:$0x3] %v296_v20  ;;  %v298_v22 = vld [vmem:[%s508_s0 + $0xa] sm:$0x3]  ;;  %v299_v23 = vld [vmem:[%s508_s0 + $0x8] sm:$0x3] }
  0x10   :  { %113 = vst [vmem:[#allocation0 + $0x30] sm:$0x3] %v297_v21  ;;  %118 = vst [vmem:[#allocation0 + $0x28] sm:$0x3] %v298_v22  ;;  %v300_v24 = vld [vmem:[%s508_s0 + $0x6] sm:$0x3] }
  0x11   :  { %123 = vst [vmem:[#allocation0 + $0x20] sm:$0x3] %v299_v23  ;;  %v301_v25 = vld [vmem:[%s508_s0 + $0x4] sm:$0x3]  ;;  %v302_v26 = vld [vmem:[%s508_s0 + $0x2] sm:$0x3] }
  0x12   :  { %128 = vst [vmem:[#allocation0 + $0x18] sm:$0x3] %v300_v24  ;;  %133 = vst [vmem:[#allocation0 + $0x10] sm:$0x3] %v301_v25  ;;  %v138_v27 = vld [vmem:[%s508_s0] sm:$0x3] }
  0x13   :  { %137 = vst [vmem:[#allocation0 + $0x8] sm:$0x3] %v302_v26  ;;  %v227_v28 = vld [vmem:[#allocation0 + $0xb0] sm:$0x3]   ;;  %v231_v29 = vld [vmem:[#allocation0 + $0xb8] sm:$0x3]  }
  0x14   :  { %139 = vst [vmem:[#allocation0] sm:$0x3] %v138_v27  ;;  %v215_v30 = vld [vmem:[#allocation0 + $0x98] sm:$0x3]   ;;  %v219_v31 = vld [vmem:[#allocation0 + $0xa0] sm:$0x3]  }
  0x15   :  { %v223_v32 = vld [vmem:[#allocation0 + $0xa8] sm:$0x3]   ;;  %324 = vst [vmem:[%s509_s1 + $0xe] sm:$0x3] %v227_v28   ;;  %325 = vst [vmem:[%s509_s1 + $0x16] sm:$0x3] %v231_v29  }
  0x16   :  { %v203_v33 = vld [vmem:[#allocation0 + $0x80] sm:$0x3]   ;;  %v207_v34 = vld [vmem:[#allocation0 + $0x88] sm:$0x3]   ;;  %v211_v35 = vld [vmem:[#allocation0 + $0x90] sm:$0x3]  }
  0x17   :  { %321 = vst [vmem:[%s509_s1 + $0x2c] sm:$0x3] %v215_v30   ;;  %322 = vst [vmem:[%s509_s1 + $0x34] sm:$0x3] %v219_v31   ;;  %v191_v36 = vld [vmem:[#allocation0 + $0x68] sm:$0x3]  }
  0x18   :  { %323 = vst [vmem:[%s509_s1 + $0x6] sm:$0x3] %v223_v32   ;;  %v195_v37 = vld [vmem:[#allocation0 + $0x70] sm:$0x3]   ;;  %v199_v38 = vld [vmem:[#allocation0 + $0x78] sm:$0x3]  }
  0x19   :  { %318 = vst [vmem:[%s509_s1 + $0x14] sm:$0x3] %v203_v33   ;;  %319 = vst [vmem:[%s509_s1 + $0x1c] sm:$0x3] %v207_v34   ;;  %v179_v39 = vld [vmem:[#allocation0 + $0x50] sm:$0x3]  }
  0x1a   :  { %320 = vst [vmem:[%s509_s1 + $0x24] sm:$0x3] %v211_v35   ;;  %v183_v40 = vld [vmem:[#allocation0 + $0x58] sm:$0x3]   ;;  %v187_v41 = vld [vmem:[#allocation0 + $0x60] sm:$0x3]  }
  0x1b   :  { %315 = vst [vmem:[%s509_s1 + $0x32] sm:$0x3] %v191_v36   ;;  %316 = vst [vmem:[%s509_s1 + $0x4] sm:$0x3] %v195_v37   ;;  %v167_v42 = vld [vmem:[#allocation0 + $0x38] sm:$0x3]  }
  0x1c   :  { %317 = vst [vmem:[%s509_s1 + $0xc] sm:$0x3] %v199_v38   ;;  %v171_v43 = vld [vmem:[#allocation0 + $0x40] sm:$0x3]   ;;  %v175_v44 = vld [vmem:[#allocation0 + $0x48] sm:$0x3]  }
  0x1d   :  { %312 = vst [vmem:[%s509_s1 + $0x1a] sm:$0x3] %v179_v39   ;;  %313 = vst [vmem:[%s509_s1 + $0x22] sm:$0x3] %v183_v40   ;;  %v155_v45 = vld [vmem:[#allocation0 + $0x20] sm:$0x3]  }
  0x1e   :  { %314 = vst [vmem:[%s509_s1 + $0x2a] sm:$0x3] %v187_v41   ;;  %v159_v46 = vld [vmem:[#allocation0 + $0x28] sm:$0x3]   ;;  %v163_v47 = vld [vmem:[#allocation0 + $0x30] sm:$0x3]  }
  0x1f   :  { %309 = vst [vmem:[%s509_s1 + $0x2] sm:$0x3] %v167_v42   ;;  %310 = vst [vmem:[%s509_s1 + $0xa] sm:$0x3] %v171_v43   ;;  %v143_v48 = vld [vmem:[#allocation0 + $0x8] sm:$0x3]  }
  0x20   :  { %311 = vst [vmem:[%s509_s1 + $0x12] sm:$0x3] %v175_v44   ;;  %v147_v49 = vld [vmem:[#allocation0 + $0x10] sm:$0x3]   ;;  %v151_v50 = vld [vmem:[#allocation0 + $0x18] sm:$0x3]  }
  0x21   :  { %306 = vst [vmem:[%s509_s1 + $0x20] sm:$0x3] %v155_v45   ;;  %307 = vst [vmem:[%s509_s1 + $0x28] sm:$0x3] %v159_v46   ;;  %v140_v51 = vld [vmem:[#allocation0] sm:$0x3]  }
  0x22   :  { %308 = vst [vmem:[%s509_s1 + $0x30] sm:$0x3] %v163_v47   ;;  %303 = vst [vmem:[%s509_s1 + $0x8] sm:$0x3] %v143_v48   ;;  %v235_v52 = vld [vmem:[#allocation0 + $0xc0] sm:$0x3]  }
  0x23   :  { %304 = vst [vmem:[%s509_s1 + $0x10] sm:$0x3] %v147_v49   ;;  %305 = vst [vmem:[%s509_s1 + $0x18] sm:$0x3] %v151_v50   ;;  %v239_v53 = vld [vmem:[#allocation0 + $0xc8] sm:$0x3]  }
  0x24   :  { %141 = vst [vmem:[%s509_s1] sm:$0x3] %v140_v51   ;;  %326 = vst [vmem:[%s509_s1 + $0x1e] sm:$0x3] %v235_v52   ;;  %v243_v54 = vld [vmem:[#allocation0 + $0xd0] sm:$0x3]  }
  0x25   :  { %327 = vst [vmem:[%s509_s1 + $0x26] sm:$0x3] %v239_v53   ;;  %v247_v55 = vld [vmem:[#allocation0 + $0xd8] sm:$0x3]   ;;  %328 = vst [vmem:[%s509_s1 + $0x2e] sm:$0x3] %v243_v54  }
  0x26   :  { %329 = vst [vmem:[%s509_s1 + $0x36] sm:$0x3] %v247_v55  }

// kernel: tile.19
= control target key start
LH: loop header
LB: loop body
LE: loop exit
PB: predicated region body
PF: predicated region fallthrough
CT: control target
= control target key end

     0   :  { %s436_s0 = inlined_call_operand.vmem [shape: f32[4,2,768], index: 0, kind: input, shape index: {}]   ;;  %s437_s1 = inlined_call_operand.vmem [shape: f32[8,768], index: 1, kind: output, shape index: {}]  }
   0x1   :  { %v236_v0 = vld [vmem:[%s436_s0 + $0x2e] sm:$0x3]  ;;  %v237_v1 = vld [vmem:[%s436_s0 + $0x2c] sm:$0x3]  ;;  %v238_v2 = vld [vmem:[%s436_s0 + $0x2a] sm:$0x3] }
   0x2   :  { %8 = vst [vmem:[#allocation0 + $0xb8] sm:$0x3] %v236_v0  ;;  %13 = vst [vmem:[#allocation0 + $0xb0] sm:$0x3] %v237_v1  ;;  %v239_v3 = vld [vmem:[%s436_s0 + $0x28] sm:$0x3] }
   0x3   :  { %18 = vst [vmem:[#allocation0 + $0xa8] sm:$0x3] %v238_v2  ;;  %v240_v4 = vld [vmem:[%s436_s0 + $0x26] sm:$0x3]  ;;  %v241_v5 = vld [vmem:[%s436_s0 + $0x24] sm:$0x3] }
   0x4   :  { %23 = vst [vmem:[#allocation0 + $0xa0] sm:$0x3] %v239_v3  ;;  %28 = vst [vmem:[#allocation0 + $0x98] sm:$0x3] %v240_v4  ;;  %v242_v6 = vld [vmem:[%s436_s0 + $0x22] sm:$0x3] }
   0x5   :  { %33 = vst [vmem:[#allocation0 + $0x90] sm:$0x3] %v241_v5  ;;  %v243_v7 = vld [vmem:[%s436_s0 + $0x20] sm:$0x3]  ;;  %v244_v8 = vld [vmem:[%s436_s0 + $0x1e] sm:$0x3] }
   0x6   :  { %38 = vst [vmem:[#allocation0 + $0x88] sm:$0x3] %v242_v6  ;;  %43 = vst [vmem:[#allocation0 + $0x80] sm:$0x3] %v243_v7  ;;  %v245_v9 = vld [vmem:[%s436_s0 + $0x1c] sm:$0x3] }
   0x7   :  { %48 = vst [vmem:[#allocation0 + $0x78] sm:$0x3] %v244_v8  ;;  %v246_v10 = vld [vmem:[%s436_s0 + $0x1a] sm:$0x3]  ;;  %v247_v11 = vld [vmem:[%s436_s0 + $0x18] sm:$0x3] }
   0x8   :  { %53 = vst [vmem:[#allocation0 + $0x70] sm:$0x3] %v245_v9  ;;  %58 = vst [vmem:[#allocation0 + $0x68] sm:$0x3] %v246_v10  ;;  %v248_v12 = vld [vmem:[%s436_s0 + $0x16] sm:$0x3] }
   0x9   :  { %63 = vst [vmem:[#allocation0 + $0x60] sm:$0x3] %v247_v11  ;;  %v249_v13 = vld [vmem:[%s436_s0 + $0x14] sm:$0x3]  ;;  %v250_v14 = vld [vmem:[%s436_s0 + $0x12] sm:$0x3] }
   0xa   :  { %68 = vst [vmem:[#allocation0 + $0x58] sm:$0x3] %v248_v12  ;;  %73 = vst [vmem:[#allocation0 + $0x50] sm:$0x3] %v249_v13  ;;  %v251_v15 = vld [vmem:[%s436_s0 + $0x10] sm:$0x3] }
   0xb   :  { %78 = vst [vmem:[#allocation0 + $0x48] sm:$0x3] %v250_v14  ;;  %v252_v16 = vld [vmem:[%s436_s0 + $0xe] sm:$0x3]  ;;  %v253_v17 = vld [vmem:[%s436_s0 + $0xc] sm:$0x3] }
   0xc   :  { %83 = vst [vmem:[#allocation0 + $0x40] sm:$0x3] %v251_v15  ;;  %88 = vst [vmem:[#allocation0 + $0x38] sm:$0x3] %v252_v16  ;;  %v254_v18 = vld [vmem:[%s436_s0 + $0xa] sm:$0x3] }
   0xd   :  { %93 = vst [vmem:[#allocation0 + $0x30] sm:$0x3] %v253_v17  ;;  %v255_v19 = vld [vmem:[%s436_s0 + $0x8] sm:$0x3]  ;;  %v256_v20 = vld [vmem:[%s436_s0 + $0x6] sm:$0x3] }
   0xe   :  { %98 = vst [vmem:[#allocation0 + $0x28] sm:$0x3] %v254_v18  ;;  %103 = vst [vmem:[#allocation0 + $0x20] sm:$0x3] %v255_v19  ;;  %v257_v21 = vld [vmem:[%s436_s0 + $0x4] sm:$0x3] }
   0xf   :  { %108 = vst [vmem:[#allocation0 + $0x18] sm:$0x3] %v256_v20  ;;  %v258_v22 = vld [vmem:[%s436_s0 + $0x2] sm:$0x3]  ;;  %v118_v23 = vld [vmem:[%s436_s0] sm:$0x3] }
  0x10   :  { %113 = vst [vmem:[#allocation0 + $0x10] sm:$0x3] %v257_v21  ;;  %117 = vst [vmem:[#allocation0 + $0x8] sm:$0x3] %v258_v22  ;;  %v203_v24 = vld [vmem:[#allocation0 + $0xa8] sm:$0x3]  }
  0x11   :  { %119 = vst [vmem:[#allocation0] sm:$0x3] %v118_v23  ;;  %v207_v25 = vld [vmem:[#allocation0 + $0xb0] sm:$0x3]   ;;  %v211_v26 = vld [vmem:[#allocation0 + $0xb8] sm:$0x3]  }
  0x12   :  { %v191_v27 = vld [vmem:[#allocation0 + $0x90] sm:$0x3]   ;;  %v195_v28 = vld [vmem:[#allocation0 + $0x98] sm:$0x3]   ;;  %v199_v29 = vld [vmem:[#allocation0 + $0xa0] sm:$0x3]  }
  0x13   :  { %279 = vst [vmem:[%s437_s1 + $0x1e] sm:$0x3] %v203_v24   ;;  %280 = vst [vmem:[%s437_s1 + $0x26] sm:$0x3] %v207_v25   ;;  %v179_v30 = vld [vmem:[#allocation0 + $0x78] sm:$0x3]  }
  0x14   :  { %281 = vst [vmem:[%s437_s1 + $0x2e] sm:$0x3] %v211_v26   ;;  %v183_v31 = vld [vmem:[#allocation0 + $0x80] sm:$0x3]   ;;  %v187_v32 = vld [vmem:[#allocation0 + $0x88] sm:$0x3]  }
  0x15   :  { %276 = vst [vmem:[%s437_s1 + $0x6] sm:$0x3] %v191_v27   ;;  %277 = vst [vmem:[%s437_s1 + $0xe] sm:$0x3] %v195_v28   ;;  %v167_v33 = vld [vmem:[#allocation0 + $0x60] sm:$0x3]  }
  0x16   :  { %278 = vst [vmem:[%s437_s1 + $0x16] sm:$0x3] %v199_v29   ;;  %v171_v34 = vld [vmem:[#allocation0 + $0x68] sm:$0x3]   ;;  %v175_v35 = vld [vmem:[#allocation0 + $0x70] sm:$0x3]  }
  0x17   :  { %273 = vst [vmem:[%s437_s1 + $0x1c] sm:$0x3] %v179_v30   ;;  %274 = vst [vmem:[%s437_s1 + $0x24] sm:$0x3] %v183_v31   ;;  %v155_v36 = vld [vmem:[#allocation0 + $0x48] sm:$0x3]  }
  0x18   :  { %275 = vst [vmem:[%s437_s1 + $0x2c] sm:$0x3] %v187_v32   ;;  %v159_v37 = vld [vmem:[#allocation0 + $0x50] sm:$0x3]   ;;  %v163_v38 = vld [vmem:[#allocation0 + $0x58] sm:$0x3]  }
  0x19   :  { %270 = vst [vmem:[%s437_s1 + $0x4] sm:$0x3] %v167_v33   ;;  %271 = vst [vmem:[%s437_s1 + $0xc] sm:$0x3] %v171_v34   ;;  %v143_v39 = vld [vmem:[#allocation0 + $0x30] sm:$0x3]  }
  0x1a   :  { %272 = vst [vmem:[%s437_s1 + $0x14] sm:$0x3] %v175_v35   ;;  %v147_v40 = vld [vmem:[#allocation0 + $0x38] sm:$0x3]   ;;  %v151_v41 = vld [vmem:[#allocation0 + $0x40] sm:$0x3]  }
  0x1b   :  { %267 = vst [vmem:[%s437_s1 + $0x1a] sm:$0x3] %v155_v36   ;;  %268 = vst [vmem:[%s437_s1 + $0x22] sm:$0x3] %v159_v37   ;;  %v131_v42 = vld [vmem:[#allocation0 + $0x18] sm:$0x3]  }
  0x1c   :  { %269 = vst [vmem:[%s437_s1 + $0x2a] sm:$0x3] %v163_v38   ;;  %v135_v43 = vld [vmem:[#allocation0 + $0x20] sm:$0x3]   ;;  %v139_v44 = vld [vmem:[#allocation0 + $0x28] sm:$0x3]  }
  0x1d   :  { %264 = vst [vmem:[%s437_s1 + $0x2] sm:$0x3] %v143_v39   ;;  %265 = vst [vmem:[%s437_s1 + $0xa] sm:$0x3] %v147_v40   ;;  %v120_v45 = vld [vmem:[#allocation0] sm:$0x3]  }
  0x1e   :  { %266 = vst [vmem:[%s437_s1 + $0x12] sm:$0x3] %v151_v41   ;;  %v123_v46 = vld [vmem:[#allocation0 + $0x8] sm:$0x3]   ;;  %v127_v47 = vld [vmem:[#allocation0 + $0x10] sm:$0x3]  }
  0x1f   :  { %261 = vst [vmem:[%s437_s1 + $0x18] sm:$0x3] %v131_v42   ;;  %262 = vst [vmem:[%s437_s1 + $0x20] sm:$0x3] %v135_v43  }
  0x20   :  { %263 = vst [vmem:[%s437_s1 + $0x28] sm:$0x3] %v139_v44   ;;  %121 = vst [vmem:[%s437_s1] sm:$0x3] %v120_v45  }
  0x21   :  { %259 = vst [vmem:[%s437_s1 + $0x8] sm:$0x3] %v123_v46   ;;  %260 = vst [vmem:[%s437_s1 + $0x10] sm:$0x3] %v127_v47  }

// kernel: gaussian_approx_forward.1
= control target key start
LH: loop header
LB: loop body
LE: loop exit
PB: predicated region body
PF: predicated region fallthrough
CT: control target
= control target key end

     0   :  { %v15781_v0 = vmov 0   ;;  %vm15783_vm0 = vmmov 0   ;;  %vm11741_vm13 = vcmask 7168   ;;  %s20612_s2 = inlined_call_operand.vmem [shape: f32[8,1], index: 2, kind: input, shape index: {}]   ;;  %s20613_s4 = inlined_call_operand.vmem [shape: bf16[896,896], index: 4, kind: input, shape index: {}]   ;;  %s20614_s3 = inlined_call_operand.vmem [shape: f32[1,896], index: 3, kind: input, shape index: {}]   ;;  %s20615_s0 = inlined_call_operand.vmem [shape: f32[8,896], index: 0, kind: input, shape index: {}]   ;;  %s20616_s6 = inlined_call_operand.vmem [shape: bf16[896,768], index: 6, kind: input, shape index: {}]   ;;  %s20617_s5 = inlined_call_operand.vmem [shape: f32[1,896], index: 5, kind: input, shape index: {}]   ;;  %s20618_s8 = inlined_call_operand.vmem [shape: bf16[896,896], index: 8, kind: input, shape index: {}]   ;;  %s20619_s10 = inlined_call_operand.vmem [shape: bf16[896,768], index: 10, kind: input, shape index: {}]   ;;  %s20620_s9 = inlined_call_operand.vmem [shape: f32[1,896], index: 9, kind: input, shape index: {}]   ;;  %s20621_s11 = inlined_call_operand.vmem [shape: f32[1,768], index: 11, kind: input, shape index: {}]   ;;  %s20622_s7 = inlined_call_operand.vmem [shape: f32[1,768], index: 7, kind: input, shape index: {}]   ;;  %s20623_s1 = inlined_call_operand.vmem [shape: f32[8,768], index: 1, kind: input, shape index: {}]   ;;  %s20624_s12 = inlined_call_operand.vmem [shape: f32[8,1], index: 12, kind: output, shape index: {}]  }
   0x1   :  { %13560 = vset.pattern.permute.xlu0 %v15781_v0  ;;  %v42_v1 = vld [vmem:[%s20612_s2] sm:$0xff]  ;;  %v13563_v3 = vld [vmem:[%s20613_s4 + $0x38c] ss:$28 sps:$4 sm:$0xff]   ;;  %v13567_v6 = vld [vmem:[%s20613_s4 + $0x3c] ss:$28 sps:$4 sm:$0xff]  }
   0x2   :  { %57 = vperm.xlu0 %13560, %v42_v1   ;;  %v13561_v2 = vld [vmem:[%s20613_s4 + $0x4] ss:$28 sps:$4 sm:$0xff]   ;;  %2858 = vmatprep.subr.bf16.mxu1 %v13563_v3  ;;  %v13571_v8 = vld [vmem:[%s20613_s4 + $0x38] ss:$28 sps:$4 sm:$0xff]   ;;  %v13577_v12 = vld [vmem:[%s20613_s4 + $0x70] ss:$28 sps:$4 sm:$0xff]  }
   0x3   :  { %v13565_v4 = vld [vmem:[%s20613_s4] ss:$28 sps:$4 sm:$0xff]   ;;  %v13566_v5 = vld [vmem:[%s20613_s4 + $0x388] ss:$28 sps:$4 sm:$0xff]   ;;  %2653 = vmatprep.subr.bf16.mxu0 %v13561_v2  ;;  %v13573_v10 = vld [vmem:[%s20613_s4 + $0x74] ss:$28 sps:$4 sm:$0xff]  }
   0x4   :  { %2654 = vmatpush1.bf16.msra.mxu0 %v13565_v4  ;;  %v13569_v7 = vld [vmem:[%s20613_s4 + $0x3c4] ss:$28 sps:$4 sm:$0xff]   ;;  %2859 = vmatpush1.bf16.msra.mxu1 %v13566_v5  ;;  %v13575_v11 = vld [vmem:[%s20613_s4 + $0x3fc] ss:$28 sps:$4 sm:$0xff]   ;;  %v13579_v14 = vld [vmem:[%s20613_s4 + $0xac] ss:$28 sps:$4 sm:$0xff]   ;;  %v61_v5 = vlaneseq }
   0x5   :  { %2655 = vmatprep.subr.bf16.mxu0 %v13567_v6  ;;  %v13572_v9 = vld [vmem:[%s20613_s4 + $0x3c0] ss:$28 sps:$4 sm:$0xff]   ;;  %2860 = vmatprep.subr.bf16.mxu1 %v13569_v7  ;;  %v13578_v13 = vld [vmem:[%s20613_s4 + $0x3f8] ss:$28 sps:$4 sm:$0xff]   ;;  %v13583_v16 = vld [vmem:[%s20613_s4 + $0xa8] ss:$28 sps:$4 sm:$0xff]  }
   0x6   :  { %v13581_v15 = vld [vmem:[%s20613_s4 + $0x434] ss:$28 sps:$4 sm:$0xff]   ;;  %v13585_v18 = vld [vmem:[%s20613_s4 + $0xe4] ss:$28 sps:$4 sm:$0xff]   ;;  %v13587_v19 = vld [vmem:[%s20613_s4 + $0x46c] ss:$28 sps:$4 sm:$0xff]  }
   0x7   :  { %v13584_v17 = vld [vmem:[%s20613_s4 + $0x430] ss:$28 sps:$4 sm:$0xff]   ;;  %v13589_v20 = vld [vmem:[%s20613_s4 + $0xe0] ss:$28 sps:$4 sm:$0xff]   ;;  %v13590_v21 = vld [vmem:[%s20613_s4 + $0x468] ss:$28 sps:$4 sm:$0xff]  }
   0x8   :  { %2656 = vmatpush1.bf16.msra.mxu0 %v13571_v8  ;;  %2861 = vmatpush1.bf16.msra.mxu1 %v13572_v9  ;;  %v13591_v22 = vld [vmem:[%s20613_s4 + $0x11c] ss:$28 sps:$4 sm:$0xff]   ;;  %v13593_v23 = vld [vmem:[%s20613_s4 + $0x4a4] ss:$28 sps:$4 sm:$0xff]   ;;  %v13597_v26 = vld [vmem:[%s20613_s4 + $0x154] ss:$28 sps:$4 sm:$0xff]  }
   0x9   :  { %2657 = vmatprep.subr.bf16.mxu0 %v13573_v10  ;;  %2862 = vmatprep.subr.bf16.mxu1 %v13575_v11  ;;  %v13595_v24 = vld [vmem:[%s20613_s4 + $0x118] ss:$28 sps:$4 sm:$0xff]   ;;  %v13596_v25 = vld [vmem:[%s20613_s4 + $0x4a0] ss:$28 sps:$4 sm:$0xff]   ;;  %v13601_v28 = vld [vmem:[%s20613_s4 + $0x150] ss:$28 sps:$4 sm:$0xff]  }
   0xa   :  { %v13599_v27 = vld [vmem:[%s20613_s4 + $0x4dc] ss:$28 sps:$4 sm:$0xff]   ;;  %v13603_v30 = vld [vmem:[%s20613_s4 + $0x18c] ss:$28 sps:$4 sm:$0xff]   ;;  %v13605_v31 = vld [vmem:[%s20613_s4 + $0x514] ss:$28 sps:$4 sm:$0xff]  }
   0xb   :  { %v13602_v29 = vld [vmem:[%s20613_s4 + $0x4d8] ss:$28 sps:$4 sm:$0xff]   ;;  %v13607_v32 = vld [vmem:[%s20613_s4 + $0x188] ss:$28 sps:$4 sm:$0xff]   ;;  %v13608_v33 = vld [vmem:[%s20613_s4 + $0x510] ss:$28 sps:$4 sm:$0xff]  }
   0xc   :  { %2658 = vmatpush1.bf16.msra.mxu0 %v13577_v12  ;;  %2863 = vmatpush1.bf16.msra.mxu1 %v13578_v13  ;;  %v13609_v34 = vld [vmem:[%s20613_s4 + $0x1c4] ss:$28 sps:$4 sm:$0xff]   ;;  %v13611_v35 = vld [vmem:[%s20613_s4 + $0x54c] ss:$28 sps:$4 sm:$0xff]   ;;  %v13615_v38 = vld [vmem:[%s20613_s4 + $0x1fc] ss:$28 sps:$4 sm:$0xff]  }
   0xd   :  { %2659 = vmatprep.subr.bf16.mxu0 %v13579_v14  ;;  %2864 = vmatprep.subr.bf16.mxu1 %v13581_v15  ;;  %v13613_v36 = vld [vmem:[%s20613_s4 + $0x1c0] ss:$28 sps:$4 sm:$0xff]   ;;  %v13614_v37 = vld [vmem:[%s20613_s4 + $0x548] ss:$28 sps:$4 sm:$0xff]   ;;  %v13619_v40 = vld [vmem:[%s20613_s4 + $0x1f8] ss:$28 sps:$4 sm:$0xff]  }
   0xe   :  { %v13617_v39 = vld [vmem:[%s20613_s4 + $0x584] ss:$28 sps:$4 sm:$0xff]   ;;  %v13621_v42 = vld [vmem:[%s20613_s4 + $0x234] ss:$28 sps:$4 sm:$0xff]   ;;  %v13623_v43 = vld [vmem:[%s20613_s4 + $0x5bc] ss:$28 sps:$4 sm:$0xff]  }
   0xf   :  { %v13620_v41 = vld [vmem:[%s20613_s4 + $0x580] ss:$28 sps:$4 sm:$0xff]   ;;  %v13625_v44 = vld [vmem:[%s20613_s4 + $0x230] ss:$28 sps:$4 sm:$0xff]   ;;  %v13626_v45 = vld [vmem:[%s20613_s4 + $0x5b8] ss:$28 sps:$4 sm:$0xff]  }
  0x10   :  { %2660 = vmatpush1.bf16.msra.mxu0 %v13583_v16  ;;  %2865 = vmatpush1.bf16.msra.mxu1 %v13584_v17  ;;  %v13627_v46 = vld [vmem:[%s20613_s4 + $0x26c] ss:$28 sps:$4 sm:$0xff]   ;;  %v13629_v47 = vld [vmem:[%s20613_s4 + $0x5f4] ss:$28 sps:$4 sm:$0xff]   ;;  %v13633_v50 = vld [vmem:[%s20613_s4 + $0x2a4] ss:$28 sps:$4 sm:$0xff]  }
  0x11   :  { %2661 = vmatprep.subr.bf16.mxu0 %v13585_v18  ;;  %2866 = vmatprep.subr.bf16.mxu1 %v13587_v19  ;;  %v13631_v48 = vld [vmem:[%s20613_s4 + $0x268] ss:$28 sps:$4 sm:$0xff]   ;;  %v13632_v49 = vld [vmem:[%s20613_s4 + $0x5f0] ss:$28 sps:$4 sm:$0xff]   ;;  %v13637_v52 = vld [vmem:[%s20613_s4 + $0x2a0] ss:$28 sps:$4 sm:$0xff]  }
  0x12   :  { %v13635_v51 = vld [vmem:[%s20613_s4 + $0x62c] ss:$28 sps:$4 sm:$0xff]   ;;  %v13639_v54 = vld [vmem:[%s20613_s4 + $0x2dc] ss:$28 sps:$4 sm:$0xff]   ;;  %v13641_v55 = vld [vmem:[%s20613_s4 + $0x664] ss:$28 sps:$4 sm:$0xff]  }
  0x13   :  { %v13638_v53 = vld [vmem:[%s20613_s4 + $0x628] ss:$28 sps:$4 sm:$0xff]   ;;  %v13643_v56 = vld [vmem:[%s20613_s4 + $0x2d8] ss:$28 sps:$4 sm:$0xff]   ;;  %v13644_v57 = vld [vmem:[%s20613_s4 + $0x660] ss:$28 sps:$4 sm:$0xff]  }
  0x14   :  { %2662 = vmatpush1.bf16.msra.mxu0 %v13589_v20  ;;  %2867 = vmatpush1.bf16.msra.mxu1 %v13590_v21  ;;  %v13645_v58 = vld [vmem:[%s20613_s4 + $0x314] ss:$28 sps:$4 sm:$0xff]   ;;  %v13647_v59 = vld [vmem:[%s20613_s4 + $0x69c] ss:$28 sps:$4 sm:$0xff]   ;;  %v13651_v62 = vld [vmem:[%s20613_s4 + $0x34c] ss:$28 sps:$4 sm:$0xff]  }
  0x15   :  { %2663 = vmatprep.subr.bf16.mxu0 %v13591_v22  ;;  %2868 = vmatprep.subr.bf16.mxu1 %v13593_v23  ;;  %v13649_v60 = vld [vmem:[%s20613_s4 + $0x310] ss:$28 sps:$4 sm:$0xff]   ;;  %v13650_v61 = vld [vmem:[%s20613_s4 + $0x698] ss:$28 sps:$4 sm:$0xff]   ;;  %v13655_v1 = vld [vmem:[%s20613_s4 + $0x348] ss:$28 sps:$4 sm:$0xff]  }
  0x16   :  { %v13653_v63 = vld [vmem:[%s20613_s4 + $0x6d4] ss:$28 sps:$4 sm:$0xff]   ;;  %v13659_v3 = vld [vmem:[%s20613_s4 + $0x384] ss:$28 sps:$4 sm:$0xff]   ;;  %v13662_v4 = vld [vmem:[%s20613_s4 + $0x70c] ss:$28 sps:$4 sm:$0xff]  }
  0x17   :  { %v13656_v2 = vld [vmem:[%s20613_s4 + $0x6d0] ss:$28 sps:$4 sm:$0xff]   ;;  %v62_v6 = vshrl.u32 %v61_v5, 7  ;;  %v54_v11 = vld [vmem:[%s20614_s3] sm:$0xff] }
  0x18   :  { %2664 = vmatpush1.bf16.msra.mxu0 %v13595_v24  ;;  %2869 = vmatpush1.bf16.msra.mxu1 %v13596_v25  ;;  %v47_v22 = vld [vmem:[%s20615_s0] sm:$0xff]  ;;  %v48_v23 = vld [vmem:[%s20615_s0 + $0x8] sm:$0xff]  ;;  %v49_v24 = vld [vmem:[%s20615_s0 + $0x10] sm:$0xff] }
  0x19   :  { %2665 = vmatprep.subr.bf16.mxu0 %v13597_v26  ;;  %2870 = vmatprep.subr.bf16.mxu1 %v13599_v27  ;;  %v16051_v7 = vsub.s32 0, %v62_v6  ;;  %v16053_v8 = vsub.s32 1, %v62_v6  ;;  %v16055_v9 = vsub.s32 2, %v62_v6  ;;  %v16057_v10 = vsub.s32 3, %v62_v6  ;;  %v50_v25 = vld [vmem:[%s20615_s0 + $0x18] sm:$0xff]  ;;  %v51_v26 = vld [vmem:[%s20615_s0 + $0x20] sm:$0xff] }
  0x1a   :  { %v16062_v12 = vsub.s32 4, %v62_v6  ;;  %v16064_v13 = vsub.s32 5, %v62_v6  ;;  %v16066_v14 = vsub.s32 6, %v62_v6 }
  0x1b   :  { %v64_v15 = vrot.slane %v54_v11, %v16051_v7  ;;  %v68_v16 = vrot.slane %v54_v11, %v16053_v8  ;;  %v72_v17 = vrot.slane %v54_v11, %v16055_v9  ;;  %v76_v18 = vrot.slane %v54_v11, %v16057_v10 }
  0x1c   :  { %2666 = vmatpush1.bf16.msra.mxu0 %v13601_v28  ;;  %2871 = vmatpush1.bf16.msra.mxu1 %v13602_v29  ;;  %v80_v19 = vrot.slane %v54_v11, %v16062_v12  ;;  %v84_v20 = vrot.slane %v54_v11, %v16064_v13  ;;  %v88_v21 = vrot.slane %v54_v11, %v16066_v14  ;;  %v53_v28 = vld [vmem:[%s20615_s0 + $0x30] sm:$0xff] }
  0x1d   :  { %2667 = vmatprep.subr.bf16.mxu0 %v13603_v30  ;;  %2872 = vmatprep.subr.bf16.mxu1 %v13605_v31 }
  0x20   :  { %2668 = vmatpush1.bf16.msra.mxu0 %v13607_v32  ;;  %2873 = vmatpush1.bf16.msra.mxu1 %v13608_v33  ;;  %v52_v33 = vld [vmem:[%s20615_s0 + $0x28] sm:$0xff] }
  0x21   :  { %2669 = vmatprep.subr.bf16.mxu0 %v13609_v34  ;;  %2874 = vmatprep.subr.bf16.mxu1 %v13611_v35 }
  0x24   :  { %2670 = vmatpush1.bf16.msra.mxu0 %v13613_v36  ;;  %2875 = vmatpush1.bf16.msra.mxu1 %v13614_v37 }
  0x25   :  { %2671 = vmatprep.subr.bf16.mxu0 %v13615_v38  ;;  %2876 = vmatprep.subr.bf16.mxu1 %v13617_v39 }
  0x28   :  { %2672 = vmatpush1.bf16.msra.mxu0 %v13619_v40  ;;  %2877 = vmatpush1.bf16.msra.mxu1 %v13620_v41 }
  0x29   :  { %2673 = vmatprep.subr.bf16.mxu0 %v13621_v42  ;;  %2878 = vmatprep.subr.bf16.mxu1 %v13623_v43 }
  0x2c   :  { %2674 = vmatpush1.bf16.msra.mxu0 %v13625_v44  ;;  %2879 = vmatpush1.bf16.msra.mxu1 %v13626_v45 }
  0x2d   :  { %2675 = vmatprep.subr.bf16.mxu0 %v13627_v46  ;;  %2880 = vmatprep.subr.bf16.mxu1 %v13629_v47 }
  0x30   :  { %2676 = vmatpush1.bf16.msra.mxu0 %v13631_v48  ;;  %2881 = vmatpush1.bf16.msra.mxu1 %v13632_v49 }
  0x31   :  { %2677 = vmatprep.subr.bf16.mxu0 %v13633_v50  ;;  %2882 = vmatprep.subr.bf16.mxu1 %v13635_v51 }
  0x34   :  { %2678 = vmatpush1.bf16.msra.mxu0 %v13637_v52  ;;  %2883 = vmatpush1.bf16.msra.mxu1 %v13638_v53 }
  0x35   :  { %2679 = vmatprep.subr.bf16.mxu0 %v13639_v54  ;;  %2884 = vmatprep.subr.bf16.mxu1 %v13641_v55 }
  0x38   :  { %2680 = vmatpush1.bf16.msra.mxu0 %v13643_v56  ;;  %2885 = vmatpush1.bf16.msra.mxu1 %v13644_v57 }
  0x39   :  { %2681 = vmatprep.subr.bf16.mxu0 %v13645_v58  ;;  %2886 = vmatprep.subr.bf16.mxu1 %v13647_v59 }
  0x3c   :  { %2682 = vmatpush1.bf16.msra.mxu0 %v13649_v60  ;;  %2887 = vmatpush1.bf16.msra.mxu1 %v13650_v61 }
  0x3d   :  { %2683 = vmatprep.subr.bf16.mxu0 %v13651_v62  ;;  %2888 = vmatprep.subr.bf16.mxu1 %v13653_v63 }
  0x40   :  { %2684 = vmatpush1.bf16.msra.mxu0 %v13655_v1  ;;  %2889 = vmatpush1.bf16.msra.mxu1 %v13656_v2 }
  0x41   :  { %2694 = vmatprep.subr.bf16.mxu0 %v13659_v3  ;;  %2899 = vmatprep.subr.bf16.mxu1 %v13662_v4  ;;  %v13657_v3 = vld [vmem:[%s20613_s4 + $0x380] ss:$28 sps:$4 sm:$0xff]  }
  0x81   :  { %v58_v27 = vpop.permute.xlu0 %57 }
  0x82   :  { %v96_v29 = vmul.f32 %v64_v15, %v58_v27  ;;  %v97_v30 = vmul.f32 %v68_v16, %v58_v27  ;;  %v98_v31 = vmul.f32 %v72_v17, %v58_v27  ;;  %v99_v32 = vmul.f32 %v76_v18, %v58_v27  ;;  %v13660_v15 = vld [vmem:[%s20613_s4 + $0x708] ss:$28 sps:$4 sm:$0xff]  }
  0x83   :  { %v100_v34 = vmul.f32 %v80_v19, %v58_v27  ;;  %v101_v35 = vmul.f32 %v84_v20, %v58_v27  ;;  %v102_v36 = vmul.f32 %v88_v21, %v58_v27  ;;  %v13663_v19 = vld [vmem:[%s20613_s4 + $0x3b8] ss:$28 sps:$4 sm:$0xff]   ;;  %v13668_v21 = vld [vmem:[%s20613_s4 + $0x744] ss:$28 sps:$4 sm:$0xff]   ;;  %v13677_v27 = vld [vmem:[%s20613_s4 + $0x42c] ss:$28 sps:$4 sm:$0xff]  }
  0x84   :  { %v103_v37 = vadd.f32 %v96_v29, %v47_v22  ;;  %v104_v38 = vadd.f32 %v97_v30, %v48_v23  ;;  %v105_v39 = vadd.f32 %v98_v31, %v49_v24  ;;  %v106_v40 = vadd.f32 %v99_v32, %v50_v25  ;;  %v13665_v20 = vld [vmem:[%s20613_s4 + $0x3bc] ss:$28 sps:$4 sm:$0xff]   ;;  %v13671_v23 = vld [vmem:[%s20613_s4 + $0x3f4] ss:$28 sps:$4 sm:$0xff]   ;;  %v13675_v29 = vld [vmem:[%s20613_s4 + $0x428] ss:$28 sps:$4 sm:$0xff]  }
  0x85   :  { %v16096_v41 = vadd.f32 %v100_v34, %v51_v26  ;;  %v16098_v42 = vadd.f32 %v102_v36, %v53_v28  ;;  %v108_v43 = vadd.f32 %v101_v35, %v52_v33  ;;  %v13666_v24 = vld [vmem:[%s20613_s4 + $0x740] ss:$28 sps:$4 sm:$0xff]   ;;  %v13669_v25 = vld [vmem:[%s20613_s4 + $0x3f0] ss:$28 sps:$4 sm:$0xff]   ;;  %v13672_v28 = vld [vmem:[%s20613_s4 + $0x778] ss:$28 sps:$4 sm:$0xff]  }
  0x86   :  { %v117_v44 = vmul.f32 0.70710677, %v103_v37  ;;  %v118_v45 = vmul.f32 0.70710677, %v104_v38  ;;  %v119_v46 = vmul.f32 0.70710677, %v105_v39 }
  0x87   :  { %v120_v47 = vmul.f32 0.70710677, %v106_v40  ;;  %v122_v48 = vmul.f32 0.70710677, %v108_v43  ;;  %v110_v51 = vmul.f32 0.5, %v103_v37  ;;  %v111_v54 = vmul.f32 0.5, %v104_v38 }
  0x88   :  { %15689 = verf.f32 %v117_v44  ;;  %v112_v55 = vmul.f32 0.5, %v105_v39  ;;  %v113_v60 = vmul.f32 0.5, %v106_v40  ;;  %v115_v4 = vmul.f32 0.5, %v108_v43  ;;  %v13674_v26 = vld [vmem:[%s20613_s4 + $0x77c] ss:$28 sps:$4 sm:$0xff]  }
  0x89   :  { %15691 = verf.f32 %v118_v45  ;;  %v13680_v30 = vld [vmem:[%s20613_s4 + $0x7b4] ss:$28 sps:$4 sm:$0xff]   ;;  %v13683_v31 = vld [vmem:[%s20613_s4 + $0x464] ss:$28 sps:$4 sm:$0xff]   ;;  %v13686_v34 = vld [vmem:[%s20613_s4 + $0x7ec] ss:$28 sps:$4 sm:$0xff]  }
  0x8a   :  { %15693 = verf.f32 %v119_v46  ;;  %v13678_v32 = vld [vmem:[%s20613_s4 + $0x7b0] ss:$28 sps:$4 sm:$0xff]   ;;  %v13681_v33 = vld [vmem:[%s20613_s4 + $0x460] ss:$28 sps:$4 sm:$0xff]   ;;  %v13684_v36 = vld [vmem:[%s20613_s4 + $0x7e8] ss:$28 sps:$4 sm:$0xff]  }
  0x8b   :  { %15695 = verf.f32 %v120_v47  ;;  %v13689_v35 = vld [vmem:[%s20613_s4 + $0x49c] ss:$28 sps:$4 sm:$0xff]   ;;  %v13692_v38 = vld [vmem:[%s20613_s4 + $0x824] ss:$28 sps:$4 sm:$0xff]   ;;  %v13695_v39 = vld [vmem:[%s20613_s4 + $0x4d4] ss:$28 sps:$4 sm:$0xff]  }
  0x8c   :  { %15697 = verf.f32 %v122_v48  ;;  %v13687_v37 = vld [vmem:[%s20613_s4 + $0x498] ss:$28 sps:$4 sm:$0xff]   ;;  %v13690_v40 = vld [vmem:[%s20613_s4 + $0x820] ss:$28 sps:$4 sm:$0xff]   ;;  %v13693_v43 = vld [vmem:[%s20613_s4 + $0x4d0] ss:$28 sps:$4 sm:$0xff]  }
  0x8d   :  { %v13698_v44 = vld [vmem:[%s20613_s4 + $0x85c] ss:$28 sps:$4 sm:$0xff]   ;;  %v13701_v45 = vld [vmem:[%s20613_s4 + $0x50c] ss:$28 sps:$4 sm:$0xff]   ;;  %v13704_v48 = vld [vmem:[%s20613_s4 + $0x894] ss:$28 sps:$4 sm:$0xff]  }
  0x8e   :  { %v13696_v46 = vld [vmem:[%s20613_s4 + $0x858] ss:$28 sps:$4 sm:$0xff]   ;;  %v13699_v47 = vld [vmem:[%s20613_s4 + $0x508] ss:$28 sps:$4 sm:$0xff]  }
  0x92   :  { %v15690_v49 = vpop.eup %15689 }
  0x93   :  { %v15692_v50 = vpop.eup %15691  ;;  %v131_v52 = vadd.f32 1.0, %v15690_v49  ;;  %v13707_v49 = vld [vmem:[%s20613_s4 + $0x544] ss:$28 sps:$4 sm:$0xff]  }
  0x94   :  { %v15694_v53 = vpop.eup %15693  ;;  %v132_v56 = vadd.f32 1.0, %v15692_v50  ;;  %v13702_v50 = vld [vmem:[%s20613_s4 + $0x890] ss:$28 sps:$4 sm:$0xff]  }
  0x95   :  { %v15696_v57 = vpop.eup %15695  ;;  %v133_v58 = vadd.f32 1.0, %v15694_v53  ;;  %v138_v59 = vmul.f32 %v131_v52, %v110_v51  ;;  %v13705_v51 = vld [vmem:[%s20613_s4 + $0x540] ss:$28 sps:$4 sm:$0xff]   ;;  %v13710_v52 = vld [vmem:[%s20613_s4 + $0x8cc] ss:$28 sps:$4 sm:$0xff]  }
  0x96   :  { %v134_v61 = vadd.f32 1.0, %v15696_v57  ;;  %v139_v62 = vmul.f32 %v132_v56, %v111_v54  ;;  %v15698_v63 = vpop.eup %15697  ;;  %v13708_v53 = vld [vmem:[%s20613_s4 + $0x8c8] ss:$28 sps:$4 sm:$0xff]   ;;  %v13713_v54 = vld [vmem:[%s20613_s4 + $0x57c] ss:$28 sps:$4 sm:$0xff]  }
  0x97   :  { %v140_v1 = vmul.f32 %v133_v58, %v112_v55  ;;  %v16100_v2 = vpack.c.bf16 %v138_v59, %v138_v59  ;;  %v136_v5 = vadd.f32 1.0, %v15698_v63  ;;  %v13711_v55 = vld [vmem:[%s20613_s4 + $0x578] ss:$28 sps:$4 sm:$0xff]   ;;  %v13716_v56 = vld [vmem:[%s20613_s4 + $0x904] ss:$28 sps:$4 sm:$0xff]  }
  0x98   :  { %v141_v6 = vmul.f32 %v134_v61, %v113_v60  ;;  %v16105_v11 = vpack.c.bf16 %v139_v62, %v139_v62  ;;  %v13714_v57 = vld [vmem:[%s20613_s4 + $0x900] ss:$28 sps:$4 sm:$0xff]   ;;  %v13719_v58 = vld [vmem:[%s20613_s4 + $0x5b4] ss:$28 sps:$4 sm:$0xff]   ;;  %v13725_v62 = vld [vmem:[%s20613_s4 + $0x5ec] ss:$28 sps:$4 sm:$0xff]  }
  0x99   :  { %v16110_v16 = vpack.c.bf16 %v140_v1, %v140_v1  ;;  %v143_v17 = vmul.f32 %v136_v5, %v115_v4  ;;  %v13717_v59 = vld [vmem:[%s20613_s4 + $0x5b0] ss:$28 sps:$4 sm:$0xff]   ;;  %v13722_v60 = vld [vmem:[%s20613_s4 + $0x93c] ss:$28 sps:$4 sm:$0xff]   ;;  %v121_v63 = vmul.f32 0.70710677, %v16096_v41 }
  0x9a   :  { %v16112_v18 = vpack.c.bf16 %v141_v6, %v141_v6  ;;  %2685 = vmatprep.mubr.bf16.mxu0 %v16105_v11  ;;  %v13720_v61 = vld [vmem:[%s20613_s4 + $0x938] ss:$28 sps:$4 sm:$0xff]   ;;  %v13723_v1 = vld [vmem:[%s20613_s4 + $0x5e8] ss:$28 sps:$4 sm:$0xff]   ;;  %v13726_v4 = vld [vmem:[%s20613_s4 + $0x970] ss:$28 sps:$4 sm:$0xff]  }
  0x9b   :  { %2686 = vmatmul.mubr.bf16.vlgmr.msra.gmra.mrb[0].mxu0 %v16100_v2  ;;  %v16125_v22 = vpack.c.bf16 %v143_v17, %v143_v17  ;;  %v13731_v5 = vld [vmem:[%s20613_s4 + $0x624] ss:$28 sps:$4 sm:$0xff]   ;;  %15699 = verf.f32 %v121_v63 }
  0x9c   :  { %2890 = vmatprep.mubr.bf16.mxu1 %v16112_v18  ;;  %2695 = vmatpush1.bf16.msra.mxu0 %v13657_v3  ;;  %v13728_v3 = vld [vmem:[%s20613_s4 + $0x974] ss:$28 sps:$4 sm:$0xff]   ;;  %v13729_v6 = vld [vmem:[%s20613_s4 + $0x620] ss:$28 sps:$4 sm:$0xff]   ;;  %v13732_v17 = vld [vmem:[%s20613_s4 + $0x9a8] ss:$28 sps:$4 sm:$0xff]  }
  0x9d   :  { %2891 = vmatmul.mubr.bf16.vlgmr.msra.gmra.mrb[0].mxu1 %v16110_v16  ;;  %2726 = vmatprep.mubr.bf16.mxu0 %v16112_v18  ;;  %v13786_v63 = vld [vmem:[%s20613_s4 + $0x328] ss:$28 sps:$4 sm:$0xff]  }
  0x9e   :  { %2900 = vmatpush1.bf16.msra.mxu1 %v13660_v15  ;;  %2931 = vmatprep.mubr.bf16.mxu1 %v16125_v22  ;;  %v13734_v15 = vld [vmem:[%s20613_s4 + $0x9ac] ss:$28 sps:$4 sm:$0xff]  }
  0x9f   :  { %2696 = vmatprep.subr.bf16.mxu0 %v13665_v20  ;;  %2901 = vmatprep.subr.bf16.mxu1 %v13668_v21  ;;  %v13735_v20 = vld [vmem:[%s20613_s4 + $0x658] ss:$28 sps:$4 sm:$0xff]   ;;  %v13740_v21 = vld [vmem:[%s20613_s4 + $0x9e4] ss:$28 sps:$4 sm:$0xff]  }
  0xa0   :  { %2697 = vmatpush1.bf16.msra.mxu0 %v13663_v19  ;;  %v13737_v19 = vld [vmem:[%s20613_s4 + $0x65c] ss:$28 sps:$4 sm:$0xff]  }
  0xa1   :  { %2698 = vmatprep.subr.bf16.mxu0 %v13671_v23  ;;  %v13738_v23 = vld [vmem:[%s20613_s4 + $0x9e0] ss:$28 sps:$4 sm:$0xff]  }
  0xa2   :  { %2902 = vmatpush1.bf16.msra.mxu1 %v13666_v24  ;;  %v13743_v24 = vld [vmem:[%s20613_s4 + $0x694] ss:$28 sps:$4 sm:$0xff]  }
  0xa3   :  { %2903 = vmatprep.subr.bf16.mxu1 %v13674_v26  ;;  %v13746_v26 = vld [vmem:[%s20613_s4 + $0xa1c] ss:$28 sps:$4 sm:$0xff]  }
  0xa4   :  { %2699 = vmatpush1.bf16.msra.mxu0 %v13669_v25  ;;  %v13741_v25 = vld [vmem:[%s20613_s4 + $0x690] ss:$28 sps:$4 sm:$0xff]  }
  0xa5   :  { %2700 = vmatprep.subr.bf16.mxu0 %v13677_v27  ;;  %v15700_v27 = vpop.eup %15699 }
  0xa6   :  { %2904 = vmatpush1.bf16.msra.mxu1 %v13672_v28  ;;  %v13744_v28 = vld [vmem:[%s20613_s4 + $0xa18] ss:$28 sps:$4 sm:$0xff]  }
  0xa7   :  { %2905 = vmatprep.subr.bf16.mxu1 %v13680_v30  ;;  %v13747_v30 = vld [vmem:[%s20613_s4 + $0x6c8] ss:$28 sps:$4 sm:$0xff]  }
  0xa8   :  { %2701 = vmatpush1.bf16.msra.mxu0 %v13675_v29  ;;  %v13749_v29 = vld [vmem:[%s20613_s4 + $0x6cc] ss:$28 sps:$4 sm:$0xff]  }
  0xa9   :  { %2702 = vmatprep.subr.bf16.mxu0 %v13683_v31  ;;  %v13752_v31 = vld [vmem:[%s20613_s4 + $0xa54] ss:$28 sps:$4 sm:$0xff]  }
  0xaa   :  { %2906 = vmatpush1.bf16.msra.mxu1 %v13678_v32  ;;  %v135_v32 = vadd.f32 1.0, %v15700_v27  ;;  %v13802_v27 = vld [vmem:[%s20613_s4 + $0x3d0] ss:$28 sps:$4 sm:$0xff]  }
  0xab   :  { %2907 = vmatprep.subr.bf16.mxu1 %v13686_v34  ;;  %v13755_v34 = vld [vmem:[%s20613_s4 + $0x704] ss:$28 sps:$4 sm:$0xff]  }
  0xac   :  { %2703 = vmatpush1.bf16.msra.mxu0 %v13681_v33  ;;  %v13750_v33 = vld [vmem:[%s20613_s4 + $0xa50] ss:$28 sps:$4 sm:$0xff]  }
  0xad   :  { %2704 = vmatprep.subr.bf16.mxu0 %v13689_v35  ;;  %v114_v35 = vmul.f32 0.5, %v16096_v41  ;;  %v13760_v41 = vld [vmem:[%s20613_s4 + $0x73c] ss:$28 sps:$4 sm:$0xff]  }
  0xae   :  { %2908 = vmatpush1.bf16.msra.mxu1 %v13684_v36  ;;  %v13753_v36 = vld [vmem:[%s20613_s4 + $0x700] ss:$28 sps:$4 sm:$0xff]  }
  0xaf   :  { %2909 = vmatprep.subr.bf16.mxu1 %v13692_v38  ;;  %v142_v38 = vmul.f32 %v135_v32, %v114_v35  ;;  %v13811_v32 = vld [vmem:[%s20613_s4 + $0x600] ss:$28 sps:$4 sm:$0xff]  }
  0xb0   :  { %2705 = vmatpush1.bf16.msra.mxu0 %v13687_v37  ;;  %v13756_v37 = vld [vmem:[%s20613_s4 + $0x1d8] ss:$28 sps:$4 sm:$0xff]   ;;  %v13812_v35 = vld [vmem:[%s20613_s4 + $0x440] ss:$28 sps:$4 sm:$0xff]  }
  0xb1   :  { %2706 = vmatprep.subr.bf16.mxu0 %v13695_v39  ;;  %v13757_v39 = vld [vmem:[%s20613_s4 + $0x18] ss:$28 sps:$4 sm:$0xff]  }
  0xb2   :  { %2910 = vmatpush1.bf16.msra.mxu1 %v13690_v40  ;;  %v13758_v40 = vld [vmem:[%s20613_s4 + $0x738] ss:$28 sps:$4 sm:$0xff]  }
  0xb3   :  { %2911 = vmatprep.subr.bf16.mxu1 %v13698_v44  ;;  %v16325_v44 = vpack.c.bf16 %v142_v38, %v142_v38  ;;  %v13820_v38 = vld [vmem:[%s20613_s4 + $0x9dc] ss:$28 sps:$4 sm:$0xff]  }
  0xb4   :  { %2707 = vmatpush1.bf16.msra.mxu0 %v13693_v43  ;;  %v13761_v43 = vld [vmem:[%s20613_s4 + $0x210] ss:$28 sps:$4 sm:$0xff]  }
  0xb5   :  { %2708 = vmatprep.subr.bf16.mxu0 %v13701_v45  ;;  %v13762_v45 = vld [vmem:[%s20613_s4 + $0x50] ss:$28 sps:$4 sm:$0xff]  }
  0xb6   :  { %2912 = vmatpush1.bf16.msra.mxu1 %v13696_v46  ;;  %v13765_v46 = vld [vmem:[%s20613_s4 + $0x774] ss:$28 sps:$4 sm:$0xff]  }
  0xb7   :  { %2913 = vmatprep.subr.bf16.mxu1 %v13704_v48  ;;  %v13763_v48 = vld [vmem:[%s20613_s4 + $0x770] ss:$28 sps:$4 sm:$0xff]  }
  0xb8   :  { %2709 = vmatpush1.bf16.msra.mxu0 %v13699_v47  ;;  %v13766_v47 = vld [vmem:[%s20613_s4 + $0x248] ss:$28 sps:$4 sm:$0xff]  }
  0xb9   :  { %2710 = vmatprep.subr.bf16.mxu0 %v13707_v49  ;;  %v13767_v49 = vld [vmem:[%s20613_s4 + $0x88] ss:$28 sps:$4 sm:$0xff]  }
  0xba   :  { %2914 = vmatpush1.bf16.msra.mxu1 %v13702_v50  ;;  %v13770_v50 = vld [vmem:[%s20613_s4 + $0x7ac] ss:$28 sps:$4 sm:$0xff]  }
  0xbb   :  { %2915 = vmatprep.subr.bf16.mxu1 %v13710_v52  ;;  %v13768_v52 = vld [vmem:[%s20613_s4 + $0x7a8] ss:$28 sps:$4 sm:$0xff]  }
  0xbc   :  { %2711 = vmatpush1.bf16.msra.mxu0 %v13705_v51  ;;  %v13771_v51 = vld [vmem:[%s20613_s4 + $0x280] ss:$28 sps:$4 sm:$0xff]  }
  0xbd   :  { %2712 = vmatprep.subr.bf16.mxu0 %v13713_v54  ;;  %v13775_v54 = vld [vmem:[%s20613_s4 + $0x7e4] ss:$28 sps:$4 sm:$0xff]  }
  0xbe   :  { %2916 = vmatpush1.bf16.msra.mxu1 %v13708_v53  ;;  %v13772_v53 = vld [vmem:[%s20613_s4 + $0xc0] ss:$28 sps:$4 sm:$0xff]  }
  0xbf   :  { %2917 = vmatprep.subr.bf16.mxu1 %v13716_v56  ;;  %v13773_v56 = vld [vmem:[%s20613_s4 + $0x7e0] ss:$28 sps:$4 sm:$0xff]  }
  0xc0   :  { %2713 = vmatpush1.bf16.msra.mxu0 %v13711_v55  ;;  %v13776_v55 = vld [vmem:[%s20613_s4 + $0x2b8] ss:$28 sps:$4 sm:$0xff]  }
  0xc1   :  { %2714 = vmatprep.subr.bf16.mxu0 %v13719_v58  ;;  %v13780_v58 = vld [vmem:[%s20613_s4 + $0x81c] ss:$28 sps:$4 sm:$0xff]  }
  0xc2   :  { %2918 = vmatpush1.bf16.msra.mxu1 %v13714_v57  ;;  %v13777_v57 = vld [vmem:[%s20613_s4 + $0xf8] ss:$28 sps:$4 sm:$0xff]  }
  0xc3   :  { %2919 = vmatprep.subr.bf16.mxu1 %v13722_v60  ;;  %v13778_v60 = vld [vmem:[%s20613_s4 + $0x818] ss:$28 sps:$4 sm:$0xff]  }
  0xc4   :  { %2715 = vmatpush1.bf16.msra.mxu0 %v13717_v59  ;;  %v13781_v59 = vld [vmem:[%s20613_s4 + $0x2f0] ss:$28 sps:$4 sm:$0xff]  }
  0xc5   :  { %2716 = vmatprep.subr.bf16.mxu0 %v13725_v62  ;;  %v13785_v62 = vld [vmem:[%s20613_s4 + $0x854] ss:$28 sps:$4 sm:$0xff]  }
  0xc6   :  { %2920 = vmatpush1.bf16.msra.mxu1 %v13720_v61  ;;  %v13782_v61 = vld [vmem:[%s20613_s4 + $0x130] ss:$28 sps:$4 sm:$0xff]  }
  0xc7   :  { %2921 = vmatprep.subr.bf16.mxu1 %v13728_v3  ;;  %v13790_v3 = vld [vmem:[%s20613_s4 + $0x88c] ss:$28 sps:$4 sm:$0xff]  }
  0xc8   :  { %2717 = vmatpush1.bf16.msra.mxu0 %v13723_v1  ;;  %v13783_v1 = vld [vmem:[%s20613_s4 + $0x850] ss:$28 sps:$4 sm:$0xff]  }
  0xc9   :  { %2718 = vmatprep.subr.bf16.mxu0 %v13731_v5  ;;  %v13791_v5 = vld [vmem:[%s20613_s4 + $0x360] ss:$28 sps:$4 sm:$0xff]  }
  0xca   :  { %2922 = vmatpush1.bf16.msra.mxu1 %v13726_v4  ;;  %v13787_v4 = vld [vmem:[%s20613_s4 + $0x168] ss:$28 sps:$4 sm:$0xff]  }
  0xcb   :  { %2923 = vmatprep.subr.bf16.mxu1 %v13734_v15  ;;  %v13795_v15 = vld [vmem:[%s20613_s4 + $0x8c4] ss:$28 sps:$4 sm:$0xff]  }
  0xcc   :  { %2719 = vmatpush1.bf16.msra.mxu0 %v13729_v6  ;;  %v13788_v6 = vld [vmem:[%s20613_s4 + $0x888] ss:$28 sps:$4 sm:$0xff]  }
  0xcd   :  { %2720 = vmatprep.subr.bf16.mxu0 %v13737_v19  ;;  %v13796_v19 = vld [vmem:[%s20613_s4 + $0x558] ss:$28 sps:$4 sm:$0xff]  }
  0xce   :  { %2924 = vmatpush1.bf16.msra.mxu1 %v13732_v17  ;;  %v13792_v17 = vld [vmem:[%s20613_s4 + $0x1a0] ss:$28 sps:$4 sm:$0xff]  }
  0xcf   :  { %2925 = vmatprep.subr.bf16.mxu1 %v13740_v21  ;;  %v13800_v21 = vld [vmem:[%s20613_s4 + $0x8fc] ss:$28 sps:$4 sm:$0xff]  }
  0xd0   :  { %2721 = vmatpush1.bf16.msra.mxu0 %v13735_v20  ;;  %v13793_v20 = vld [vmem:[%s20613_s4 + $0x8c0] ss:$28 sps:$4 sm:$0xff]  }
  0xd1   :  { %2722 = vmatprep.subr.bf16.mxu0 %v13743_v24  ;;  %v13801_v24 = vld [vmem:[%s20613_s4 + $0x590] ss:$28 sps:$4 sm:$0xff]  }
  0xd2   :  { %2926 = vmatpush1.bf16.msra.mxu1 %v13738_v23  ;;  %v13797_v23 = vld [vmem:[%s20613_s4 + $0x398] ss:$28 sps:$4 sm:$0xff]  }
  0xd3   :  { %2927 = vmatprep.subr.bf16.mxu1 %v13746_v26  ;;  %v13805_v26 = vld [vmem:[%s20613_s4 + $0x934] ss:$28 sps:$4 sm:$0xff]  }
  0xd4   :  { %2723 = vmatpush1.bf16.msra.mxu0 %v13741_v25  ;;  %v13798_v25 = vld [vmem:[%s20613_s4 + $0x8f8] ss:$28 sps:$4 sm:$0xff]  }
  0xd5   :  { %2724 = vmatprep.subr.bf16.mxu0 %v13749_v29  ;;  %v13803_v29 = vld [vmem:[%s20613_s4 + $0x930] ss:$28 sps:$4 sm:$0xff]  }
  0xd6   :  { %2928 = vmatpush1.bf16.msra.mxu1 %v13744_v28  ;;  %v13806_v28 = vld [vmem:[%s20613_s4 + $0x5c8] ss:$28 sps:$4 sm:$0xff]  }
  0xd7   :  { %2929 = vmatprep.subr.bf16.mxu1 %v13752_v31  ;;  %v13807_v31 = vld [vmem:[%s20613_s4 + $0x408] ss:$28 sps:$4 sm:$0xff]  }
  0xd8   :  { %2725 = vmatpush1.bf16.msra.mxu0 %v13747_v30  ;;  %v13810_v30 = vld [vmem:[%s20613_s4 + $0x96c] ss:$28 sps:$4 sm:$0xff]  }
  0xd9   :  { %2735 = vmatprep.subr.bf16.mxu0 %v13755_v34  ;;  %v13815_v34 = vld [vmem:[%s20613_s4 + $0x9a4] ss:$28 sps:$4 sm:$0xff]  }
  0xda   :  { %2930 = vmatpush1.bf16.msra.mxu1 %v13750_v33  ;;  %v13808_v33 = vld [vmem:[%s20613_s4 + $0x968] ss:$28 sps:$4 sm:$0xff]  }
  0xdb   :  { %2727 = vmatmul.mubr.bf16.vlgmr.msra.gmra.mrb[0].mxu0 %v16110_v16  ;;  %13203 = vmatprep.subr.bf16.mxu1 %v13756_v37  ;;  %v13813_v37 = vld [vmem:[%s20613_s4 + $0x9a0] ss:$28 sps:$4 sm:$0xff]  }
  0xdc   :  { %2736 = vmatpush1.bf16.msra.mxu0 %v13753_v36  ;;  %2767 = vmatprep.mubr.bf16.mxu0 %v16125_v22  ;;  %v13816_v36 = vld [vmem:[%s20613_s4 + $0x638] ss:$28 sps:$4 sm:$0xff]  }
  0xdd   :  { %2932 = vmatmul.mubr.bf16.vlgmr.msra.gmra.mrb[0].mxu1 %v16325_v44  ;;  %2737 = vmatprep.subr.bf16.mxu0 %v13760_v41  ;;  %v13821_v41 = vld [vmem:[%s20613_s4 + $0x670] ss:$28 sps:$4 sm:$0xff]  }
  0xde   :  { %13204 = vmatpush3.bf16.msra.mxu1 %v13757_v39  ;;  %3177 = vmatprep.mubr.bf16.mxu1 %v16105_v11  ;;  %v13817_v39 = vld [vmem:[%s20613_s4 + $0x478] ss:$28 sps:$4 sm:$0xff]  }
  0xdf   :  { %13205 = vmatprep.subr.bf16.mxu1 %v13761_v43  ;;  %v13825_v43 = vld [vmem:[%s20613_s4 + $0xa14] ss:$28 sps:$4 sm:$0xff]  }
  0xe0   :  { %2738 = vmatpush1.bf16.msra.mxu0 %v13758_v40  ;;  %v13818_v40 = vld [vmem:[%s20613_s4 + $0x9d8] ss:$28 sps:$4 sm:$0xff]  }
  0xe1   :  { %2739 = vmatprep.subr.bf16.mxu0 %v13765_v46  ;;  %v13826_v46 = vld [vmem:[%s20613_s4 + $0x6a8] ss:$28 sps:$4 sm:$0xff]  }
  0xe2   :  { %13206 = vmatpush3.bf16.msra.mxu1 %v13762_v45  ;;  %v13822_v45 = vld [vmem:[%s20613_s4 + $0x4b0] ss:$28 sps:$4 sm:$0xff]  }
  0xe3   :  { %13207 = vmatprep.subr.bf16.mxu1 %v13766_v47  ;;  %v13823_v47 = vld [vmem:[%s20613_s4 + $0xa10] ss:$28 sps:$4 sm:$0xff]  }
  0xe4   :  { %2740 = vmatpush1.bf16.msra.mxu0 %v13763_v48  ;;  %v13830_v48 = vld [vmem:[%s20613_s4 + $0xa4c] ss:$28 sps:$4 sm:$0xff]  }
  0xe5   :  { %2741 = vmatprep.subr.bf16.mxu0 %v13770_v50  ;;  %v13831_v50 = vld [vmem:[%s20613_s4 + $0x6e0] ss:$28 sps:$4 sm:$0xff]  }
  0xe6   :  { %13208 = vmatpush3.bf16.msra.mxu1 %v13767_v49  ;;  %v13827_v49 = vld [vmem:[%s20613_s4 + $0x4e8] ss:$28 sps:$4 sm:$0xff]  }
  0xe7   :  { %13209 = vmatprep.subr.bf16.mxu1 %v13771_v51  ;;  %v13828_v51 = vld [vmem:[%s20613_s4 + $0xa48] ss:$28 sps:$4 sm:$0xff]  }
  0xe8   :  { %2742 = vmatpush1.bf16.msra.mxu0 %v13768_v52  ;;  %v13835_v52 = vld [vmem:[%s20613_s4 + $0xa84] ss:$28 sps:$4 sm:$0xff]  }
  0xe9   :  { %2743 = vmatprep.subr.bf16.mxu0 %v13775_v54  ;;  %v13836_v54 = vld [vmem:[%s20613_s4 + $0x8d8] ss:$28 sps:$4 sm:$0xff]  }
  0xea   :  { %13210 = vmatpush3.bf16.msra.mxu1 %v13772_v53  ;;  %v13832_v53 = vld [vmem:[%s20613_s4 + $0x520] ss:$28 sps:$4 sm:$0xff]  }
  0xeb   :  { %13211 = vmatprep.subr.bf16.mxu1 %v13776_v55  ;;  %v13833_v55 = vld [vmem:[%s20613_s4 + $0xa80] ss:$28 sps:$4 sm:$0xff]  }
  0xec   :  { %2744 = vmatpush1.bf16.msra.mxu0 %v13773_v56  ;;  %v13840_v56 = vld [vmem:[%s20613_s4 + $0xabc] ss:$28 sps:$4 sm:$0xff]  }
  0xed   :  { %2745 = vmatprep.subr.bf16.mxu0 %v13780_v58  ;;  %v13841_v58 = vld [vmem:[%s20613_s4 + $0x910] ss:$28 sps:$4 sm:$0xff]  }
  0xee   :  { %13212 = vmatpush3.bf16.msra.mxu1 %v13777_v57  ;;  %v13837_v57 = vld [vmem:[%s20613_s4 + $0x718] ss:$28 sps:$4 sm:$0xff]  }
  0xef   :  { %13213 = vmatprep.subr.bf16.mxu1 %v13781_v59  ;;  %v13838_v59 = vld [vmem:[%s20613_s4 + $0xab8] ss:$28 sps:$4 sm:$0xff]  }
  0xf0   :  { %2746 = vmatpush1.bf16.msra.mxu0 %v13778_v60  ;;  %v13845_v60 = vld [vmem:[%s20613_s4 + $0xaf4] ss:$28 sps:$4 sm:$0xff]  }
  0xf1   :  { %2747 = vmatprep.subr.bf16.mxu0 %v13785_v62  ;;  %v13846_v62 = vld [vmem:[%s20613_s4 + $0x948] ss:$28 sps:$4 sm:$0xff]  }
  0xf2   :  { %13214 = vmatpush3.bf16.msra.mxu1 %v13782_v61  ;;  %v13842_v61 = vld [vmem:[%s20613_s4 + $0x750] ss:$28 sps:$4 sm:$0xff]  }
  0xf3   :  { %13215 = vmatprep.subr.bf16.mxu1 %v13786_v63  ;;  %v123_v63 = vmul.f32 0.70710677, %v16098_v42 }
  0xf4   :  { %2748 = vmatpush1.bf16.msra.mxu0 %v13783_v1  ;;  %v13843_v1 = vld [vmem:[%s20613_s4 + $0xaf0] ss:$28 sps:$4 sm:$0xff]  }
  0xf5   :  { %2749 = vmatprep.subr.bf16.mxu0 %v13790_v3  ;;  %v13850_v3 = vld [vmem:[%s20613_s4 + $0xb2c] ss:$28 sps:$4 sm:$0xff]   ;;  %15701 = verf.f32 %v123_v63 }
  0xf6   :  { %13216 = vmatpush3.bf16.msra.mxu1 %v13787_v4  ;;  %v13847_v4 = vld [vmem:[%s20613_s4 + $0x788] ss:$28 sps:$4 sm:$0xff]  }
  0xf7   :  { %13217 = vmatprep.subr.bf16.mxu1 %v13791_v5  ;;  %v13851_v5 = vld [vmem:[%s20613_s4 + $0x980] ss:$28 sps:$4 sm:$0xff]   ;;  %v13900_v63 = vld [vmem:[%s20613_s4 + $0xbe8] ss:$28 sps:$4 sm:$0xff]  }
  0xf8   :  { %2750 = vmatpush1.bf16.msra.mxu0 %v13788_v6  ;;  %v13848_v6 = vld [vmem:[%s20613_s4 + $0xb28] ss:$28 sps:$4 sm:$0xff]  }
  0xf9   :  { %2751 = vmatprep.subr.bf16.mxu0 %v13795_v15  ;;  %v13855_v15 = vld [vmem:[%s20613_s4 + $0xb64] ss:$28 sps:$4 sm:$0xff]  }
  0xfa   :  { %13218 = vmatpush3.bf16.msra.mxu1 %v13792_v17  ;;  %v13852_v17 = vld [vmem:[%s20613_s4 + $0x7c0] ss:$28 sps:$4 sm:$0xff]  }
  0xfb   :  { %13225 = vmatprep.subr.bf16.mxu1 %v13796_v19  ;;  %v13856_v19 = vld [vmem:[%s20613_s4 + $0x9b8] ss:$28 sps:$4 sm:$0xff]  }
  0xfc   :  { %2752 = vmatpush1.bf16.msra.mxu0 %v13793_v20  ;;  %v13853_v20 = vld [vmem:[%s20613_s4 + $0xb60] ss:$28 sps:$4 sm:$0xff]  }
  0xfd   :  { %3178 = vmatmul.mubr.bf16.vlgmr.msra.gmra.mrb[4].mxu1 %v16100_v2  ;;  %2753 = vmatprep.subr.bf16.mxu0 %v13800_v21  ;;  %v13860_v21 = vld [vmem:[%s20613_s4 + $0xb9c] ss:$28 sps:$4 sm:$0xff]  }
  0xfe   :  { %13226 = vmatpush3.bf16.msra.mxu1 %v13797_v23  ;;  %3217 = vmatprep.mubr.bf16.mxu1 %v16112_v18  ;;  %v13857_v23 = vld [vmem:[%s20613_s4 + $0x7f8] ss:$28 sps:$4 sm:$0xff]  }
  0xff   :  { %13227 = vmatprep.subr.bf16.mxu1 %v13801_v24  ;;  %v13861_v24 = vld [vmem:[%s20613_s4 + $0x9f0] ss:$28 sps:$4 sm:$0xff]  }
 0x100   :  { %2754 = vmatpush1.bf16.msra.mxu0 %v13798_v25  ;;  %v13858_v25 = vld [vmem:[%s20613_s4 + $0xb98] ss:$28 sps:$4 sm:$0xff]  }
 0x101   :  { %2755 = vmatprep.subr.bf16.mxu0 %v13805_v26  ;;  %v13865_v26 = vld [vmem:[%s20613_s4 + $0xbd4] ss:$28 sps:$4 sm:$0xff]  }
 0x102   :  { %13228 = vmatpush3.bf16.msra.mxu1 %v13802_v27  ;;  %v15702_v27 = vpop.eup %15701 }
 0x103   :  { %13229 = vmatprep.subr.bf16.mxu1 %v13806_v28  ;;  %v13862_v28 = vld [vmem:[%s20613_s4 + $0x830] ss:$28 sps:$4 sm:$0xff]  }
 0x104   :  { %2756 = vmatpush1.bf16.msra.mxu0 %v13803_v29  ;;  %v13866_v29 = vld [vmem:[%s20613_s4 + $0xa28] ss:$28 sps:$4 sm:$0xff]  }
 0x105   :  { %2757 = vmatprep.subr.bf16.mxu0 %v13810_v30  ;;  %v13863_v30 = vld [vmem:[%s20613_s4 + $0xbd0] ss:$28 sps:$4 sm:$0xff]  }
 0x106   :  { %13230 = vmatpush3.bf16.msra.mxu1 %v13807_v31  ;;  %v137_v31 = vadd.f32 1.0, %v15702_v27  ;;  %v13922_v27 = vld [vmem:[%s20613_s4 + $0x2e4] ss:$28 sps:$4 sm:$0xff]  }
 0x107   :  { %13231 = vmatprep.subr.bf16.mxu1 %v13811_v32  ;;  %v13870_v32 = vld [vmem:[%s20613_s4 + $0xc0c] ss:$28 sps:$4 sm:$0xff]  }
 0x108   :  { %2758 = vmatpush1.bf16.msra.mxu0 %v13808_v33  ;;  %v13867_v33 = vld [vmem:[%s20613_s4 + $0x868] ss:$28 sps:$4 sm:$0xff]  }
 0x109   :  { %2759 = vmatprep.subr.bf16.mxu0 %v13815_v34  ;;  %v116_v34 = vmul.f32 0.5, %v16098_v42  ;;  %v13872_v42 = vld [vmem:[%s20613_s4 + $0x8a0] ss:$28 sps:$4 sm:$0xff]  }
 0x10a   :  { %13232 = vmatpush3.bf16.msra.mxu1 %v13812_v35  ;;  %v13871_v35 = vld [vmem:[%s20613_s4 + $0xa60] ss:$28 sps:$4 sm:$0xff]  }
 0x10b   :  { %13233 = vmatprep.subr.bf16.mxu1 %v13816_v36  ;;  %v13868_v36 = vld [vmem:[%s20613_s4 + $0xc08] ss:$28 sps:$4 sm:$0xff]  }
 0x10c   :  { %2760 = vmatpush1.bf16.msra.mxu0 %v13813_v37  ;;  %v144_v37 = vmul.f32 %v137_v31, %v116_v34  ;;  %v13925_v31 = vld [vmem:[%s20613_s4 + $0x31c] ss:$28 sps:$4 sm:$0xff]  }
 0x10d   :  { %2761 = vmatprep.subr.bf16.mxu0 %v13820_v38  ;;  %v13875_v38 = vld [vmem:[%s20613_s4 + $0xc] ss:$28 sps:$4 sm:$0xff]   ;;  %v14024_v34 = vld [vmem:[%s20616_s6 + $0x64] ss:$24 sps:$4 sm:$0xff]  }
 0x10e   :  { %13234 = vmatpush3.bf16.msra.mxu1 %v13817_v39  ;;  %v13873_v39 = vld [vmem:[%s20613_s4 + $0x8] ss:$28 sps:$4 sm:$0xff]  }
 0x10f   :  { %13235 = vmatprep.subr.bf16.mxu1 %v13821_v41  ;;  %v16612_v41 = vpack.c.bf16 %v144_v37, %v144_v37  ;;  %v14028_v37 = vld [vmem:[%s20616_s6 + $0x90] ss:$24 sps:$4 sm:$0xff]  }
 0x110   :  { %2762 = vmatpush1.bf16.msra.mxu0 %v13818_v40  ;;  %v13879_v40 = vld [vmem:[%s20613_s4 + $0x44] ss:$28 sps:$4 sm:$0xff]  }
 0x111   :  { %2763 = vmatprep.subr.bf16.mxu0 %v13825_v43  ;;  %v13876_v43 = vld [vmem:[%s20613_s4 + $0xa98] ss:$28 sps:$4 sm:$0xff]  }
 0x112   :  { %13236 = vmatpush3.bf16.msra.mxu1 %v13822_v45  ;;  %v15782_v45 = vmov 0.0  }
 0x113   :  { %13237 = vmatprep.subr.bf16.mxu1 %v13826_v46  ;;  %v13877_v46 = vld [vmem:[%s20613_s4 + $0x40] ss:$28 sps:$4 sm:$0xff]  }
 0x114   :  { %2764 = vmatpush1.bf16.msra.mxu0 %v13823_v47  ;;  %v13883_v47 = vld [vmem:[%s20613_s4 + $0x7c] ss:$28 sps:$4 sm:$0xff]  }
 0x115   :  { %2765 = vmatprep.subr.bf16.mxu0 %v13830_v48  ;;  %v13880_v48 = vld [vmem:[%s20613_s4 + $0xad0] ss:$28 sps:$4 sm:$0xff]  }
 0x116   :  { %13238 = vmatpush3.bf16.msra.mxu1 %v13827_v49  ;;  %v13881_v49 = vld [vmem:[%s20613_s4 + $0x78] ss:$28 sps:$4 sm:$0xff]  }
 0x117   :  { %13239 = vmatprep.subr.bf16.mxu1 %v13831_v50  ;;  %v13887_v50 = vld [vmem:[%s20613_s4 + $0xb4] ss:$28 sps:$4 sm:$0xff]  }
 0x118   :  { %2766 = vmatpush1.bf16.msra.mxu0 %v13828_v51  ;;  %v13884_v51 = vld [vmem:[%s20613_s4 + $0xb08] ss:$28 sps:$4 sm:$0xff]  }
 0x119   :  { %2776 = vmatprep.subr.bf16.mxu0 %v13835_v52  ;;  %v13885_v52 = vld [vmem:[%s20613_s4 + $0xb0] ss:$28 sps:$4 sm:$0xff]  }
 0x11a   :  { %13240 = vmatpush3.bf16.msra.mxu1 %v13832_v53  ;;  %v13891_v53 = vld [vmem:[%s20613_s4 + $0xec] ss:$28 sps:$4 sm:$0xff]  }
 0x11b   :  { %2768 = vmatmul.mubr.bf16.vlgmr.msra.gmra.mrb[0].mxu0 %v16325_v44  ;;  %13247 = vmatprep.subr.bf16.mxu1 %v13836_v54  ;;  %v13888_v54 = vld [vmem:[%s20613_s4 + $0xb40] ss:$28 sps:$4 sm:$0xff]  }
 0x11c   :  { %2777 = vmatpush1.bf16.msra.mxu0 %v13833_v55  ;;  %2808 = vmatprep.mubr.bf16.mxu0 %v15781_v0  ;;  %v13889_v55 = vld [vmem:[%s20613_s4 + $0xe8] ss:$28 sps:$4 sm:$0xff]  }
 0x11d   :  { %3218 = vmatmul.mubr.bf16.vlgmr.msra.gmra.mrb[8].mxu1 %v16110_v16  ;;  %2778 = vmatprep.subr.bf16.mxu0 %v13840_v56  ;;  %v13895_v56 = vld [vmem:[%s20613_s4 + $0x124] ss:$28 sps:$4 sm:$0xff]  }
 0x11e   :  { %13248 = vmatpush3.bf16.msra.mxu1 %v13837_v57  ;;  %3257 = vmatprep.mubr.bf16.mxu1 %v16125_v22  ;;  %v13892_v57 = vld [vmem:[%s20613_s4 + $0xb78] ss:$28 sps:$4 sm:$0xff]  }
 0x11f   :  { %13249 = vmatprep.subr.bf16.mxu1 %v13841_v58  ;;  %v13893_v58 = vld [vmem:[%s20613_s4 + $0x120] ss:$28 sps:$4 sm:$0xff]  }
 0x120   :  { %2779 = vmatpush1.bf16.msra.mxu0 %v13838_v59  ;;  %v13899_v59 = vld [vmem:[%s20613_s4 + $0x15c] ss:$28 sps:$4 sm:$0xff]  }
 0x121   :  { %2780 = vmatprep.subr.bf16.mxu0 %v13845_v60  ;;  %v13896_v60 = vld [vmem:[%s20613_s4 + $0xbb0] ss:$28 sps:$4 sm:$0xff]  }
 0x122   :  { %13250 = vmatpush3.bf16.msra.mxu1 %v13842_v61  ;;  %v13897_v61 = vld [vmem:[%s20613_s4 + $0x158] ss:$28 sps:$4 sm:$0xff]  }
 0x123   :  { %13251 = vmatprep.subr.bf16.mxu1 %v13846_v62  ;;  %v13903_v62 = vld [vmem:[%s20613_s4 + $0x194] ss:$28 sps:$4 sm:$0xff]  }
 0x124   :  { %2781 = vmatpush1.bf16.msra.mxu0 %v13843_v1  ;;  %v13901_v1 = vld [vmem:[%s20613_s4 + $0x190] ss:$28 sps:$4 sm:$0xff]  }
 0x125   :  { %2782 = vmatprep.subr.bf16.mxu0 %v13850_v3  ;;  %v13907_v3 = vld [vmem:[%s20613_s4 + $0x1cc] ss:$28 sps:$4 sm:$0xff]  }
 0x126   :  { %13252 = vmatpush3.bf16.msra.mxu1 %v13847_v4  ;;  %v13904_v4 = vld [vmem:[%s20613_s4 + $0xc20] ss:$28 sps:$4 sm:$0xff]  }
 0x127   :  { %13253 = vmatprep.subr.bf16.mxu1 %v13851_v5  ;;  %v13905_v5 = vld [vmem:[%s20613_s4 + $0x1c8] ss:$28 sps:$4 sm:$0xff]  }
 0x128   :  { %2783 = vmatpush1.bf16.msra.mxu0 %v13848_v6  ;;  %v13910_v6 = vld [vmem:[%s20613_s4 + $0x204] ss:$28 sps:$4 sm:$0xff]  }
 0x129   :  { %2784 = vmatprep.subr.bf16.mxu0 %v13855_v15  ;;  %v13908_v15 = vld [vmem:[%s20613_s4 + $0x200] ss:$28 sps:$4 sm:$0xff]  }
 0x12a   :  { %13254 = vmatpush3.bf16.msra.mxu1 %v13852_v17  ;;  %v13913_v17 = vld [vmem:[%s20613_s4 + $0x23c] ss:$28 sps:$4 sm:$0xff]  }
 0x12b   :  { %13255 = vmatprep.subr.bf16.mxu1 %v13856_v19  ;;  %v13911_v19 = vld [vmem:[%s20613_s4 + $0x238] ss:$28 sps:$4 sm:$0xff]  }
 0x12c   :  { %2785 = vmatpush1.bf16.msra.mxu0 %v13853_v20  ;;  %v13916_v20 = vld [vmem:[%s20613_s4 + $0x274] ss:$28 sps:$4 sm:$0xff]  }
 0x12d   :  { %2786 = vmatprep.subr.bf16.mxu0 %v13860_v21  ;;  %v13914_v21 = vld [vmem:[%s20613_s4 + $0x270] ss:$28 sps:$4 sm:$0xff]  }
 0x12e   :  { %13256 = vmatpush3.bf16.msra.mxu1 %v13857_v23  ;;  %v13919_v23 = vld [vmem:[%s20613_s4 + $0x2ac] ss:$28 sps:$4 sm:$0xff]  }
 0x12f   :  { %13257 = vmatprep.subr.bf16.mxu1 %v13861_v24  ;;  %v14010_v24 = vld [vmem:[%s20616_s6] ss:$24 sps:$4 sm:$0xff]  }
 0x130   :  { %2787 = vmatpush1.bf16.msra.mxu0 %v13858_v25  ;;  %v14012_v25 = vld [vmem:[%s20616_s6 + $0x4] ss:$24 sps:$4 sm:$0xff]  }
 0x131   :  { %2788 = vmatprep.subr.bf16.mxu0 %v13865_v26  ;;  %v13917_v26 = vld [vmem:[%s20613_s4 + $0x2a8] ss:$28 sps:$4 sm:$0xff]  }
 0x132   :  { %13258 = vmatpush3.bf16.msra.mxu1 %v13862_v28  ;;  %v14018_v28 = vld [vmem:[%s20616_s6 + $0x34] ss:$24 sps:$4 sm:$0xff]  }
 0x133   :  { %13259 = vmatprep.subr.bf16.mxu1 %v13866_v29  ;;  %v14016_v29 = vld [vmem:[%s20616_s6 + $0x30] ss:$24 sps:$4 sm:$0xff]  }
 0x134   :  { %2789 = vmatpush1.bf16.msra.mxu0 %v13863_v30  ;;  %v13920_v30 = vld [vmem:[%s20613_s4 + $0x2e0] ss:$28 sps:$4 sm:$0xff]  }
 0x135   :  { %2790 = vmatprep.subr.bf16.mxu0 %v13870_v32  ;;  %v13923_v32 = vld [vmem:[%s20613_s4 + $0x318] ss:$28 sps:$4 sm:$0xff]  }
 0x136   :  { %13260 = vmatpush3.bf16.msra.mxu1 %v13867_v33  ;;  %v14022_v33 = vld [vmem:[%s20616_s6 + $0x60] ss:$24 sps:$4 sm:$0xff]  }
 0x137   :  { %13261 = vmatprep.subr.bf16.mxu1 %v13871_v35  ;;  %v13928_v35 = vld [vmem:[%s20613_s4 + $0x354] ss:$28 sps:$4 sm:$0xff]  }
 0x138   :  { %2791 = vmatpush1.bf16.msra.mxu0 %v13868_v36  ;;  %v13926_v36 = vld [vmem:[%s20613_s4 + $0x350] ss:$28 sps:$4 sm:$0xff]  }
 0x139   :  { %2817 = vmatprep.subr.bf16.mxu0 %v13875_v38  ;;  %v14030_v38 = vld [vmem:[%s20616_s6 + $0x94] ss:$24 sps:$4 sm:$0xff]  }
 0x13a   :  { %13262 = vmatpush3.bf16.msra.mxu1 %v13872_v42  ;;  %v13931_v42 = vld [vmem:[%s20613_s4 + $0xa8c] ss:$28 sps:$4 sm:$0xff]  }
 0x13b   :  { %2809 = vmatmul.mubr.bf16.vlgmr.msra.gmra.mrb[0].mxu0 %v16612_v41  ;;  %13353 = vmatprep.subr.bf16.mxu1 %v15782_v45 }
 0x13c   :  { %2818 = vmatpush1.bf16.msra.mxu0 %v13873_v39  ;;  %2849 = vmatprep.mubr.bf16.mxu0 %v16105_v11  ;;  %v14036_v39 = vld [vmem:[%s20616_s6 + $0xc4] ss:$24 sps:$4 sm:$0xff]  }
 0x13d   :  { %3258 = vmatmul.mubr.bf16.vlgmr.msra.gmra.mrb[12].mxu1 %v16325_v44  ;;  %2819 = vmatprep.subr.bf16.mxu0 %v13879_v40  ;;  %v14034_v40 = vld [vmem:[%s20616_s6 + $0xc0] ss:$24 sps:$4 sm:$0xff]  }
 0x13e   :  { %13354 = vmatpush3.bf16.msra.mxu1 %v13876_v43  ;;  %13369 = vmatprep.mubr.msk.bf16.mxu1 %vm15783_vm0, %v15782_v45  ;;  %v13929_v43 = vld [vmem:[%s20613_s4 + $0xa88] ss:$28 sps:$4 sm:$0xff]  }
 0x13f   :  { %13355 = vmatprep.subr.bf16.mxu1 %v15782_v45 }
 0x140   :  { %2820 = vmatpush1.bf16.msra.mxu0 %v13877_v46  ;;  %v13934_v46 = vld [vmem:[%s20613_s4 + $0xac4] ss:$28 sps:$4 sm:$0xff]  }
 0x141   :  { %2821 = vmatprep.subr.bf16.mxu0 %v13883_v47  ;;  %v14040_v47 = vld [vmem:[%s20616_s6 + $0xf0] ss:$24 sps:$4 sm:$0xff]  }
 0x142   :  { %13356 = vmatpush3.bf16.msra.mxu1 %v13880_v48  ;;  %v14042_v48 = vld [vmem:[%s20616_s6 + $0xf4] ss:$24 sps:$4 sm:$0xff]  }
 0x143   :  { %13357 = vmatprep.subr.bf16.mxu1 %v15782_v45 }
 0x144   :  { %2822 = vmatpush1.bf16.msra.mxu0 %v13881_v49  ;;  %v13932_v49 = vld [vmem:[%s20613_s4 + $0xac0] ss:$28 sps:$4 sm:$0xff]  }
 0x145   :  { %2823 = vmatprep.subr.bf16.mxu0 %v13887_v50  ;;  %v13937_v50 = vld [vmem:[%s20613_s4 + $0xafc] ss:$28 sps:$4 sm:$0xff]  }
 0x146   :  { %13358 = vmatpush3.bf16.msra.mxu1 %v13884_v51  ;;  %v14048_v51 = vld [vmem:[%s20616_s6 + $0x124] ss:$24 sps:$4 sm:$0xff]  }
 0x147   :  { %13359 = vmatprep.subr.bf16.mxu1 %v15782_v45 }
 0x148   :  { %2824 = vmatpush1.bf16.msra.mxu0 %v13885_v52  ;;  %v14046_v52 = vld [vmem:[%s20616_s6 + $0x120] ss:$24 sps:$4 sm:$0xff]  }
 0x149   :  { %2825 = vmatprep.subr.bf16.mxu0 %v13891_v53  ;;  %v13935_v53 = vld [vmem:[%s20613_s4 + $0xaf8] ss:$28 sps:$4 sm:$0xff]  }
 0x14a   :  { %13360 = vmatpush3.bf16.msra.mxu1 %v13888_v54  ;;  %v13940_v54 = vld [vmem:[%s20613_s4 + $0xb34] ss:$28 sps:$4 sm:$0xff]  }
 0x14b   :  { %13361 = vmatprep.subr.bf16.mxu1 %v15782_v45 }
 0x14c   :  { %2826 = vmatpush1.bf16.msra.mxu0 %v13889_v55  ;;  %v14054_v55 = vld [vmem:[%s20616_s6 + $0x154] ss:$24 sps:$4 sm:$0xff]  }
 0x14d   :  { %2827 = vmatprep.subr.bf16.mxu0 %v13895_v56  ;;  %v14052_v56 = vld [vmem:[%s20616_s6 + $0x150] ss:$24 sps:$4 sm:$0xff]  }
 0x14e   :  { %13362 = vmatpush3.bf16.msra.mxu1 %v13892_v57  ;;  %v13938_v57 = vld [vmem:[%s20613_s4 + $0xb30] ss:$28 sps:$4 sm:$0xff]  }
 0x14f   :  { %13363 = vmatprep.subr.bf16.mxu1 %v15782_v45 }
 0x150   :  { %2828 = vmatpush1.bf16.msra.mxu0 %v13893_v58  ;;  %v13943_v58 = vld [vmem:[%s20613_s4 + $0xb6c] ss:$28 sps:$4 sm:$0xff]  }
 0x151   :  { %2829 = vmatprep.subr.bf16.mxu0 %v13899_v59  ;;  %v14060_v59 = vld [vmem:[%s20616_s6 + $0x184] ss:$24 sps:$4 sm:$0xff]  }
 0x152   :  { %13364 = vmatpush3.bf16.msra.mxu1 %v13896_v60  ;;  %v14058_v60 = vld [vmem:[%s20616_s6 + $0x180] ss:$24 sps:$4 sm:$0xff]  }
 0x153   :  { %13365 = vmatprep.subr.bf16.mxu1 %v15782_v45 }
 0x154   :  { %2830 = vmatpush1.bf16.msra.mxu0 %v13897_v61  ;;  %v13941_v61 = vld [vmem:[%s20613_s4 + $0xb68] ss:$28 sps:$4 sm:$0xff]  }
 0x155   :  { %2831 = vmatprep.subr.bf16.mxu0 %v13903_v62  ;;  %v13946_v62 = vld [vmem:[%s20613_s4 + $0xba4] ss:$28 sps:$4 sm:$0xff]  }
 0x156   :  { %13366 = vmatpush3.bf16.msra.mxu1 %v13900_v63  ;;  %v14066_v63 = vld [vmem:[%s20616_s6 + $0x1b4] ss:$24 sps:$4 sm:$0xff]  }
 0x157   :  { %13367 = vmatprep.subr.bf16.mxu1 %v15782_v45 }
 0x158   :  { %2832 = vmatpush1.bf16.msra.mxu0 %v13901_v1  ;;  %v14064_v1 = vld [vmem:[%s20616_s6 + $0x1b0] ss:$24 sps:$4 sm:$0xff]  }
 0x159   :  { %2833 = vmatprep.subr.bf16.mxu0 %v13907_v3  ;;  %v13944_v3 = vld [vmem:[%s20613_s4 + $0xba0] ss:$28 sps:$4 sm:$0xff]  }
 0x15a   :  { %13368 = vmatpush3.bf16.msra.mxu1 %v13904_v4  ;;  %v13949_v4 = vld [vmem:[%s20613_s4 + $0xbdc] ss:$28 sps:$4 sm:$0xff]  }
 0x15b   :  { %5395 = vmatprep.subr.bf16.mxu1 %v14012_v25  ;;  %v14084_v25 = vld [vmem:[%s20616_s6 + $0x244] ss:$24 sps:$4 sm:$0xff]  }
 0x15c   :  { %2834 = vmatpush1.bf16.msra.mxu0 %v13905_v5  ;;  %v13947_v5 = vld [vmem:[%s20613_s4 + $0xbd8] ss:$28 sps:$4 sm:$0xff]  }
 0x15d   :  { %13370 = vmatmul.mubr.bf16.vlgmr.msra.gmra.mrb[16].mxu1 %v16612_v41  ;;  %2835 = vmatprep.subr.bf16.mxu0 %v13910_v6  ;;  %v14072_v6 = vld [vmem:[%s20616_s6 + $0x1e4] ss:$24 sps:$4 sm:$0xff]  }
 0x15e   :  { %5396 = vmatpush1.bf16.msra.mxu1 %v14010_v24  ;;  %v13953_v24 = vld [vmem:[%s20613_s4 + $0x10] ss:$28 sps:$4 sm:$0xff]  }
 0x15f   :  { %5397 = vmatprep.subr.bf16.mxu1 %v14018_v28  ;;  %v13956_v28 = vld [vmem:[%s20613_s4 + $0x48] ss:$28 sps:$4 sm:$0xff]  }
 0x160   :  { %2836 = vmatpush1.bf16.msra.mxu0 %v13908_v15  ;;  %v13952_v15 = vld [vmem:[%s20613_s4 + $0xc14] ss:$28 sps:$4 sm:$0xff]  }
 0x161   :  { %2837 = vmatprep.subr.bf16.mxu0 %v13913_v17  ;;  %v14070_v17 = vld [vmem:[%s20616_s6 + $0x1e0] ss:$24 sps:$4 sm:$0xff]  }
 0x162   :  { %5398 = vmatpush1.bf16.msra.mxu1 %v14016_v29  ;;  %v14090_v29 = vld [vmem:[%s20616_s6 + $0x274] ss:$24 sps:$4 sm:$0xff]  }
 0x163   :  { %5399 = vmatprep.subr.bf16.mxu1 %v14024_v34  ;;  %v13964_v34 = vld [vmem:[%s20613_s4 + $0xbc] ss:$28 sps:$4 sm:$0xff]  }
 0x164   :  { %2838 = vmatpush1.bf16.msra.mxu0 %v13911_v19  ;;  %v13950_v19 = vld [vmem:[%s20613_s4 + $0xc10] ss:$28 sps:$4 sm:$0xff]  }
 0x165   :  { %2839 = vmatprep.subr.bf16.mxu0 %v13916_v20  ;;  %v14078_v20 = vld [vmem:[%s20616_s6 + $0x214] ss:$24 sps:$4 sm:$0xff]  }
 0x166   :  { %5400 = vmatpush1.bf16.msra.mxu1 %v14022_v33  ;;  %v14096_v33 = vld [vmem:[%s20616_s6 + $0x2a4] ss:$24 sps:$4 sm:$0xff]  }
 0x167   :  { %5401 = vmatprep.subr.bf16.mxu1 %v14030_v38  ;;  %v13967_v38 = vld [vmem:[%s20613_s4 + $0xf4] ss:$28 sps:$4 sm:$0xff]  }
 0x168   :  { %2840 = vmatpush1.bf16.msra.mxu0 %v13914_v21  ;;  %v13955_v21 = vld [vmem:[%s20613_s4 + $0x14] ss:$28 sps:$4 sm:$0xff]  }
 0x169   :  { %2841 = vmatprep.subr.bf16.mxu0 %v13919_v23  ;;  %v14076_v23 = vld [vmem:[%s20616_s6 + $0x210] ss:$24 sps:$4 sm:$0xff]  }
 0x16a   :  { %5402 = vmatpush1.bf16.msra.mxu1 %v14028_v37  ;;  %v14102_v37 = vld [vmem:[%s20616_s6 + $0x2d4] ss:$24 sps:$4 sm:$0xff]  }
 0x16b   :  { %5403 = vmatprep.subr.bf16.mxu1 %v14036_v39  ;;  %v13965_v39 = vld [vmem:[%s20613_s4 + $0xf0] ss:$28 sps:$4 sm:$0xff]  }
 0x16c   :  { %2842 = vmatpush1.bf16.msra.mxu0 %v13917_v26  ;;  %v13958_v26 = vld [vmem:[%s20613_s4 + $0x4c] ss:$28 sps:$4 sm:$0xff]  }
 0x16d   :  { %2843 = vmatprep.subr.bf16.mxu0 %v13922_v27  ;;  %v14082_v27 = vld [vmem:[%s20616_s6 + $0x240] ss:$24 sps:$4 sm:$0xff]  }
 0x16e   :  { %5404 = vmatpush1.bf16.msra.mxu1 %v14034_v40  ;;  %v13970_v40 = vld [vmem:[%s20613_s4 + $0x12c] ss:$28 sps:$4 sm:$0xff]  }
 0x16f   :  { %5405 = vmatprep.subr.bf16.mxu1 %v14042_v48 }
 0x170   :  { %2844 = vmatpush1.bf16.msra.mxu0 %v13920_v30  ;;  %v13961_v30 = vld [vmem:[%s20613_s4 + $0x84] ss:$28 sps:$4 sm:$0xff]  }
 0x171   :  { %2845 = vmatprep.subr.bf16.mxu0 %v13925_v31  ;;  %v14088_v31 = vld [vmem:[%s20616_s6 + $0x270] ss:$24 sps:$4 sm:$0xff]  }
 0x172   :  { %5406 = vmatpush1.bf16.msra.mxu1 %v14040_v47  ;;  %v13971_v47 = vld [vmem:[%s20613_s4 + $0x160] ss:$28 sps:$4 sm:$0xff]  }
 0x173   :  { %5407 = vmatprep.subr.bf16.mxu1 %v14048_v51 }
 0x174   :  { %2846 = vmatpush1.bf16.msra.mxu0 %v13923_v32  ;;  %v13959_v32 = vld [vmem:[%s20613_s4 + $0x80] ss:$28 sps:$4 sm:$0xff]  }
 0x175   :  { %2847 = vmatprep.subr.bf16.mxu0 %v13928_v35  ;;  %v14094_v35 = vld [vmem:[%s20616_s6 + $0x2a0] ss:$24 sps:$4 sm:$0xff]  }
 0x176   :  { %5408 = vmatpush1.bf16.msra.mxu1 %v14046_v52  ;;  %v13974_v52 = vld [vmem:[%s20613_s4 + $0x198] ss:$28 sps:$4 sm:$0xff]  }
 0x177   :  { %5409 = vmatprep.subr.bf16.mxu1 %v14054_v55  ;;  %v13977_v55 = vld [vmem:[%s20613_s4 + $0x1d0] ss:$28 sps:$4 sm:$0xff]  }
 0x178   :  { %2848 = vmatpush1.bf16.msra.mxu0 %v13926_v36  ;;  %v13962_v36 = vld [vmem:[%s20613_s4 + $0xb8] ss:$28 sps:$4 sm:$0xff]  }
 0x179   :  { %2940 = vmatprep.subr.bf16.mxu0 %v13931_v42  ;;  %v14100_v42 = vld [vmem:[%s20616_s6 + $0x2d0] ss:$24 sps:$4 sm:$0xff]  }
 0x17a   :  { %5410 = vmatpush1.bf16.msra.mxu1 %v14052_v56  ;;  %v13982_v56 = vld [vmem:[%s20613_s4 + $0x20c] ss:$28 sps:$4 sm:$0xff]  }
 0x17b   :  { %2850 = vmatmul.mubr.bf16.vlgmr.msra.gmra.mrb[4].mxu0 %v16100_v2  ;;  %5411 = vmatprep.subr.bf16.mxu1 %v14060_v59  ;;  %v13983_v59 = vld [vmem:[%s20613_s4 + $0x240] ss:$28 sps:$4 sm:$0xff]  }
 0x17c   :  { %2941 = vmatpush1.bf16.msra.mxu0 %v13929_v43  ;;  %2972 = vmatprep.mubr.bf16.mxu0 %v15781_v0  ;;  %v13968_v43 = vld [vmem:[%s20613_s4 + $0x128] ss:$28 sps:$4 sm:$0xff]  }
 0x17d   :  { %2942 = vmatprep.subr.bf16.mxu0 %v13934_v46  ;;  %v13973_v46 = vld [vmem:[%s20613_s4 + $0x164] ss:$28 sps:$4 sm:$0xff]  }
 0x17e   :  { %5412 = vmatpush1.bf16.msra.mxu1 %v14058_v60  ;;  %v13988_v60 = vld [vmem:[%s20613_s4 + $0x27c] ss:$28 sps:$4 sm:$0xff]  }
 0x17f   :  { %5413 = vmatprep.subr.bf16.mxu1 %v14066_v63  ;;  %v14132_v63 = vld [vmem:[%s20616_s6 + $0x304] ss:$24 sps:$4 sm:$0xff]  }
 0x180   :  { %2943 = vmatpush1.bf16.msra.mxu0 %v13932_v49 }
 0x181   :  { %2944 = vmatprep.subr.bf16.mxu0 %v13937_v50  ;;  %v13976_v50 = vld [vmem:[%s20613_s4 + $0x19c] ss:$28 sps:$4 sm:$0xff]  }
 0x182   :  { %5414 = vmatpush1.bf16.msra.mxu1 %v14064_v1  ;;  %v13989_v1 = vld [vmem:[%s20613_s4 + $0x2b0] ss:$28 sps:$4 sm:$0xff]  }
 0x183   :  { %5415 = vmatprep.subr.bf16.mxu1 %v14072_v6 }
 0x184   :  { %2945 = vmatpush1.bf16.msra.mxu0 %v13935_v53 }
 0x185   :  { %2946 = vmatprep.subr.bf16.mxu0 %v13940_v54  ;;  %v13979_v54 = vld [vmem:[%s20613_s4 + $0x1d4] ss:$28 sps:$4 sm:$0xff]  }
 0x186   :  { %5416 = vmatpush1.bf16.msra.mxu1 %v14070_v17 }
 0x187   :  { %5417 = vmatprep.subr.bf16.mxu1 %v14078_v20 }
 0x188   :  { %2947 = vmatpush1.bf16.msra.mxu0 %v13938_v57  ;;  %v13980_v57 = vld [vmem:[%s20613_s4 + $0x208] ss:$28 sps:$4 sm:$0xff]  }
 0x189   :  { %2948 = vmatprep.subr.bf16.mxu0 %v13943_v58  ;;  %v13985_v58 = vld [vmem:[%s20613_s4 + $0x244] ss:$28 sps:$4 sm:$0xff]  }
 0x18a   :  { %5418 = vmatpush1.bf16.msra.mxu1 %v14076_v23 }
 0x18b   :  { %5419 = vmatprep.subr.bf16.mxu1 %v14084_v25  ;;  %v14003_v25 = vld [vmem:[%s20613_s4 + $0x394] ss:$28 sps:$4 sm:$0xff]  }
 0x18c   :  { %2949 = vmatpush1.bf16.msra.mxu0 %v13941_v61  ;;  %v13986_v61 = vld [vmem:[%s20613_s4 + $0x278] ss:$28 sps:$4 sm:$0xff]  }
 0x18d   :  { %2950 = vmatprep.subr.bf16.mxu0 %v13946_v62  ;;  %v13991_v62 = vld [vmem:[%s20613_s4 + $0x2b4] ss:$28 sps:$4 sm:$0xff]  }
 0x18e   :  { %5420 = vmatpush1.bf16.msra.mxu1 %v14082_v27  ;;  %v14006_v27 = vld [vmem:[%s20613_s4 + $0x3cc] ss:$28 sps:$4 sm:$0xff]  }
 0x18f   :  { %5421 = vmatprep.subr.bf16.mxu1 %v14090_v29  ;;  %v14009_v29 = vld [vmem:[%s20613_s4 + $0x404] ss:$28 sps:$4 sm:$0xff]  }
 0x190   :  { %2951 = vmatpush1.bf16.msra.mxu0 %v13944_v3  ;;  %v13994_v3 = vld [vmem:[%s20613_s4 + $0x2ec] ss:$28 sps:$4 sm:$0xff]  }
 0x191   :  { %2952 = vmatprep.subr.bf16.mxu0 %v13949_v4  ;;  %v13992_v4 = vld [vmem:[%s20613_s4 + $0x2e8] ss:$28 sps:$4 sm:$0xff]  }
 0x192   :  { %5422 = vmatpush1.bf16.msra.mxu1 %v14088_v31  ;;  %v14015_v31 = vld [vmem:[%s20613_s4 + $0x43c] ss:$28 sps:$4 sm:$0xff]  }
 0x193   :  { %5423 = vmatprep.subr.bf16.mxu1 %v14096_v33  ;;  %v14021_v33 = vld [vmem:[%s20613_s4 + $0x474] ss:$28 sps:$4 sm:$0xff]  }
 0x194   :  { %2953 = vmatpush1.bf16.msra.mxu0 %v13947_v5  ;;  %v13997_v5 = vld [vmem:[%s20613_s4 + $0x324] ss:$28 sps:$4 sm:$0xff]  }
 0x195   :  { %2954 = vmatprep.subr.bf16.mxu0 %v13952_v15  ;;  %v13995_v15 = vld [vmem:[%s20613_s4 + $0x320] ss:$28 sps:$4 sm:$0xff]  }
 0x196   :  { %5424 = vmatpush1.bf16.msra.mxu1 %v14094_v35  ;;  %v17028_v35 = vld [vmem:[%s20617_s5] sm:$0xff] }
 0x197   :  { %5425 = vmatprep.subr.bf16.mxu1 %v14102_v37  ;;  %v14025_v37 = vld [vmem:[%s20613_s4 + $0x4a8] ss:$28 sps:$4 sm:$0xff]  }
 0x198   :  { %2955 = vmatpush1.bf16.msra.mxu0 %v13950_v19  ;;  %v14000_v19 = vld [vmem:[%s20613_s4 + $0x35c] ss:$28 sps:$4 sm:$0xff]  }
 0x199   :  { %2981 = vmatprep.subr.bf16.mxu0 %v13955_v21 }
 0x19a   :  { %5426 = vmatpush1.bf16.msra.mxu1 %v14100_v42  ;;  %v629_v42 = vrot.slane %v17028_v35, %v16066_v14 }
 0x19b   :  { %2973 = vmatmul.mubr.bf16.vlgmr.msra.gmra.mrb[8].mxu0 %v16612_v41  ;;  %5436 = vmatprep.subr.bf16.mxu1 %v14132_v63  ;;  %v14069_v63 = vld [vmem:[%s20613_s4 + $0x634] ss:$28 sps:$4 sm:$0xff]  }
 0x19c   :  { %2982 = vmatpush1.bf16.msra.mxu0 %v13953_v24  ;;  %3013 = vmatprep.mubr.bf16.mxu0 %v16105_v11  ;;  %v13998_v24 = vld [vmem:[%s20613_s4 + $0x358] ss:$28 sps:$4 sm:$0xff]  }
 0x19d   :  { %2983 = vmatprep.subr.bf16.mxu0 %v13958_v26  ;;  %v14001_v26 = vld [vmem:[%s20613_s4 + $0x390] ss:$28 sps:$4 sm:$0xff]  }
 0x1a0   :  { %2984 = vmatpush1.bf16.msra.mxu0 %v13956_v28  ;;  %v14004_v28 = vld [vmem:[%s20613_s4 + $0x3c8] ss:$28 sps:$4 sm:$0xff]  }
 0x1a1   :  { %2985 = vmatprep.subr.bf16.mxu0 %v13961_v30  ;;  %v14007_v30 = vld [vmem:[%s20613_s4 + $0x400] ss:$28 sps:$4 sm:$0xff]  }
 0x1a4   :  { %2986 = vmatpush1.bf16.msra.mxu0 %v13959_v32  ;;  %v14013_v32 = vld [vmem:[%s20613_s4 + $0x438] ss:$28 sps:$4 sm:$0xff]  }
 0x1a5   :  { %2987 = vmatprep.subr.bf16.mxu0 %v13964_v34  ;;  %v14019_v34 = vld [vmem:[%s20613_s4 + $0x470] ss:$28 sps:$4 sm:$0xff]  }
 0x1a8   :  { %2988 = vmatpush1.bf16.msra.mxu0 %v13962_v36  ;;  %v14027_v36 = vld [vmem:[%s20613_s4 + $0x4ac] ss:$28 sps:$4 sm:$0xff]  }
 0x1a9   :  { %2989 = vmatprep.subr.bf16.mxu0 %v13967_v38  ;;  %v14033_v38 = vld [vmem:[%s20613_s4 + $0x4e4] ss:$28 sps:$4 sm:$0xff]  }
 0x1ac   :  { %2990 = vmatpush1.bf16.msra.mxu0 %v13965_v39 }
 0x1ad   :  { %2991 = vmatprep.subr.bf16.mxu0 %v13970_v40  ;;  %v14031_v40 = vld [vmem:[%s20613_s4 + $0x4e0] ss:$28 sps:$4 sm:$0xff]  }
 0x1b0   :  { %v16932_v48 = vpop.f32.mrb[0].mxu1  ;;  %2992 = vmatpush1.bf16.msra.mxu0 %v13968_v43 }
 0x1b1   :  { %v16934_v49 = vpop.f32.mrb[1].mxu1  ;;  %2993 = vmatprep.subr.bf16.mxu0 %v13973_v46  ;;  %v14039_v46 = vld [vmem:[%s20613_s4 + $0x51c] ss:$28 sps:$4 sm:$0xff]  }
 0x1b2   :  { %v2937_v51 = vpop.f32.mrb[2].mxu1 }
 0x1b3   :  { %v2938_v53 = vpop.f32.mrb[3].mxu1 }
 0x1b4   :  { %2994 = vmatpush1.bf16.msra.mxu0 %v13971_v47 }
 0x1b5   :  { %2995 = vmatprep.subr.bf16.mxu0 %v13976_v50 }
 0x1b8   :  { %2996 = vmatpush1.bf16.msra.mxu0 %v13974_v52 }
 0x1b9   :  { %2997 = vmatprep.subr.bf16.mxu0 %v13979_v54  ;;  %v14037_v54 = vld [vmem:[%s20613_s4 + $0x518] ss:$28 sps:$4 sm:$0xff]  }
 0x1bc   :  { %2998 = vmatpush1.bf16.msra.mxu0 %v13977_v55  ;;  %v14045_v55 = vld [vmem:[%s20613_s4 + $0x554] ss:$28 sps:$4 sm:$0xff]  }
 0x1bd   :  { %2999 = vmatprep.subr.bf16.mxu0 %v13982_v56  ;;  %v14043_v56 = vld [vmem:[%s20613_s4 + $0x550] ss:$28 sps:$4 sm:$0xff]  }
 0x1c0   :  { %3000 = vmatpush1.bf16.msra.mxu0 %v13980_v57  ;;  %v14051_v57 = vld [vmem:[%s20613_s4 + $0x58c] ss:$28 sps:$4 sm:$0xff]  }
 0x1c1   :  { %3001 = vmatprep.subr.bf16.mxu0 %v13985_v58  ;;  %v14049_v58 = vld [vmem:[%s20613_s4 + $0x588] ss:$28 sps:$4 sm:$0xff]  }
 0x1c4   :  { %3002 = vmatpush1.bf16.msra.mxu0 %v13983_v59  ;;  %v14057_v59 = vld [vmem:[%s20613_s4 + $0x5c4] ss:$28 sps:$4 sm:$0xff]  }
 0x1c5   :  { %3003 = vmatprep.subr.bf16.mxu0 %v13988_v60  ;;  %v14055_v60 = vld [vmem:[%s20613_s4 + $0x5c0] ss:$28 sps:$4 sm:$0xff]  }
 0x1c8   :  { %3004 = vmatpush1.bf16.msra.mxu0 %v13986_v61  ;;  %v14063_v61 = vld [vmem:[%s20613_s4 + $0x5fc] ss:$28 sps:$4 sm:$0xff]  }
 0x1c9   :  { %3005 = vmatprep.subr.bf16.mxu0 %v13991_v62  ;;  %v14061_v62 = vld [vmem:[%s20613_s4 + $0x5f8] ss:$28 sps:$4 sm:$0xff]  }
 0x1cc   :  { %3006 = vmatpush1.bf16.msra.mxu0 %v13989_v1  ;;  %v14067_v1 = vld [vmem:[%s20613_s4 + $0x630] ss:$28 sps:$4 sm:$0xff]  }
 0x1cd   :  { %3007 = vmatprep.subr.bf16.mxu0 %v13994_v3  ;;  %v14075_v3 = vld [vmem:[%s20613_s4 + $0x66c] ss:$28 sps:$4 sm:$0xff]  }
 0x1d0   :  { %v13219_v6 = vpop.f32.mrb[4].mxu1  ;;  %3008 = vmatpush1.bf16.msra.mxu0 %v13992_v4  ;;  %v605_v4 = vrot.slane %v17028_v35, %v16051_v7 }
 0x1d1   :  { %v13220_v17 = vpop.f32.mrb[5].mxu1  ;;  %3009 = vmatprep.subr.bf16.mxu0 %v13997_v5  ;;  %v609_v5 = vrot.slane %v17028_v35, %v16053_v8 }
 0x1d2   :  { %v13221_v20 = vadd.f32 %v13220_v17, %v13219_v6  ;;  %v13222_v21 = vpop.f32.mrb[6].mxu1  ;;  %v14073_v6 = vld [vmem:[%s20613_s4 + $0x668] ss:$28 sps:$4 sm:$0xff]  }
 0x1d3   :  { %v13223_v23 = vpop.f32.mrb[7].mxu1 }
 0x1d4   :  { %3010 = vmatpush1.bf16.msra.mxu0 %v13995_v15  ;;  %v3180_v47 = vadd.f32 %v13221_v20, %v629_v42  ;;  %v14081_v15 = vld [vmem:[%s20613_s4 + $0x6a4] ss:$28 sps:$4 sm:$0xff]   ;;  %v14099_v42 = vld [vmem:[%s20613_s4 + $0x74c] ss:$28 sps:$4 sm:$0xff]  }
 0x1d5   :  { %3011 = vmatprep.subr.bf16.mxu0 %v14000_v19 }
 0x1d8   :  { %3012 = vmatpush1.bf16.msra.mxu0 %v13998_v24 }
 0x1d9   :  { %3022 = vmatprep.subr.bf16.mxu0 %v14003_v25  ;;  %v14079_v25 = vld [vmem:[%s20613_s4 + $0x6a0] ss:$28 sps:$4 sm:$0xff]  }
 0x1db   :  { %3014 = vmatmul.mubr.bf16.vlgmr.msra.gmra.mrb[12].mxu0 %v16100_v2 }
 0x1dc   :  { %3023 = vmatpush1.bf16.msra.mxu0 %v14001_v26  ;;  %3054 = vmatprep.mubr.bf16.mxu0 %v16112_v18 }
 0x1dd   :  { %3024 = vmatprep.subr.bf16.mxu0 %v14006_v27 }
 0x1e0   :  { %3025 = vmatpush1.bf16.msra.mxu0 %v14004_v28 }
 0x1e1   :  { %3026 = vmatprep.subr.bf16.mxu0 %v14009_v29  ;;  %v14087_v29 = vld [vmem:[%s20613_s4 + $0x6dc] ss:$28 sps:$4 sm:$0xff]  }
 0x1e4   :  { %3027 = vmatpush1.bf16.msra.mxu0 %v14007_v30 }
 0x1e5   :  { %3028 = vmatprep.subr.bf16.mxu0 %v14015_v31 }
 0x1e8   :  { %3029 = vmatpush1.bf16.msra.mxu0 %v14013_v32 }
 0x1e9   :  { %3030 = vmatprep.subr.bf16.mxu0 %v14021_v33 }
 0x1ec   :  { %3031 = vmatpush1.bf16.msra.mxu0 %v14019_v34  ;;  %v14085_v34 = vld [vmem:[%s20613_s4 + $0x6d8] ss:$28 sps:$4 sm:$0xff]  }
 0x1ed   :  { %3032 = vmatprep.subr.bf16.mxu0 %v14027_v36 }
 0x1f0   :  { %v13241_v39 = vpop.f32.mrb[8].mxu1  ;;  %3033 = vmatpush1.bf16.msra.mxu0 %v14025_v37  ;;  %v14093_v37 = vld [vmem:[%s20613_s4 + $0x714] ss:$28 sps:$4 sm:$0xff]  }
 0x1f1   :  { %v13242_v43 = vpop.f32.mrb[9].mxu1  ;;  %3034 = vmatprep.subr.bf16.mxu0 %v14033_v38  ;;  %v14091_v38 = vld [vmem:[%s20613_s4 + $0x710] ss:$28 sps:$4 sm:$0xff]  }
 0x1f2   :  { %v13243_v50 = vadd.f32 %v13242_v43, %v13241_v39  ;;  %v13244_v51 = vpop.f32.mrb[10].mxu1  ;;  %v14097_v39 = vld [vmem:[%s20613_s4 + $0x748] ss:$28 sps:$4 sm:$0xff]  }
 0x1f3   :  { %v13245_v52 = vpop.f32.mrb[11].mxu1  ;;  %v14105_v43 = vld [vmem:[%s20613_s4 + $0x784] ss:$28 sps:$4 sm:$0xff]  }
 0x1f4   :  { %v3220_v53 = vadd.f32 %v13243_v50, %v3180_v47  ;;  %3035 = vmatpush1.bf16.msra.mxu0 %v14031_v40 }
 0x1f5   :  { %3036 = vmatprep.subr.bf16.mxu0 %v14039_v46 }
 0x1f8   :  { %3037 = vmatpush1.bf16.msra.mxu0 %v14037_v54  ;;  %v14103_v54 = vld [vmem:[%s20613_s4 + $0x780] ss:$28 sps:$4 sm:$0xff]  }
 0x1f9   :  { %3038 = vmatprep.subr.bf16.mxu0 %v14045_v55 }
 0x1fc   :  { %3039 = vmatpush1.bf16.msra.mxu0 %v14043_v56  ;;  %v14108_v56 = vld [vmem:[%s20613_s4 + $0x7bc] ss:$28 sps:$4 sm:$0xff]  }
 0x1fd   :  { %3040 = vmatprep.subr.bf16.mxu0 %v14051_v57 }
 0x200   :  { %3041 = vmatpush1.bf16.msra.mxu0 %v14049_v58  ;;  %v14130_v58 = vld [vmem:[%s20616_s6 + $0x300] ss:$24 sps:$4 sm:$0xff]  }
 0x201   :  { %3042 = vmatprep.subr.bf16.mxu0 %v14057_v59 }
 0x204   :  { %3043 = vmatpush1.bf16.msra.mxu0 %v14055_v60  ;;  %v14106_v60 = vld [vmem:[%s20613_s4 + $0x7b8] ss:$28 sps:$4 sm:$0xff]  }
 0x205   :  { %3044 = vmatprep.subr.bf16.mxu0 %v14063_v61  ;;  %v14138_v61 = vld [vmem:[%s20616_s6 + $0x334] ss:$24 sps:$4 sm:$0xff]  }
 0x208   :  { %3045 = vmatpush1.bf16.msra.mxu0 %v14061_v62  ;;  %v14111_v62 = vld [vmem:[%s20613_s4 + $0x7f4] ss:$28 sps:$4 sm:$0xff]  }
 0x209   :  { %3046 = vmatprep.subr.bf16.mxu0 %v14069_v63  ;;  %v14136_v63 = vld [vmem:[%s20616_s6 + $0x330] ss:$24 sps:$4 sm:$0xff]  }
 0x20c   :  { %3047 = vmatpush1.bf16.msra.mxu0 %v14067_v1  ;;  %v14109_v1 = vld [vmem:[%s20613_s4 + $0x7f0] ss:$28 sps:$4 sm:$0xff]  }
 0x20d   :  { %3048 = vmatprep.subr.bf16.mxu0 %v14075_v3  ;;  %v14144_v3 = vld [vmem:[%s20616_s6 + $0x364] ss:$24 sps:$4 sm:$0xff]  }
 0x20e   :  { %v2810_v17 = vpop.f32.mrb[0].mxu0 }
 0x20f   :  { %v13393_v19 = vadd.f32 %v2810_v17, %v605_v4  ;;  %v2812_v20 = vpop.f32.mrb[1].mxu0  ;;  %v14114_v4 = vld [vmem:[%s20613_s4 + $0x82c] ss:$28 sps:$4 sm:$0xff]   ;;  %v14117_v17 = vld [vmem:[%s20613_s4 + $0x864] ss:$28 sps:$4 sm:$0xff]  }
 0x210   :  { %v13263_v21 = vpop.f32.mrb[12].mxu1  ;;  %v13394_v23 = vadd.f32 %v2812_v20, %v609_v5  ;;  %v2814_v24 = vpop.f32.mrb[2].mxu0  ;;  %3049 = vmatpush1.bf16.msra.mxu0 %v14073_v6  ;;  %v14142_v5 = vld [vmem:[%s20616_s6 + $0x360] ss:$24 sps:$4 sm:$0xff]   ;;  %v14112_v6 = vld [vmem:[%s20613_s4 + $0x828] ss:$28 sps:$4 sm:$0xff]  }
 0x211   :  { %v3312_v26 = vmul.f32 0.70710677, %v13393_v19  ;;  %v13264_v27 = vpop.f32.mrb[13].mxu1  ;;  %v2815_v28 = vpop.f32.mrb[3].mxu0  ;;  %3050 = vmatprep.subr.bf16.mxu0 %v14081_v15  ;;  %v3305_v47 = vmul.f32 0.5, %v13393_v19 }
 0x212   :  { %v3313_v30 = vmul.f32 0.70710677, %v13394_v23  ;;  %v13265_v31 = vadd.f32 %v13264_v27, %v13263_v21  ;;  %v13266_v32 = vpop.f32.mrb[14].mxu1  ;;  %v3306_v51 = vmul.f32 0.5, %v13394_v23  ;;  %v14150_v15 = vld [vmem:[%s20616_s6 + $0x394] ss:$24 sps:$4 sm:$0xff]  }
 0x213   :  { %15703 = verf.f32 %v3312_v26  ;;  %v13267_v33 = vpop.f32.mrb[15].mxu1  ;;  %v14148_v19 = vld [vmem:[%s20616_s6 + $0x390] ss:$24 sps:$4 sm:$0xff]   ;;  %v14115_v21 = vld [vmem:[%s20613_s4 + $0x860] ss:$28 sps:$4 sm:$0xff]  }
 0x214   :  { %15705 = verf.f32 %v3313_v30  ;;  %3051 = vmatpush1.bf16.msra.mxu0 %v14079_v25  ;;  %v3260_v36 = vadd.f32 %v13265_v31, %v3220_v53  ;;  %v14156_v23 = vld [vmem:[%s20616_s6 + $0x3c4] ss:$24 sps:$4 sm:$0xff]   ;;  %v14118_v30 = vld [vmem:[%s20613_s4 + $0x898] ss:$28 sps:$4 sm:$0xff]   ;;  %v14160_v33 = vld [vmem:[%s20616_s6 + $0x3f0] ss:$24 sps:$4 sm:$0xff]  }
 0x215   :  { %3052 = vmatprep.subr.bf16.mxu0 %v14087_v29  ;;  %v14120_v26 = vld [vmem:[%s20613_s4 + $0x89c] ss:$28 sps:$4 sm:$0xff]   ;;  %v14162_v31 = vld [vmem:[%s20616_s6 + $0x3f4] ss:$24 sps:$4 sm:$0xff]  }
 0x216   :  { %v14154_v29 = vld [vmem:[%s20616_s6 + $0x3c0] ss:$24 sps:$4 sm:$0xff]   ;;  %v14123_v32 = vld [vmem:[%s20613_s4 + $0x8d4] ss:$28 sps:$4 sm:$0xff]  }
 0x218   :  { %3053 = vmatpush1.bf16.msra.mxu0 %v14085_v34  ;;  %v14121_v34 = vld [vmem:[%s20613_s4 + $0x8d0] ss:$28 sps:$4 sm:$0xff]  }
 0x219   :  { %3063 = vmatprep.subr.bf16.mxu0 %v14093_v37  ;;  %v14126_v37 = vld [vmem:[%s20613_s4 + $0x90c] ss:$28 sps:$4 sm:$0xff]  }
 0x21b   :  { %3055 = vmatmul.mubr.bf16.vlgmr.msra.gmra.mrb[12].mxu0 %v16110_v16 }
 0x21c   :  { %3064 = vmatpush1.bf16.msra.mxu0 %v14091_v38  ;;  %3095 = vmatprep.mubr.bf16.mxu0 %v16125_v22  ;;  %v14166_v38 = vld [vmem:[%s20616_s6 + $0x420] ss:$24 sps:$4 sm:$0xff]  }
 0x21d   :  { %v15704_v40 = vpop.eup %15703  ;;  %3065 = vmatprep.subr.bf16.mxu0 %v14099_v42  ;;  %v14124_v42 = vld [vmem:[%s20613_s4 + $0x908] ss:$28 sps:$4 sm:$0xff]  }
 0x21e   :  { %v15706_v46 = vpop.eup %15705  ;;  %v3326_v50 = vadd.f32 1.0, %v15704_v40  ;;  %v14129_v40 = vld [vmem:[%s20613_s4 + $0x944] ss:$28 sps:$4 sm:$0xff]  }
 0x21f   :  { %v3327_v52 = vadd.f32 1.0, %v15706_v46  ;;  %v14127_v46 = vld [vmem:[%s20613_s4 + $0x940] ss:$28 sps:$4 sm:$0xff]  }
 0x220   :  { %v3333_v53 = vmul.f32 %v3326_v50, %v3305_v47  ;;  %3066 = vmatpush1.bf16.msra.mxu0 %v14097_v39  ;;  %v14174_v39 = vld [vmem:[%s20616_s6 + $0x454] ss:$24 sps:$4 sm:$0xff]   ;;  %v14180_v47 = vld [vmem:[%s20616_s6 + $0x484] ss:$24 sps:$4 sm:$0xff]  }
 0x221   :  { %3067 = vmatprep.subr.bf16.mxu0 %v14105_v43  ;;  %v3334_v55 = vmul.f32 %v3327_v52, %v3306_v51  ;;  %v14172_v43 = vld [vmem:[%s20616_s6 + $0x450] ss:$24 sps:$4 sm:$0xff]   ;;  %v14135_v50 = vld [vmem:[%s20613_s4 + $0x97c] ss:$28 sps:$4 sm:$0xff]  }
 0x222   :  { %v17130_v59 = vpack.c.bf16 %v3333_v53, %v3333_v53  ;;  %v14178_v51 = vld [vmem:[%s20616_s6 + $0x480] ss:$24 sps:$4 sm:$0xff]   ;;  %v14186_v53 = vld [vmem:[%s20616_s6 + $0x4b4] ss:$24 sps:$4 sm:$0xff]  }
 0x223   :  { %v17125_v57 = vpack.c.bf16 %v3334_v55, %v3334_v55  ;;  %v14133_v52 = vld [vmem:[%s20613_s4 + $0x978] ss:$28 sps:$4 sm:$0xff]   ;;  %v14184_v55 = vld [vmem:[%s20616_s6 + $0x4b0] ss:$24 sps:$4 sm:$0xff]  }
 0x224   :  { %3068 = vmatpush1.bf16.msra.mxu0 %v14103_v54  ;;  %v14141_v54 = vld [vmem:[%s20613_s4 + $0x9b4] ss:$28 sps:$4 sm:$0xff]  }
 0x225   :  { %5427 = vmatprep.mubr.bf16.mxu1 %v17125_v57  ;;  %3069 = vmatprep.subr.bf16.mxu0 %v14108_v56  ;;  %v14139_v56 = vld [vmem:[%s20613_s4 + $0x9b0] ss:$28 sps:$4 sm:$0xff]  }
 0x226   :  { %5428 = vmatmul.mubr.bf16.vlgmr.msra.gmra.mrb[20].mxu1 %v17130_v59 }
 0x227   :  { %5437 = vmatpush1.bf16.msra.mxu1 %v14130_v58  ;;  %v14192_v58 = vld [vmem:[%s20616_s6 + $0x4e4] ss:$24 sps:$4 sm:$0xff]  }
 0x228   :  { %3070 = vmatpush1.bf16.msra.mxu0 %v14106_v60  ;;  %5438 = vmatprep.subr.bf16.mxu1 %v14138_v61  ;;  %v14147_v60 = vld [vmem:[%s20613_s4 + $0x9ec] ss:$28 sps:$4 sm:$0xff]   ;;  %v613_v61 = vrot.slane %v17028_v35, %v16055_v9 }
 0x229   :  { %3071 = vmatprep.subr.bf16.mxu0 %v14111_v62  ;;  %v14190_v62 = vld [vmem:[%s20616_s6 + $0x4e0] ss:$24 sps:$4 sm:$0xff]  }
 0x22b   :  { %5439 = vmatpush1.bf16.msra.mxu1 %v14136_v63  ;;  %v617_v63 = vrot.slane %v17028_v35, %v16057_v10  ;;  %v14196_v35 = vld [vmem:[%s20616_s6 + $0x510] ss:$24 sps:$4 sm:$0xff]  }
 0x22c   :  { %3072 = vmatpush1.bf16.msra.mxu0 %v14109_v1  ;;  %5440 = vmatprep.subr.bf16.mxu1 %v14144_v3  ;;  %v14145_v1 = vld [vmem:[%s20613_s4 + $0x9e8] ss:$28 sps:$4 sm:$0xff]   ;;  %v14198_v3 = vld [vmem:[%s20616_s6 + $0x514] ss:$24 sps:$4 sm:$0xff]  }
 0x22d   :  { %3073 = vmatprep.subr.bf16.mxu0 %v14114_v4  ;;  %v14153_v4 = vld [vmem:[%s20613_s4 + $0xa24] ss:$28 sps:$4 sm:$0xff]  }
 0x22f   :  { %5441 = vmatpush1.bf16.msra.mxu1 %v14142_v5 }
 0x230   :  { %v3299_v20 = vpop.f32.mrb[16].mxu1  ;;  %3074 = vmatpush1.bf16.msra.mxu0 %v14112_v6  ;;  %5442 = vmatprep.subr.bf16.mxu1 %v14150_v15 }
 0x231   :  { %v17176_v24 = vadd.f32 %v3299_v20, %v3260_v36  ;;  %v13371_v25 = vpop.f32.mrb[17].mxu1  ;;  %3075 = vmatprep.subr.bf16.mxu0 %v14117_v17  ;;  %v14168_v36 = vld [vmem:[%s20616_s6 + $0x424] ss:$24 sps:$4 sm:$0xff]  }
 0x232   :  { %v3302_v27 = vpop.f32.mrb[18].mxu1  ;;  %v14151_v20 = vld [vmem:[%s20613_s4 + $0xa20] ss:$28 sps:$4 sm:$0xff]  }
 0x233   :  { %v13372_v28 = vpop.f32.mrb[19].mxu1  ;;  %5443 = vmatpush1.bf16.msra.mxu1 %v14148_v19  ;;  %v14159_v25 = vld [vmem:[%s20613_s4 + $0xa5c] ss:$28 sps:$4 sm:$0xff]  }
 0x234   :  { %3076 = vmatpush1.bf16.msra.mxu0 %v14115_v21  ;;  %5444 = vmatprep.subr.bf16.mxu1 %v14156_v23  ;;  %v14204_v21 = vld [vmem:[%s20616_s6 + $0x544] ss:$24 sps:$4 sm:$0xff]   ;;  %v14202_v28 = vld [vmem:[%s20616_s6 + $0x540] ss:$24 sps:$4 sm:$0xff]  }
 0x235   :  { %3077 = vmatprep.subr.bf16.mxu0 %v14120_v26 }
 0x237   :  { %5445 = vmatpush1.bf16.msra.mxu1 %v14154_v29  ;;  %v14157_v29 = vld [vmem:[%s20613_s4 + $0xa58] ss:$28 sps:$4 sm:$0xff]  }
 0x238   :  { %3078 = vmatpush1.bf16.msra.mxu0 %v14118_v30  ;;  %5446 = vmatprep.subr.bf16.mxu1 %v14162_v31  ;;  %v14210_v30 = vld [vmem:[%s20616_s6 + $0x574] ss:$24 sps:$4 sm:$0xff]  }
 0x239   :  { %3079 = vmatprep.subr.bf16.mxu0 %v14123_v32  ;;  %v14163_v31 = vld [vmem:[%s20613_s4 + $0xa90] ss:$28 sps:$4 sm:$0xff]  }
 0x23a   :  { %v14171_v32 = vld [vmem:[%s20613_s4 + $0xacc] ss:$28 sps:$4 sm:$0xff]  }
 0x23b   :  { %5447 = vmatpush1.bf16.msra.mxu1 %v14160_v33  ;;  %v14216_v33 = vld [vmem:[%s20616_s6 + $0x5a4] ss:$24 sps:$4 sm:$0xff]  }
 0x23c   :  { %3080 = vmatpush1.bf16.msra.mxu0 %v14121_v34  ;;  %5448 = vmatprep.subr.bf16.mxu1 %v14168_v36  ;;  %v14214_v34 = vld [vmem:[%s20616_s6 + $0x5a0] ss:$24 sps:$4 sm:$0xff]   ;;  %v14169_v36 = vld [vmem:[%s20613_s4 + $0xac8] ss:$28 sps:$4 sm:$0xff]  }
 0x23d   :  { %3081 = vmatprep.subr.bf16.mxu0 %v14126_v37  ;;  %v14222_v37 = vld [vmem:[%s20616_s6 + $0x5d4] ss:$24 sps:$4 sm:$0xff]  }
 0x23f   :  { %5449 = vmatpush1.bf16.msra.mxu1 %v14166_v38  ;;  %v14177_v38 = vld [vmem:[%s20613_s4 + $0xb04] ss:$28 sps:$4 sm:$0xff]  }
 0x240   :  { %3082 = vmatpush1.bf16.msra.mxu0 %v14124_v42  ;;  %5450 = vmatprep.subr.bf16.mxu1 %v14174_v39  ;;  %v14220_v42 = vld [vmem:[%s20616_s6 + $0x5d0] ss:$24 sps:$4 sm:$0xff]   ;;  %v14175_v39 = vld [vmem:[%s20613_s4 + $0xb00] ss:$28 sps:$4 sm:$0xff]  }
 0x241   :  { %3083 = vmatprep.subr.bf16.mxu0 %v14129_v40  ;;  %v14183_v40 = vld [vmem:[%s20613_s4 + $0xb3c] ss:$28 sps:$4 sm:$0xff]  }
 0x243   :  { %5451 = vmatpush1.bf16.msra.mxu1 %v14172_v43  ;;  %v14181_v43 = vld [vmem:[%s20613_s4 + $0xb38] ss:$28 sps:$4 sm:$0xff]  }
 0x244   :  { %3084 = vmatpush1.bf16.msra.mxu0 %v14127_v46  ;;  %5452 = vmatprep.subr.bf16.mxu1 %v14180_v47  ;;  %v14189_v46 = vld [vmem:[%s20613_s4 + $0xb74] ss:$28 sps:$4 sm:$0xff]  }
 0x245   :  { %3085 = vmatprep.subr.bf16.mxu0 %v14135_v50  ;;  %v14187_v47 = vld [vmem:[%s20613_s4 + $0xb70] ss:$28 sps:$4 sm:$0xff]  }
 0x246   :  { %v14195_v50 = vld [vmem:[%s20613_s4 + $0xbac] ss:$28 sps:$4 sm:$0xff]  }
 0x247   :  { %5453 = vmatpush1.bf16.msra.mxu1 %v14178_v51  ;;  %v14193_v51 = vld [vmem:[%s20613_s4 + $0xba8] ss:$28 sps:$4 sm:$0xff]  }
 0x248   :  { %3086 = vmatpush1.bf16.msra.mxu0 %v14133_v52  ;;  %5454 = vmatprep.subr.bf16.mxu1 %v14186_v53  ;;  %v14201_v52 = vld [vmem:[%s20613_s4 + $0xbe4] ss:$28 sps:$4 sm:$0xff]  }
 0x249   :  { %3087 = vmatprep.subr.bf16.mxu0 %v14141_v54 }
 0x24b   :  { %5455 = vmatpush1.bf16.msra.mxu1 %v14184_v55 }
 0x24c   :  { %3088 = vmatpush1.bf16.msra.mxu0 %v14139_v56  ;;  %5456 = vmatprep.subr.bf16.mxu1 %v14192_v58 }
 0x24d   :  { %3089 = vmatprep.subr.bf16.mxu0 %v14147_v60  ;;  %v14199_v60 = vld [vmem:[%s20613_s4 + $0xbe0] ss:$28 sps:$4 sm:$0xff]  }
 0x24e   :  { %v2851_v5 = vpop.f32.mrb[4].mxu0 }
 0x24f   :  { %v2852_v6 = vadd.f32 %v2851_v5, %v613_v61  ;;  %v2853_v15 = vpop.f32.mrb[5].mxu0  ;;  %5457 = vmatpush1.bf16.msra.mxu1 %v14190_v62  ;;  %v14211_v5 = vld [vmem:[%s20616_s6 + $0x8] ss:$24 sps:$4 sm:$0xff]  }
 0x250   :  { %v2854_v17 = vadd.f32 %v2853_v15, %v617_v63  ;;  %v2855_v19 = vpop.f32.mrb[6].mxu0  ;;  %3090 = vmatpush1.bf16.msra.mxu0 %v14145_v1  ;;  %5458 = vmatprep.subr.bf16.mxu1 %v14198_v3  ;;  %v14207_v63 = vld [vmem:[%s20613_s4 + $0xc1c] ss:$28 sps:$4 sm:$0xff]  }
 0x251   :  { %v2856_v23 = vpop.f32.mrb[7].mxu0  ;;  %3091 = vmatprep.subr.bf16.mxu0 %v14153_v4  ;;  %v13396_v26 = vadd.f32 %v16932_v48, %v2852_v6  ;;  %v14165_v48 = vld [vmem:[%s20613_s4 + $0xa94] ss:$28 sps:$4 sm:$0xff]   ;;  %v14213_v4 = vld [vmem:[%s20616_s6 + $0xc] ss:$24 sps:$4 sm:$0xff]  }
 0x252   :  { %v13399_v27 = vadd.f32 %v16934_v49, %v2854_v17  ;;  %v14208_v49 = vld [vmem:[%s20616_s6 + $0x570] ss:$24 sps:$4 sm:$0xff]   ;;  %v14205_v3 = vld [vmem:[%s20613_s4 + $0xc18] ss:$28 sps:$4 sm:$0xff]   ;;  %v14315_v15 = vld [vmem:[%s20616_s6 + $0x604] ss:$24 sps:$4 sm:$0xff]  }
 0x253   :  { %5459 = vmatpush1.bf16.msra.mxu1 %v14196_v35  ;;  %v14219_v6 = vld [vmem:[%s20616_s6 + $0x3c] ss:$24 sps:$4 sm:$0xff]   ;;  %v14217_v35 = vld [vmem:[%s20616_s6 + $0x38] ss:$24 sps:$4 sm:$0xff]   ;;  %v14225_v19 = vld [vmem:[%s20616_s6 + $0x6c] ss:$24 sps:$4 sm:$0xff]  }
 0x254   :  { %3092 = vmatpush1.bf16.msra.mxu0 %v14151_v20  ;;  %5460 = vmatprep.subr.bf16.mxu1 %v14204_v21 }
 0x255   :  { %3093 = vmatprep.subr.bf16.mxu0 %v14159_v25 }
 0x257   :  { %5461 = vmatpush1.bf16.msra.mxu1 %v14202_v28  ;;  %v14223_v28 = vld [vmem:[%s20616_s6 + $0x68] ss:$24 sps:$4 sm:$0xff]  }
 0x258   :  { %3094 = vmatpush1.bf16.msra.mxu0 %v14157_v29  ;;  %5462 = vmatprep.subr.bf16.mxu1 %v14210_v30  ;;  %v14228_v30 = vld [vmem:[%s20616_s6 + $0x9c] ss:$24 sps:$4 sm:$0xff]  }
 0x259   :  { %3104 = vmatprep.subr.bf16.mxu0 %v14165_v48 }
 0x25b   :  { %3096 = vmatmul.mubr.bf16.vlgmr.msra.gmra.mrb[12].mxu0 %v16325_v44  ;;  %5463 = vmatpush1.bf16.msra.mxu1 %v14208_v49  ;;  %v14313_v49 = vld [vmem:[%s20616_s6 + $0x600] ss:$24 sps:$4 sm:$0xff]  }
 0x25c   :  { %3105 = vmatpush1.bf16.msra.mxu0 %v14163_v31  ;;  %3136 = vmatprep.mubr.bf16.mxu0 %v15781_v0 }
 0x25d   :  { %3106 = vmatprep.subr.bf16.mxu0 %v14171_v32  ;;  %5464 = vmatprep.subr.bf16.mxu1 %v14216_v33  ;;  %v14226_v32 = vld [vmem:[%s20616_s6 + $0x98] ss:$24 sps:$4 sm:$0xff]   ;;  %v14321_v33 = vld [vmem:[%s20616_s6 + $0x634] ss:$24 sps:$4 sm:$0xff]  }
 0x25f   :  { %5465 = vmatpush1.bf16.msra.mxu1 %v14214_v34  ;;  %v14231_v34 = vld [vmem:[%s20616_s6 + $0xcc] ss:$24 sps:$4 sm:$0xff]  }
 0x260   :  { %3107 = vmatpush1.bf16.msra.mxu0 %v14169_v36  ;;  %5466 = vmatprep.subr.bf16.mxu1 %v14222_v37  ;;  %v14319_v36 = vld [vmem:[%s20616_s6 + $0x630] ss:$24 sps:$4 sm:$0xff]  }
 0x261   :  { %3108 = vmatprep.subr.bf16.mxu0 %v14177_v38  ;;  %v14229_v37 = vld [vmem:[%s20616_s6 + $0xc8] ss:$24 sps:$4 sm:$0xff]   ;;  %v14327_v38 = vld [vmem:[%s20616_s6 + $0x664] ss:$24 sps:$4 sm:$0xff]  }
 0x263   :  { %5467 = vmatpush1.bf16.msra.mxu1 %v14220_v42  ;;  %v14234_v42 = vld [vmem:[%s20616_s6 + $0xfc] ss:$24 sps:$4 sm:$0xff]  }
 0x264   :  { %3109 = vmatpush1.bf16.msra.mxu0 %v14175_v39  ;;  %5477 = vmatprep.subr.bf16.mxu1 %v14315_v15  ;;  %v14325_v39 = vld [vmem:[%s20616_s6 + $0x660] ss:$24 sps:$4 sm:$0xff]   ;;  %v14363_v15 = vld [vmem:[%s20616_s6 + $0x784] ss:$24 sps:$4 sm:$0xff]  }
 0x265   :  { %3110 = vmatprep.subr.bf16.mxu0 %v14183_v40  ;;  %v14232_v40 = vld [vmem:[%s20616_s6 + $0xf8] ss:$24 sps:$4 sm:$0xff]  }
 0x268   :  { %3111 = vmatpush1.bf16.msra.mxu0 %v14181_v43  ;;  %v14333_v43 = vld [vmem:[%s20616_s6 + $0x694] ss:$24 sps:$4 sm:$0xff]  }
 0x269   :  { %3112 = vmatprep.subr.bf16.mxu0 %v14189_v46  ;;  %v14237_v46 = vld [vmem:[%s20616_s6 + $0x12c] ss:$24 sps:$4 sm:$0xff]  }
 0x26c   :  { %3113 = vmatpush1.bf16.msra.mxu0 %v14187_v47  ;;  %v14331_v47 = vld [vmem:[%s20616_s6 + $0x690] ss:$24 sps:$4 sm:$0xff]  }
 0x26d   :  { %3114 = vmatprep.subr.bf16.mxu0 %v14195_v50  ;;  %v14235_v50 = vld [vmem:[%s20616_s6 + $0x128] ss:$24 sps:$4 sm:$0xff]  }
 0x26e   :  { %v2974_v53 = vpop.f32.mrb[8].mxu0 }
 0x26f   :  { %v13397_v54 = vadd.f32 %v13396_v26, %v2974_v53  ;;  %v2976_v55 = vpop.f32.mrb[9].mxu0  ;;  %v14337_v53 = vld [vmem:[%s20616_s6 + $0x6c0] ss:$24 sps:$4 sm:$0xff]  }
 0x270   :  { %v13400_v56 = vadd.f32 %v13399_v27, %v2976_v55  ;;  %v2978_v58 = vpop.f32.mrb[10].mxu0  ;;  %3115 = vmatpush1.bf16.msra.mxu0 %v14193_v51  ;;  %v14339_v51 = vld [vmem:[%s20616_s6 + $0x6c4] ss:$24 sps:$4 sm:$0xff]   ;;  %v14345_v55 = vld [vmem:[%s20616_s6 + $0x6f4] ss:$24 sps:$4 sm:$0xff]  }
 0x271   :  { %v3314_v61 = vmul.f32 0.70710677, %v13397_v54  ;;  %v2979_v62 = vpop.f32.mrb[11].mxu0  ;;  %3116 = vmatprep.subr.bf16.mxu0 %v14201_v52  ;;  %v3307_v21 = vmul.f32 0.5, %v13397_v54  ;;  %v14240_v52 = vld [vmem:[%s20616_s6 + $0x15c] ss:$24 sps:$4 sm:$0xff]  }
 0x272   :  { %v3315_v1 = vmul.f32 0.70710677, %v13400_v56  ;;  %v3308_v25 = vmul.f32 0.5, %v13400_v56  ;;  %v14238_v54 = vld [vmem:[%s20616_s6 + $0x158] ss:$24 sps:$4 sm:$0xff]  }
 0x273   :  { %15707 = verf.f32 %v3314_v61  ;;  %v14243_v56 = vld [vmem:[%s20616_s6 + $0x18c] ss:$24 sps:$4 sm:$0xff]   ;;  %v14343_v58 = vld [vmem:[%s20616_s6 + $0x6f0] ss:$24 sps:$4 sm:$0xff]   ;;  %v14246_v62 = vld [vmem:[%s20616_s6 + $0x1bc] ss:$24 sps:$4 sm:$0xff]  }
 0x274   :  { %15709 = verf.f32 %v3315_v1  ;;  %3117 = vmatpush1.bf16.msra.mxu0 %v14199_v60  ;;  %v14241_v60 = vld [vmem:[%s20616_s6 + $0x188] ss:$24 sps:$4 sm:$0xff]   ;;  %v14351_v61 = vld [vmem:[%s20616_s6 + $0x724] ss:$24 sps:$4 sm:$0xff]   ;;  %v14244_v1 = vld [vmem:[%s20616_s6 + $0x1b8] ss:$24 sps:$4 sm:$0xff]  }
 0x275   :  { %3118 = vmatprep.subr.bf16.mxu0 %v14207_v63  ;;  %v14349_v63 = vld [vmem:[%s20616_s6 + $0x720] ss:$24 sps:$4 sm:$0xff]  }
 0x278   :  { %3119 = vmatpush1.bf16.msra.mxu0 %v14205_v3  ;;  %v14357_v3 = vld [vmem:[%s20616_s6 + $0x754] ss:$24 sps:$4 sm:$0xff]  }
 0x279   :  { %5559 = vmatprep.subr.bf16.mxu0 %v14213_v4  ;;  %v14249_v4 = vld [vmem:[%s20616_s6 + $0x1ec] ss:$24 sps:$4 sm:$0xff]  }
 0x27b   :  { %3137 = vmatmul.mubr.bf16.vlgmr.msra.gmra.mrb[12].mxu0 %v16612_v41 }
 0x27c   :  { %5560 = vmatpush1.bf16.msra.mxu0 %v14211_v5  ;;  %5591 = vmatprep.mubr.bf16.mxu0 %v17125_v57  ;;  %v14355_v5 = vld [vmem:[%s20616_s6 + $0x750] ss:$24 sps:$4 sm:$0xff]  }
 0x27d   :  { %v15708_v17 = vpop.eup %15707  ;;  %5561 = vmatprep.subr.bf16.mxu0 %v14219_v6  ;;  %v14247_v6 = vld [vmem:[%s20616_s6 + $0x1e8] ss:$24 sps:$4 sm:$0xff]  }
 0x27e   :  { %v15710_v20 = vpop.eup %15709  ;;  %v3328_v23 = vadd.f32 1.0, %v15708_v17  ;;  %v14361_v17 = vld [vmem:[%s20616_s6 + $0x780] ss:$24 sps:$4 sm:$0xff]  }
 0x27f   :  { %v3329_v26 = vadd.f32 1.0, %v15710_v20  ;;  %v14369_v20 = vld [vmem:[%s20616_s6 + $0x7b4] ss:$24 sps:$4 sm:$0xff]  }
 0x280   :  { %v3335_v27 = vmul.f32 %v3328_v23, %v3307_v21  ;;  %5562 = vmatpush1.bf16.msra.mxu0 %v14217_v35  ;;  %v14252_v35 = vld [vmem:[%s20616_s6 + $0x21c] ss:$24 sps:$4 sm:$0xff]   ;;  %v14255_v21 = vld [vmem:[%s20616_s6 + $0x24c] ss:$24 sps:$4 sm:$0xff]   ;;  %v14367_v23 = vld [vmem:[%s20616_s6 + $0x7b0] ss:$24 sps:$4 sm:$0xff]  }
 0x281   :  { %5563 = vmatprep.subr.bf16.mxu0 %v14225_v19  ;;  %v3336_v29 = vmul.f32 %v3329_v26, %v3308_v25  ;;  %v14250_v19 = vld [vmem:[%s20616_s6 + $0x218] ss:$24 sps:$4 sm:$0xff]   ;;  %v14253_v25 = vld [vmem:[%s20616_s6 + $0x248] ss:$24 sps:$4 sm:$0xff]   ;;  %v14375_v26 = vld [vmem:[%s20616_s6 + $0x7e4] ss:$24 sps:$4 sm:$0xff]  }
 0x282   :  { %v17388_v31 = vpack.c.bf16 %v3335_v27, %v3335_v27  ;;  %v14258_v27 = vld [vmem:[%s20616_s6 + $0x27c] ss:$24 sps:$4 sm:$0xff]  }
 0x283   :  { %v17383_v48 = vpack.c.bf16 %v3336_v29, %v3336_v29  ;;  %v14256_v29 = vld [vmem:[%s20616_s6 + $0x278] ss:$24 sps:$4 sm:$0xff]  }
 0x284   :  { %5564 = vmatpush1.bf16.msra.mxu0 %v14223_v28  ;;  %v14373_v28 = vld [vmem:[%s20616_s6 + $0x7e0] ss:$24 sps:$4 sm:$0xff]  }
 0x285   :  { %5468 = vmatprep.mubr.bf16.mxu1 %v17383_v48  ;;  %5565 = vmatprep.subr.bf16.mxu0 %v14228_v30  ;;  %v14261_v30 = vld [vmem:[%s20616_s6 + $0x2ac] ss:$24 sps:$4 sm:$0xff]  }
 0x286   :  { %5469 = vmatmul.mubr.bf16.vlgmr.msra.gmra.mrb[20].mxu1 %v17388_v31 }
 0x287   :  { %5478 = vmatpush1.bf16.msra.mxu1 %v14313_v49  ;;  %v14259_v49 = vld [vmem:[%s20616_s6 + $0x2a8] ss:$24 sps:$4 sm:$0xff]  }
 0x288   :  { %5566 = vmatpush1.bf16.msra.mxu0 %v14226_v32  ;;  %5479 = vmatprep.subr.bf16.mxu1 %v14321_v33  ;;  %v14264_v32 = vld [vmem:[%s20616_s6 + $0x2dc] ss:$24 sps:$4 sm:$0xff]   ;;  %v14262_v33 = vld [vmem:[%s20616_s6 + $0x2d8] ss:$24 sps:$4 sm:$0xff]  }
 0x289   :  { %5567 = vmatprep.subr.bf16.mxu0 %v14231_v34  ;;  %v14267_v34 = vld [vmem:[%s20616_s6 + $0x30c] ss:$24 sps:$4 sm:$0xff]  }
 0x28b   :  { %5480 = vmatpush1.bf16.msra.mxu1 %v14319_v36  ;;  %v14265_v36 = vld [vmem:[%s20616_s6 + $0x308] ss:$24 sps:$4 sm:$0xff]  }
 0x28c   :  { %5568 = vmatpush1.bf16.msra.mxu0 %v14229_v37  ;;  %5481 = vmatprep.subr.bf16.mxu1 %v14327_v38  ;;  %v14270_v37 = vld [vmem:[%s20616_s6 + $0x33c] ss:$24 sps:$4 sm:$0xff]   ;;  %v14268_v38 = vld [vmem:[%s20616_s6 + $0x338] ss:$24 sps:$4 sm:$0xff]  }
 0x28d   :  { %5569 = vmatprep.subr.bf16.mxu0 %v14234_v42  ;;  %v14273_v42 = vld [vmem:[%s20616_s6 + $0x36c] ss:$24 sps:$4 sm:$0xff]  }
 0x28f   :  { %5482 = vmatpush1.bf16.msra.mxu1 %v14325_v39  ;;  %v14271_v39 = vld [vmem:[%s20616_s6 + $0x368] ss:$24 sps:$4 sm:$0xff]  }
 0x290   :  { %5570 = vmatpush1.bf16.msra.mxu0 %v14232_v40  ;;  %5483 = vmatprep.subr.bf16.mxu1 %v14333_v43  ;;  %v14276_v40 = vld [vmem:[%s20616_s6 + $0x39c] ss:$24 sps:$4 sm:$0xff]   ;;  %v14274_v43 = vld [vmem:[%s20616_s6 + $0x398] ss:$24 sps:$4 sm:$0xff]  }
 0x291   :  { %5571 = vmatprep.subr.bf16.mxu0 %v14237_v46  ;;  %v14279_v46 = vld [vmem:[%s20616_s6 + $0x3cc] ss:$24 sps:$4 sm:$0xff]  }
 0x293   :  { %5484 = vmatpush1.bf16.msra.mxu1 %v14331_v47  ;;  %v14277_v47 = vld [vmem:[%s20616_s6 + $0x3c8] ss:$24 sps:$4 sm:$0xff]  }
 0x294   :  { %5572 = vmatpush1.bf16.msra.mxu0 %v14235_v50  ;;  %5485 = vmatprep.subr.bf16.mxu1 %v14339_v51  ;;  %v14282_v50 = vld [vmem:[%s20616_s6 + $0x3fc] ss:$24 sps:$4 sm:$0xff]   ;;  %v14280_v51 = vld [vmem:[%s20616_s6 + $0x3f8] ss:$24 sps:$4 sm:$0xff]  }
 0x295   :  { %5573 = vmatprep.subr.bf16.mxu0 %v14240_v52  ;;  %v14285_v52 = vld [vmem:[%s20616_s6 + $0x42c] ss:$24 sps:$4 sm:$0xff]  }
 0x297   :  { %5486 = vmatpush1.bf16.msra.mxu1 %v14337_v53  ;;  %v14283_v53 = vld [vmem:[%s20616_s6 + $0x428] ss:$24 sps:$4 sm:$0xff]  }
 0x298   :  { %5574 = vmatpush1.bf16.msra.mxu0 %v14238_v54  ;;  %5487 = vmatprep.subr.bf16.mxu1 %v14345_v55  ;;  %v14288_v54 = vld [vmem:[%s20616_s6 + $0x45c] ss:$24 sps:$4 sm:$0xff]  }
 0x299   :  { %5575 = vmatprep.subr.bf16.mxu0 %v14243_v56  ;;  %v14381_v55 = vld [vmem:[%s20616_s6 + $0x814] ss:$24 sps:$4 sm:$0xff]   ;;  %v14286_v56 = vld [vmem:[%s20616_s6 + $0x458] ss:$24 sps:$4 sm:$0xff]  }
 0x29b   :  { %5488 = vmatpush1.bf16.msra.mxu1 %v14343_v58  ;;  %v14379_v58 = vld [vmem:[%s20616_s6 + $0x810] ss:$24 sps:$4 sm:$0xff]  }
 0x29c   :  { %5576 = vmatpush1.bf16.msra.mxu0 %v14241_v60  ;;  %5489 = vmatprep.subr.bf16.mxu1 %v14351_v61  ;;  %v14291_v60 = vld [vmem:[%s20616_s6 + $0x48c] ss:$24 sps:$4 sm:$0xff]  }
 0x29d   :  { %5577 = vmatprep.subr.bf16.mxu0 %v14246_v62  ;;  %v14387_v61 = vld [vmem:[%s20616_s6 + $0x844] ss:$24 sps:$4 sm:$0xff]   ;;  %v14289_v62 = vld [vmem:[%s20616_s6 + $0x488] ss:$24 sps:$4 sm:$0xff]  }
 0x29f   :  { %5490 = vmatpush1.bf16.msra.mxu1 %v14349_v63  ;;  %v14385_v63 = vld [vmem:[%s20616_s6 + $0x840] ss:$24 sps:$4 sm:$0xff]  }
 0x2a0   :  { %5578 = vmatpush1.bf16.msra.mxu0 %v14244_v1  ;;  %5491 = vmatprep.subr.bf16.mxu1 %v14357_v3  ;;  %v14294_v1 = vld [vmem:[%s20616_s6 + $0x4bc] ss:$24 sps:$4 sm:$0xff]  }
 0x2a1   :  { %5579 = vmatprep.subr.bf16.mxu0 %v14249_v4  ;;  %v14393_v3 = vld [vmem:[%s20616_s6 + $0x874] ss:$24 sps:$4 sm:$0xff]   ;;  %v14292_v4 = vld [vmem:[%s20616_s6 + $0x4b8] ss:$24 sps:$4 sm:$0xff]  }
 0x2a3   :  { %5492 = vmatpush1.bf16.msra.mxu1 %v14355_v5  ;;  %v14391_v5 = vld [vmem:[%s20616_s6 + $0x870] ss:$24 sps:$4 sm:$0xff]  }
 0x2a4   :  { %5580 = vmatpush1.bf16.msra.mxu0 %v14247_v6  ;;  %5493 = vmatprep.subr.bf16.mxu1 %v14363_v15  ;;  %v14297_v6 = vld [vmem:[%s20616_s6 + $0x4ec] ss:$24 sps:$4 sm:$0xff]  }
 0x2a5   :  { %5581 = vmatprep.subr.bf16.mxu0 %v14252_v35  ;;  %v14399_v15 = vld [vmem:[%s20616_s6 + $0x8a4] ss:$24 sps:$4 sm:$0xff]   ;;  %v14295_v35 = vld [vmem:[%s20616_s6 + $0x4e8] ss:$24 sps:$4 sm:$0xff]  }
 0x2a7   :  { %5494 = vmatpush1.bf16.msra.mxu1 %v14361_v17  ;;  %v14397_v17 = vld [vmem:[%s20616_s6 + $0x8a0] ss:$24 sps:$4 sm:$0xff]  }
 0x2a8   :  { %5582 = vmatpush1.bf16.msra.mxu0 %v14250_v19  ;;  %5495 = vmatprep.subr.bf16.mxu1 %v14369_v20  ;;  %v14300_v19 = vld [vmem:[%s20616_s6 + $0x51c] ss:$24 sps:$4 sm:$0xff]   ;;  %v14403_v20 = vld [vmem:[%s20616_s6 + $0x8d0] ss:$24 sps:$4 sm:$0xff]  }
 0x2a9   :  { %5583 = vmatprep.subr.bf16.mxu0 %v14255_v21  ;;  %v14405_v21 = vld [vmem:[%s20616_s6 + $0x8d4] ss:$24 sps:$4 sm:$0xff]  }
 0x2ab   :  { %5496 = vmatpush1.bf16.msra.mxu1 %v14367_v23  ;;  %v14298_v23 = vld [vmem:[%s20616_s6 + $0x518] ss:$24 sps:$4 sm:$0xff]  }
 0x2ac   :  { %5584 = vmatpush1.bf16.msra.mxu0 %v14253_v25  ;;  %5497 = vmatprep.subr.bf16.mxu1 %v14375_v26  ;;  %v14303_v25 = vld [vmem:[%s20616_s6 + $0x54c] ss:$24 sps:$4 sm:$0xff]  }
 0x2ad   :  { %5585 = vmatprep.subr.bf16.mxu0 %v14258_v27  ;;  %v14411_v26 = vld [vmem:[%s20616_s6 + $0x904] ss:$24 sps:$4 sm:$0xff]   ;;  %v14301_v27 = vld [vmem:[%s20616_s6 + $0x548] ss:$24 sps:$4 sm:$0xff]  }
 0x2af   :  { %5498 = vmatpush1.bf16.msra.mxu1 %v14373_v28  ;;  %v14306_v28 = vld [vmem:[%s20616_s6 + $0x57c] ss:$24 sps:$4 sm:$0xff]  }
 0x2b0   :  { %5586 = vmatpush1.bf16.msra.mxu0 %v14256_v29  ;;  %5499 = vmatprep.subr.bf16.mxu1 %v14381_v55  ;;  %v14304_v29 = vld [vmem:[%s20616_s6 + $0x578] ss:$24 sps:$4 sm:$0xff]  }
 0x2b1   :  { %5587 = vmatprep.subr.bf16.mxu0 %v14261_v30  ;;  %v14309_v30 = vld [vmem:[%s20616_s6 + $0x5ac] ss:$24 sps:$4 sm:$0xff]   ;;  %v14358_v55 = vld [vmem:[%s20616_s6 + $0x758] ss:$24 sps:$4 sm:$0xff]  }
 0x2b3   :  { %5500 = vmatpush1.bf16.msra.mxu1 %v14379_v58  ;;  %v14364_v58 = vld [vmem:[%s20616_s6 + $0x788] ss:$24 sps:$4 sm:$0xff]  }
 0x2b4   :  { %5588 = vmatpush1.bf16.msra.mxu0 %v14259_v49  ;;  %5501 = vmatprep.subr.bf16.mxu1 %v14387_v61  ;;  %v14307_v49 = vld [vmem:[%s20616_s6 + $0x5a8] ss:$24 sps:$4 sm:$0xff]   ;;  %v14370_v61 = vld [vmem:[%s20616_s6 + $0x7b8] ss:$24 sps:$4 sm:$0xff]  }
 0x2b5   :  { %5589 = vmatprep.subr.bf16.mxu0 %v14264_v32  ;;  %v14312_v32 = vld [vmem:[%s20616_s6 + $0x5dc] ss:$24 sps:$4 sm:$0xff]  }
 0x2b7   :  { %5502 = vmatpush1.bf16.msra.mxu1 %v14385_v63  ;;  %v14376_v63 = vld [vmem:[%s20616_s6 + $0x7e8] ss:$24 sps:$4 sm:$0xff]  }
 0x2b8   :  { %5590 = vmatpush1.bf16.msra.mxu0 %v14262_v33  ;;  %5503 = vmatprep.subr.bf16.mxu1 %v14393_v3  ;;  %v14310_v33 = vld [vmem:[%s20616_s6 + $0x5d8] ss:$24 sps:$4 sm:$0xff]  }
 0x2b9   :  { %5600 = vmatprep.subr.bf16.mxu0 %v14267_v34  ;;  %v14318_v34 = vld [vmem:[%s20616_s6 + $0x60c] ss:$24 sps:$4 sm:$0xff]   ;;  %v14382_v3 = vld [vmem:[%s20616_s6 + $0x818] ss:$24 sps:$4 sm:$0xff]  }
 0x2bb   :  { %5592 = vmatmul.mubr.bf16.vlgmr.msra.gmra.mrb[16].mxu0 %v17130_v59  ;;  %5504 = vmatpush1.bf16.msra.mxu1 %v14391_v5  ;;  %v14388_v5 = vld [vmem:[%s20616_s6 + $0x848] ss:$24 sps:$4 sm:$0xff]  }
 0x2bc   :  { %5601 = vmatpush1.bf16.msra.mxu0 %v14265_v36  ;;  %5632 = vmatprep.mubr.bf16.mxu0 %v17383_v48  ;;  %v14316_v36 = vld [vmem:[%s20616_s6 + $0x608] ss:$24 sps:$4 sm:$0xff]  }
 0x2bd   :  { %5602 = vmatprep.subr.bf16.mxu0 %v14270_v37  ;;  %5505 = vmatprep.subr.bf16.mxu1 %v14399_v15  ;;  %v14324_v37 = vld [vmem:[%s20616_s6 + $0x63c] ss:$24 sps:$4 sm:$0xff]   ;;  %v14394_v15 = vld [vmem:[%s20616_s6 + $0x878] ss:$24 sps:$4 sm:$0xff]  }
 0x2bf   :  { %5506 = vmatpush1.bf16.msra.mxu1 %v14397_v17  ;;  %v14400_v17 = vld [vmem:[%s20616_s6 + $0x8a8] ss:$24 sps:$4 sm:$0xff]  }
 0x2c0   :  { %5603 = vmatpush1.bf16.msra.mxu0 %v14268_v38  ;;  %5507 = vmatprep.subr.bf16.mxu1 %v14405_v21  ;;  %v14322_v38 = vld [vmem:[%s20616_s6 + $0x638] ss:$24 sps:$4 sm:$0xff]   ;;  %v14414_v21 = vld [vmem:[%s20616_s6 + $0x90c] ss:$24 sps:$4 sm:$0xff]  }
 0x2c1   :  { %5604 = vmatprep.subr.bf16.mxu0 %v14273_v42  ;;  %v14330_v42 = vld [vmem:[%s20616_s6 + $0x66c] ss:$24 sps:$4 sm:$0xff]  }
 0x2c3   :  { %5508 = vmatpush1.bf16.msra.mxu1 %v14403_v20  ;;  %v14406_v20 = vld [vmem:[%s20616_s6 + $0x8d8] ss:$24 sps:$4 sm:$0xff]  }
 0x2c4   :  { %5605 = vmatpush1.bf16.msra.mxu0 %v14271_v39  ;;  %5518 = vmatprep.subr.bf16.mxu1 %v14411_v26  ;;  %v14328_v39 = vld [vmem:[%s20616_s6 + $0x668] ss:$24 sps:$4 sm:$0xff]  }
 0x2c5   :  { %5606 = vmatprep.subr.bf16.mxu0 %v14276_v40  ;;  %v14336_v40 = vld [vmem:[%s20616_s6 + $0x69c] ss:$24 sps:$4 sm:$0xff]  }
 0x2c8   :  { %5607 = vmatpush1.bf16.msra.mxu0 %v14274_v43  ;;  %v14334_v43 = vld [vmem:[%s20616_s6 + $0x698] ss:$24 sps:$4 sm:$0xff]  }
 0x2c9   :  { %5608 = vmatprep.subr.bf16.mxu0 %v14279_v46  ;;  %v14342_v46 = vld [vmem:[%s20616_s6 + $0x6cc] ss:$24 sps:$4 sm:$0xff]  }
 0x2cc   :  { %5609 = vmatpush1.bf16.msra.mxu0 %v14277_v47  ;;  %v14340_v47 = vld [vmem:[%s20616_s6 + $0x6c8] ss:$24 sps:$4 sm:$0xff]  }
 0x2cd   :  { %5610 = vmatprep.subr.bf16.mxu0 %v14282_v50  ;;  %v14348_v50 = vld [vmem:[%s20616_s6 + $0x6fc] ss:$24 sps:$4 sm:$0xff]  }
 0x2d0   :  { %5611 = vmatpush1.bf16.msra.mxu0 %v14280_v51  ;;  %v14346_v51 = vld [vmem:[%s20616_s6 + $0x6f8] ss:$24 sps:$4 sm:$0xff]  }
 0x2d1   :  { %5612 = vmatprep.subr.bf16.mxu0 %v14285_v52  ;;  %v14354_v52 = vld [vmem:[%s20616_s6 + $0x72c] ss:$24 sps:$4 sm:$0xff]  }
 0x2d4   :  { %5613 = vmatpush1.bf16.msra.mxu0 %v14283_v53  ;;  %v14352_v53 = vld [vmem:[%s20616_s6 + $0x728] ss:$24 sps:$4 sm:$0xff]  }
 0x2d5   :  { %5614 = vmatprep.subr.bf16.mxu0 %v14288_v54  ;;  %v14360_v54 = vld [vmem:[%s20616_s6 + $0x75c] ss:$24 sps:$4 sm:$0xff]  }
 0x2d8   :  { %5615 = vmatpush1.bf16.msra.mxu0 %v14286_v56  ;;  %v14366_v56 = vld [vmem:[%s20616_s6 + $0x78c] ss:$24 sps:$4 sm:$0xff]  }
 0x2d9   :  { %5616 = vmatprep.subr.bf16.mxu0 %v14291_v60  ;;  %v14372_v60 = vld [vmem:[%s20616_s6 + $0x7bc] ss:$24 sps:$4 sm:$0xff]  }
 0x2dc   :  { %5617 = vmatpush1.bf16.msra.mxu0 %v14289_v62  ;;  %v14378_v62 = vld [vmem:[%s20616_s6 + $0x7ec] ss:$24 sps:$4 sm:$0xff]  }
 0x2dd   :  { %5618 = vmatprep.subr.bf16.mxu0 %v14294_v1  ;;  %v14384_v1 = vld [vmem:[%s20616_s6 + $0x81c] ss:$24 sps:$4 sm:$0xff]  }
 0x2e0   :  { %5619 = vmatpush1.bf16.msra.mxu0 %v14292_v4  ;;  %v14390_v4 = vld [vmem:[%s20616_s6 + $0x84c] ss:$24 sps:$4 sm:$0xff]  }
 0x2e1   :  { %5620 = vmatprep.subr.bf16.mxu0 %v14297_v6  ;;  %v14396_v6 = vld [vmem:[%s20616_s6 + $0x87c] ss:$24 sps:$4 sm:$0xff]  }
 0x2e4   :  { %5621 = vmatpush1.bf16.msra.mxu0 %v14295_v35  ;;  %v14402_v35 = vld [vmem:[%s20616_s6 + $0x8ac] ss:$24 sps:$4 sm:$0xff]  }
 0x2e5   :  { %5622 = vmatprep.subr.bf16.mxu0 %v14300_v19  ;;  %v14408_v19 = vld [vmem:[%s20616_s6 + $0x8dc] ss:$24 sps:$4 sm:$0xff]  }
 0x2e8   :  { %5623 = vmatpush1.bf16.msra.mxu0 %v14298_v23  ;;  %v15779_v23 = vld [vmem:[%s20617_s5] sm:$0xff] }
 0x2e9   :  { %5624 = vmatprep.subr.bf16.mxu0 %v14303_v25  ;;  %v621_v25 = vrot.slane %v15779_v23, %v16062_v12  ;;  %v625_v26 = vrot.slane %v15779_v23, %v16064_v13  ;;  %v14442_v23 = vld [vmem:[%s20616_s6 + $0x9f8] ss:$24 sps:$4 sm:$0xff]  }
 0x2ec   :  { %5625 = vmatpush1.bf16.msra.mxu0 %v14301_v27 }
 0x2ed   :  { %5626 = vmatprep.subr.bf16.mxu0 %v14306_v28 }
 0x2f0   :  { %5627 = vmatpush1.bf16.msra.mxu0 %v14304_v29 }
 0x2f1   :  { %5628 = vmatprep.subr.bf16.mxu0 %v14309_v30 }
 0x2f4   :  { %5629 = vmatpush1.bf16.msra.mxu0 %v14307_v49 }
 0x2f5   :  { %5630 = vmatprep.subr.bf16.mxu0 %v14312_v32 }
 0x2f8   :  { %5631 = vmatpush1.bf16.msra.mxu0 %v14310_v33 }
 0x2f9   :  { %5641 = vmatprep.subr.bf16.mxu0 %v14318_v34 }
 0x2fb   :  { %5633 = vmatmul.mubr.bf16.vlgmr.msra.gmra.mrb[16].mxu0 %v17388_v31 }
 0x2fc   :  { %5642 = vmatpush1.bf16.msra.mxu0 %v14316_v36 }
 0x2fd   :  { %5643 = vmatprep.subr.bf16.mxu0 %v14324_v37 }
 0x300   :  { %5644 = vmatpush1.bf16.msra.mxu0 %v14322_v38 }
 0x301   :  { %5645 = vmatprep.subr.bf16.mxu0 %v14330_v42 }
 0x304   :  { %5646 = vmatpush1.bf16.msra.mxu0 %v14328_v39 }
 0x305   :  { %5647 = vmatprep.subr.bf16.mxu0 %v14336_v40 }
 0x308   :  { %5648 = vmatpush1.bf16.msra.mxu0 %v14334_v43 }
 0x309   :  { %5649 = vmatprep.subr.bf16.mxu0 %v14342_v46 }
 0x30c   :  { %5650 = vmatpush1.bf16.msra.mxu0 %v14340_v47  ;;  %v14409_v47 = vld [vmem:[%s20616_s6 + $0x900] ss:$24 sps:$4 sm:$0xff]  }
 0x30d   :  { %5651 = vmatprep.subr.bf16.mxu0 %v14348_v50  ;;  %v14412_v50 = vld [vmem:[%s20616_s6 + $0x908] ss:$24 sps:$4 sm:$0xff]  }
 0x310   :  { %5652 = vmatpush1.bf16.msra.mxu0 %v14346_v51 }
 0x311   :  { %5653 = vmatprep.subr.bf16.mxu0 %v14354_v52 }
 0x314   :  { %5654 = vmatpush1.bf16.msra.mxu0 %v14352_v53  ;;  %v14417_v53 = vld [vmem:[%s20616_s6 + $0x934] ss:$24 sps:$4 sm:$0xff]  }
 0x315   :  { %5655 = vmatprep.subr.bf16.mxu0 %v14360_v54  ;;  %v14420_v54 = vld [vmem:[%s20616_s6 + $0x93c] ss:$24 sps:$4 sm:$0xff]  }
 0x318   :  { %5656 = vmatpush1.bf16.msra.mxu0 %v14358_v55  ;;  %v14415_v55 = vld [vmem:[%s20616_s6 + $0x930] ss:$24 sps:$4 sm:$0xff]  }
 0x319   :  { %5657 = vmatprep.subr.bf16.mxu0 %v14366_v56  ;;  %v14418_v56 = vld [vmem:[%s20616_s6 + $0x938] ss:$24 sps:$4 sm:$0xff]  }
 0x31c   :  { %5658 = vmatpush1.bf16.msra.mxu0 %v14364_v58  ;;  %v14423_v58 = vld [vmem:[%s20616_s6 + $0x964] ss:$24 sps:$4 sm:$0xff]  }
 0x31d   :  { %5659 = vmatprep.subr.bf16.mxu0 %v14372_v60  ;;  %v14426_v60 = vld [vmem:[%s20616_s6 + $0x96c] ss:$24 sps:$4 sm:$0xff]  }
 0x320   :  { %5660 = vmatpush1.bf16.msra.mxu0 %v14370_v61  ;;  %v14421_v61 = vld [vmem:[%s20616_s6 + $0x960] ss:$24 sps:$4 sm:$0xff]  }
 0x321   :  { %5661 = vmatprep.subr.bf16.mxu0 %v14378_v62  ;;  %v14424_v62 = vld [vmem:[%s20616_s6 + $0x968] ss:$24 sps:$4 sm:$0xff]  }
 0x324   :  { %5662 = vmatpush1.bf16.msra.mxu0 %v14376_v63  ;;  %v3318_v63 = vmul.f32 0.70710677, %v17176_v24 }
 0x325   :  { %5663 = vmatprep.subr.bf16.mxu0 %v14384_v1  ;;  %v14429_v1 = vld [vmem:[%s20616_s6 + $0x994] ss:$24 sps:$4 sm:$0xff]  }
 0x328   :  { %5664 = vmatpush1.bf16.msra.mxu0 %v14382_v3  ;;  %v14432_v3 = vld [vmem:[%s20616_s6 + $0x99c] ss:$24 sps:$4 sm:$0xff]  }
 0x329   :  { %5665 = vmatprep.subr.bf16.mxu0 %v14390_v4  ;;  %v14427_v4 = vld [vmem:[%s20616_s6 + $0x990] ss:$24 sps:$4 sm:$0xff]  }
 0x32c   :  { %5666 = vmatpush1.bf16.msra.mxu0 %v14388_v5  ;;  %v14430_v5 = vld [vmem:[%s20616_s6 + $0x998] ss:$24 sps:$4 sm:$0xff]  }
 0x32d   :  { %5667 = vmatprep.subr.bf16.mxu0 %v14396_v6  ;;  %v14435_v6 = vld [vmem:[%s20616_s6 + $0x9c4] ss:$24 sps:$4 sm:$0xff]  }
 0x330   :  { %5668 = vmatpush1.bf16.msra.mxu0 %v14394_v15  ;;  %v14438_v15 = vld [vmem:[%s20616_s6 + $0x9cc] ss:$24 sps:$4 sm:$0xff]  }
 0x331   :  { %5669 = vmatprep.subr.bf16.mxu0 %v14402_v35  ;;  %v14433_v35 = vld [vmem:[%s20616_s6 + $0x9c0] ss:$24 sps:$4 sm:$0xff]  }
 0x334   :  { %5670 = vmatpush1.bf16.msra.mxu0 %v14400_v17  ;;  %v14436_v17 = vld [vmem:[%s20616_s6 + $0x9c8] ss:$24 sps:$4 sm:$0xff]  }
 0x335   :  { %5671 = vmatprep.subr.bf16.mxu0 %v14408_v19  ;;  %v14441_v19 = vld [vmem:[%s20616_s6 + $0x9f4] ss:$24 sps:$4 sm:$0xff]  }
 0x338   :  { %5672 = vmatpush1.bf16.msra.mxu0 %v14406_v20  ;;  %v14444_v20 = vld [vmem:[%s20616_s6 + $0x9fc] ss:$24 sps:$4 sm:$0xff]  }
 0x339   :  { %5682 = vmatprep.subr.bf16.mxu0 %v14414_v21  ;;  %v14439_v21 = vld [vmem:[%s20616_s6 + $0x9f0] ss:$24 sps:$4 sm:$0xff]  }
 0x34e   :  { %v3138_v27 = vpop.f32.mrb[12].mxu0 }
 0x34f   :  { %v13401_v28 = vadd.f32 %v3138_v27, %v621_v25  ;;  %v3140_v29 = vpop.f32.mrb[13].mxu0  ;;  %v14447_v25 = vld [vmem:[%s20616_s6 + $0xa24] ss:$24 sps:$4 sm:$0xff]  }
 0x350   :  { %v13402_v30 = vadd.f32 %v3140_v29, %v625_v26  ;;  %v3142_v49 = vpop.f32.mrb[14].mxu0  ;;  %v14450_v26 = vld [vmem:[%s20616_s6 + $0xa2c] ss:$24 sps:$4 sm:$0xff]   ;;  %v14448_v29 = vld [vmem:[%s20616_s6 + $0xa28] ss:$24 sps:$4 sm:$0xff]  }
 0x351   :  { %v3316_v32 = vmul.f32 0.70710677, %v13401_v28  ;;  %v3143_v33 = vpop.f32.mrb[15].mxu0  ;;  %v3309_v38 = vmul.f32 0.5, %v13401_v28  ;;  %v14445_v28 = vld [vmem:[%s20616_s6 + $0xa20] ss:$24 sps:$4 sm:$0xff]  }
 0x352   :  { %v3317_v34 = vmul.f32 0.70710677, %v13402_v30  ;;  %v3310_v39 = vmul.f32 0.5, %v13402_v30  ;;  %v14453_v49 = vld [vmem:[%s20616_s6 + $0xa54] ss:$24 sps:$4 sm:$0xff]  }
 0x353   :  { %15711 = verf.f32 %v3316_v32  ;;  %v14456_v32 = vld [vmem:[%s20616_s6 + $0xa5c] ss:$24 sps:$4 sm:$0xff]   ;;  %v14451_v33 = vld [vmem:[%s20616_s6 + $0xa50] ss:$24 sps:$4 sm:$0xff]  }
 0x354   :  { %15713 = verf.f32 %v3317_v34  ;;  %v14454_v34 = vld [vmem:[%s20616_s6 + $0xa58] ss:$24 sps:$4 sm:$0xff]  }
 0x355   :  { %15715 = verf.f32 %v3318_v63  ;;  %v14481_v63 = vld [vmem:[%s20616_s6 + $0xd0] ss:$24 sps:$4 sm:$0xff]  }
 0x35d   :  { %v15712_v36 = vpop.eup %15711 }
 0x35e   :  { %v15714_v37 = vpop.eup %15713  ;;  %v3330_v42 = vadd.f32 1.0, %v15712_v36  ;;  %v3311_v36 = vmul.f32 0.5, %v17176_v24  ;;  %v14460_v24 = vld [vmem:[%s20618_s8] ss:$28 sps:$4 sm:$0xff]  }
 0x35f   :  { %v3331_v40 = vadd.f32 1.0, %v15714_v37  ;;  %v15716_v27 = vpop.eup %15715 }
 0x360   :  { %v3337_v43 = vmul.f32 %v3330_v42, %v3309_v38  ;;  %v3332_v30 = vadd.f32 1.0, %v15716_v27  ;;  %v14459_v38 = vld [vmem:[%s20616_s6 + $0x14] ss:$24 sps:$4 sm:$0xff]   ;;  %v14462_v42 = vld [vmem:[%s20618_s8 + $0x4] ss:$28 sps:$4 sm:$0xff]  }
 0x361   :  { %v3338_v46 = vmul.f32 %v3331_v40, %v3310_v39  ;;  %v14457_v39 = vld [vmem:[%s20616_s6 + $0x10] ss:$24 sps:$4 sm:$0xff]   ;;  %v14465_v40 = vld [vmem:[%s20616_s6 + $0x44] ss:$24 sps:$4 sm:$0xff]   ;;  %v14507_v27 = vld [vmem:[%s20616_s6 + $0x194] ss:$24 sps:$4 sm:$0xff]  }
 0x362   :  { %v17771_v52 = vpack.c.bf16 %v3337_v43, %v3337_v43  ;;  %v3339_v37 = vmul.f32 %v3332_v30, %v3311_v36  ;;  %v14468_v43 = vld [vmem:[%s20618_s8 + $0x3c] ss:$28 sps:$4 sm:$0xff]   ;;  %v14519_v36 = vld [vmem:[%s20616_s6 + $0x1f4] ss:$24 sps:$4 sm:$0xff]  }
 0x363   :  { %v17769_v51 = vpack.c.bf16 %v3338_v46, %v3338_v46  ;;  %v14508_v30 = vld [vmem:[%s20618_s8 + $0x1c0] ss:$28 sps:$4 sm:$0xff]  }
 0x364   :  { %v17883_v46 = vpack.c.bf16 %v3339_v37, %v3339_v37  ;;  %v14517_v37 = vld [vmem:[%s20616_s6 + $0x1f0] ss:$24 sps:$4 sm:$0xff]  }
 0x365   :  { %5509 = vmatprep.mubr.bf16.mxu1 %v17769_v51  ;;  %5673 = vmatprep.mubr.bf16.mxu0 %v17769_v51 }
 0x366   :  { %5510 = vmatmul.mubr.bf16.vlgmr.msra.gmra.mrb[20].mxu1 %v17771_v52  ;;  %5674 = vmatmul.mubr.bf16.vlgmr.msra.gmra.mrb[16].mxu0 %v17771_v52 }
 0x367   :  { %5519 = vmatpush1.bf16.msra.mxu1 %v14409_v47  ;;  %5683 = vmatpush1.bf16.msra.mxu0 %v14412_v50  ;;  %v14463_v47 = vld [vmem:[%s20616_s6 + $0x40] ss:$24 sps:$4 sm:$0xff]  }
 0x368   :  { %5520 = vmatprep.subr.bf16.mxu1 %v14417_v53  ;;  %5684 = vmatprep.subr.bf16.mxu0 %v14420_v54  ;;  %v14466_v50 = vld [vmem:[%s20618_s8 + $0x38] ss:$28 sps:$4 sm:$0xff]  }
 0x369   :  { %5550 = vmatprep.mubr.bf16.mxu1 %v15781_v0  ;;  %5714 = vmatprep.mubr.bf16.mxu0 %v15781_v0  ;;  %v14471_v53 = vld [vmem:[%s20616_s6 + $0x74] ss:$24 sps:$4 sm:$0xff]  }
 0x36a   :  { %v14474_v54 = vld [vmem:[%s20618_s8 + $0x74] ss:$28 sps:$4 sm:$0xff]  }
 0x36b   :  { %5521 = vmatpush1.bf16.msra.mxu1 %v14415_v55  ;;  %5685 = vmatpush1.bf16.msra.mxu0 %v14418_v56  ;;  %v14472_v55 = vld [vmem:[%s20618_s8 + $0x70] ss:$28 sps:$4 sm:$0xff]   ;;  %v14477_v56 = vld [vmem:[%s20616_s6 + $0xa4] ss:$24 sps:$4 sm:$0xff]  }
 0x36c   :  { %5522 = vmatprep.subr.bf16.mxu1 %v14423_v58  ;;  %5686 = vmatprep.subr.bf16.mxu0 %v14426_v60  ;;  %v14475_v58 = vld [vmem:[%s20616_s6 + $0xa0] ss:$24 sps:$4 sm:$0xff]   ;;  %v14480_v60 = vld [vmem:[%s20618_s8 + $0xac] ss:$28 sps:$4 sm:$0xff]  }
 0x36f   :  { %5523 = vmatpush1.bf16.msra.mxu1 %v14421_v61  ;;  %5687 = vmatpush1.bf16.msra.mxu0 %v14424_v62  ;;  %v14478_v61 = vld [vmem:[%s20618_s8 + $0xa8] ss:$28 sps:$4 sm:$0xff]   ;;  %v14483_v62 = vld [vmem:[%s20616_s6 + $0xd4] ss:$24 sps:$4 sm:$0xff]  }
 0x370   :  { %5524 = vmatprep.subr.bf16.mxu1 %v14429_v1  ;;  %5688 = vmatprep.subr.bf16.mxu0 %v14432_v3  ;;  %v14486_v1 = vld [vmem:[%s20618_s8 + $0xe4] ss:$28 sps:$4 sm:$0xff]  }
 0x371   :  { %v14484_v3 = vld [vmem:[%s20618_s8 + $0xe0] ss:$28 sps:$4 sm:$0xff]  }
 0x373   :  { %5525 = vmatpush1.bf16.msra.mxu1 %v14427_v4  ;;  %5689 = vmatpush1.bf16.msra.mxu0 %v14430_v5  ;;  %v14489_v4 = vld [vmem:[%s20616_s6 + $0x104] ss:$24 sps:$4 sm:$0xff]   ;;  %v14487_v5 = vld [vmem:[%s20616_s6 + $0x100] ss:$24 sps:$4 sm:$0xff]  }
 0x374   :  { %5526 = vmatprep.subr.bf16.mxu1 %v14435_v6  ;;  %5690 = vmatprep.subr.bf16.mxu0 %v14438_v15  ;;  %v14492_v6 = vld [vmem:[%s20618_s8 + $0x11c] ss:$28 sps:$4 sm:$0xff]  }
 0x375   :  { %v14490_v15 = vld [vmem:[%s20618_s8 + $0x118] ss:$28 sps:$4 sm:$0xff]  }
 0x377   :  { %5527 = vmatpush1.bf16.msra.mxu1 %v14433_v35  ;;  %5691 = vmatpush1.bf16.msra.mxu0 %v14436_v17  ;;  %v14495_v35 = vld [vmem:[%s20616_s6 + $0x134] ss:$24 sps:$4 sm:$0xff]   ;;  %v14493_v17 = vld [vmem:[%s20616_s6 + $0x130] ss:$24 sps:$4 sm:$0xff]  }
 0x378   :  { %5528 = vmatprep.subr.bf16.mxu1 %v14441_v19  ;;  %5692 = vmatprep.subr.bf16.mxu0 %v14444_v20  ;;  %v14498_v19 = vld [vmem:[%s20618_s8 + $0x154] ss:$28 sps:$4 sm:$0xff]  }
 0x379   :  { %v14496_v20 = vld [vmem:[%s20618_s8 + $0x150] ss:$28 sps:$4 sm:$0xff]  }
 0x37b   :  { %5529 = vmatpush1.bf16.msra.mxu1 %v14439_v21  ;;  %5693 = vmatpush1.bf16.msra.mxu0 %v14442_v23  ;;  %v14501_v21 = vld [vmem:[%s20616_s6 + $0x164] ss:$24 sps:$4 sm:$0xff]   ;;  %v14499_v23 = vld [vmem:[%s20616_s6 + $0x160] ss:$24 sps:$4 sm:$0xff]  }
 0x37c   :  { %5530 = vmatprep.subr.bf16.mxu1 %v14447_v25  ;;  %5694 = vmatprep.subr.bf16.mxu0 %v14450_v26  ;;  %v14504_v25 = vld [vmem:[%s20618_s8 + $0x18c] ss:$28 sps:$4 sm:$0xff]  }
 0x37d   :  { %v14502_v26 = vld [vmem:[%s20618_s8 + $0x188] ss:$28 sps:$4 sm:$0xff]  }
 0x37f   :  { %5531 = vmatpush1.bf16.msra.mxu1 %v14445_v28  ;;  %5695 = vmatpush1.bf16.msra.mxu0 %v14448_v29  ;;  %v14505_v28 = vld [vmem:[%s20616_s6 + $0x190] ss:$24 sps:$4 sm:$0xff]   ;;  %v14510_v29 = vld [vmem:[%s20618_s8 + $0x1c4] ss:$28 sps:$4 sm:$0xff]  }
 0x380   :  { %5532 = vmatprep.subr.bf16.mxu1 %v14453_v49  ;;  %5696 = vmatprep.subr.bf16.mxu0 %v14456_v32  ;;  %v14513_v49 = vld [vmem:[%s20616_s6 + $0x1c4] ss:$24 sps:$4 sm:$0xff]   ;;  %v14511_v32 = vld [vmem:[%s20616_s6 + $0x1c0] ss:$24 sps:$4 sm:$0xff]  }
 0x383   :  { %5533 = vmatpush1.bf16.msra.mxu1 %v14451_v33  ;;  %5697 = vmatpush1.bf16.msra.mxu0 %v14454_v34  ;;  %v14516_v33 = vld [vmem:[%s20618_s8 + $0x1fc] ss:$28 sps:$4 sm:$0xff]  }
 0x384   :  { %5723 = vmatprep.subr.bf16.mxu1 %v14459_v38  ;;  %8388 = vmatprep.subr.bf16.mxu0 %v14462_v42  ;;  %v14514_v34 = vld [vmem:[%s20618_s8 + $0x1f8] ss:$28 sps:$4 sm:$0xff]   ;;  %v14520_v42 = vld [vmem:[%s20618_s8 + $0x230] ss:$28 sps:$4 sm:$0xff]  }
 0x385   :  { %v14522_v38 = vld [vmem:[%s20618_s8 + $0x234] ss:$28 sps:$4 sm:$0xff]  }
 0x386   :  { %5551 = vmatmul.mubr.bf16.vlgmr.msra.gmra.mrb[20].mxu1 %v17883_v46  ;;  %5715 = vmatmul.mubr.bf16.vlgmr.msra.gmra.mrb[16].mxu0 %v17883_v46 }
 0x387   :  { %5724 = vmatpush1.bf16.msra.mxu1 %v14457_v39  ;;  %5755 = vmatprep.mubr.bf16.mxu1 %v17125_v57  ;;  %v14469_v57 = vld [vmem:[%s20616_s6 + $0x70] ss:$24 sps:$4 sm:$0xff]   ;;  %v14525_v39 = vld [vmem:[%s20616_s6 + $0x224] ss:$24 sps:$4 sm:$0xff]  }
 0x388   :  { %8389 = vmatpush1.bf16.msra.mxu0 %v14460_v24  ;;  %8420 = vmatprep.mubr.bf16.mxu0 %v16105_v11  ;;  %v14523_v24 = vld [vmem:[%s20616_s6 + $0x220] ss:$24 sps:$4 sm:$0xff]  }
 0x389   :  { %5725 = vmatprep.subr.bf16.mxu1 %v14465_v40  ;;  %8390 = vmatprep.subr.bf16.mxu0 %v14468_v43  ;;  %v14528_v40 = vld [vmem:[%s20618_s8 + $0x26c] ss:$28 sps:$4 sm:$0xff]  }
 0x38a   :  { %v14526_v43 = vld [vmem:[%s20618_s8 + $0x268] ss:$28 sps:$4 sm:$0xff]  }
 0x38b   :  { %5726 = vmatpush1.bf16.msra.mxu1 %v14463_v47  ;;  %v14531_v47 = vld [vmem:[%s20616_s6 + $0x254] ss:$24 sps:$4 sm:$0xff]  }
 0x38c   :  { %8391 = vmatpush1.bf16.msra.mxu0 %v14466_v50  ;;  %5727 = vmatprep.subr.bf16.mxu1 %v14471_v53  ;;  %v14529_v50 = vld [vmem:[%s20616_s6 + $0x250] ss:$24 sps:$4 sm:$0xff]   ;;  %v14534_v53 = vld [vmem:[%s20618_s8 + $0x2a4] ss:$28 sps:$4 sm:$0xff]  }
 0x38d   :  { %8392 = vmatprep.subr.bf16.mxu0 %v14474_v54  ;;  %v14532_v54 = vld [vmem:[%s20618_s8 + $0x2a0] ss:$28 sps:$4 sm:$0xff]  }
 0x38f   :  { %5728 = vmatpush1.bf16.msra.mxu1 %v14469_v57  ;;  %v14537_v57 = vld [vmem:[%s20616_s6 + $0x284] ss:$24 sps:$4 sm:$0xff]  }
 0x390   :  { %8393 = vmatpush1.bf16.msra.mxu0 %v14472_v55  ;;  %5729 = vmatprep.subr.bf16.mxu1 %v14477_v56  ;;  %v14535_v55 = vld [vmem:[%s20616_s6 + $0x280] ss:$24 sps:$4 sm:$0xff]  }
 0x391   :  { %8394 = vmatprep.subr.bf16.mxu0 %v14480_v60  ;;  %v14540_v56 = vld [vmem:[%s20618_s8 + $0x2dc] ss:$28 sps:$4 sm:$0xff]   ;;  %v14543_v60 = vld [vmem:[%s20616_s6 + $0x2b4] ss:$24 sps:$4 sm:$0xff]  }
 0x393   :  { %5730 = vmatpush1.bf16.msra.mxu1 %v14475_v58  ;;  %v14538_v58 = vld [vmem:[%s20618_s8 + $0x2d8] ss:$28 sps:$4 sm:$0xff]  }
 0x394   :  { %8395 = vmatpush1.bf16.msra.mxu0 %v14478_v61  ;;  %5731 = vmatprep.subr.bf16.mxu1 %v14483_v62  ;;  %v14541_v61 = vld [vmem:[%s20616_s6 + $0x2b0] ss:$24 sps:$4 sm:$0xff]  }
 0x395   :  { %8396 = vmatprep.subr.bf16.mxu0 %v14486_v1  ;;  %v14546_v62 = vld [vmem:[%s20618_s8 + $0x314] ss:$28 sps:$4 sm:$0xff]   ;;  %v14549_v1 = vld [vmem:[%s20616_s6 + $0x2e4] ss:$24 sps:$4 sm:$0xff]  }
 0x397   :  { %5732 = vmatpush1.bf16.msra.mxu1 %v14481_v63  ;;  %v14544_v63 = vld [vmem:[%s20618_s8 + $0x310] ss:$28 sps:$4 sm:$0xff]  }
 0x398   :  { %8397 = vmatpush1.bf16.msra.mxu0 %v14484_v3  ;;  %5733 = vmatprep.subr.bf16.mxu1 %v14489_v4  ;;  %v14547_v3 = vld [vmem:[%s20616_s6 + $0x2e0] ss:$24 sps:$4 sm:$0xff]   ;;  %v14552_v4 = vld [vmem:[%s20618_s8 + $0x34c] ss:$28 sps:$4 sm:$0xff]  }
 0x399   :  { %8398 = vmatprep.subr.bf16.mxu0 %v14492_v6  ;;  %v14555_v6 = vld [vmem:[%s20616_s6 + $0x314] ss:$24 sps:$4 sm:$0xff]  }
 0x39b   :  { %5734 = vmatpush1.bf16.msra.mxu1 %v14487_v5  ;;  %v14550_v5 = vld [vmem:[%s20618_s8 + $0x348] ss:$28 sps:$4 sm:$0xff]  }
 0x39c   :  { %8399 = vmatpush1.bf16.msra.mxu0 %v14490_v15  ;;  %5735 = vmatprep.subr.bf16.mxu1 %v14495_v35  ;;  %v14553_v15 = vld [vmem:[%s20616_s6 + $0x310] ss:$24 sps:$4 sm:$0xff]   ;;  %v14558_v35 = vld [vmem:[%s20618_s8 + $0x384] ss:$28 sps:$4 sm:$0xff]  }
 0x39d   :  { %8400 = vmatprep.subr.bf16.mxu0 %v14498_v19  ;;  %v14561_v19 = vld [vmem:[%s20616_s6 + $0x344] ss:$24 sps:$4 sm:$0xff]  }
 0x39f   :  { %5736 = vmatpush1.bf16.msra.mxu1 %v14493_v17  ;;  %v14556_v17 = vld [vmem:[%s20618_s8 + $0x380] ss:$28 sps:$4 sm:$0xff]  }
 0x3a0   :  { %8401 = vmatpush1.bf16.msra.mxu0 %v14496_v20  ;;  %5737 = vmatprep.subr.bf16.mxu1 %v14501_v21  ;;  %v14564_v20 = vld [vmem:[%s20618_s8 + $0x3bc] ss:$28 sps:$4 sm:$0xff]  }
 0x3a1   :  { %8402 = vmatprep.subr.bf16.mxu0 %v14504_v25  ;;  %v14559_v21 = vld [vmem:[%s20616_s6 + $0x340] ss:$24 sps:$4 sm:$0xff]   ;;  %v14565_v25 = vld [vmem:[%s20616_s6 + $0x370] ss:$24 sps:$4 sm:$0xff]  }
 0x3a3   :  { %5738 = vmatpush1.bf16.msra.mxu1 %v14499_v23  ;;  %v14562_v23 = vld [vmem:[%s20618_s8 + $0x3b8] ss:$28 sps:$4 sm:$0xff]  }
 0x3a4   :  { %8403 = vmatpush1.bf16.msra.mxu0 %v14502_v26  ;;  %5739 = vmatprep.subr.bf16.mxu1 %v14507_v27  ;;  %v14568_v26 = vld [vmem:[%s20618_s8 + $0x3f0] ss:$28 sps:$4 sm:$0xff]   ;;  %v14573_v27 = vld [vmem:[%s20616_s6 + $0x3a4] ss:$24 sps:$4 sm:$0xff]  }
 0x3a5   :  { %8404 = vmatprep.subr.bf16.mxu0 %v14510_v29  ;;  %v14576_v29 = vld [vmem:[%s20618_s8 + $0x42c] ss:$28 sps:$4 sm:$0xff]  }
 0x3a7   :  { %5740 = vmatpush1.bf16.msra.mxu1 %v14505_v28  ;;  %v14571_v28 = vld [vmem:[%s20616_s6 + $0x3a0] ss:$24 sps:$4 sm:$0xff]  }
 0x3a8   :  { %8405 = vmatpush1.bf16.msra.mxu0 %v14508_v30  ;;  %5741 = vmatprep.subr.bf16.mxu1 %v14513_v49  ;;  %v14574_v30 = vld [vmem:[%s20618_s8 + $0x428] ss:$28 sps:$4 sm:$0xff]   ;;  %v14579_v49 = vld [vmem:[%s20616_s6 + $0x3d4] ss:$24 sps:$4 sm:$0xff]  }
 0x3a9   :  { %8406 = vmatprep.subr.bf16.mxu0 %v14516_v33  ;;  %v14582_v33 = vld [vmem:[%s20618_s8 + $0x464] ss:$28 sps:$4 sm:$0xff]  }
 0x3ab   :  { %5742 = vmatpush1.bf16.msra.mxu1 %v14511_v32  ;;  %v14577_v32 = vld [vmem:[%s20616_s6 + $0x3d0] ss:$24 sps:$4 sm:$0xff]  }
 0x3ac   :  { %8407 = vmatpush1.bf16.msra.mxu0 %v14514_v34  ;;  %5743 = vmatprep.subr.bf16.mxu1 %v14519_v36  ;;  %v14580_v34 = vld [vmem:[%s20618_s8 + $0x460] ss:$28 sps:$4 sm:$0xff]  }
 0x3ad   :  { %8408 = vmatprep.subr.bf16.mxu0 %v14522_v38  ;;  %v14585_v36 = vld [vmem:[%s20616_s6 + $0x404] ss:$24 sps:$4 sm:$0xff]  }
 0x3ae   :  { %v14588_v38 = vld [vmem:[%s20618_s8 + $0x49c] ss:$28 sps:$4 sm:$0xff]  }
 0x3af   :  { %5744 = vmatpush1.bf16.msra.mxu1 %v14517_v37  ;;  %v14583_v37 = vld [vmem:[%s20616_s6 + $0x400] ss:$24 sps:$4 sm:$0xff]  }
 0x3b0   :  { %8409 = vmatpush1.bf16.msra.mxu0 %v14520_v42  ;;  %5745 = vmatprep.subr.bf16.mxu1 %v14525_v39  ;;  %v14586_v42 = vld [vmem:[%s20618_s8 + $0x498] ss:$28 sps:$4 sm:$0xff]  }
 0x3b1   :  { %8410 = vmatprep.subr.bf16.mxu0 %v14528_v40  ;;  %v14591_v39 = vld [vmem:[%s20616_s6 + $0x434] ss:$24 sps:$4 sm:$0xff]   ;;  %v14589_v40 = vld [vmem:[%s20616_s6 + $0x430] ss:$24 sps:$4 sm:$0xff]  }
 0x3b3   :  { %5746 = vmatpush1.bf16.msra.mxu1 %v14523_v24  ;;  %v14594_v24 = vld [vmem:[%s20618_s8 + $0x4d4] ss:$28 sps:$4 sm:$0xff]  }
 0x3b4   :  { %8411 = vmatpush1.bf16.msra.mxu0 %v14526_v43  ;;  %5747 = vmatprep.subr.bf16.mxu1 %v14531_v47  ;;  %v14592_v43 = vld [vmem:[%s20618_s8 + $0x4d0] ss:$28 sps:$4 sm:$0xff]   ;;  %v14597_v47 = vld [vmem:[%s20616_s6 + $0x464] ss:$24 sps:$4 sm:$0xff]  }
 0x3b5   :  { %8412 = vmatprep.subr.bf16.mxu0 %v14534_v53  ;;  %v14595_v53 = vld [vmem:[%s20616_s6 + $0x460] ss:$24 sps:$4 sm:$0xff]  }
 0x3b7   :  { %5748 = vmatpush1.bf16.msra.mxu1 %v14529_v50  ;;  %v14600_v50 = vld [vmem:[%s20618_s8 + $0x50c] ss:$28 sps:$4 sm:$0xff]  }
 0x3b8   :  { %8413 = vmatpush1.bf16.msra.mxu0 %v14532_v54  ;;  %5749 = vmatprep.subr.bf16.mxu1 %v14537_v57  ;;  %v14598_v54 = vld [vmem:[%s20618_s8 + $0x508] ss:$28 sps:$4 sm:$0xff]   ;;  %v14603_v57 = vld [vmem:[%s20616_s6 + $0x494] ss:$24 sps:$4 sm:$0xff]  }
 0x3b9   :  { %8414 = vmatprep.subr.bf16.mxu0 %v14540_v56  ;;  %v14606_v56 = vld [vmem:[%s20618_s8 + $0x544] ss:$28 sps:$4 sm:$0xff]  }
 0x3bb   :  { %5750 = vmatpush1.bf16.msra.mxu1 %v14535_v55  ;;  %v14601_v55 = vld [vmem:[%s20616_s6 + $0x490] ss:$24 sps:$4 sm:$0xff]  }
 0x3bc   :  { %8415 = vmatpush1.bf16.msra.mxu0 %v14538_v58  ;;  %5751 = vmatprep.subr.bf16.mxu1 %v14543_v60  ;;  %v14604_v58 = vld [vmem:[%s20618_s8 + $0x540] ss:$28 sps:$4 sm:$0xff]  }
 0x3bd   :  { %8416 = vmatprep.subr.bf16.mxu0 %v14546_v62  ;;  %v14609_v60 = vld [vmem:[%s20616_s6 + $0x4c4] ss:$24 sps:$4 sm:$0xff]   ;;  %v14607_v62 = vld [vmem:[%s20616_s6 + $0x4c0] ss:$24 sps:$4 sm:$0xff]  }
 0x3bf   :  { %5752 = vmatpush1.bf16.msra.mxu1 %v14541_v61  ;;  %v14612_v61 = vld [vmem:[%s20618_s8 + $0x57c] ss:$28 sps:$4 sm:$0xff]  }
 0x3c0   :  { %8417 = vmatpush1.bf16.msra.mxu0 %v14544_v63  ;;  %5753 = vmatprep.subr.bf16.mxu1 %v14549_v1  ;;  %v14610_v63 = vld [vmem:[%s20618_s8 + $0x578] ss:$28 sps:$4 sm:$0xff]  }
 0x3c1   :  { %8418 = vmatprep.subr.bf16.mxu0 %v14552_v4  ;;  %v14615_v1 = vld [vmem:[%s20616_s6 + $0x4f4] ss:$24 sps:$4 sm:$0xff]   ;;  %v14613_v4 = vld [vmem:[%s20616_s6 + $0x4f0] ss:$24 sps:$4 sm:$0xff]  }
 0x3c3   :  { %5754 = vmatpush1.bf16.msra.mxu1 %v14547_v3  ;;  %v14618_v3 = vld [vmem:[%s20618_s8 + $0x5b4] ss:$28 sps:$4 sm:$0xff]  }
 0x3c4   :  { %8419 = vmatpush1.bf16.msra.mxu0 %v14550_v5  ;;  %5764 = vmatprep.subr.bf16.mxu1 %v14555_v6  ;;  %v14616_v5 = vld [vmem:[%s20618_s8 + $0x5b0] ss:$28 sps:$4 sm:$0xff]   ;;  %v14621_v6 = vld [vmem:[%s20616_s6 + $0x524] ss:$24 sps:$4 sm:$0xff]  }
 0x3c5   :  { %8429 = vmatprep.subr.bf16.mxu0 %v14558_v35  ;;  %v14619_v35 = vld [vmem:[%s20616_s6 + $0x520] ss:$24 sps:$4 sm:$0xff]  }
 0x3c6   :  { %5756 = vmatmul.mubr.bf16.vlgmr.msra.gmra.mrb[24].mxu1 %v17130_v59  ;;  %v14567_v59 = vld [vmem:[%s20616_s6 + $0x374] ss:$24 sps:$4 sm:$0xff]  }
 0x3c7   :  { %8421 = vmatmul.mubr.bf16.vlgmr.msra.gmra.mrb[20].mxu0 %v16100_v2  ;;  %5765 = vmatpush1.bf16.msra.mxu1 %v14553_v15  ;;  %v14624_v15 = vld [vmem:[%s20618_s8 + $0x5ec] ss:$28 sps:$4 sm:$0xff]  }
 0x3c8   :  { %5796 = vmatprep.mubr.bf16.mxu1 %v17383_v48  ;;  %8430 = vmatpush1.bf16.msra.mxu0 %v14556_v17  ;;  %v14570_v48 = vld [vmem:[%s20618_s8 + $0x3f4] ss:$28 sps:$4 sm:$0xff]   ;;  %v14622_v17 = vld [vmem:[%s20618_s8 + $0x5e8] ss:$28 sps:$4 sm:$0xff]  }
 0x3c9   :  { %8461 = vmatprep.mubr.bf16.mxu0 %v16112_v18  ;;  %5766 = vmatprep.subr.bf16.mxu1 %v14561_v19  ;;  %v14627_v19 = vld [vmem:[%s20616_s6 + $0x554] ss:$24 sps:$4 sm:$0xff]  }
 0x3ca   :  { %8431 = vmatprep.subr.bf16.mxu0 %v14564_v20  ;;  %v14630_v20 = vld [vmem:[%s20618_s8 + $0x624] ss:$28 sps:$4 sm:$0xff]  }
 0x3cb   :  { %5767 = vmatpush1.bf16.msra.mxu1 %v14559_v21  ;;  %v14625_v21 = vld [vmem:[%s20616_s6 + $0x550] ss:$24 sps:$4 sm:$0xff]  }
 0x3cc   :  { %8432 = vmatpush1.bf16.msra.mxu0 %v14562_v23  ;;  %5768 = vmatprep.subr.bf16.mxu1 %v14567_v59  ;;  %v14628_v23 = vld [vmem:[%s20618_s8 + $0x620] ss:$28 sps:$4 sm:$0xff]  }
 0x3cd   :  { %8433 = vmatprep.subr.bf16.mxu0 %v14570_v48  ;;  %v14633_v59 = vld [vmem:[%s20616_s6 + $0x584] ss:$24 sps:$4 sm:$0xff]   ;;  %v14631_v48 = vld [vmem:[%s20616_s6 + $0x580] ss:$24 sps:$4 sm:$0xff]  }
 0x3cf   :  { %5769 = vmatpush1.bf16.msra.mxu1 %v14565_v25  ;;  %v14636_v25 = vld [vmem:[%s20618_s8 + $0x65c] ss:$28 sps:$4 sm:$0xff]  }
 0x3d0   :  { %8434 = vmatpush1.bf16.msra.mxu0 %v14568_v26  ;;  %5770 = vmatprep.subr.bf16.mxu1 %v14573_v27  ;;  %v14634_v26 = vld [vmem:[%s20618_s8 + $0x658] ss:$28 sps:$4 sm:$0xff]  }
 0x3d1   :  { %8435 = vmatprep.subr.bf16.mxu0 %v14576_v29  ;;  %v14639_v27 = vld [vmem:[%s20616_s6 + $0x5b4] ss:$24 sps:$4 sm:$0xff]   ;;  %v14637_v29 = vld [vmem:[%s20616_s6 + $0x5b0] ss:$24 sps:$4 sm:$0xff]  }
 0x3d3   :  { %5771 = vmatpush1.bf16.msra.mxu1 %v14571_v28  ;;  %v14642_v28 = vld [vmem:[%s20618_s8 + $0x694] ss:$28 sps:$4 sm:$0xff]  }
 0x3d4   :  { %8436 = vmatpush1.bf16.msra.mxu0 %v14574_v30  ;;  %5772 = vmatprep.subr.bf16.mxu1 %v14579_v49  ;;  %v14640_v30 = vld [vmem:[%s20618_s8 + $0x690] ss:$28 sps:$4 sm:$0xff]   ;;  %v14645_v49 = vld [vmem:[%s20616_s6 + $0x5e4] ss:$24 sps:$4 sm:$0xff]  }
 0x3d5   :  { %8437 = vmatprep.subr.bf16.mxu0 %v14582_v33  ;;  %v14643_v33 = vld [vmem:[%s20616_s6 + $0x5e0] ss:$24 sps:$4 sm:$0xff]  }
 0x3d7   :  { %5773 = vmatpush1.bf16.msra.mxu1 %v14577_v32  ;;  %v14648_v32 = vld [vmem:[%s20618_s8 + $0x6cc] ss:$28 sps:$4 sm:$0xff]  }
 0x3d8   :  { %8438 = vmatpush1.bf16.msra.mxu0 %v14580_v34  ;;  %5774 = vmatprep.subr.bf16.mxu1 %v14585_v36  ;;  %v14646_v34 = vld [vmem:[%s20618_s8 + $0x6c8] ss:$28 sps:$4 sm:$0xff]   ;;  %v14651_v36 = vld [vmem:[%s20616_s6 + $0x614] ss:$24 sps:$4 sm:$0xff]  }
 0x3d9   :  { %8439 = vmatprep.subr.bf16.mxu0 %v14588_v38  ;;  %v14649_v38 = vld [vmem:[%s20616_s6 + $0x610] ss:$24 sps:$4 sm:$0xff]  }
 0x3db   :  { %5775 = vmatpush1.bf16.msra.mxu1 %v14583_v37  ;;  %v14654_v37 = vld [vmem:[%s20618_s8 + $0x704] ss:$28 sps:$4 sm:$0xff]  }
 0x3dc   :  { %8440 = vmatpush1.bf16.msra.mxu0 %v14586_v42  ;;  %5776 = vmatprep.subr.bf16.mxu1 %v14591_v39  ;;  %v14652_v42 = vld [vmem:[%s20618_s8 + $0x700] ss:$28 sps:$4 sm:$0xff]  }
 0x3dd   :  { %8441 = vmatprep.subr.bf16.mxu0 %v14594_v24  ;;  %v14657_v39 = vld [vmem:[%s20616_s6 + $0x644] ss:$24 sps:$4 sm:$0xff]  }
 0x3de   :  { %v14660_v24 = vld [vmem:[%s20618_s8 + $0x73c] ss:$28 sps:$4 sm:$0xff]  }
 0x3df   :  { %5777 = vmatpush1.bf16.msra.mxu1 %v14589_v40  ;;  %v14655_v40 = vld [vmem:[%s20616_s6 + $0x640] ss:$24 sps:$4 sm:$0xff]  }
 0x3e0   :  { %8442 = vmatpush1.bf16.msra.mxu0 %v14592_v43  ;;  %5778 = vmatprep.subr.bf16.mxu1 %v14597_v47  ;;  %v14658_v43 = vld [vmem:[%s20618_s8 + $0x738] ss:$28 sps:$4 sm:$0xff]  }
 0x3e1   :  { %8443 = vmatprep.subr.bf16.mxu0 %v14600_v50  ;;  %v14666_v47 = vld [vmem:[%s20618_s8 + $0x774] ss:$28 sps:$4 sm:$0xff]  }
 0x3e2   :  { %v14664_v50 = vld [vmem:[%s20618_s8 + $0x770] ss:$28 sps:$4 sm:$0xff]  }
 0x3e3   :  { %5779 = vmatpush1.bf16.msra.mxu1 %v14595_v53  ;;  %v14669_v53 = vld [vmem:[%s20616_s6 + $0x6a4] ss:$24 sps:$4 sm:$0xff]  }
 0x3e4   :  { %8444 = vmatpush1.bf16.msra.mxu0 %v14598_v54  ;;  %5780 = vmatprep.subr.bf16.mxu1 %v14603_v57  ;;  %v14672_v54 = vld [vmem:[%s20618_s8 + $0x7ac] ss:$28 sps:$4 sm:$0xff]   ;;  %v14667_v57 = vld [vmem:[%s20616_s6 + $0x6a0] ss:$24 sps:$4 sm:$0xff]  }
 0x3e5   :  { %8445 = vmatprep.subr.bf16.mxu0 %v14606_v56  ;;  %v14675_v56 = vld [vmem:[%s20616_s6 + $0x6d4] ss:$24 sps:$4 sm:$0xff]  }
 0x3e7   :  { %5781 = vmatpush1.bf16.msra.mxu1 %v14601_v55  ;;  %v14670_v55 = vld [vmem:[%s20618_s8 + $0x7a8] ss:$28 sps:$4 sm:$0xff]  }
 0x3e8   :  { %8446 = vmatpush1.bf16.msra.mxu0 %v14604_v58  ;;  %5782 = vmatprep.subr.bf16.mxu1 %v14609_v60  ;;  %v14678_v58 = vld [vmem:[%s20618_s8 + $0x7e4] ss:$28 sps:$4 sm:$0xff]   ;;  %v14673_v60 = vld [vmem:[%s20616_s6 + $0x6d0] ss:$24 sps:$4 sm:$0xff]  }
 0x3e9   :  { %8447 = vmatprep.subr.bf16.mxu0 %v14612_v61  ;;  %v14676_v61 = vld [vmem:[%s20618_s8 + $0x7e0] ss:$28 sps:$4 sm:$0xff]  }
 0x3eb   :  { %5783 = vmatpush1.bf16.msra.mxu1 %v14607_v62  ;;  %v14681_v62 = vld [vmem:[%s20616_s6 + $0x704] ss:$24 sps:$4 sm:$0xff]  }
 0x3ec   :  { %8448 = vmatpush1.bf16.msra.mxu0 %v14610_v63  ;;  %5784 = vmatprep.subr.bf16.mxu1 %v14615_v1  ;;  %v14684_v63 = vld [vmem:[%s20618_s8 + $0x81c] ss:$28 sps:$4 sm:$0xff]  }
 0x3ed   :  { %8449 = vmatprep.subr.bf16.mxu0 %v14618_v3  ;;  %v14679_v1 = vld [vmem:[%s20616_s6 + $0x700] ss:$24 sps:$4 sm:$0xff]  }
 0x3ee   :  { %v14682_v3 = vld [vmem:[%s20618_s8 + $0x818] ss:$28 sps:$4 sm:$0xff]  }
 0x3ef   :  { %5785 = vmatpush1.bf16.msra.mxu1 %v14613_v4  ;;  %v14687_v4 = vld [vmem:[%s20616_s6 + $0x734] ss:$24 sps:$4 sm:$0xff]  }
 0x3f0   :  { %8450 = vmatpush1.bf16.msra.mxu0 %v14616_v5  ;;  %5786 = vmatprep.subr.bf16.mxu1 %v14621_v6  ;;  %v14690_v5 = vld [vmem:[%s20618_s8 + $0x854] ss:$28 sps:$4 sm:$0xff]  }
 0x3f1   :  { %8451 = vmatprep.subr.bf16.mxu0 %v14624_v15  ;;  %v14685_v6 = vld [vmem:[%s20616_s6 + $0x730] ss:$24 sps:$4 sm:$0xff]  }
 0x3f2   :  { %v14688_v15 = vld [vmem:[%s20618_s8 + $0x850] ss:$28 sps:$4 sm:$0xff]  }
 0x3f3   :  { %5787 = vmatpush1.bf16.msra.mxu1 %v14619_v35  ;;  %v14693_v35 = vld [vmem:[%s20616_s6 + $0x764] ss:$24 sps:$4 sm:$0xff]  }
 0x3f4   :  { %8452 = vmatpush1.bf16.msra.mxu0 %v14622_v17  ;;  %5788 = vmatprep.subr.bf16.mxu1 %v14627_v19  ;;  %v14696_v17 = vld [vmem:[%s20618_s8 + $0x88c] ss:$28 sps:$4 sm:$0xff]   ;;  %v14691_v19 = vld [vmem:[%s20616_s6 + $0x760] ss:$24 sps:$4 sm:$0xff]  }
 0x3f5   :  { %8453 = vmatprep.subr.bf16.mxu0 %v14630_v20  ;;  %v14694_v20 = vld [vmem:[%s20618_s8 + $0x888] ss:$28 sps:$4 sm:$0xff]  }
 0x3f7   :  { %5789 = vmatpush1.bf16.msra.mxu1 %v14625_v21  ;;  %v14699_v21 = vld [vmem:[%s20616_s6 + $0x794] ss:$24 sps:$4 sm:$0xff]  }
 0x3f8   :  { %8454 = vmatpush1.bf16.msra.mxu0 %v14628_v23  ;;  %5790 = vmatprep.subr.bf16.mxu1 %v14633_v59  ;;  %v14702_v23 = vld [vmem:[%s20618_s8 + $0x8c4] ss:$28 sps:$4 sm:$0xff]   ;;  %v14697_v59 = vld [vmem:[%s20616_s6 + $0x790] ss:$24 sps:$4 sm:$0xff]  }
 0x3f9   :  { %8455 = vmatprep.subr.bf16.mxu0 %v14636_v25  ;;  %v14700_v25 = vld [vmem:[%s20618_s8 + $0x8c0] ss:$28 sps:$4 sm:$0xff]  }
 0x3fb   :  { %5791 = vmatpush1.bf16.msra.mxu1 %v14631_v48  ;;  %v14705_v48 = vld [vmem:[%s20616_s6 + $0x7c4] ss:$24 sps:$4 sm:$0xff]  }
 0x3fc   :  { %8456 = vmatpush1.bf16.msra.mxu0 %v14634_v26  ;;  %5792 = vmatprep.subr.bf16.mxu1 %v14639_v27  ;;  %v14708_v26 = vld [vmem:[%s20618_s8 + $0x8fc] ss:$28 sps:$4 sm:$0xff]  }
 0x3fd   :  { %8457 = vmatprep.subr.bf16.mxu0 %v14642_v28  ;;  %v14703_v27 = vld [vmem:[%s20616_s6 + $0x7c0] ss:$24 sps:$4 sm:$0xff]  }
 0x3fe   :  { %v14706_v28 = vld [vmem:[%s20618_s8 + $0x8f8] ss:$28 sps:$4 sm:$0xff]  }
 0x3ff   :  { %5793 = vmatpush1.bf16.msra.mxu1 %v14637_v29  ;;  %v14711_v29 = vld [vmem:[%s20616_s6 + $0x7f4] ss:$24 sps:$4 sm:$0xff]  }
 0x400   :  { %8458 = vmatpush1.bf16.msra.mxu0 %v14640_v30  ;;  %5794 = vmatprep.subr.bf16.mxu1 %v14645_v49  ;;  %v14714_v30 = vld [vmem:[%s20618_s8 + $0x934] ss:$28 sps:$4 sm:$0xff]  }
 0x401   :  { %8459 = vmatprep.subr.bf16.mxu0 %v14648_v32  ;;  %v14709_v49 = vld [vmem:[%s20616_s6 + $0x7f0] ss:$24 sps:$4 sm:$0xff]  }
 0x402   :  { %v14712_v32 = vld [vmem:[%s20618_s8 + $0x930] ss:$28 sps:$4 sm:$0xff]  }
 0x403   :  { %5795 = vmatpush1.bf16.msra.mxu1 %v14643_v33  ;;  %v14717_v33 = vld [vmem:[%s20616_s6 + $0x824] ss:$24 sps:$4 sm:$0xff]  }
 0x404   :  { %8460 = vmatpush1.bf16.msra.mxu0 %v14646_v34  ;;  %5805 = vmatprep.subr.bf16.mxu1 %v14651_v36  ;;  %v14720_v34 = vld [vmem:[%s20618_s8 + $0x96c] ss:$28 sps:$4 sm:$0xff]   ;;  %v14715_v36 = vld [vmem:[%s20616_s6 + $0x820] ss:$24 sps:$4 sm:$0xff]  }
 0x405   :  { %8470 = vmatprep.subr.bf16.mxu0 %v14654_v37  ;;  %v14718_v37 = vld [vmem:[%s20618_s8 + $0x968] ss:$28 sps:$4 sm:$0xff]  }
 0x406   :  { %5797 = vmatmul.mubr.bf16.vlgmr.msra.gmra.mrb[24].mxu1 %v17388_v31  ;;  %v14663_v31 = vld [vmem:[%s20616_s6 + $0x674] ss:$24 sps:$4 sm:$0xff]  }
 0x407   :  { %8462 = vmatmul.mubr.bf16.vlgmr.msra.gmra.mrb[20].mxu0 %v16110_v16  ;;  %5806 = vmatpush1.bf16.msra.mxu1 %v14649_v38  ;;  %v14723_v38 = vld [vmem:[%s20616_s6 + $0x854] ss:$24 sps:$4 sm:$0xff]  }
 0x408   :  { %5837 = vmatprep.mubr.bf16.mxu1 %v17769_v51  ;;  %8471 = vmatpush1.bf16.msra.mxu0 %v14652_v42  ;;  %v14661_v51 = vld [vmem:[%s20616_s6 + $0x670] ss:$24 sps:$4 sm:$0xff]   ;;  %v14726_v42 = vld [vmem:[%s20618_s8 + $0x9a4] ss:$28 sps:$4 sm:$0xff]  }
 0x409   :  { %8502 = vmatprep.mubr.bf16.mxu0 %v16125_v22  ;;  %5807 = vmatprep.subr.bf16.mxu1 %v14657_v39  ;;  %v14721_v39 = vld [vmem:[%s20616_s6 + $0x850] ss:$24 sps:$4 sm:$0xff]  }
 0x40a   :  { %8472 = vmatprep.subr.bf16.mxu0 %v14660_v24  ;;  %v14724_v24 = vld [vmem:[%s20618_s8 + $0x9a0] ss:$28 sps:$4 sm:$0xff]  }
 0x40b   :  { %5808 = vmatpush1.bf16.msra.mxu1 %v14655_v40  ;;  %v14729_v40 = vld [vmem:[%s20616_s6 + $0x884] ss:$24 sps:$4 sm:$0xff]  }
 0x40c   :  { %8473 = vmatpush1.bf16.msra.mxu0 %v14658_v43  ;;  %5809 = vmatprep.subr.bf16.mxu1 %v14663_v31  ;;  %v14732_v43 = vld [vmem:[%s20618_s8 + $0x9dc] ss:$28 sps:$4 sm:$0xff]  }
 0x40d   :  { %8474 = vmatprep.subr.bf16.mxu0 %v14666_v47  ;;  %v14727_v31 = vld [vmem:[%s20616_s6 + $0x880] ss:$24 sps:$4 sm:$0xff]  }
 0x40e   :  { %v14730_v47 = vld [vmem:[%s20618_s8 + $0x9d8] ss:$28 sps:$4 sm:$0xff]  }
 0x40f   :  { %5810 = vmatpush1.bf16.msra.mxu1 %v14661_v51  ;;  %v14735_v51 = vld [vmem:[%s20616_s6 + $0x8b4] ss:$24 sps:$4 sm:$0xff]  }
 0x410   :  { %8475 = vmatpush1.bf16.msra.mxu0 %v14664_v50  ;;  %5811 = vmatprep.subr.bf16.mxu1 %v14669_v53  ;;  %v14738_v50 = vld [vmem:[%s20618_s8 + $0xa14] ss:$28 sps:$4 sm:$0xff]  }
 0x411   :  { %8476 = vmatprep.subr.bf16.mxu0 %v14672_v54  ;;  %v14733_v53 = vld [vmem:[%s20616_s6 + $0x8b0] ss:$24 sps:$4 sm:$0xff]  }
 0x412   :  { %v14736_v54 = vld [vmem:[%s20618_s8 + $0xa10] ss:$28 sps:$4 sm:$0xff]  }
 0x413   :  { %5812 = vmatpush1.bf16.msra.mxu1 %v14667_v57  ;;  %v14741_v57 = vld [vmem:[%s20616_s6 + $0x8e4] ss:$24 sps:$4 sm:$0xff]  }
 0x414   :  { %8477 = vmatpush1.bf16.msra.mxu0 %v14670_v55  ;;  %5813 = vmatprep.subr.bf16.mxu1 %v14675_v56  ;;  %v14744_v55 = vld [vmem:[%s20618_s8 + $0xa4c] ss:$28 sps:$4 sm:$0xff]   ;;  %v14739_v56 = vld [vmem:[%s20616_s6 + $0x8e0] ss:$24 sps:$4 sm:$0xff]  }
 0x415   :  { %8478 = vmatprep.subr.bf16.mxu0 %v14678_v58  ;;  %v14742_v58 = vld [vmem:[%s20618_s8 + $0xa48] ss:$28 sps:$4 sm:$0xff]  }
 0x417   :  { %5814 = vmatpush1.bf16.msra.mxu1 %v14673_v60  ;;  %v14747_v60 = vld [vmem:[%s20616_s6 + $0x914] ss:$24 sps:$4 sm:$0xff]  }
 0x418   :  { %8479 = vmatpush1.bf16.msra.mxu0 %v14676_v61  ;;  %5815 = vmatprep.subr.bf16.mxu1 %v14681_v62  ;;  %v14750_v61 = vld [vmem:[%s20618_s8 + $0xa84] ss:$28 sps:$4 sm:$0xff]   ;;  %v14745_v62 = vld [vmem:[%s20616_s6 + $0x910] ss:$24 sps:$4 sm:$0xff]  }
 0x419   :  { %8480 = vmatprep.subr.bf16.mxu0 %v14684_v63  ;;  %v14748_v63 = vld [vmem:[%s20618_s8 + $0xa80] ss:$28 sps:$4 sm:$0xff]  }
 0x41b   :  { %5816 = vmatpush1.bf16.msra.mxu1 %v14679_v1  ;;  %v14753_v1 = vld [vmem:[%s20616_s6 + $0x944] ss:$24 sps:$4 sm:$0xff]  }
 0x41c   :  { %8481 = vmatpush1.bf16.msra.mxu0 %v14682_v3  ;;  %5817 = vmatprep.subr.bf16.mxu1 %v14687_v4  ;;  %v14756_v3 = vld [vmem:[%s20618_s8 + $0xabc] ss:$28 sps:$4 sm:$0xff]  }
 0x41d   :  { %8482 = vmatprep.subr.bf16.mxu0 %v14690_v5  ;;  %v14751_v4 = vld [vmem:[%s20616_s6 + $0x940] ss:$24 sps:$4 sm:$0xff]  }
 0x41e   :  { %v14754_v5 = vld [vmem:[%s20618_s8 + $0xab8] ss:$28 sps:$4 sm:$0xff]  }
 0x41f   :  { %5818 = vmatpush1.bf16.msra.mxu1 %v14685_v6  ;;  %v14759_v6 = vld [vmem:[%s20616_s6 + $0x974] ss:$24 sps:$4 sm:$0xff]  }
 0x420   :  { %8483 = vmatpush1.bf16.msra.mxu0 %v14688_v15  ;;  %5819 = vmatprep.subr.bf16.mxu1 %v14693_v35  ;;  %v14757_v15 = vld [vmem:[%s20616_s6 + $0x970] ss:$24 sps:$4 sm:$0xff]  }
 0x421   :  { %8484 = vmatprep.subr.bf16.mxu0 %v14696_v17  ;;  %v14760_v35 = vld [vmem:[%s20618_s8 + $0xaf0] ss:$28 sps:$4 sm:$0xff]   ;;  %v14765_v17 = vld [vmem:[%s20616_s6 + $0x9a4] ss:$24 sps:$4 sm:$0xff]  }
 0x423   :  { %5820 = vmatpush1.bf16.msra.mxu1 %v14691_v19  ;;  %v14768_v19 = vld [vmem:[%s20618_s8 + $0xb2c] ss:$28 sps:$4 sm:$0xff]  }
 0x424   :  { %8485 = vmatpush1.bf16.msra.mxu0 %v14694_v20  ;;  %5821 = vmatprep.subr.bf16.mxu1 %v14699_v21  ;;  %v14763_v20 = vld [vmem:[%s20616_s6 + $0x9a0] ss:$24 sps:$4 sm:$0xff]   ;;  %v14766_v21 = vld [vmem:[%s20618_s8 + $0xb28] ss:$28 sps:$4 sm:$0xff]  }
 0x425   :  { %8486 = vmatprep.subr.bf16.mxu0 %v14702_v23  ;;  %v14771_v23 = vld [vmem:[%s20616_s6 + $0x9d4] ss:$24 sps:$4 sm:$0xff]  }
 0x427   :  { %5822 = vmatpush1.bf16.msra.mxu1 %v14697_v59  ;;  %v14774_v59 = vld [vmem:[%s20618_s8 + $0xb64] ss:$28 sps:$4 sm:$0xff]  }
 0x428   :  { %8487 = vmatpush1.bf16.msra.mxu0 %v14700_v25  ;;  %5823 = vmatprep.subr.bf16.mxu1 %v14705_v48  ;;  %v14769_v25 = vld [vmem:[%s20616_s6 + $0x9d0] ss:$24 sps:$4 sm:$0xff]   ;;  %v14772_v48 = vld [vmem:[%s20618_s8 + $0xb60] ss:$28 sps:$4 sm:$0xff]  }
 0x429   :  { %8488 = vmatprep.subr.bf16.mxu0 %v14708_v26  ;;  %v14777_v26 = vld [vmem:[%s20616_s6 + $0xa04] ss:$24 sps:$4 sm:$0xff]  }
 0x42b   :  { %5824 = vmatpush1.bf16.msra.mxu1 %v14703_v27  ;;  %v14780_v27 = vld [vmem:[%s20618_s8 + $0xb9c] ss:$28 sps:$4 sm:$0xff]  }
 0x42c   :  { %8489 = vmatpush1.bf16.msra.mxu0 %v14706_v28  ;;  %5825 = vmatprep.subr.bf16.mxu1 %v14711_v29  ;;  %v14775_v28 = vld [vmem:[%s20616_s6 + $0xa00] ss:$24 sps:$4 sm:$0xff]  }
 0x42d   :  { %8490 = vmatprep.subr.bf16.mxu0 %v14714_v30  ;;  %v14778_v29 = vld [vmem:[%s20618_s8 + $0xb98] ss:$28 sps:$4 sm:$0xff]  }
 0x42e   :  { %v14783_v30 = vld [vmem:[%s20616_s6 + $0xa34] ss:$24 sps:$4 sm:$0xff]  }
 0x42f   :  { %5826 = vmatpush1.bf16.msra.mxu1 %v14709_v49 }
 0x430   :  { %8491 = vmatpush1.bf16.msra.mxu0 %v14712_v32  ;;  %5827 = vmatprep.subr.bf16.mxu1 %v14717_v33  ;;  %v14786_v33 = vld [vmem:[%s20618_s8 + $0xbd4] ss:$28 sps:$4 sm:$0xff]  }
 0x431   :  { %8492 = vmatprep.subr.bf16.mxu0 %v14720_v34 }
 0x433   :  { %5828 = vmatpush1.bf16.msra.mxu1 %v14715_v36 }
 0x434   :  { %8493 = vmatpush1.bf16.msra.mxu0 %v14718_v37  ;;  %5829 = vmatprep.subr.bf16.mxu1 %v14723_v38 }
 0x435   :  { %8494 = vmatprep.subr.bf16.mxu0 %v14726_v42  ;;  %v14781_v42 = vld [vmem:[%s20616_s6 + $0xa30] ss:$24 sps:$4 sm:$0xff]  }
 0x437   :  { %5830 = vmatpush1.bf16.msra.mxu1 %v14721_v39 }
 0x438   :  { %8495 = vmatpush1.bf16.msra.mxu0 %v14724_v24  ;;  %5831 = vmatprep.subr.bf16.mxu1 %v14729_v40  ;;  %v14784_v40 = vld [vmem:[%s20618_s8 + $0xbd0] ss:$28 sps:$4 sm:$0xff]  }
 0x439   :  { %8496 = vmatprep.subr.bf16.mxu0 %v14732_v43  ;;  %v14789_v43 = vld [vmem:[%s20616_s6 + $0xa64] ss:$24 sps:$4 sm:$0xff]  }
 0x43b   :  { %5832 = vmatpush1.bf16.msra.mxu1 %v14727_v31  ;;  %v14792_v31 = vld [vmem:[%s20618_s8 + $0xc0c] ss:$28 sps:$4 sm:$0xff]  }
 0x43c   :  { %8497 = vmatpush1.bf16.msra.mxu0 %v14730_v47  ;;  %5833 = vmatprep.subr.bf16.mxu1 %v14735_v51  ;;  %v14787_v47 = vld [vmem:[%s20616_s6 + $0xa60] ss:$24 sps:$4 sm:$0xff]   ;;  %v14790_v51 = vld [vmem:[%s20618_s8 + $0xc08] ss:$28 sps:$4 sm:$0xff]  }
 0x43d   :  { %8498 = vmatprep.subr.bf16.mxu0 %v14738_v50  ;;  %v14795_v50 = vld [vmem:[%s20618_s8 + $0xc] ss:$28 sps:$4 sm:$0xff]  }
 0x43f   :  { %5834 = vmatpush1.bf16.msra.mxu1 %v14733_v53  ;;  %v14798_v53 = vld [vmem:[%s20618_s8 + $0x14] ss:$28 sps:$4 sm:$0xff]  }
 0x440   :  { %8499 = vmatpush1.bf16.msra.mxu0 %v14736_v54  ;;  %5835 = vmatprep.subr.bf16.mxu1 %v14741_v57  ;;  %v14793_v54 = vld [vmem:[%s20618_s8 + $0x8] ss:$28 sps:$4 sm:$0xff]   ;;  %v14796_v57 = vld [vmem:[%s20618_s8 + $0x10] ss:$28 sps:$4 sm:$0xff]  }
 0x441   :  { %8500 = vmatprep.subr.bf16.mxu0 %v14744_v55  ;;  %v14801_v55 = vld [vmem:[%s20618_s8 + $0x44] ss:$28 sps:$4 sm:$0xff]  }
 0x443   :  { %5836 = vmatpush1.bf16.msra.mxu1 %v14739_v56  ;;  %v14804_v56 = vld [vmem:[%s20618_s8 + $0x4c] ss:$28 sps:$4 sm:$0xff]  }
 0x444   :  { %8501 = vmatpush1.bf16.msra.mxu0 %v14742_v58  ;;  %5846 = vmatprep.subr.bf16.mxu1 %v14747_v60  ;;  %v14799_v58 = vld [vmem:[%s20618_s8 + $0x40] ss:$28 sps:$4 sm:$0xff]   ;;  %v14802_v60 = vld [vmem:[%s20618_s8 + $0x48] ss:$28 sps:$4 sm:$0xff]  }
 0x445   :  { %8511 = vmatprep.subr.bf16.mxu0 %v14750_v61  ;;  %v14810_v61 = vld [vmem:[%s20618_s8 + $0x84] ss:$28 sps:$4 sm:$0xff]  }
 0x446   :  { %5838 = vmatmul.mubr.bf16.vlgmr.msra.gmra.mrb[24].mxu1 %v17771_v52  ;;  %v14762_v52 = vld [vmem:[%s20618_s8 + $0xaf4] ss:$28 sps:$4 sm:$0xff]  }
 0x447   :  { %8503 = vmatmul.mubr.bf16.vlgmr.msra.gmra.mrb[20].mxu0 %v16325_v44  ;;  %5847 = vmatpush1.bf16.msra.mxu1 %v14745_v62  ;;  %v14805_v62 = vld [vmem:[%s20618_s8 + $0x78] ss:$28 sps:$4 sm:$0xff]  }
 0x448   :  { %8512 = vmatpush1.bf16.msra.mxu0 %v14748_v63  ;;  %5848 = vmatprep.subr.bf16.mxu1 %v14753_v1  ;;  %v14808_v63 = vld [vmem:[%s20618_s8 + $0x80] ss:$28 sps:$4 sm:$0xff]   ;;  %v14813_v1 = vld [vmem:[%s20618_s8 + $0xb4] ss:$28 sps:$4 sm:$0xff]  }
 0x449   :  { %8513 = vmatprep.subr.bf16.mxu0 %v14756_v3  ;;  %5878 = vmatprep.mubr.bf16.mxu1 %v15781_v0  ;;  %v14816_v3 = vld [vmem:[%s20618_s8 + $0xbc] ss:$28 sps:$4 sm:$0xff]  }
 0x44a   :  { %8543 = vmatprep.mubr.bf16.mxu0 %v15781_v0 }
 0x44b   :  { %5849 = vmatpush1.bf16.msra.mxu1 %v14751_v4  ;;  %v14811_v4 = vld [vmem:[%s20618_s8 + $0xb0] ss:$28 sps:$4 sm:$0xff]  }
 0x44c   :  { %8514 = vmatpush1.bf16.msra.mxu0 %v14754_v5  ;;  %5850 = vmatprep.subr.bf16.mxu1 %v14759_v6  ;;  %v14814_v5 = vld [vmem:[%s20618_s8 + $0xb8] ss:$28 sps:$4 sm:$0xff]   ;;  %v14819_v6 = vld [vmem:[%s20618_s8 + $0xec] ss:$28 sps:$4 sm:$0xff]  }
 0x44d   :  { %8515 = vmatprep.subr.bf16.mxu0 %v14762_v52  ;;  %v14822_v52 = vld [vmem:[%s20618_s8 + $0xf4] ss:$28 sps:$4 sm:$0xff]  }
 0x44f   :  { %5851 = vmatpush1.bf16.msra.mxu1 %v14757_v15  ;;  %v14817_v15 = vld [vmem:[%s20618_s8 + $0xe8] ss:$28 sps:$4 sm:$0xff]  }
 0x450   :  { %8516 = vmatpush1.bf16.msra.mxu0 %v14760_v35  ;;  %5852 = vmatprep.subr.bf16.mxu1 %v14765_v17  ;;  %v14820_v35 = vld [vmem:[%s20618_s8 + $0xf0] ss:$28 sps:$4 sm:$0xff]   ;;  %v14825_v17 = vld [vmem:[%s20618_s8 + $0x124] ss:$28 sps:$4 sm:$0xff]  }
 0x451   :  { %8517 = vmatprep.subr.bf16.mxu0 %v14768_v19  ;;  %v14828_v19 = vld [vmem:[%s20618_s8 + $0x12c] ss:$28 sps:$4 sm:$0xff]  }
 0x453   :  { %5853 = vmatpush1.bf16.msra.mxu1 %v14763_v20  ;;  %v14823_v20 = vld [vmem:[%s20618_s8 + $0x120] ss:$28 sps:$4 sm:$0xff]  }
 0x454   :  { %8518 = vmatpush1.bf16.msra.mxu0 %v14766_v21  ;;  %5854 = vmatprep.subr.bf16.mxu1 %v14771_v23  ;;  %v14826_v21 = vld [vmem:[%s20618_s8 + $0x128] ss:$28 sps:$4 sm:$0xff]   ;;  %v14831_v23 = vld [vmem:[%s20618_s8 + $0x15c] ss:$28 sps:$4 sm:$0xff]  }
 0x455   :  { %8519 = vmatprep.subr.bf16.mxu0 %v14774_v59  ;;  %v14834_v59 = vld [vmem:[%s20618_s8 + $0x164] ss:$28 sps:$4 sm:$0xff]  }
 0x457   :  { %5855 = vmatpush1.bf16.msra.mxu1 %v14769_v25  ;;  %v14829_v25 = vld [vmem:[%s20618_s8 + $0x158] ss:$28 sps:$4 sm:$0xff]  }
 0x458   :  { %8520 = vmatpush1.bf16.msra.mxu0 %v14772_v48  ;;  %5856 = vmatprep.subr.bf16.mxu1 %v14777_v26  ;;  %v14832_v48 = vld [vmem:[%s20618_s8 + $0x160] ss:$28 sps:$4 sm:$0xff]   ;;  %v14837_v26 = vld [vmem:[%s20618_s8 + $0x194] ss:$28 sps:$4 sm:$0xff]  }
 0x459   :  { %v18534_v49 = vpop.f32.mrb[20].mxu1  ;;  %v18536_v32 = vpop.f32.mrb[16].mxu0  ;;  %8521 = vmatprep.subr.bf16.mxu0 %v14780_v27  ;;  %v14840_v27 = vld [vmem:[%s20618_s8 + $0x19c] ss:$28 sps:$4 sm:$0xff]  }
 0x45a   :  { %v18541_v34 = vpop.f32.mrb[21].mxu1  ;;  %v18543_v36 = vpop.f32.mrb[17].mxu0 }
 0x45b   :  { %v5556_v37 = vpop.f32.mrb[22].mxu1  ;;  %v5720_v38 = vpop.f32.mrb[18].mxu0  ;;  %5857 = vmatpush1.bf16.msra.mxu1 %v14775_v28  ;;  %v14835_v28 = vld [vmem:[%s20618_s8 + $0x190] ss:$28 sps:$4 sm:$0xff]  }
 0x45c   :  { %8522 = vmatpush1.bf16.msra.mxu0 %v14778_v29  ;;  %v5557_v39 = vpop.f32.mrb[23].mxu1  ;;  %v5721_v24 = vpop.f32.mrb[19].mxu0  ;;  %5858 = vmatprep.subr.bf16.mxu1 %v14783_v30  ;;  %v14838_v29 = vld [vmem:[%s20618_s8 + $0x198] ss:$28 sps:$4 sm:$0xff]   ;;  %v14843_v30 = vld [vmem:[%s20618_s8 + $0x1cc] ss:$28 sps:$4 sm:$0xff]  }
 0x45d   :  { %8523 = vmatprep.subr.bf16.mxu0 %v14786_v33  ;;  %v14846_v33 = vld [vmem:[%s20618_s8 + $0x1d4] ss:$28 sps:$4 sm:$0xff]   ;;  %v14841_v37 = vld [vmem:[%s20618_s8 + $0x1c8] ss:$28 sps:$4 sm:$0xff]   ;;  %v14847_v24 = vld [vmem:[%s20618_s8 + $0x200] ss:$28 sps:$4 sm:$0xff]  }
 0x45e   :  { %v14844_v38 = vld [vmem:[%s20618_s8 + $0x1d0] ss:$28 sps:$4 sm:$0xff]  }
 0x45f   :  { %5859 = vmatpush1.bf16.msra.mxu1 %v14781_v42  ;;  %v14849_v42 = vld [vmem:[%s20618_s8 + $0x204] ss:$28 sps:$4 sm:$0xff]   ;;  %v14852_v39 = vld [vmem:[%s20618_s8 + $0x20c] ss:$28 sps:$4 sm:$0xff]  }
 0x460   :  { %8524 = vmatpush1.bf16.msra.mxu0 %v14784_v40  ;;  %5860 = vmatprep.subr.bf16.mxu1 %v14789_v43  ;;  %v14850_v40 = vld [vmem:[%s20618_s8 + $0x208] ss:$28 sps:$4 sm:$0xff]   ;;  %v14855_v43 = vld [vmem:[%s20618_s8 + $0x23c] ss:$28 sps:$4 sm:$0xff]  }
 0x461   :  { %8525 = vmatprep.subr.bf16.mxu0 %v14792_v31  ;;  %v14858_v31 = vld [vmem:[%s20618_s8 + $0x244] ss:$28 sps:$4 sm:$0xff]  }
 0x463   :  { %5861 = vmatpush1.bf16.msra.mxu1 %v14787_v47  ;;  %v14853_v47 = vld [vmem:[%s20618_s8 + $0x238] ss:$28 sps:$4 sm:$0xff]  }
 0x464   :  { %8526 = vmatpush1.bf16.msra.mxu0 %v14790_v51  ;;  %8552 = vmatprep.subr.bf16.mxu1 %v14795_v50  ;;  %v14856_v51 = vld [vmem:[%s20618_s8 + $0x240] ss:$28 sps:$4 sm:$0xff]   ;;  %v14861_v50 = vld [vmem:[%s20618_s8 + $0x274] ss:$28 sps:$4 sm:$0xff]  }
 0x465   :  { %8716 = vmatprep.subr.bf16.mxu0 %v14798_v53  ;;  %v14864_v53 = vld [vmem:[%s20618_s8 + $0x27c] ss:$28 sps:$4 sm:$0xff]  }
 0x466   :  { %5879 = vmatmul.mubr.bf16.vlgmr.msra.gmra.mrb[24].mxu1 %v17883_v46  ;;  %v14807_v46 = vld [vmem:[%s20618_s8 + $0x7c] ss:$28 sps:$4 sm:$0xff]  }
 0x467   :  { %8544 = vmatmul.mubr.bf16.vlgmr.msra.gmra.mrb[20].mxu0 %v16612_v41  ;;  %8553 = vmatpush1.bf16.msra.mxu1 %v14793_v54  ;;  %v14859_v54 = vld [vmem:[%s20618_s8 + $0x270] ss:$28 sps:$4 sm:$0xff]  }
 0x468   :  { %8584 = vmatprep.mubr.bf16.mxu1 %v16105_v11  ;;  %8717 = vmatpush1.bf16.msra.mxu0 %v14796_v57  ;;  %v14862_v57 = vld [vmem:[%s20618_s8 + $0x278] ss:$28 sps:$4 sm:$0xff]  }
 0x469   :  { %8748 = vmatprep.mubr.bf16.mxu0 %v16105_v11  ;;  %8554 = vmatprep.subr.bf16.mxu1 %v14801_v55  ;;  %v14867_v55 = vld [vmem:[%s20618_s8 + $0x2ac] ss:$28 sps:$4 sm:$0xff]  }
 0x46a   :  { %8718 = vmatprep.subr.bf16.mxu0 %v14804_v56  ;;  %v14870_v56 = vld [vmem:[%s20618_s8 + $0x2b4] ss:$28 sps:$4 sm:$0xff]  }
 0x46b   :  { %8555 = vmatpush1.bf16.msra.mxu1 %v14799_v58  ;;  %v14865_v58 = vld [vmem:[%s20618_s8 + $0x2a8] ss:$28 sps:$4 sm:$0xff]  }
 0x46c   :  { %8719 = vmatpush1.bf16.msra.mxu0 %v14802_v60  ;;  %8556 = vmatprep.subr.bf16.mxu1 %v14807_v46  ;;  %v14868_v60 = vld [vmem:[%s20618_s8 + $0x2b0] ss:$28 sps:$4 sm:$0xff]   ;;  %v14873_v46 = vld [vmem:[%s20618_s8 + $0x2e4] ss:$28 sps:$4 sm:$0xff]  }
 0x46d   :  { %8720 = vmatprep.subr.bf16.mxu0 %v14810_v61  ;;  %v14876_v61 = vld [vmem:[%s20618_s8 + $0x2ec] ss:$28 sps:$4 sm:$0xff]  }
 0x46f   :  { %8557 = vmatpush1.bf16.msra.mxu1 %v14805_v62  ;;  %v14871_v62 = vld [vmem:[%s20618_s8 + $0x2e0] ss:$28 sps:$4 sm:$0xff]  }
 0x470   :  { %8721 = vmatpush1.bf16.msra.mxu0 %v14808_v63  ;;  %8558 = vmatprep.subr.bf16.mxu1 %v14813_v1  ;;  %v14874_v63 = vld [vmem:[%s20618_s8 + $0x2e8] ss:$28 sps:$4 sm:$0xff]   ;;  %v14879_v1 = vld [vmem:[%s20618_s8 + $0x31c] ss:$28 sps:$4 sm:$0xff]  }
 0x471   :  { %8722 = vmatprep.subr.bf16.mxu0 %v14816_v3  ;;  %v14882_v3 = vld [vmem:[%s20618_s8 + $0x324] ss:$28 sps:$4 sm:$0xff]  }
 0x473   :  { %8559 = vmatpush1.bf16.msra.mxu1 %v14811_v4  ;;  %v14877_v4 = vld [vmem:[%s20618_s8 + $0x318] ss:$28 sps:$4 sm:$0xff]  }
 0x474   :  { %8723 = vmatpush1.bf16.msra.mxu0 %v14814_v5  ;;  %8560 = vmatprep.subr.bf16.mxu1 %v14819_v6  ;;  %v14880_v5 = vld [vmem:[%s20618_s8 + $0x320] ss:$28 sps:$4 sm:$0xff]   ;;  %v14885_v6 = vld [vmem:[%s20618_s8 + $0x354] ss:$28 sps:$4 sm:$0xff]  }
 0x475   :  { %8724 = vmatprep.subr.bf16.mxu0 %v14822_v52  ;;  %v14888_v52 = vld [vmem:[%s20618_s8 + $0x35c] ss:$28 sps:$4 sm:$0xff]  }
 0x477   :  { %8561 = vmatpush1.bf16.msra.mxu1 %v14817_v15  ;;  %v14883_v15 = vld [vmem:[%s20618_s8 + $0x350] ss:$28 sps:$4 sm:$0xff]  }
 0x478   :  { %8725 = vmatpush1.bf16.msra.mxu0 %v14820_v35  ;;  %8562 = vmatprep.subr.bf16.mxu1 %v14825_v17  ;;  %v14886_v35 = vld [vmem:[%s20618_s8 + $0x358] ss:$28 sps:$4 sm:$0xff]   ;;  %v14891_v17 = vld [vmem:[%s20618_s8 + $0x38c] ss:$28 sps:$4 sm:$0xff]  }
 0x479   :  { %8726 = vmatprep.subr.bf16.mxu0 %v14828_v19  ;;  %v14894_v19 = vld [vmem:[%s20618_s8 + $0x394] ss:$28 sps:$4 sm:$0xff]  }
 0x47b   :  { %8563 = vmatpush1.bf16.msra.mxu1 %v14823_v20  ;;  %v14889_v20 = vld [vmem:[%s20618_s8 + $0x388] ss:$28 sps:$4 sm:$0xff]  }
 0x47c   :  { %8727 = vmatpush1.bf16.msra.mxu0 %v14826_v21  ;;  %8564 = vmatprep.subr.bf16.mxu1 %v14831_v23  ;;  %v14892_v21 = vld [vmem:[%s20618_s8 + $0x390] ss:$28 sps:$4 sm:$0xff]   ;;  %v14897_v23 = vld [vmem:[%s20618_s8 + $0x3c4] ss:$28 sps:$4 sm:$0xff]  }
 0x47d   :  { %8728 = vmatprep.subr.bf16.mxu0 %v14834_v59  ;;  %v14900_v59 = vld [vmem:[%s20618_s8 + $0x3cc] ss:$28 sps:$4 sm:$0xff]  }
 0x47f   :  { %8565 = vmatpush1.bf16.msra.mxu1 %v14829_v25  ;;  %v14895_v25 = vld [vmem:[%s20618_s8 + $0x3c0] ss:$28 sps:$4 sm:$0xff]  }
 0x480   :  { %8729 = vmatpush1.bf16.msra.mxu0 %v14832_v48  ;;  %8566 = vmatprep.subr.bf16.mxu1 %v14837_v26  ;;  %v14898_v48 = vld [vmem:[%s20618_s8 + $0x3c8] ss:$28 sps:$4 sm:$0xff]   ;;  %v14903_v26 = vld [vmem:[%s20618_s8 + $0x3fc] ss:$28 sps:$4 sm:$0xff]  }
 0x481   :  { %8730 = vmatprep.subr.bf16.mxu0 %v14840_v27  ;;  %v14906_v27 = vld [vmem:[%s20618_s8 + $0x404] ss:$28 sps:$4 sm:$0xff]  }
 0x483   :  { %8567 = vmatpush1.bf16.msra.mxu1 %v14835_v28  ;;  %v14901_v28 = vld [vmem:[%s20618_s8 + $0x3f8] ss:$28 sps:$4 sm:$0xff]  }
 0x484   :  { %8731 = vmatpush1.bf16.msra.mxu0 %v14838_v29  ;;  %8568 = vmatprep.subr.bf16.mxu1 %v14843_v30  ;;  %v14904_v29 = vld [vmem:[%s20618_s8 + $0x400] ss:$28 sps:$4 sm:$0xff]   ;;  %v14909_v30 = vld [vmem:[%s20618_s8 + $0x434] ss:$28 sps:$4 sm:$0xff]  }
 0x485   :  { %8732 = vmatprep.subr.bf16.mxu0 %v14846_v33  ;;  %v14912_v33 = vld [vmem:[%s20618_s8 + $0x43c] ss:$28 sps:$4 sm:$0xff]  }
 0x487   :  { %8569 = vmatpush1.bf16.msra.mxu1 %v14841_v37  ;;  %v14907_v37 = vld [vmem:[%s20618_s8 + $0x430] ss:$28 sps:$4 sm:$0xff]  }
 0x488   :  { %8733 = vmatpush1.bf16.msra.mxu0 %v14844_v38  ;;  %8570 = vmatprep.subr.bf16.mxu1 %v14849_v42  ;;  %v14910_v38 = vld [vmem:[%s20618_s8 + $0x438] ss:$28 sps:$4 sm:$0xff]   ;;  %v14915_v42 = vld [vmem:[%s20618_s8 + $0x46c] ss:$28 sps:$4 sm:$0xff]  }
 0x489   :  { %8734 = vmatprep.subr.bf16.mxu0 %v14852_v39  ;;  %v14918_v39 = vld [vmem:[%s20618_s8 + $0x474] ss:$28 sps:$4 sm:$0xff]  }
 0x48b   :  { %8571 = vmatpush1.bf16.msra.mxu1 %v14847_v24  ;;  %v14913_v24 = vld [vmem:[%s20618_s8 + $0x468] ss:$28 sps:$4 sm:$0xff]  }
 0x48c   :  { %8735 = vmatpush1.bf16.msra.mxu0 %v14850_v40  ;;  %8572 = vmatprep.subr.bf16.mxu1 %v14855_v43  ;;  %v14916_v40 = vld [vmem:[%s20618_s8 + $0x470] ss:$28 sps:$4 sm:$0xff]   ;;  %v14921_v43 = vld [vmem:[%s20618_s8 + $0x4a4] ss:$28 sps:$4 sm:$0xff]  }
 0x48d   :  { %8736 = vmatprep.subr.bf16.mxu0 %v14858_v31  ;;  %v14924_v31 = vld [vmem:[%s20618_s8 + $0x4ac] ss:$28 sps:$4 sm:$0xff]  }
 0x48f   :  { %8573 = vmatpush1.bf16.msra.mxu1 %v14853_v47  ;;  %v14919_v47 = vld [vmem:[%s20618_s8 + $0x4a0] ss:$28 sps:$4 sm:$0xff]  }
 0x490   :  { %8737 = vmatpush1.bf16.msra.mxu0 %v14856_v51  ;;  %8574 = vmatprep.subr.bf16.mxu1 %v14861_v50  ;;  %v14922_v51 = vld [vmem:[%s20618_s8 + $0x4a8] ss:$28 sps:$4 sm:$0xff]   ;;  %v14927_v50 = vld [vmem:[%s20618_s8 + $0x4dc] ss:$28 sps:$4 sm:$0xff]  }
 0x491   :  { %8738 = vmatprep.subr.bf16.mxu0 %v14864_v53  ;;  %v14930_v53 = vld [vmem:[%s20618_s8 + $0x4e4] ss:$28 sps:$4 sm:$0xff]  }
 0x493   :  { %8575 = vmatpush1.bf16.msra.mxu1 %v14859_v54  ;;  %v14925_v54 = vld [vmem:[%s20618_s8 + $0x4d8] ss:$28 sps:$4 sm:$0xff]  }
 0x494   :  { %8739 = vmatpush1.bf16.msra.mxu0 %v14862_v57  ;;  %8576 = vmatprep.subr.bf16.mxu1 %v14867_v55  ;;  %v14928_v57 = vld [vmem:[%s20618_s8 + $0x4e0] ss:$28 sps:$4 sm:$0xff]   ;;  %v14933_v55 = vld [vmem:[%s20618_s8 + $0x514] ss:$28 sps:$4 sm:$0xff]  }
 0x495   :  { %8740 = vmatprep.subr.bf16.mxu0 %v14870_v56  ;;  %v14936_v56 = vld [vmem:[%s20618_s8 + $0x51c] ss:$28 sps:$4 sm:$0xff]  }
 0x497   :  { %8577 = vmatpush1.bf16.msra.mxu1 %v14865_v58  ;;  %v14931_v58 = vld [vmem:[%s20618_s8 + $0x510] ss:$28 sps:$4 sm:$0xff]  }
 0x498   :  { %8741 = vmatpush1.bf16.msra.mxu0 %v14868_v60  ;;  %8578 = vmatprep.subr.bf16.mxu1 %v14873_v46  ;;  %v14934_v60 = vld [vmem:[%s20618_s8 + $0x518] ss:$28 sps:$4 sm:$0xff]   ;;  %v14939_v46 = vld [vmem:[%s20618_s8 + $0x54c] ss:$28 sps:$4 sm:$0xff]  }
 0x499   :  { %8742 = vmatprep.subr.bf16.mxu0 %v14876_v61  ;;  %v14942_v61 = vld [vmem:[%s20618_s8 + $0x554] ss:$28 sps:$4 sm:$0xff]  }
 0x49b   :  { %8579 = vmatpush1.bf16.msra.mxu1 %v14871_v62  ;;  %v14937_v62 = vld [vmem:[%s20618_s8 + $0x548] ss:$28 sps:$4 sm:$0xff]  }
 0x49c   :  { %8743 = vmatpush1.bf16.msra.mxu0 %v14874_v63  ;;  %8580 = vmatprep.subr.bf16.mxu1 %v14879_v1  ;;  %v14940_v63 = vld [vmem:[%s20618_s8 + $0x550] ss:$28 sps:$4 sm:$0xff]   ;;  %v14945_v1 = vld [vmem:[%s20618_s8 + $0x584] ss:$28 sps:$4 sm:$0xff]  }
 0x49d   :  { %8744 = vmatprep.subr.bf16.mxu0 %v14882_v3  ;;  %v14948_v3 = vld [vmem:[%s20618_s8 + $0x58c] ss:$28 sps:$4 sm:$0xff]  }
 0x49f   :  { %8581 = vmatpush1.bf16.msra.mxu1 %v14877_v4  ;;  %v14943_v4 = vld [vmem:[%s20618_s8 + $0x580] ss:$28 sps:$4 sm:$0xff]  }
 0x4a0   :  { %8745 = vmatpush1.bf16.msra.mxu0 %v14880_v5  ;;  %8582 = vmatprep.subr.bf16.mxu1 %v14885_v6  ;;  %v14946_v5 = vld [vmem:[%s20618_s8 + $0x588] ss:$28 sps:$4 sm:$0xff]   ;;  %v14951_v6 = vld [vmem:[%s20618_s8 + $0x5bc] ss:$28 sps:$4 sm:$0xff]  }
 0x4a1   :  { %8746 = vmatprep.subr.bf16.mxu0 %v14888_v52  ;;  %v14954_v52 = vld [vmem:[%s20618_s8 + $0x5c4] ss:$28 sps:$4 sm:$0xff]  }
 0x4a3   :  { %8583 = vmatpush1.bf16.msra.mxu1 %v14883_v15  ;;  %v14949_v15 = vld [vmem:[%s20618_s8 + $0x5b8] ss:$28 sps:$4 sm:$0xff]  }
 0x4a4   :  { %8747 = vmatpush1.bf16.msra.mxu0 %v14886_v35  ;;  %8593 = vmatprep.subr.bf16.mxu1 %v14891_v17  ;;  %v14952_v35 = vld [vmem:[%s20618_s8 + $0x5c0] ss:$28 sps:$4 sm:$0xff]   ;;  %v14957_v17 = vld [vmem:[%s20618_s8 + $0x5f4] ss:$28 sps:$4 sm:$0xff]  }
 0x4a5   :  { %8757 = vmatprep.subr.bf16.mxu0 %v14894_v19  ;;  %v14960_v19 = vld [vmem:[%s20618_s8 + $0x5fc] ss:$28 sps:$4 sm:$0xff]  }
 0x4a6   :  { %8585 = vmatmul.mubr.bf16.vlgmr.msra.gmra.mrb[28].mxu1 %v16100_v2 }
 0x4a7   :  { %8749 = vmatmul.mubr.bf16.vlgmr.msra.gmra.mrb[24].mxu0 %v16100_v2  ;;  %8594 = vmatpush1.bf16.msra.mxu1 %v14889_v20  ;;  %v14955_v20 = vld [vmem:[%s20618_s8 + $0x5f0] ss:$28 sps:$4 sm:$0xff]  }
 0x4a8   :  { %8625 = vmatprep.mubr.bf16.mxu1 %v16112_v18  ;;  %8758 = vmatpush1.bf16.msra.mxu0 %v14892_v21  ;;  %v14958_v21 = vld [vmem:[%s20618_s8 + $0x5f8] ss:$28 sps:$4 sm:$0xff]  }
 0x4a9   :  { %8789 = vmatprep.mubr.bf16.mxu0 %v16112_v18  ;;  %8595 = vmatprep.subr.bf16.mxu1 %v14897_v23  ;;  %v14963_v23 = vld [vmem:[%s20618_s8 + $0x62c] ss:$28 sps:$4 sm:$0xff]  }
 0x4aa   :  { %8759 = vmatprep.subr.bf16.mxu0 %v14900_v59  ;;  %v14966_v59 = vld [vmem:[%s20618_s8 + $0x634] ss:$28 sps:$4 sm:$0xff]  }
 0x4ab   :  { %8596 = vmatpush1.bf16.msra.mxu1 %v14895_v25  ;;  %v14961_v25 = vld [vmem:[%s20618_s8 + $0x628] ss:$28 sps:$4 sm:$0xff]  }
 0x4ac   :  { %8760 = vmatpush1.bf16.msra.mxu0 %v14898_v48  ;;  %8597 = vmatprep.subr.bf16.mxu1 %v14903_v26  ;;  %v14964_v48 = vld [vmem:[%s20618_s8 + $0x630] ss:$28 sps:$4 sm:$0xff]   ;;  %v14969_v26 = vld [vmem:[%s20618_s8 + $0x664] ss:$28 sps:$4 sm:$0xff]  }
 0x4ad   :  { %8761 = vmatprep.subr.bf16.mxu0 %v14906_v27  ;;  %v14972_v27 = vld [vmem:[%s20618_s8 + $0x66c] ss:$28 sps:$4 sm:$0xff]  }
 0x4af   :  { %8598 = vmatpush1.bf16.msra.mxu1 %v14901_v28  ;;  %v14967_v28 = vld [vmem:[%s20618_s8 + $0x660] ss:$28 sps:$4 sm:$0xff]  }
 0x4b0   :  { %8762 = vmatpush1.bf16.msra.mxu0 %v14904_v29  ;;  %8599 = vmatprep.subr.bf16.mxu1 %v14909_v30  ;;  %v14970_v29 = vld [vmem:[%s20618_s8 + $0x668] ss:$28 sps:$4 sm:$0xff]   ;;  %v14975_v30 = vld [vmem:[%s20618_s8 + $0x69c] ss:$28 sps:$4 sm:$0xff]  }
 0x4b1   :  { %8763 = vmatprep.subr.bf16.mxu0 %v14912_v33  ;;  %v14978_v33 = vld [vmem:[%s20618_s8 + $0x6a4] ss:$28 sps:$4 sm:$0xff]  }
 0x4b3   :  { %8600 = vmatpush1.bf16.msra.mxu1 %v14907_v37  ;;  %v14973_v37 = vld [vmem:[%s20618_s8 + $0x698] ss:$28 sps:$4 sm:$0xff]  }
 0x4b4   :  { %8764 = vmatpush1.bf16.msra.mxu0 %v14910_v38  ;;  %8601 = vmatprep.subr.bf16.mxu1 %v14915_v42  ;;  %v14976_v38 = vld [vmem:[%s20618_s8 + $0x6a0] ss:$28 sps:$4 sm:$0xff]   ;;  %v14981_v42 = vld [vmem:[%s20618_s8 + $0x6d4] ss:$28 sps:$4 sm:$0xff]  }
 0x4b5   :  { %8765 = vmatprep.subr.bf16.mxu0 %v14918_v39  ;;  %v14984_v39 = vld [vmem:[%s20618_s8 + $0x6dc] ss:$28 sps:$4 sm:$0xff]  }
 0x4b7   :  { %8602 = vmatpush1.bf16.msra.mxu1 %v14913_v24  ;;  %v14979_v24 = vld [vmem:[%s20618_s8 + $0x6d0] ss:$28 sps:$4 sm:$0xff]  }
 0x4b8   :  { %8766 = vmatpush1.bf16.msra.mxu0 %v14916_v40  ;;  %8603 = vmatprep.subr.bf16.mxu1 %v14921_v43  ;;  %v14982_v40 = vld [vmem:[%s20618_s8 + $0x6d8] ss:$28 sps:$4 sm:$0xff]   ;;  %v14987_v43 = vld [vmem:[%s20618_s8 + $0x70c] ss:$28 sps:$4 sm:$0xff]  }
 0x4b9   :  { %8767 = vmatprep.subr.bf16.mxu0 %v14924_v31  ;;  %v14990_v31 = vld [vmem:[%s20618_s8 + $0x714] ss:$28 sps:$4 sm:$0xff]  }
 0x4bb   :  { %8604 = vmatpush1.bf16.msra.mxu1 %v14919_v47  ;;  %v14985_v47 = vld [vmem:[%s20618_s8 + $0x708] ss:$28 sps:$4 sm:$0xff]  }
 0x4bc   :  { %8768 = vmatpush1.bf16.msra.mxu0 %v14922_v51  ;;  %8605 = vmatprep.subr.bf16.mxu1 %v14927_v50  ;;  %v14988_v51 = vld [vmem:[%s20618_s8 + $0x710] ss:$28 sps:$4 sm:$0xff]   ;;  %v14993_v50 = vld [vmem:[%s20618_s8 + $0x744] ss:$28 sps:$4 sm:$0xff]  }
 0x4bd   :  { %8769 = vmatprep.subr.bf16.mxu0 %v14930_v53  ;;  %v14996_v53 = vld [vmem:[%s20618_s8 + $0x74c] ss:$28 sps:$4 sm:$0xff]  }
 0x4bf   :  { %8606 = vmatpush1.bf16.msra.mxu1 %v14925_v54  ;;  %v14991_v54 = vld [vmem:[%s20618_s8 + $0x740] ss:$28 sps:$4 sm:$0xff]  }
 0x4c0   :  { %8770 = vmatpush1.bf16.msra.mxu0 %v14928_v57  ;;  %8607 = vmatprep.subr.bf16.mxu1 %v14933_v55  ;;  %v14994_v57 = vld [vmem:[%s20618_s8 + $0x748] ss:$28 sps:$4 sm:$0xff]   ;;  %v14999_v55 = vld [vmem:[%s20618_s8 + $0x77c] ss:$28 sps:$4 sm:$0xff]  }
 0x4c1   :  { %8771 = vmatprep.subr.bf16.mxu0 %v14936_v56  ;;  %v15002_v56 = vld [vmem:[%s20618_s8 + $0x784] ss:$28 sps:$4 sm:$0xff]  }
 0x4c3   :  { %8608 = vmatpush1.bf16.msra.mxu1 %v14931_v58  ;;  %v14997_v58 = vld [vmem:[%s20618_s8 + $0x778] ss:$28 sps:$4 sm:$0xff]  }
 0x4c4   :  { %8772 = vmatpush1.bf16.msra.mxu0 %v14934_v60  ;;  %8609 = vmatprep.subr.bf16.mxu1 %v14939_v46  ;;  %v15000_v60 = vld [vmem:[%s20618_s8 + $0x780] ss:$28 sps:$4 sm:$0xff]   ;;  %v15005_v46 = vld [vmem:[%s20618_s8 + $0x7b4] ss:$28 sps:$4 sm:$0xff]  }
 0x4c5   :  { %8773 = vmatprep.subr.bf16.mxu0 %v14942_v61  ;;  %v15003_v61 = vld [vmem:[%s20618_s8 + $0x7b0] ss:$28 sps:$4 sm:$0xff]  }
 0x4c7   :  { %8610 = vmatpush1.bf16.msra.mxu1 %v14937_v62  ;;  %v15008_v62 = vld [vmem:[%s20618_s8 + $0x7bc] ss:$28 sps:$4 sm:$0xff]  }
 0x4c8   :  { %8774 = vmatpush1.bf16.msra.mxu0 %v14940_v63  ;;  %8611 = vmatprep.subr.bf16.mxu1 %v14945_v1  ;;  %v15006_v63 = vld [vmem:[%s20618_s8 + $0x7b8] ss:$28 sps:$4 sm:$0xff]   ;;  %v15011_v1 = vld [vmem:[%s20618_s8 + $0x7ec] ss:$28 sps:$4 sm:$0xff]  }
 0x4c9   :  { %8775 = vmatprep.subr.bf16.mxu0 %v14948_v3  ;;  %v15009_v3 = vld [vmem:[%s20618_s8 + $0x7e8] ss:$28 sps:$4 sm:$0xff]  }
 0x4cb   :  { %8612 = vmatpush1.bf16.msra.mxu1 %v14943_v4  ;;  %v15014_v4 = vld [vmem:[%s20618_s8 + $0x7f4] ss:$28 sps:$4 sm:$0xff]  }
 0x4cc   :  { %8776 = vmatpush1.bf16.msra.mxu0 %v14946_v5  ;;  %8613 = vmatprep.subr.bf16.mxu1 %v14951_v6  ;;  %v15012_v5 = vld [vmem:[%s20618_s8 + $0x7f0] ss:$28 sps:$4 sm:$0xff]   ;;  %v15017_v6 = vld [vmem:[%s20618_s8 + $0x824] ss:$28 sps:$4 sm:$0xff]  }
 0x4cd   :  { %8777 = vmatprep.subr.bf16.mxu0 %v14954_v52  ;;  %v15015_v52 = vld [vmem:[%s20618_s8 + $0x820] ss:$28 sps:$4 sm:$0xff]  }
 0x4cf   :  { %8614 = vmatpush1.bf16.msra.mxu1 %v14949_v15  ;;  %v15020_v15 = vld [vmem:[%s20618_s8 + $0x82c] ss:$28 sps:$4 sm:$0xff]  }
 0x4d0   :  { %8778 = vmatpush1.bf16.msra.mxu0 %v14952_v35  ;;  %8615 = vmatprep.subr.bf16.mxu1 %v14957_v17  ;;  %v15018_v35 = vld [vmem:[%s20618_s8 + $0x828] ss:$28 sps:$4 sm:$0xff]   ;;  %v15023_v17 = vld [vmem:[%s20618_s8 + $0x85c] ss:$28 sps:$4 sm:$0xff]  }
 0x4d1   :  { %8779 = vmatprep.subr.bf16.mxu0 %v14960_v19  ;;  %v15021_v19 = vld [vmem:[%s20618_s8 + $0x858] ss:$28 sps:$4 sm:$0xff]  }
 0x4d3   :  { %8616 = vmatpush1.bf16.msra.mxu1 %v14955_v20  ;;  %v15026_v20 = vld [vmem:[%s20618_s8 + $0x864] ss:$28 sps:$4 sm:$0xff]  }
 0x4d4   :  { %8780 = vmatpush1.bf16.msra.mxu0 %v14958_v21  ;;  %8617 = vmatprep.subr.bf16.mxu1 %v14963_v23  ;;  %v15024_v21 = vld [vmem:[%s20618_s8 + $0x860] ss:$28 sps:$4 sm:$0xff]   ;;  %v15029_v23 = vld [vmem:[%s20618_s8 + $0x894] ss:$28 sps:$4 sm:$0xff]  }
 0x4d5   :  { %8781 = vmatprep.subr.bf16.mxu0 %v14966_v59  ;;  %v15027_v59 = vld [vmem:[%s20618_s8 + $0x890] ss:$28 sps:$4 sm:$0xff]  }
 0x4d7   :  { %8618 = vmatpush1.bf16.msra.mxu1 %v14961_v25  ;;  %v15032_v25 = vld [vmem:[%s20618_s8 + $0x89c] ss:$28 sps:$4 sm:$0xff]  }
 0x4d8   :  { %8782 = vmatpush1.bf16.msra.mxu0 %v14964_v48  ;;  %8619 = vmatprep.subr.bf16.mxu1 %v14969_v26  ;;  %v15030_v48 = vld [vmem:[%s20618_s8 + $0x898] ss:$28 sps:$4 sm:$0xff]   ;;  %v15035_v26 = vld [vmem:[%s20618_s8 + $0x8cc] ss:$28 sps:$4 sm:$0xff]  }
 0x4d9   :  { %8783 = vmatprep.subr.bf16.mxu0 %v14972_v27  ;;  %v15033_v27 = vld [vmem:[%s20618_s8 + $0x8c8] ss:$28 sps:$4 sm:$0xff]  }
 0x4db   :  { %8620 = vmatpush1.bf16.msra.mxu1 %v14967_v28  ;;  %v15038_v28 = vld [vmem:[%s20618_s8 + $0x8d4] ss:$28 sps:$4 sm:$0xff]  }
 0x4dc   :  { %8784 = vmatpush1.bf16.msra.mxu0 %v14970_v29  ;;  %8621 = vmatprep.subr.bf16.mxu1 %v14975_v30  ;;  %v15036_v29 = vld [vmem:[%s20618_s8 + $0x8d0] ss:$28 sps:$4 sm:$0xff]   ;;  %v15041_v30 = vld [vmem:[%s20618_s8 + $0x904] ss:$28 sps:$4 sm:$0xff]  }
 0x4dd   :  { %8785 = vmatprep.subr.bf16.mxu0 %v14978_v33  ;;  %v15044_v33 = vld [vmem:[%s20618_s8 + $0x90c] ss:$28 sps:$4 sm:$0xff]  }
 0x4df   :  { %8622 = vmatpush1.bf16.msra.mxu1 %v14973_v37  ;;  %v15039_v37 = vld [vmem:[%s20618_s8 + $0x900] ss:$28 sps:$4 sm:$0xff]  }
 0x4e0   :  { %8786 = vmatpush1.bf16.msra.mxu0 %v14976_v38  ;;  %8623 = vmatprep.subr.bf16.mxu1 %v14981_v42  ;;  %v15042_v38 = vld [vmem:[%s20618_s8 + $0x908] ss:$28 sps:$4 sm:$0xff]   ;;  %v15047_v42 = vld [vmem:[%s20618_s8 + $0x93c] ss:$28 sps:$4 sm:$0xff]  }
 0x4e1   :  { %8787 = vmatprep.subr.bf16.mxu0 %v14984_v39  ;;  %v15045_v39 = vld [vmem:[%s20618_s8 + $0x938] ss:$28 sps:$4 sm:$0xff]  }
 0x4e3   :  { %8624 = vmatpush1.bf16.msra.mxu1 %v14979_v24  ;;  %v15050_v24 = vld [vmem:[%s20618_s8 + $0x944] ss:$28 sps:$4 sm:$0xff]  }
 0x4e4   :  { %8788 = vmatpush1.bf16.msra.mxu0 %v14982_v40  ;;  %8634 = vmatprep.subr.bf16.mxu1 %v14987_v43  ;;  %v15048_v40 = vld [vmem:[%s20618_s8 + $0x940] ss:$28 sps:$4 sm:$0xff]   ;;  %v15053_v43 = vld [vmem:[%s20618_s8 + $0x974] ss:$28 sps:$4 sm:$0xff]  }
 0x4e5   :  { %8798 = vmatprep.subr.bf16.mxu0 %v14990_v31  ;;  %v15051_v31 = vld [vmem:[%s20618_s8 + $0x970] ss:$28 sps:$4 sm:$0xff]  }
 0x4e6   :  { %8626 = vmatmul.mubr.bf16.vlgmr.msra.gmra.mrb[28].mxu1 %v16110_v16 }
 0x4e7   :  { %8790 = vmatmul.mubr.bf16.vlgmr.msra.gmra.mrb[24].mxu0 %v16110_v16  ;;  %8635 = vmatpush1.bf16.msra.mxu1 %v14985_v47  ;;  %v15056_v47 = vld [vmem:[%s20618_s8 + $0x97c] ss:$28 sps:$4 sm:$0xff]  }
 0x4e8   :  { %8666 = vmatprep.mubr.bf16.mxu1 %v16125_v22  ;;  %8799 = vmatpush1.bf16.msra.mxu0 %v14988_v51  ;;  %v15054_v51 = vld [vmem:[%s20618_s8 + $0x978] ss:$28 sps:$4 sm:$0xff]  }
 0x4e9   :  { %8830 = vmatprep.mubr.bf16.mxu0 %v16125_v22  ;;  %8636 = vmatprep.subr.bf16.mxu1 %v14993_v50  ;;  %v15059_v50 = vld [vmem:[%s20618_s8 + $0x9ac] ss:$28 sps:$4 sm:$0xff]  }
 0x4ea   :  { %8800 = vmatprep.subr.bf16.mxu0 %v14996_v53  ;;  %v15057_v53 = vld [vmem:[%s20618_s8 + $0x9a8] ss:$28 sps:$4 sm:$0xff]  }
 0x4eb   :  { %8637 = vmatpush1.bf16.msra.mxu1 %v14991_v54  ;;  %v15062_v54 = vld [vmem:[%s20618_s8 + $0x9b4] ss:$28 sps:$4 sm:$0xff]  }
 0x4ec   :  { %8801 = vmatpush1.bf16.msra.mxu0 %v14994_v57  ;;  %8638 = vmatprep.subr.bf16.mxu1 %v14999_v55  ;;  %v15060_v57 = vld [vmem:[%s20618_s8 + $0x9b0] ss:$28 sps:$4 sm:$0xff]   ;;  %v15065_v55 = vld [vmem:[%s20618_s8 + $0x9e4] ss:$28 sps:$4 sm:$0xff]  }
 0x4ed   :  { %8802 = vmatprep.subr.bf16.mxu0 %v15002_v56  ;;  %v15063_v56 = vld [vmem:[%s20618_s8 + $0x9e0] ss:$28 sps:$4 sm:$0xff]  }
 0x4ef   :  { %8639 = vmatpush1.bf16.msra.mxu1 %v14997_v58  ;;  %v15068_v58 = vld [vmem:[%s20618_s8 + $0x9ec] ss:$28 sps:$4 sm:$0xff]  }
 0x4f0   :  { %8803 = vmatpush1.bf16.msra.mxu0 %v15000_v60  ;;  %8640 = vmatprep.subr.bf16.mxu1 %v15005_v46  ;;  %v15066_v60 = vld [vmem:[%s20618_s8 + $0x9e8] ss:$28 sps:$4 sm:$0xff]   ;;  %v15071_v46 = vld [vmem:[%s20618_s8 + $0xa1c] ss:$28 sps:$4 sm:$0xff]  }
 0x4f1   :  { %8804 = vmatprep.subr.bf16.mxu0 %v15008_v62  ;;  %v15074_v62 = vld [vmem:[%s20618_s8 + $0xa24] ss:$28 sps:$4 sm:$0xff]  }
 0x4f3   :  { %8641 = vmatpush1.bf16.msra.mxu1 %v15003_v61  ;;  %v15069_v61 = vld [vmem:[%s20618_s8 + $0xa18] ss:$28 sps:$4 sm:$0xff]  }
 0x4f4   :  { %8805 = vmatpush1.bf16.msra.mxu0 %v15006_v63  ;;  %8642 = vmatprep.subr.bf16.mxu1 %v15011_v1  ;;  %v15072_v63 = vld [vmem:[%s20618_s8 + $0xa20] ss:$28 sps:$4 sm:$0xff]   ;;  %v15077_v1 = vld [vmem:[%s20618_s8 + $0xa54] ss:$28 sps:$4 sm:$0xff]  }
 0x4f5   :  { %8806 = vmatprep.subr.bf16.mxu0 %v15014_v4  ;;  %v15080_v4 = vld [vmem:[%s20618_s8 + $0xa5c] ss:$28 sps:$4 sm:$0xff]  }
 0x4f7   :  { %8643 = vmatpush1.bf16.msra.mxu1 %v15009_v3  ;;  %v15075_v3 = vld [vmem:[%s20618_s8 + $0xa50] ss:$28 sps:$4 sm:$0xff]  }
 0x4f8   :  { %8807 = vmatpush1.bf16.msra.mxu0 %v15012_v5  ;;  %8644 = vmatprep.subr.bf16.mxu1 %v15017_v6  ;;  %v15078_v5 = vld [vmem:[%s20618_s8 + $0xa58] ss:$28 sps:$4 sm:$0xff]   ;;  %v15083_v6 = vld [vmem:[%s20618_s8 + $0xa8c] ss:$28 sps:$4 sm:$0xff]  }
 0x4f9   :  { %8808 = vmatprep.subr.bf16.mxu0 %v15020_v15  ;;  %v15086_v15 = vld [vmem:[%s20618_s8 + $0xa94] ss:$28 sps:$4 sm:$0xff]  }
 0x4fb   :  { %8645 = vmatpush1.bf16.msra.mxu1 %v15015_v52  ;;  %v15081_v52 = vld [vmem:[%s20618_s8 + $0xa88] ss:$28 sps:$4 sm:$0xff]  }
 0x4fc   :  { %8809 = vmatpush1.bf16.msra.mxu0 %v15018_v35  ;;  %8646 = vmatprep.subr.bf16.mxu1 %v15023_v17  ;;  %v15084_v35 = vld [vmem:[%s20618_s8 + $0xa90] ss:$28 sps:$4 sm:$0xff]   ;;  %v15089_v17 = vld [vmem:[%s20618_s8 + $0xac4] ss:$28 sps:$4 sm:$0xff]  }
 0x4fd   :  { %8810 = vmatprep.subr.bf16.mxu0 %v15026_v20  ;;  %v15087_v20 = vld [vmem:[%s20618_s8 + $0xac0] ss:$28 sps:$4 sm:$0xff]  }
 0x4ff   :  { %8647 = vmatpush1.bf16.msra.mxu1 %v15021_v19  ;;  %v15092_v19 = vld [vmem:[%s20618_s8 + $0xacc] ss:$28 sps:$4 sm:$0xff]  }
 0x500   :  { %8811 = vmatpush1.bf16.msra.mxu0 %v15024_v21  ;;  %8648 = vmatprep.subr.bf16.mxu1 %v15029_v23  ;;  %v15090_v21 = vld [vmem:[%s20618_s8 + $0xac8] ss:$28 sps:$4 sm:$0xff]   ;;  %v15095_v23 = vld [vmem:[%s20618_s8 + $0xafc] ss:$28 sps:$4 sm:$0xff]  }
 0x501   :  { %8812 = vmatprep.subr.bf16.mxu0 %v15032_v25  ;;  %v15093_v25 = vld [vmem:[%s20618_s8 + $0xaf8] ss:$28 sps:$4 sm:$0xff]  }
 0x503   :  { %8649 = vmatpush1.bf16.msra.mxu1 %v15027_v59  ;;  %v15098_v59 = vld [vmem:[%s20618_s8 + $0xb04] ss:$28 sps:$4 sm:$0xff]  }
 0x504   :  { %8813 = vmatpush1.bf16.msra.mxu0 %v15030_v48  ;;  %8650 = vmatprep.subr.bf16.mxu1 %v15035_v26  ;;  %v15096_v48 = vld [vmem:[%s20618_s8 + $0xb00] ss:$28 sps:$4 sm:$0xff]   ;;  %v15101_v26 = vld [vmem:[%s20618_s8 + $0xb34] ss:$28 sps:$4 sm:$0xff]  }
 0x505   :  { %8814 = vmatprep.subr.bf16.mxu0 %v15038_v28  ;;  %v15099_v28 = vld [vmem:[%s20618_s8 + $0xb30] ss:$28 sps:$4 sm:$0xff]  }
 0x507   :  { %8651 = vmatpush1.bf16.msra.mxu1 %v15033_v27  ;;  %v15104_v27 = vld [vmem:[%s20618_s8 + $0xb3c] ss:$28 sps:$4 sm:$0xff]  }
 0x508   :  { %8815 = vmatpush1.bf16.msra.mxu0 %v15036_v29  ;;  %8652 = vmatprep.subr.bf16.mxu1 %v15041_v30  ;;  %v15102_v29 = vld [vmem:[%s20618_s8 + $0xb38] ss:$28 sps:$4 sm:$0xff]   ;;  %v15107_v30 = vld [vmem:[%s20618_s8 + $0xb6c] ss:$28 sps:$4 sm:$0xff]  }
 0x509   :  { %8816 = vmatprep.subr.bf16.mxu0 %v15044_v33  ;;  %v15110_v33 = vld [vmem:[%s20618_s8 + $0xb74] ss:$28 sps:$4 sm:$0xff]  }
 0x50b   :  { %8653 = vmatpush1.bf16.msra.mxu1 %v15039_v37  ;;  %v15105_v37 = vld [vmem:[%s20618_s8 + $0xb68] ss:$28 sps:$4 sm:$0xff]  }
 0x50c   :  { %8817 = vmatpush1.bf16.msra.mxu0 %v15042_v38  ;;  %8654 = vmatprep.subr.bf16.mxu1 %v15047_v42  ;;  %v15108_v38 = vld [vmem:[%s20618_s8 + $0xb70] ss:$28 sps:$4 sm:$0xff]   ;;  %v15113_v42 = vld [vmem:[%s20618_s8 + $0xba4] ss:$28 sps:$4 sm:$0xff]  }
 0x50d   :  { %8818 = vmatprep.subr.bf16.mxu0 %v15050_v24  ;;  %v15111_v24 = vld [vmem:[%s20618_s8 + $0xba0] ss:$28 sps:$4 sm:$0xff]  }
 0x50f   :  { %8655 = vmatpush1.bf16.msra.mxu1 %v15045_v39  ;;  %v15116_v39 = vld [vmem:[%s20618_s8 + $0xbac] ss:$28 sps:$4 sm:$0xff]  }
 0x510   :  { %8819 = vmatpush1.bf16.msra.mxu0 %v15048_v40  ;;  %8656 = vmatprep.subr.bf16.mxu1 %v15053_v43  ;;  %v15114_v40 = vld [vmem:[%s20618_s8 + $0xba8] ss:$28 sps:$4 sm:$0xff]   ;;  %v15119_v43 = vld [vmem:[%s20618_s8 + $0xbdc] ss:$28 sps:$4 sm:$0xff]  }
 0x511   :  { %8820 = vmatprep.subr.bf16.mxu0 %v15056_v47 }
 0x513   :  { %8657 = vmatpush1.bf16.msra.mxu1 %v15051_v31  ;;  %v15122_v31 = vld [vmem:[%s20618_s8 + $0xbe4] ss:$28 sps:$4 sm:$0xff]  }
 0x514   :  { %8821 = vmatpush1.bf16.msra.mxu0 %v15054_v51  ;;  %8658 = vmatprep.subr.bf16.mxu1 %v15059_v50  ;;  %v15117_v51 = vld [vmem:[%s20618_s8 + $0xbd8] ss:$28 sps:$4 sm:$0xff]  }
 0x515   :  { %8822 = vmatprep.subr.bf16.mxu0 %v15062_v54  ;;  %v15120_v54 = vld [vmem:[%s20618_s8 + $0xbe0] ss:$28 sps:$4 sm:$0xff]  }
 0x517   :  { %8659 = vmatpush1.bf16.msra.mxu1 %v15057_v53 }
 0x518   :  { %8823 = vmatpush1.bf16.msra.mxu0 %v15060_v57  ;;  %8660 = vmatprep.subr.bf16.mxu1 %v15065_v55 }
 0x519   :  { %8824 = vmatprep.subr.bf16.mxu0 %v15068_v58  ;;  %v15128_v58 = vld [vmem:[%s20618_s8 + $0xc1c] ss:$28 sps:$4 sm:$0xff]  }
 0x51b   :  { %8661 = vmatpush1.bf16.msra.mxu1 %v15063_v56  ;;  %v15125_v56 = vld [vmem:[%s20618_s8 + $0xc14] ss:$28 sps:$4 sm:$0xff]  }
 0x51c   :  { %8825 = vmatpush1.bf16.msra.mxu0 %v15066_v60  ;;  %8662 = vmatprep.subr.bf16.mxu1 %v15071_v46 }
 0x51d   :  { %8826 = vmatprep.subr.bf16.mxu0 %v15074_v62  ;;  %v15123_v62 = vld [vmem:[%s20618_s8 + $0xc10] ss:$28 sps:$4 sm:$0xff]  }
 0x51f   :  { %8663 = vmatpush1.bf16.msra.mxu1 %v15069_v61 }
 0x520   :  { %8827 = vmatpush1.bf16.msra.mxu0 %v15072_v63  ;;  %8664 = vmatprep.subr.bf16.mxu1 %v15077_v1  ;;  %v15126_v63 = vld [vmem:[%s20618_s8 + $0xc18] ss:$28 sps:$4 sm:$0xff]  }
 0x521   :  { %8828 = vmatprep.subr.bf16.mxu0 %v15080_v4  ;;  %v15129_v1 = vld [vmem:[%s20618_s8 + $0x1d8] ss:$28 sps:$4 sm:$0xff]  }
 0x522   :  { %v15130_v4 = vld [vmem:[%s20618_s8 + $0x18] ss:$28 sps:$4 sm:$0xff]  }
 0x523   :  { %8665 = vmatpush1.bf16.msra.mxu1 %v15075_v3  ;;  %v19263_v3 = vld [vmem:[%s20620_s9] sm:$0xff] }
 0x524   :  { %8829 = vmatpush1.bf16.msra.mxu0 %v15078_v5  ;;  %8675 = vmatprep.subr.bf16.mxu1 %v15083_v6  ;;  %v15131_v5 = vld [vmem:[%s20618_s8 + $0xa98] ss:$28 sps:$4 sm:$0xff]   ;;  %v15132_v6 = vld [vmem:[%s20618_s8 + $0x210] ss:$28 sps:$4 sm:$0xff]  }
 0x525   :  { %8839 = vmatprep.subr.bf16.mxu0 %v15086_v15  ;;  %v6344_v15 = vrot.slane %v19263_v3, %v16053_v8 }
 0x526   :  { %8667 = vmatmul.mubr.bf16.vlgmr.msra.gmra.mrb[28].mxu1 %v16325_v44 }
 0x527   :  { %8831 = vmatmul.mubr.bf16.vlgmr.msra.gmra.mrb[24].mxu0 %v16325_v44  ;;  %8676 = vmatpush1.bf16.msra.mxu1 %v15081_v52  ;;  %v15133_v52 = vld [vmem:[%s20618_s8 + $0x50] ss:$28 sps:$4 sm:$0xff]  }
 0x528   :  { %8840 = vmatpush1.bf16.msra.mxu0 %v15084_v35  ;;  %8677 = vmatprep.subr.bf16.mxu1 %v15089_v17  ;;  %v15134_v35 = vld [vmem:[%s20618_s8 + $0xad0] ss:$28 sps:$4 sm:$0xff]   ;;  %v15135_v17 = vld [vmem:[%s20618_s8 + $0x248] ss:$28 sps:$4 sm:$0xff]  }
 0x529   :  { %8841 = vmatprep.subr.bf16.mxu0 %v15092_v19  ;;  %8707 = vmatprep.mubr.bf16.mxu1 %v15781_v0  ;;  %v15136_v19 = vld [vmem:[%s20618_s8 + $0x88] ss:$28 sps:$4 sm:$0xff]  }
 0x52a   :  { %8871 = vmatprep.mubr.bf16.mxu0 %v15781_v0 }
 0x52b   :  { %8678 = vmatpush1.bf16.msra.mxu1 %v15087_v20 }
 0x52c   :  { %8842 = vmatpush1.bf16.msra.mxu0 %v15090_v21  ;;  %8679 = vmatprep.subr.bf16.mxu1 %v15095_v23  ;;  %v15137_v21 = vld [vmem:[%s20618_s8 + $0xb08] ss:$28 sps:$4 sm:$0xff]   ;;  %v15139_v23 = vld [vmem:[%s20618_s8 + $0xc0] ss:$28 sps:$4 sm:$0xff]  }
 0x52d   :  { %8843 = vmatprep.subr.bf16.mxu0 %v15098_v59 }
 0x52f   :  { %8680 = vmatpush1.bf16.msra.mxu1 %v15093_v25  ;;  %v15140_v25 = vld [vmem:[%s20618_s8 + $0xb40] ss:$28 sps:$4 sm:$0xff]  }
 0x530   :  { %8844 = vmatpush1.bf16.msra.mxu0 %v15096_v48  ;;  %8681 = vmatprep.subr.bf16.mxu1 %v15101_v26  ;;  %v15141_v48 = vld [vmem:[%s20618_s8 + $0x2b8] ss:$28 sps:$4 sm:$0xff]  }
 0x531   :  { %8845 = vmatprep.subr.bf16.mxu0 %v15104_v27  ;;  %v15142_v26 = vld [vmem:[%s20618_s8 + $0xf8] ss:$28 sps:$4 sm:$0xff]  }
 0x532   :  { %v15143_v27 = vld [vmem:[%s20618_s8 + $0xb78] ss:$28 sps:$4 sm:$0xff]  }
 0x533   :  { %8682 = vmatpush1.bf16.msra.mxu1 %v15099_v28  ;;  %v15144_v28 = vld [vmem:[%s20618_s8 + $0x2f0] ss:$28 sps:$4 sm:$0xff]  }
 0x534   :  { %8846 = vmatpush1.bf16.msra.mxu0 %v15102_v29  ;;  %8683 = vmatprep.subr.bf16.mxu1 %v15107_v30  ;;  %v15145_v29 = vld [vmem:[%s20618_s8 + $0x130] ss:$28 sps:$4 sm:$0xff]  }
 0x535   :  { %8847 = vmatprep.subr.bf16.mxu0 %v15110_v33  ;;  %v15146_v30 = vld [vmem:[%s20618_s8 + $0xbb0] ss:$28 sps:$4 sm:$0xff]   ;;  %v15147_v33 = vld [vmem:[%s20618_s8 + $0x328] ss:$28 sps:$4 sm:$0xff]  }
 0x537   :  { %8684 = vmatpush1.bf16.msra.mxu1 %v15105_v37  ;;  %v15148_v37 = vld [vmem:[%s20618_s8 + $0x168] ss:$28 sps:$4 sm:$0xff]  }
 0x538   :  { %8848 = vmatpush1.bf16.msra.mxu0 %v15108_v38  ;;  %8685 = vmatprep.subr.bf16.mxu1 %v15113_v42  ;;  %v15149_v38 = vld [vmem:[%s20618_s8 + $0xbe8] ss:$28 sps:$4 sm:$0xff]   ;;  %v15150_v42 = vld [vmem:[%s20618_s8 + $0x360] ss:$28 sps:$4 sm:$0xff]  }
 0x539   :  { %v19233_v47 = vpop.f32.mrb[24].mxu1  ;;  %8849 = vmatprep.subr.bf16.mxu0 %v15116_v39 }
 0x53a   :  { %v19238_v50 = vpop.f32.mrb[20].mxu0  ;;  %v19240_v53 = vpop.f32.mrb[25].mxu1 }
 0x53b   :  { %v8547_v57 = vpop.f32.mrb[21].mxu0  ;;  %v5884_v55 = vpop.f32.mrb[26].mxu1  ;;  %8686 = vmatpush1.bf16.msra.mxu1 %v15111_v24  ;;  %v15151_v24 = vld [vmem:[%s20618_s8 + $0x1a0] ss:$28 sps:$4 sm:$0xff]  }
 0x53c   :  { %v8549_v60 = vpop.f32.mrb[22].mxu0  ;;  %8850 = vmatpush1.bf16.msra.mxu0 %v15114_v40  ;;  %v5885_v46 = vpop.f32.mrb[27].mxu1  ;;  %8687 = vmatprep.subr.bf16.mxu1 %v15119_v43  ;;  %v13410_v20 = vadd.f32 %v8547_v57, %v6344_v15  ;;  %v15152_v40 = vld [vmem:[%s20618_s8 + $0xc20] ss:$28 sps:$4 sm:$0xff]   ;;  %v15157_v57 = vld [vmem:[%s20618_s8 + $0x398] ss:$28 sps:$4 sm:$0xff]  }
 0x53d   :  { %v8550_v61 = vpop.f32.mrb[23].mxu0  ;;  %8851 = vmatprep.subr.bf16.mxu0 %v15122_v31  ;;  %v15153_v31 = vld [vmem:[%s20618_s8 + $0x558] ss:$28 sps:$4 sm:$0xff]   ;;  %v15154_v55 = vld [vmem:[%s20619_s10 + $0x8] ss:$24 sps:$4 sm:$0xff]  }
 0x53e   :  { %v9048_v59 = vmul.f32 0.70710677, %v13410_v20  ;;  %v15159_v46 = vld [vmem:[%s20619_s10 + $0x38] ss:$24 sps:$4 sm:$0xff]   ;;  %v15174_v15 = vld [vmem:[%s20619_s10 + $0xc8] ss:$24 sps:$4 sm:$0xff]  }
 0x53f   :  { %8688 = vmatpush1.bf16.msra.mxu1 %v15117_v51  ;;  %v15156_v51 = vld [vmem:[%s20619_s10 + $0xc] ss:$24 sps:$4 sm:$0xff]  }
 0x540   :  { %8852 = vmatpush1.bf16.msra.mxu0 %v15120_v54  ;;  %8689 = vmatprep.subr.bf16.mxu1 %v15125_v56  ;;  %15717 = verf.f32 %v9048_v59  ;;  %v9041_v54 = vmul.f32 0.5, %v13410_v20  ;;  %v15162_v61 = vld [vmem:[%s20618_s8 + $0x3d0] ss:$28 sps:$4 sm:$0xff]   ;;  %v15184_v59 = vld [vmem:[%s20619_s10 + $0x128] ss:$24 sps:$4 sm:$0xff]  }
 0x541   :  { %8853 = vmatprep.subr.bf16.mxu0 %v15128_v58  ;;  %v15158_v58 = vld [vmem:[%s20618_s8 + $0x590] ss:$28 sps:$4 sm:$0xff]  }
 0x542   :  { %v15179_v20 = vld [vmem:[%s20619_s10 + $0xf8] ss:$24 sps:$4 sm:$0xff]  }
 0x543   :  { %8690 = vmatpush1.bf16.msra.mxu1 %v15123_v62  ;;  %v15164_v62 = vld [vmem:[%s20619_s10 + $0x68] ss:$24 sps:$4 sm:$0xff]  }
 0x544   :  { %8854 = vmatpush1.bf16.msra.mxu0 %v15126_v63  ;;  %13278 = vmatprep.subr.bf16.mxu1 %v15129_v1  ;;  %v15168_v63 = vld [vmem:[%s20618_s8 + $0x600] ss:$28 sps:$4 sm:$0xff]  }
 0x545   :  { %13373 = vmatprep.subr.bf16.mxu0 %v15782_v45  ;;  %v15171_v1 = vld [vmem:[%s20619_s10 + $0x9c] ss:$24 sps:$4 sm:$0xff]  }
 0x546   :  { %8708 = vmatmul.mubr.bf16.vlgmr.msra.gmra.mrb[28].mxu1 %v16612_v41 }
 0x547   :  { %8872 = vmatmul.mubr.bf16.vlgmr.msra.gmra.mrb[24].mxu0 %v16612_v41  ;;  %13279 = vmatpush3.bf16.msra.mxu1 %v15130_v4  ;;  %v15169_v4 = vld [vmem:[%s20619_s10 + $0x98] ss:$24 sps:$4 sm:$0xff]  }
 0x548   :  { %8912 = vmatprep.mubr.bf16.mxu1 %v16105_v11  ;;  %13374 = vmatpush3.bf16.msra.mxu0 %v15131_v5  ;;  %v15138_v11 = vld [vmem:[%s20618_s8 + $0x280] ss:$28 sps:$4 sm:$0xff]  }
 0x549   :  { %13280 = vmatprep.subr.bf16.mxu1 %v15132_v6  ;;  %13375 = vmatprep.subr.bf16.mxu0 %v15782_v45  ;;  %v15172_v5 = vld [vmem:[%s20618_s8 + $0x440] ss:$28 sps:$4 sm:$0xff]   ;;  %v15173_v6 = vld [vmem:[%s20618_s8 + $0x638] ss:$28 sps:$4 sm:$0xff]  }
 0x54a   :  { %13389 = vmatprep.mubr.msk.bf16.mxu0 %vm15783_vm0, %v15782_v45  ;;  %v15718_v39 = vpop.eup %15717 }
 0x54b   :  { %13281 = vmatpush3.bf16.msra.mxu1 %v15133_v52  ;;  %v9062_v43 = vadd.f32 1.0, %v15718_v39  ;;  %v15176_v52 = vld [vmem:[%s20619_s10 + $0xcc] ss:$24 sps:$4 sm:$0xff]   ;;  %v15201_v39 = vld [vmem:[%s20619_s10 + $0x1bc] ss:$24 sps:$4 sm:$0xff]  }
 0x54c   :  { %13376 = vmatpush3.bf16.msra.mxu0 %v15134_v35  ;;  %13282 = vmatprep.subr.bf16.mxu1 %v15135_v17  ;;  %v15177_v35 = vld [vmem:[%s20618_s8 + $0x478] ss:$28 sps:$4 sm:$0xff]   ;;  %v15178_v17 = vld [vmem:[%s20618_s8 + $0x670] ss:$28 sps:$4 sm:$0xff]  }
 0x54d   :  { %13377 = vmatprep.subr.bf16.mxu0 %v15782_v45  ;;  %v9069_v56 = vmul.f32 %v9062_v43, %v9041_v54  ;;  %v15203_v43 = vld [vmem:[%s20618_s8 + $0x948] ss:$28 sps:$4 sm:$0xff]   ;;  %v15211_v54 = vld [vmem:[%s20619_s10 + $0x21c] ss:$24 sps:$4 sm:$0xff]  }
 0x54f   :  { %13283 = vmatpush3.bf16.msra.mxu1 %v15136_v19  ;;  %v19369_v60 = vpack.c.bf16 %v9069_v56, %v9069_v56  ;;  %v15181_v19 = vld [vmem:[%s20619_s10 + $0xfc] ss:$24 sps:$4 sm:$0xff]  }
 0x550   :  { %13378 = vmatpush3.bf16.msra.mxu0 %v15137_v21  ;;  %13284 = vmatprep.subr.bf16.mxu1 %v15138_v11  ;;  %v15182_v21 = vld [vmem:[%s20618_s8 + $0x4b0] ss:$28 sps:$4 sm:$0xff]   ;;  %v15183_v11 = vld [vmem:[%s20618_s8 + $0x6a8] ss:$28 sps:$4 sm:$0xff]   ;;  %v15213_v56 = vld [vmem:[%s20618_s8 + $0x9b8] ss:$28 sps:$4 sm:$0xff]  }
 0x551   :  { %13379 = vmatprep.subr.bf16.mxu0 %v15782_v45 }
 0x553   :  { %13285 = vmatpush3.bf16.msra.mxu1 %v15139_v23  ;;  %v15186_v23 = vld [vmem:[%s20619_s10 + $0x12c] ss:$24 sps:$4 sm:$0xff]  }
 0x554   :  { %13380 = vmatpush3.bf16.msra.mxu0 %v15140_v25  ;;  %13286 = vmatprep.subr.bf16.mxu1 %v15141_v48  ;;  %v15187_v25 = vld [vmem:[%s20618_s8 + $0x4e8] ss:$28 sps:$4 sm:$0xff]   ;;  %v15188_v48 = vld [vmem:[%s20618_s8 + $0x6e0] ss:$28 sps:$4 sm:$0xff]  }
 0x555   :  { %13381 = vmatprep.subr.bf16.mxu0 %v15782_v45 }
 0x557   :  { %13287 = vmatpush3.bf16.msra.mxu1 %v15142_v26  ;;  %v15191_v26 = vld [vmem:[%s20619_s10 + $0x15c] ss:$24 sps:$4 sm:$0xff]  }
 0x558   :  { %13382 = vmatpush3.bf16.msra.mxu0 %v15143_v27  ;;  %13288 = vmatprep.subr.bf16.mxu1 %v15144_v28  ;;  %v15189_v27 = vld [vmem:[%s20619_s10 + $0x158] ss:$24 sps:$4 sm:$0xff]   ;;  %v15192_v28 = vld [vmem:[%s20618_s8 + $0x520] ss:$28 sps:$4 sm:$0xff]  }
 0x559   :  { %13383 = vmatprep.subr.bf16.mxu0 %v15782_v45 }
 0x55b   :  { %13289 = vmatpush3.bf16.msra.mxu1 %v15145_v29  ;;  %v15193_v29 = vld [vmem:[%s20618_s8 + $0x8d8] ss:$28 sps:$4 sm:$0xff]  }
 0x55c   :  { %13384 = vmatpush3.bf16.msra.mxu0 %v15146_v30  ;;  %13290 = vmatprep.subr.bf16.mxu1 %v15147_v33  ;;  %v15196_v30 = vld [vmem:[%s20619_s10 + $0x18c] ss:$24 sps:$4 sm:$0xff]   ;;  %v15197_v33 = vld [vmem:[%s20618_s8 + $0x718] ss:$28 sps:$4 sm:$0xff]  }
 0x55d   :  { %13385 = vmatprep.subr.bf16.mxu0 %v15782_v45 }
 0x55f   :  { %13291 = vmatpush3.bf16.msra.mxu1 %v15148_v37  ;;  %v6340_v37 = vrot.slane %v19263_v3, %v16051_v7  ;;  %v15202_v3 = vld [vmem:[%s20618_s8 + $0x750] ss:$28 sps:$4 sm:$0xff]  }
 0x560   :  { %13386 = vmatpush3.bf16.msra.mxu0 %v15149_v38  ;;  %13292 = vmatprep.subr.bf16.mxu1 %v15150_v42  ;;  %v15194_v38 = vld [vmem:[%s20619_s10 + $0x188] ss:$24 sps:$4 sm:$0xff]   ;;  %v15198_v42 = vld [vmem:[%s20618_s8 + $0x910] ss:$28 sps:$4 sm:$0xff]  }
 0x561   :  { %13387 = vmatprep.subr.bf16.mxu0 %v15782_v45  ;;  %v15161_v45 = vld [vmem:[%s20619_s10 + $0x3c] ss:$24 sps:$4 sm:$0xff]  }
 0x563   :  { %13293 = vmatpush3.bf16.msra.mxu1 %v15151_v24  ;;  %v13409_v24 = vadd.f32 %v19238_v50, %v6340_v37  ;;  %v15296_v37 = vld [vmem:[%s20619_s10 + $0x368] ss:$24 sps:$4 sm:$0xff]  }
 0x564   :  { %13388 = vmatpush3.bf16.msra.mxu0 %v15152_v40  ;;  %13300 = vmatprep.subr.bf16.mxu1 %v15153_v31  ;;  %v15199_v40 = vld [vmem:[%s20619_s10 + $0x1b8] ss:$24 sps:$4 sm:$0xff]   ;;  %v15204_v31 = vld [vmem:[%s20619_s10 + $0x1e8] ss:$24 sps:$4 sm:$0xff]  }
 0x565   :  { %11294 = vmatprep.subr.bf16.mxu0 %v15156_v51  ;;  %v9047_v50 = vmul.f32 0.70710677, %v13409_v24  ;;  %v15208_v51 = vld [vmem:[%s20618_s8 + $0x980] ss:$28 sps:$4 sm:$0xff]  }
 0x566   :  { %8913 = vmatmul.mubr.bf16.vlgmr.msra.gmra.mrb[32].mxu1 %v16100_v2  ;;  %v15163_v2 = vld [vmem:[%s20618_s8 + $0x5c8] ss:$28 sps:$4 sm:$0xff]  }
 0x567   :  { %13390 = vmatmul.mubr.bf16.vlgmr.msra.gmra.mrb[28].mxu0 %v16612_v41  ;;  %13301 = vmatpush3.bf16.msra.mxu1 %v15157_v57  ;;  %v15166_v41 = vld [vmem:[%s20619_s10 + $0x6c] ss:$24 sps:$4 sm:$0xff]   ;;  %v15212_v57 = vld [vmem:[%s20618_s8 + $0x7c0] ss:$28 sps:$4 sm:$0xff]   ;;  %15719 = verf.f32 %v9047_v50  ;;  %v15248_v50 = vld [vmem:[%s20619_s10 + $0xf0] ss:$24 sps:$4 sm:$0xff]  }
 0x568   :  { %8952 = vmatprep.mubr.bf16.mxu1 %v16112_v18  ;;  %11295 = vmatpush1.bf16.msra.mxu0 %v15154_v55  ;;  %v15167_v18 = vld [vmem:[%s20618_s8 + $0x408] ss:$28 sps:$4 sm:$0xff]   ;;  %v15209_v55 = vld [vmem:[%s20619_s10 + $0x218] ss:$24 sps:$4 sm:$0xff]  }
 0x569   :  { %11326 = vmatprep.mubr.bf16.mxu0 %v19369_v60  ;;  %13302 = vmatprep.subr.bf16.mxu1 %v15158_v58  ;;  %v15216_v58 = vld [vmem:[%s20619_s10 + $0x24c] ss:$24 sps:$4 sm:$0xff]  }
 0x56a   :  { %11296 = vmatprep.subr.bf16.mxu0 %v15161_v45  ;;  %v15217_v45 = vld [vmem:[%s20618_s8 + $0x7f8] ss:$28 sps:$4 sm:$0xff]  }
 0x56b   :  { %13303 = vmatpush3.bf16.msra.mxu1 %v15162_v61  ;;  %v15218_v61 = vld [vmem:[%s20618_s8 + $0x9f0] ss:$28 sps:$4 sm:$0xff]  }
 0x56c   :  { %11297 = vmatpush1.bf16.msra.mxu0 %v15159_v46  ;;  %13304 = vmatprep.subr.bf16.mxu1 %v15163_v2  ;;  %v15214_v46 = vld [vmem:[%s20619_s10 + $0x248] ss:$24 sps:$4 sm:$0xff]   ;;  %v15221_v2 = vld [vmem:[%s20619_s10 + $0x27c] ss:$24 sps:$4 sm:$0xff]  }
 0x56d   :  { %11298 = vmatprep.subr.bf16.mxu0 %v15166_v41  ;;  %v15222_v41 = vld [vmem:[%s20618_s8 + $0x830] ss:$28 sps:$4 sm:$0xff]  }
 0x56f   :  { %13305 = vmatpush3.bf16.msra.mxu1 %v15167_v18  ;;  %v15223_v18 = vld [vmem:[%s20618_s8 + $0xa28] ss:$28 sps:$4 sm:$0xff]  }
 0x570   :  { %11299 = vmatpush1.bf16.msra.mxu0 %v15164_v62  ;;  %13306 = vmatprep.subr.bf16.mxu1 %v15168_v63  ;;  %v15219_v62 = vld [vmem:[%s20619_s10 + $0x278] ss:$24 sps:$4 sm:$0xff]   ;;  %v15226_v63 = vld [vmem:[%s20619_s10 + $0x2ac] ss:$24 sps:$4 sm:$0xff]  }
 0x571   :  { %11300 = vmatprep.subr.bf16.mxu0 %v15171_v1  ;;  %v15720_v1 = vpop.eup %15719 }
 0x573   :  { %13307 = vmatpush3.bf16.msra.mxu1 %v15172_v5  ;;  %v15224_v5 = vld [vmem:[%s20619_s10 + $0x2a8] ss:$24 sps:$4 sm:$0xff]  }
 0x574   :  { %11301 = vmatpush1.bf16.msra.mxu0 %v15169_v4  ;;  %13308 = vmatprep.subr.bf16.mxu1 %v15173_v6  ;;  %v15227_v4 = vld [vmem:[%s20618_s8 + $0x868] ss:$28 sps:$4 sm:$0xff]   ;;  %v15228_v6 = vld [vmem:[%s20618_s8 + $0xa60] ss:$28 sps:$4 sm:$0xff]  }
 0x575   :  { %11302 = vmatprep.subr.bf16.mxu0 %v15176_v52  ;;  %v9061_v52 = vadd.f32 1.0, %v15720_v1  ;;  %v15260_v1 = vld [vmem:[%s20619_s10 + $0x1b0] ss:$24 sps:$4 sm:$0xff]  }
 0x577   :  { %13309 = vmatpush3.bf16.msra.mxu1 %v15177_v35  ;;  %v9040_v35 = vmul.f32 0.5, %v13409_v24  ;;  %v15310_v24 = vld [vmem:[%s20619_s10 + $0x3cc] ss:$24 sps:$4 sm:$0xff]  }
 0x578   :  { %11303 = vmatpush1.bf16.msra.mxu0 %v15174_v15  ;;  %13310 = vmatprep.subr.bf16.mxu1 %v15178_v17  ;;  %v15231_v15 = vld [vmem:[%s20619_s10 + $0x2dc] ss:$24 sps:$4 sm:$0xff]  }
 0x579   :  { %11304 = vmatprep.subr.bf16.mxu0 %v15181_v19  ;;  %v15232_v17 = vld [vmem:[%s20618_s8 + $0x8a0] ss:$28 sps:$4 sm:$0xff]   ;;  %v15229_v19 = vld [vmem:[%s20619_s10 + $0x2d8] ss:$24 sps:$4 sm:$0xff]  }
 0x57b   :  { %13311 = vmatpush3.bf16.msra.mxu1 %v15182_v21  ;;  %v9068_v21 = vmul.f32 %v9061_v52, %v9040_v35  ;;  %v15263_v52 = vld [vmem:[%s20619_s10 + $0x1e0] ss:$24 sps:$4 sm:$0xff]  }
 0x57c   :  { %11305 = vmatpush1.bf16.msra.mxu0 %v15179_v20  ;;  %13312 = vmatprep.subr.bf16.mxu1 %v15183_v11  ;;  %v15235_v20 = vld [vmem:[%s20619_s10 + $0x4] ss:$24 sps:$4 sm:$0xff]   ;;  %v15344_v35 = vld [vmem:[%s20619_s10 + $0x4e8] ss:$24 sps:$4 sm:$0xff]  }
 0x57d   :  { %11306 = vmatprep.subr.bf16.mxu0 %v15186_v23  ;;  %v15286_v11 = vld [vmem:[%s20619_s10 + $0x30c] ss:$24 sps:$4 sm:$0xff]   ;;  %v15233_v23 = vld [vmem:[%s20619_s10] ss:$24 sps:$4 sm:$0xff]  }
 0x57f   :  { %13313 = vmatpush3.bf16.msra.mxu1 %v15187_v25  ;;  %v19564_v25 = vpack.c.bf16 %v9068_v21, %v9068_v21  ;;  %v15350_v21 = vld [vmem:[%s20619_s10 + $0x518] ss:$24 sps:$4 sm:$0xff]  }
 0x580   :  { %11307 = vmatpush1.bf16.msra.mxu0 %v15184_v59  ;;  %13314 = vmatprep.subr.bf16.mxu1 %v15188_v48  ;;  %v15238_v59 = vld [vmem:[%s20619_s10 + $0x34] ss:$24 sps:$4 sm:$0xff]   ;;  %v15284_v48 = vld [vmem:[%s20619_s10 + $0x308] ss:$24 sps:$4 sm:$0xff]  }
 0x581   :  { %11308 = vmatprep.subr.bf16.mxu0 %v15191_v26  ;;  %v15292_v26 = vld [vmem:[%s20619_s10 + $0x33c] ss:$24 sps:$4 sm:$0xff]  }
 0x583   :  { %13315 = vmatpush3.bf16.msra.mxu1 %v15192_v28  ;;  %v15241_v28 = vld [vmem:[%s20619_s10 + $0x64] ss:$24 sps:$4 sm:$0xff]  }
 0x584   :  { %11309 = vmatpush1.bf16.msra.mxu0 %v15189_v27  ;;  %13322 = vmatprep.subr.bf16.mxu1 %v15193_v29  ;;  %v15236_v27 = vld [vmem:[%s20619_s10 + $0x30] ss:$24 sps:$4 sm:$0xff]   ;;  %v15298_v29 = vld [vmem:[%s20619_s10 + $0x36c] ss:$24 sps:$4 sm:$0xff]  }
 0x585   :  { %11310 = vmatprep.subr.bf16.mxu0 %v15196_v30  ;;  %v15239_v30 = vld [vmem:[%s20619_s10 + $0x60] ss:$24 sps:$4 sm:$0xff]  }
 0x586   :  { %8953 = vmatmul.mubr.bf16.vlgmr.msra.gmra.mrb[36].mxu1 %v16110_v16  ;;  %v15206_v16 = vld [vmem:[%s20619_s10 + $0x1ec] ss:$24 sps:$4 sm:$0xff]  }
 0x587   :  { %13323 = vmatpush3.bf16.msra.mxu1 %v15197_v33  ;;  %8992 = vmatprep.mubr.bf16.mxu1 %v16125_v22  ;;  %v15207_v22 = vld [vmem:[%s20618_s8 + $0x788] ss:$28 sps:$4 sm:$0xff]   ;;  %v15244_v33 = vld [vmem:[%s20619_s10 + $0x94] ss:$24 sps:$4 sm:$0xff]  }
 0x588   :  { %11311 = vmatpush1.bf16.msra.mxu0 %v15194_v38  ;;  %13324 = vmatprep.subr.bf16.mxu1 %v15198_v42  ;;  %v15304_v38 = vld [vmem:[%s20619_s10 + $0x39c] ss:$24 sps:$4 sm:$0xff]   ;;  %v15242_v42 = vld [vmem:[%s20619_s10 + $0x90] ss:$24 sps:$4 sm:$0xff]  }
 0x589   :  { %11312 = vmatprep.subr.bf16.mxu0 %v15201_v39  ;;  %v15247_v39 = vld [vmem:[%s20619_s10 + $0xc4] ss:$24 sps:$4 sm:$0xff]  }
 0x58b   :  { %13325 = vmatpush3.bf16.msra.mxu1 %v15202_v3  ;;  %v15302_v3 = vld [vmem:[%s20619_s10 + $0x398] ss:$24 sps:$4 sm:$0xff]  }
 0x58c   :  { %11313 = vmatpush1.bf16.msra.mxu0 %v15199_v40  ;;  %13326 = vmatprep.subr.bf16.mxu1 %v15203_v43  ;;  %v15245_v40 = vld [vmem:[%s20619_s10 + $0xc0] ss:$24 sps:$4 sm:$0xff]   ;;  %v15250_v43 = vld [vmem:[%s20619_s10 + $0xf4] ss:$24 sps:$4 sm:$0xff]  }
 0x58d   :  { %11314 = vmatprep.subr.bf16.mxu0 %v15206_v16  ;;  %v15308_v16 = vld [vmem:[%s20619_s10 + $0x3c8] ss:$24 sps:$4 sm:$0xff]  }
 0x58f   :  { %13327 = vmatpush3.bf16.msra.mxu1 %v15207_v22  ;;  %v15316_v22 = vld [vmem:[%s20619_s10 + $0x3fc] ss:$24 sps:$4 sm:$0xff]  }
 0x590   :  { %11315 = vmatpush1.bf16.msra.mxu0 %v15204_v31  ;;  %13328 = vmatprep.subr.bf16.mxu1 %v15208_v51  ;;  %v15253_v31 = vld [vmem:[%s20619_s10 + $0x124] ss:$24 sps:$4 sm:$0xff]   ;;  %v15314_v51 = vld [vmem:[%s20619_s10 + $0x3f8] ss:$24 sps:$4 sm:$0xff]  }
 0x591   :  { %11316 = vmatprep.subr.bf16.mxu0 %v15211_v54  ;;  %v15322_v54 = vld [vmem:[%s20619_s10 + $0x42c] ss:$24 sps:$4 sm:$0xff]  }
 0x593   :  { %13329 = vmatpush3.bf16.msra.mxu1 %v15212_v57  ;;  %v15251_v57 = vld [vmem:[%s20619_s10 + $0x120] ss:$24 sps:$4 sm:$0xff]  }
 0x594   :  { %11317 = vmatpush1.bf16.msra.mxu0 %v15209_v55  ;;  %13330 = vmatprep.subr.bf16.mxu1 %v15213_v56  ;;  %v15256_v55 = vld [vmem:[%s20619_s10 + $0x154] ss:$24 sps:$4 sm:$0xff]   ;;  %v15320_v56 = vld [vmem:[%s20619_s10 + $0x428] ss:$24 sps:$4 sm:$0xff]  }
 0x595   :  { %11318 = vmatprep.subr.bf16.mxu0 %v15216_v58  ;;  %v15328_v58 = vld [vmem:[%s20619_s10 + $0x45c] ss:$24 sps:$4 sm:$0xff]  }
 0x597   :  { %13331 = vmatpush3.bf16.msra.mxu1 %v15217_v45  ;;  %v15254_v45 = vld [vmem:[%s20619_s10 + $0x150] ss:$24 sps:$4 sm:$0xff]  }
 0x598   :  { %11319 = vmatpush1.bf16.msra.mxu0 %v15214_v46  ;;  %13332 = vmatprep.subr.bf16.mxu1 %v15218_v61  ;;  %v15259_v46 = vld [vmem:[%s20619_s10 + $0x184] ss:$24 sps:$4 sm:$0xff]   ;;  %v15326_v61 = vld [vmem:[%s20619_s10 + $0x458] ss:$24 sps:$4 sm:$0xff]  }
 0x599   :  { %11320 = vmatprep.subr.bf16.mxu0 %v15221_v2  ;;  %v15334_v2 = vld [vmem:[%s20619_s10 + $0x48c] ss:$24 sps:$4 sm:$0xff]  }
 0x59b   :  { %13333 = vmatpush3.bf16.msra.mxu1 %v15222_v41  ;;  %v15257_v41 = vld [vmem:[%s20619_s10 + $0x180] ss:$24 sps:$4 sm:$0xff]  }
 0x59c   :  { %11321 = vmatpush1.bf16.msra.mxu0 %v15219_v62  ;;  %13334 = vmatprep.subr.bf16.mxu1 %v15223_v18  ;;  %v15262_v62 = vld [vmem:[%s20619_s10 + $0x1b4] ss:$24 sps:$4 sm:$0xff]   ;;  %v15332_v18 = vld [vmem:[%s20619_s10 + $0x488] ss:$24 sps:$4 sm:$0xff]  }
 0x59d   :  { %11322 = vmatprep.subr.bf16.mxu0 %v15226_v63  ;;  %v15340_v63 = vld [vmem:[%s20619_s10 + $0x4bc] ss:$24 sps:$4 sm:$0xff]  }
 0x59f   :  { %13335 = vmatpush3.bf16.msra.mxu1 %v15227_v4  ;;  %v15265_v4 = vld [vmem:[%s20619_s10 + $0x1e4] ss:$24 sps:$4 sm:$0xff]  }
 0x5a0   :  { %11323 = vmatpush1.bf16.msra.mxu0 %v15224_v5  ;;  %13336 = vmatprep.subr.bf16.mxu1 %v15228_v6  ;;  %v15338_v5 = vld [vmem:[%s20619_s10 + $0x4b8] ss:$24 sps:$4 sm:$0xff]   ;;  %v15346_v6 = vld [vmem:[%s20619_s10 + $0x4ec] ss:$24 sps:$4 sm:$0xff]  }
 0x5a1   :  { %11324 = vmatprep.subr.bf16.mxu0 %v15231_v15  ;;  %v15268_v15 = vld [vmem:[%s20619_s10 + $0x214] ss:$24 sps:$4 sm:$0xff]  }
 0x5a3   :  { %13337 = vmatpush3.bf16.msra.mxu1 %v15232_v17  ;;  %v15352_v17 = vld [vmem:[%s20619_s10 + $0x51c] ss:$24 sps:$4 sm:$0xff]  }
 0x5a4   :  { %11325 = vmatpush1.bf16.msra.mxu0 %v15229_v19  ;;  %11130 = vmatprep.subr.bf16.mxu1 %v15235_v20  ;;  %v15266_v19 = vld [vmem:[%s20619_s10 + $0x210] ss:$24 sps:$4 sm:$0xff]   ;;  %v15271_v20 = vld [vmem:[%s20619_s10 + $0x244] ss:$24 sps:$4 sm:$0xff]  }
 0x5a5   :  { %11335 = vmatprep.subr.bf16.mxu0 %v15286_v11  ;;  %v15358_v11 = vld [vmem:[%s20619_s10 + $0x54c] ss:$24 sps:$4 sm:$0xff]  }
 0x5a6   :  { %8993 = vmatmul.mubr.bf16.vlgmr.msra.gmra.mrb[40].mxu1 %v16325_v44  ;;  %v15290_v44 = vld [vmem:[%s20619_s10 + $0x338] ss:$24 sps:$4 sm:$0xff]  }
 0x5a7   :  { %11327 = vmatmul.mubr.bf16.vlgmr.msra.gmra.mrb[32].mxu0 %v19564_v25  ;;  %11131 = vmatpush1.bf16.msra.mxu1 %v15233_v23  ;;  %v15269_v23 = vld [vmem:[%s20619_s10 + $0x240] ss:$24 sps:$4 sm:$0xff]  }
 0x5a8   :  { %11162 = vmatprep.mubr.bf16.mxu1 %v19369_v60  ;;  %11132 = vmatprep.subr.bf16.mxu1 %v15238_v59  ;;  %v15274_v59 = vld [vmem:[%s20619_s10 + $0x274] ss:$24 sps:$4 sm:$0xff]  }
 0x5a9   :  { %11336 = vmatpush1.bf16.msra.mxu0 %v15284_v48  ;;  %v15356_v48 = vld [vmem:[%s20619_s10 + $0x548] ss:$24 sps:$4 sm:$0xff]  }
 0x5aa   :  { %11337 = vmatprep.subr.bf16.mxu0 %v15292_v26  ;;  %v15364_v26 = vld [vmem:[%s20619_s10 + $0x57c] ss:$24 sps:$4 sm:$0xff]  }
 0x5ab   :  { %11133 = vmatpush1.bf16.msra.mxu1 %v15236_v27  ;;  %v15272_v27 = vld [vmem:[%s20619_s10 + $0x270] ss:$24 sps:$4 sm:$0xff]  }
 0x5ac   :  { %11134 = vmatprep.subr.bf16.mxu1 %v15241_v28  ;;  %v15277_v28 = vld [vmem:[%s20619_s10 + $0x2a4] ss:$24 sps:$4 sm:$0xff]  }
 0x5ad   :  { %11338 = vmatpush1.bf16.msra.mxu0 %v15290_v44  ;;  %v15362_v44 = vld [vmem:[%s20619_s10 + $0x578] ss:$24 sps:$4 sm:$0xff]  }
 0x5ae   :  { %11339 = vmatprep.subr.bf16.mxu0 %v15298_v29  ;;  %v15370_v29 = vld [vmem:[%s20619_s10 + $0x5ac] ss:$24 sps:$4 sm:$0xff]  }
 0x5af   :  { %11135 = vmatpush1.bf16.msra.mxu1 %v15239_v30  ;;  %v15275_v30 = vld [vmem:[%s20619_s10 + $0x2a0] ss:$24 sps:$4 sm:$0xff]  }
 0x5b0   :  { %11136 = vmatprep.subr.bf16.mxu1 %v15244_v33  ;;  %v15280_v33 = vld [vmem:[%s20619_s10 + $0x2d4] ss:$24 sps:$4 sm:$0xff]  }
 0x5b1   :  { %11340 = vmatpush1.bf16.msra.mxu0 %v15296_v37  ;;  %v15368_v37 = vld [vmem:[%s20619_s10 + $0x5a8] ss:$24 sps:$4 sm:$0xff]  }
 0x5b2   :  { %11341 = vmatprep.subr.bf16.mxu0 %v15304_v38  ;;  %v15376_v38 = vld [vmem:[%s20619_s10 + $0x5dc] ss:$24 sps:$4 sm:$0xff]  }
 0x5b3   :  { %11137 = vmatpush1.bf16.msra.mxu1 %v15242_v42  ;;  %v15278_v42 = vld [vmem:[%s20619_s10 + $0x2d0] ss:$24 sps:$4 sm:$0xff]  }
 0x5b4   :  { %11138 = vmatprep.subr.bf16.mxu1 %v15247_v39  ;;  %v15283_v39 = vld [vmem:[%s20619_s10 + $0x304] ss:$24 sps:$4 sm:$0xff]  }
 0x5b5   :  { %11342 = vmatpush1.bf16.msra.mxu0 %v15302_v3  ;;  %v15374_v3 = vld [vmem:[%s20619_s10 + $0x5d8] ss:$24 sps:$4 sm:$0xff]  }
 0x5b6   :  { %11343 = vmatprep.subr.bf16.mxu0 %v15310_v24  ;;  %v15382_v24 = vld [vmem:[%s20619_s10 + $0x60c] ss:$24 sps:$4 sm:$0xff]  }
 0x5b7   :  { %11139 = vmatpush1.bf16.msra.mxu1 %v15245_v40  ;;  %v15281_v40 = vld [vmem:[%s20619_s10 + $0x300] ss:$24 sps:$4 sm:$0xff]  }
 0x5b8   :  { %11140 = vmatprep.subr.bf16.mxu1 %v15250_v43  ;;  %v15289_v43 = vld [vmem:[%s20619_s10 + $0x334] ss:$24 sps:$4 sm:$0xff]  }
 0x5b9   :  { %11344 = vmatpush1.bf16.msra.mxu0 %v15308_v16  ;;  %v15287_v16 = vld [vmem:[%s20619_s10 + $0x330] ss:$24 sps:$4 sm:$0xff]  }
 0x5ba   :  { %11345 = vmatprep.subr.bf16.mxu0 %v15316_v22  ;;  %v15295_v22 = vld [vmem:[%s20619_s10 + $0x364] ss:$24 sps:$4 sm:$0xff]  }
 0x5bb   :  { %11141 = vmatpush1.bf16.msra.mxu1 %v15248_v50  ;;  %v15293_v50 = vld [vmem:[%s20619_s10 + $0x360] ss:$24 sps:$4 sm:$0xff]  }
 0x5bc   :  { %11142 = vmatprep.subr.bf16.mxu1 %v15253_v31  ;;  %v15301_v31 = vld [vmem:[%s20619_s10 + $0x394] ss:$24 sps:$4 sm:$0xff]  }
 0x5bd   :  { %11346 = vmatpush1.bf16.msra.mxu0 %v15314_v51  ;;  %v15299_v51 = vld [vmem:[%s20619_s10 + $0x390] ss:$24 sps:$4 sm:$0xff]  }
 0x5be   :  { %11347 = vmatprep.subr.bf16.mxu0 %v15322_v54  ;;  %v15307_v54 = vld [vmem:[%s20619_s10 + $0x3c4] ss:$24 sps:$4 sm:$0xff]  }
 0x5bf   :  { %11143 = vmatpush1.bf16.msra.mxu1 %v15251_v57  ;;  %v15305_v57 = vld [vmem:[%s20619_s10 + $0x3c0] ss:$24 sps:$4 sm:$0xff]  }
 0x5c0   :  { %11144 = vmatprep.subr.bf16.mxu1 %v15256_v55  ;;  %v15313_v55 = vld [vmem:[%s20619_s10 + $0x3f4] ss:$24 sps:$4 sm:$0xff]  }
 0x5c1   :  { %11348 = vmatpush1.bf16.msra.mxu0 %v15320_v56  ;;  %v15311_v56 = vld [vmem:[%s20619_s10 + $0x3f0] ss:$24 sps:$4 sm:$0xff]  }
 0x5c2   :  { %11349 = vmatprep.subr.bf16.mxu0 %v15328_v58  ;;  %v15319_v58 = vld [vmem:[%s20619_s10 + $0x424] ss:$24 sps:$4 sm:$0xff]  }
 0x5c3   :  { %11145 = vmatpush1.bf16.msra.mxu1 %v15254_v45  ;;  %v15317_v45 = vld [vmem:[%s20619_s10 + $0x420] ss:$24 sps:$4 sm:$0xff]  }
 0x5c4   :  { %11146 = vmatprep.subr.bf16.mxu1 %v15259_v46  ;;  %v15325_v46 = vld [vmem:[%s20619_s10 + $0x454] ss:$24 sps:$4 sm:$0xff]  }
 0x5c5   :  { %11350 = vmatpush1.bf16.msra.mxu0 %v15326_v61  ;;  %v15323_v61 = vld [vmem:[%s20619_s10 + $0x450] ss:$24 sps:$4 sm:$0xff]  }
 0x5c6   :  { %11351 = vmatprep.subr.bf16.mxu0 %v15334_v2  ;;  %v15331_v2 = vld [vmem:[%s20619_s10 + $0x484] ss:$24 sps:$4 sm:$0xff]  }
 0x5c7   :  { %11147 = vmatpush1.bf16.msra.mxu1 %v15257_v41  ;;  %v15329_v41 = vld [vmem:[%s20619_s10 + $0x480] ss:$24 sps:$4 sm:$0xff]  }
 0x5c8   :  { %11148 = vmatprep.subr.bf16.mxu1 %v15262_v62  ;;  %v15337_v62 = vld [vmem:[%s20619_s10 + $0x4b4] ss:$24 sps:$4 sm:$0xff]  }
 0x5c9   :  { %11352 = vmatpush1.bf16.msra.mxu0 %v15332_v18  ;;  %v15335_v18 = vld [vmem:[%s20619_s10 + $0x4b0] ss:$24 sps:$4 sm:$0xff]  }
 0x5ca   :  { %11353 = vmatprep.subr.bf16.mxu0 %v15340_v63  ;;  %v15343_v63 = vld [vmem:[%s20619_s10 + $0x4e4] ss:$24 sps:$4 sm:$0xff]  }
 0x5cb   :  { %11149 = vmatpush1.bf16.msra.mxu1 %v15260_v1  ;;  %v15341_v1 = vld [vmem:[%s20619_s10 + $0x4e0] ss:$24 sps:$4 sm:$0xff]  }
 0x5cc   :  { %11150 = vmatprep.subr.bf16.mxu1 %v15265_v4  ;;  %v15349_v4 = vld [vmem:[%s20619_s10 + $0x514] ss:$24 sps:$4 sm:$0xff]  }
 0x5cd   :  { %11354 = vmatpush1.bf16.msra.mxu0 %v15338_v5  ;;  %v15347_v5 = vld [vmem:[%s20619_s10 + $0x510] ss:$24 sps:$4 sm:$0xff]  }
 0x5ce   :  { %11355 = vmatprep.subr.bf16.mxu0 %v15346_v6  ;;  %v15355_v6 = vld [vmem:[%s20619_s10 + $0x544] ss:$24 sps:$4 sm:$0xff]  }
 0x5cf   :  { %11151 = vmatpush1.bf16.msra.mxu1 %v15263_v52  ;;  %v15353_v52 = vld [vmem:[%s20619_s10 + $0x540] ss:$24 sps:$4 sm:$0xff]  }
 0x5d0   :  { %11152 = vmatprep.subr.bf16.mxu1 %v15268_v15  ;;  %v15361_v15 = vld [vmem:[%s20619_s10 + $0x574] ss:$24 sps:$4 sm:$0xff]  }
 0x5d1   :  { %11356 = vmatpush1.bf16.msra.mxu0 %v15344_v35  ;;  %v19837_v35 = vld [vmem:[%s20620_s9] sm:$0xff] }
 0x5d2   :  { %11357 = vmatprep.subr.bf16.mxu0 %v15352_v17  ;;  %v6348_v17 = vrot.slane %v19837_v35, %v16055_v9 }
 0x5d3   :  { %11153 = vmatpush1.bf16.msra.mxu1 %v15266_v19  ;;  %v6352_v19 = vrot.slane %v19837_v35, %v16057_v10 }
 0x5d4   :  { %11154 = vmatprep.subr.bf16.mxu1 %v15271_v20  ;;  %v15359_v20 = vld [vmem:[%s20619_s10 + $0x570] ss:$24 sps:$4 sm:$0xff]  }
 0x5d5   :  { %11358 = vmatpush1.bf16.msra.mxu0 %v15350_v21  ;;  %v6360_v21 = vrot.slane %v19837_v35, %v16064_v13 }
 0x5d6   :  { %11359 = vmatprep.subr.bf16.mxu0 %v15358_v11  ;;  %v15367_v11 = vld [vmem:[%s20619_s10 + $0x5a4] ss:$24 sps:$4 sm:$0xff]  }
 0x5d7   :  { %11155 = vmatpush1.bf16.msra.mxu1 %v15269_v23 }
 0x5d8   :  { %11156 = vmatprep.subr.bf16.mxu1 %v15274_v59 }
 0x5d9   :  { %11360 = vmatpush1.bf16.msra.mxu0 %v15356_v48 }
 0x5da   :  { %11361 = vmatprep.subr.bf16.mxu0 %v15364_v26 }
 0x5db   :  { %11157 = vmatpush1.bf16.msra.mxu1 %v15272_v27 }
 0x5dc   :  { %11158 = vmatprep.subr.bf16.mxu1 %v15277_v28 }
 0x5dd   :  { %11362 = vmatpush1.bf16.msra.mxu0 %v15362_v44 }
 0x5de   :  { %11363 = vmatprep.subr.bf16.mxu0 %v15370_v29  ;;  %v15365_v29 = vld [vmem:[%s20619_s10 + $0x5a0] ss:$24 sps:$4 sm:$0xff]  }
 0x5df   :  { %11159 = vmatpush1.bf16.msra.mxu1 %v15275_v30 }
 0x5e0   :  { %11160 = vmatprep.subr.bf16.mxu1 %v15280_v33 }
 0x5e1   :  { %11364 = vmatpush1.bf16.msra.mxu0 %v15368_v37 }
 0x5e2   :  { %11365 = vmatprep.subr.bf16.mxu0 %v15376_v38 }
 0x5e3   :  { %11161 = vmatpush1.bf16.msra.mxu1 %v15278_v42  ;;  %v15373_v42 = vld [vmem:[%s20619_s10 + $0x5d4] ss:$24 sps:$4 sm:$0xff]  }
 0x5e4   :  { %11171 = vmatprep.subr.bf16.mxu1 %v15283_v39 }
 0x5e5   :  { %11366 = vmatpush1.bf16.msra.mxu0 %v15374_v3 }
 0x5e6   :  { %11163 = vmatmul.mubr.bf16.vlgmr.msra.gmra.mrb[44].mxu1 %v19564_v25  ;;  %11376 = vmatprep.subr.bf16.mxu0 %v15382_v24 }
 0x5e7   :  { %11172 = vmatpush1.bf16.msra.mxu1 %v15281_v40  ;;  %v15371_v40 = vld [vmem:[%s20619_s10 + $0x5d0] ss:$24 sps:$4 sm:$0xff]  }
 0x5e8   :  { %11173 = vmatprep.subr.bf16.mxu1 %v15289_v43  ;;  %v15379_v43 = vld [vmem:[%s20619_s10 + $0x604] ss:$24 sps:$4 sm:$0xff]  }
 0x5eb   :  { %11174 = vmatpush1.bf16.msra.mxu1 %v15287_v16 }
 0x5ec   :  { %11175 = vmatprep.subr.bf16.mxu1 %v15295_v22 }
 0x5ef   :  { %11176 = vmatpush1.bf16.msra.mxu1 %v15293_v50 }
 0x5f0   :  { %11177 = vmatprep.subr.bf16.mxu1 %v15301_v31 }
 0x5f3   :  { %11178 = vmatpush1.bf16.msra.mxu1 %v15299_v51 }
 0x5f4   :  { %11179 = vmatprep.subr.bf16.mxu1 %v15307_v54 }
 0x5f7   :  { %11180 = vmatpush1.bf16.msra.mxu1 %v15305_v57 }
 0x5f8   :  { %11181 = vmatprep.subr.bf16.mxu1 %v15313_v55 }
 0x5fb   :  { %11182 = vmatpush1.bf16.msra.mxu1 %v15311_v56 }
 0x5fc   :  { %11183 = vmatprep.subr.bf16.mxu1 %v15319_v58 }
 0x5ff   :  { %11184 = vmatpush1.bf16.msra.mxu1 %v15317_v45 }
 0x600   :  { %11185 = vmatprep.subr.bf16.mxu1 %v15325_v46 }
 0x603   :  { %11186 = vmatpush1.bf16.msra.mxu1 %v15323_v61 }
 0x604   :  { %11187 = vmatprep.subr.bf16.mxu1 %v15331_v2  ;;  %v15377_v2 = vld [vmem:[%s20619_s10 + $0x600] ss:$24 sps:$4 sm:$0xff]  }
 0x607   :  { %11188 = vmatpush1.bf16.msra.mxu1 %v15329_v41  ;;  %v15380_v41 = vld [vmem:[%s20619_s10 + $0x608] ss:$24 sps:$4 sm:$0xff]  }
 0x608   :  { %11189 = vmatprep.subr.bf16.mxu1 %v15337_v62 }
 0x60b   :  { %11190 = vmatpush1.bf16.msra.mxu1 %v15335_v18  ;;  %v15385_v18 = vld [vmem:[%s20619_s10 + $0x634] ss:$24 sps:$4 sm:$0xff]  }
 0x60c   :  { %11191 = vmatprep.subr.bf16.mxu1 %v15343_v63  ;;  %v15388_v63 = vld [vmem:[%s20619_s10 + $0x63c] ss:$24 sps:$4 sm:$0xff]  }
 0x60f   :  { %11192 = vmatpush1.bf16.msra.mxu1 %v15341_v1 }
 0x610   :  { %11193 = vmatprep.subr.bf16.mxu1 %v15349_v4  ;;  %v15383_v4 = vld [vmem:[%s20619_s10 + $0x630] ss:$24 sps:$4 sm:$0xff]  }
 0x613   :  { %11194 = vmatpush1.bf16.msra.mxu1 %v15347_v5  ;;  %v15386_v5 = vld [vmem:[%s20619_s10 + $0x638] ss:$24 sps:$4 sm:$0xff]  }
 0x614   :  { %11195 = vmatprep.subr.bf16.mxu1 %v15355_v6  ;;  %v15391_v6 = vld [vmem:[%s20619_s10 + $0x664] ss:$24 sps:$4 sm:$0xff]  }
 0x617   :  { %11196 = vmatpush1.bf16.msra.mxu1 %v15353_v52  ;;  %v15394_v52 = vld [vmem:[%s20619_s10 + $0x66c] ss:$24 sps:$4 sm:$0xff]  }
 0x618   :  { %11197 = vmatprep.subr.bf16.mxu1 %v15361_v15  ;;  %v15389_v15 = vld [vmem:[%s20619_s10 + $0x660] ss:$24 sps:$4 sm:$0xff]  }
 0x619   :  { %v8709_v23 = vpop.f32.mrb[28].mxu1 }
 0x61a   :  { %v13411_v59 = vadd.f32 %v8709_v23, %v6348_v17  ;;  %v19851_v48 = vpop.f32.mrb[24].mxu0  ;;  %v8711_v26 = vpop.f32.mrb[29].mxu1  ;;  %v15392_v17 = vld [vmem:[%s20619_s10 + $0x668] ss:$24 sps:$4 sm:$0xff]  }
 0x61b   :  { %v13412_v27 = vadd.f32 %v8711_v26, %v6352_v19  ;;  %v8875_v28 = vpop.f32.mrb[25].mxu0  ;;  %v8713_v44 = vpop.f32.mrb[30].mxu1  ;;  %11198 = vmatpush1.bf16.msra.mxu1 %v15359_v20  ;;  %v15397_v19 = vld [vmem:[%s20619_s10 + $0x694] ss:$24 sps:$4 sm:$0xff]  }
 0x61c   :  { %v9049_v30 = vmul.f32 0.70710677, %v13411_v59  ;;  %v13414_v33 = vadd.f32 %v8875_v28, %v6360_v21  ;;  %v8877_v37 = vpop.f32.mrb[26].mxu0  ;;  %v8714_v38 = vpop.f32.mrb[31].mxu1  ;;  %11199 = vmatprep.subr.bf16.mxu1 %v15367_v11  ;;  %v9042_v31 = vmul.f32 0.5, %v13411_v59 }
 0x61d   :  { %v9050_v39 = vmul.f32 0.70710677, %v13412_v27  ;;  %v8878_v24 = vpop.f32.mrb[27].mxu0  ;;  %v9043_v54 = vmul.f32 0.5, %v13412_v27  ;;  %v15400_v20 = vld [vmem:[%s20619_s10 + $0x69c] ss:$24 sps:$4 sm:$0xff]  }
 0x61e   :  { %15721 = verf.f32 %v9049_v30  ;;  %v9052_v3 = vmul.f32 0.70710677, %v13414_v33  ;;  %v9045_v56 = vmul.f32 0.5, %v13414_v33  ;;  %v15395_v28 = vld [vmem:[%s20619_s10 + $0x690] ss:$24 sps:$4 sm:$0xff]  }
 0x61f   :  { %11200 = vmatpush1.bf16.msra.mxu1 %v15365_v29  ;;  %15723 = verf.f32 %v9050_v39  ;;  %v15398_v44 = vld [vmem:[%s20619_s10 + $0x698] ss:$24 sps:$4 sm:$0xff]   ;;  %v15403_v33 = vld [vmem:[%s20619_s10 + $0x6c4] ss:$24 sps:$4 sm:$0xff]   ;;  %v15404_v39 = vld [vmem:[%s20619_s10 + $0x6c8] ss:$24 sps:$4 sm:$0xff]  }
 0x620   :  { %11201 = vmatprep.subr.bf16.mxu1 %v15373_v42  ;;  %15725 = verf.f32 %v9052_v3  ;;  %v15406_v37 = vld [vmem:[%s20619_s10 + $0x6cc] ss:$24 sps:$4 sm:$0xff]   ;;  %v15401_v42 = vld [vmem:[%s20619_s10 + $0x6c0] ss:$24 sps:$4 sm:$0xff]   ;;  %v15412_v24 = vld [vmem:[%s20619_s10 + $0x6fc] ss:$24 sps:$4 sm:$0xff]  }
 0x621   :  { %v15409_v3 = vld [vmem:[%s20619_s10 + $0x6f4] ss:$24 sps:$4 sm:$0xff]  }
 0x623   :  { %11202 = vmatpush1.bf16.msra.mxu1 %v15371_v40  ;;  %v15407_v40 = vld [vmem:[%s20619_s10 + $0x6f0] ss:$24 sps:$4 sm:$0xff]  }
 0x624   :  { %11212 = vmatprep.subr.bf16.mxu1 %v15379_v43  ;;  %v15410_v43 = vld [vmem:[%s20619_s10 + $0x6f8] ss:$24 sps:$4 sm:$0xff]  }
 0x628   :  { %v15722_v16 = vpop.eup %15721 }
 0x629   :  { %v9063_v22 = vadd.f32 1.0, %v15722_v16  ;;  %v15724_v50 = vpop.eup %15723  ;;  %v15415_v16 = vld [vmem:[%s20619_s10 + $0x724] ss:$24 sps:$4 sm:$0xff]  }
 0x62a   :  { %v15726_v51 = vpop.eup %15725  ;;  %v9064_v57 = vadd.f32 1.0, %v15724_v50  ;;  %v15413_v50 = vld [vmem:[%s20619_s10 + $0x720] ss:$24 sps:$4 sm:$0xff]  }
 0x62b   :  { %v9070_v55 = vmul.f32 %v9063_v22, %v9042_v31  ;;  %v9066_v58 = vadd.f32 1.0, %v15726_v51  ;;  %v15418_v22 = vld [vmem:[%s20619_s10 + $0x72c] ss:$24 sps:$4 sm:$0xff]   ;;  %v15416_v31 = vld [vmem:[%s20619_s10 + $0x728] ss:$24 sps:$4 sm:$0xff]  }
 0x62c   :  { %v9071_v45 = vmul.f32 %v9064_v57, %v9043_v54  ;;  %v15421_v51 = vld [vmem:[%s20619_s10 + $0x754] ss:$24 sps:$4 sm:$0xff]   ;;  %v15419_v57 = vld [vmem:[%s20619_s10 + $0x750] ss:$24 sps:$4 sm:$0xff]  }
 0x62d   :  { %v9073_v46 = vmul.f32 %v9066_v58, %v9045_v56  ;;  %v19873_v62 = vpack.c.bf16 %v9070_v55, %v9070_v55  ;;  %v15424_v54 = vld [vmem:[%s20619_s10 + $0x75c] ss:$24 sps:$4 sm:$0xff]   ;;  %v15422_v55 = vld [vmem:[%s20619_s10 + $0x758] ss:$24 sps:$4 sm:$0xff]   ;;  %v15430_v58 = vld [vmem:[%s20619_s10 + $0x78c] ss:$24 sps:$4 sm:$0xff]  }
 0x62e   :  { %v19865_v61 = vpack.c.bf16 %v9071_v45, %v9071_v45  ;;  %v15427_v56 = vld [vmem:[%s20619_s10 + $0x784] ss:$24 sps:$4 sm:$0xff]   ;;  %v6356_v45 = vrot.slane %v19837_v35, %v16062_v12 }
 0x62f   :  { %v19885_v1 = vpack.c.bf16 %v9073_v46, %v9073_v46  ;;  %v15425_v46 = vld [vmem:[%s20619_s10 + $0x780] ss:$24 sps:$4 sm:$0xff]  }
 0x630   :  { %11203 = vmatprep.mubr.bf16.mxu1 %v19865_v61  ;;  %11367 = vmatprep.mubr.bf16.mxu0 %v19865_v61 }
 0x631   :  { %11204 = vmatmul.mubr.bf16.vlgmr.msra.gmra.mrb[44].mxu1 %v19873_v62  ;;  %11368 = vmatmul.mubr.bf16.vlgmr.msra.gmra.mrb[32].mxu0 %v19873_v62 }
 0x632   :  { %11213 = vmatpush1.bf16.msra.mxu1 %v15377_v2  ;;  %11377 = vmatpush1.bf16.msra.mxu0 %v15380_v41  ;;  %v15428_v2 = vld [vmem:[%s20619_s10 + $0x788] ss:$24 sps:$4 sm:$0xff]   ;;  %v15433_v41 = vld [vmem:[%s20619_s10 + $0x7b4] ss:$24 sps:$4 sm:$0xff]  }
 0x633   :  { %11244 = vmatprep.mubr.bf16.mxu1 %v19885_v1  ;;  %11408 = vmatprep.mubr.bf16.mxu0 %v19885_v1 }
 0x634   :  { %11214 = vmatprep.subr.bf16.mxu1 %v15385_v18  ;;  %11378 = vmatprep.subr.bf16.mxu0 %v15388_v63  ;;  %v15436_v18 = vld [vmem:[%s20619_s10 + $0x7bc] ss:$24 sps:$4 sm:$0xff]   ;;  %v13413_v63 = vadd.f32 %v19851_v48, %v6356_v45  ;;  %v15442_v48 = vld [vmem:[%s20619_s10 + $0x7ec] ss:$24 sps:$4 sm:$0xff]  }
 0x635   :  { %v15475_v45 = vld [vmem:[%s20619_s10 + $0x904] ss:$24 sps:$4 sm:$0xff]  }
 0x636   :  { %11215 = vmatpush1.bf16.msra.mxu1 %v15383_v4  ;;  %11379 = vmatpush1.bf16.msra.mxu0 %v15386_v5  ;;  %v15431_v4 = vld [vmem:[%s20619_s10 + $0x7b0] ss:$24 sps:$4 sm:$0xff]  }
 0x637   :  { %11216 = vmatprep.subr.bf16.mxu1 %v15391_v6  ;;  %11380 = vmatprep.subr.bf16.mxu0 %v15394_v52  ;;  %v15434_v5 = vld [vmem:[%s20619_s10 + $0x7b8] ss:$24 sps:$4 sm:$0xff]   ;;  %v15439_v6 = vld [vmem:[%s20619_s10 + $0x7e4] ss:$24 sps:$4 sm:$0xff]   ;;  %v9051_v52 = vmul.f32 0.70710677, %v13413_v63 }
 0x639   :  { %v13294_v21 = vpop.f32.mrb[32].mxu1  ;;  %15727 = verf.f32 %v9051_v52  ;;  %v15490_v52 = vld [vmem:[%s20619_s10 + $0x96c] ss:$24 sps:$4 sm:$0xff]  }
 0x63a   :  { %v19913_v11 = vpop.f32.mrb[28].mxu0  ;;  %v13295_v23 = vpop.f32.mrb[33].mxu1  ;;  %11217 = vmatpush1.bf16.msra.mxu1 %v15389_v15  ;;  %11381 = vmatpush1.bf16.msra.mxu0 %v15392_v17  ;;  %v6364_v15 = vrot.slane %v19837_v35, %v16066_v14  ;;  %v15437_v17 = vld [vmem:[%s20619_s10 + $0x7e0] ss:$24 sps:$4 sm:$0xff]   ;;  %v15448_v14 = vld [vmem:[%s20619_s10 + $0x81c] ss:$24 sps:$4 sm:$0xff]  }
 0x63b   :  { %v19915_v59 = vadd.f32 %v13295_v23, %v13294_v21  ;;  %v13391_v26 = vpop.f32.mrb[29].mxu0  ;;  %v13297_v27 = vpop.f32.mrb[34].mxu1  ;;  %11218 = vmatprep.subr.bf16.mxu1 %v15397_v19  ;;  %11382 = vmatprep.subr.bf16.mxu0 %v15400_v20  ;;  %v15440_v19 = vld [vmem:[%s20619_s10 + $0x7e8] ss:$24 sps:$4 sm:$0xff]   ;;  %v15445_v20 = vld [vmem:[%s20619_s10 + $0x814] ss:$24 sps:$4 sm:$0xff]  }
 0x63c   :  { %v9037_v29 = vpop.f32.mrb[30].mxu0  ;;  %v13298_v30 = vpop.f32.mrb[35].mxu1 }
 0x63d   :  { %v13392_v38 = vpop.f32.mrb[31].mxu0  ;;  %v8915_v23 = vadd.f32 %v19915_v59, %v6364_v15  ;;  %v15451_v30 = vld [vmem:[%s20619_s10 + $0x844] ss:$24 sps:$4 sm:$0xff]   ;;  %v15485_v15 = vld [vmem:[%s20619_s10 + $0x960] ss:$24 sps:$4 sm:$0xff]  }
 0x63e   :  { %11219 = vmatpush1.bf16.msra.mxu1 %v15395_v28  ;;  %11383 = vmatpush1.bf16.msra.mxu0 %v15398_v44  ;;  %v15443_v28 = vld [vmem:[%s20619_s10 + $0x810] ss:$24 sps:$4 sm:$0xff]   ;;  %v15454_v59 = vld [vmem:[%s20619_s10 + $0x84c] ss:$24 sps:$4 sm:$0xff]  }
 0x63f   :  { %11220 = vmatprep.subr.bf16.mxu1 %v15403_v33  ;;  %11384 = vmatprep.subr.bf16.mxu0 %v15406_v37  ;;  %v15446_v44 = vld [vmem:[%s20619_s10 + $0x818] ss:$24 sps:$4 sm:$0xff]   ;;  %v15452_v38 = vld [vmem:[%s20619_s10 + $0x848] ss:$24 sps:$4 sm:$0xff]  }
 0x640   :  { %v15449_v37 = vld [vmem:[%s20619_s10 + $0x840] ss:$24 sps:$4 sm:$0xff]  }
 0x642   :  { %11221 = vmatpush1.bf16.msra.mxu1 %v15401_v42  ;;  %11385 = vmatpush1.bf16.msra.mxu0 %v15404_v39  ;;  %v15457_v42 = vld [vmem:[%s20619_s10 + $0x874] ss:$24 sps:$4 sm:$0xff]  }
 0x643   :  { %11222 = vmatprep.subr.bf16.mxu1 %v15409_v3  ;;  %11386 = vmatprep.subr.bf16.mxu0 %v15412_v24  ;;  %v15460_v39 = vld [vmem:[%s20619_s10 + $0x87c] ss:$24 sps:$4 sm:$0xff]   ;;  %v15455_v3 = vld [vmem:[%s20619_s10 + $0x870] ss:$24 sps:$4 sm:$0xff]  }
 0x644   :  { %v15458_v24 = vld [vmem:[%s20619_s10 + $0x878] ss:$24 sps:$4 sm:$0xff]  }
 0x646   :  { %11223 = vmatpush1.bf16.msra.mxu1 %v15407_v40  ;;  %11387 = vmatpush1.bf16.msra.mxu0 %v15410_v43  ;;  %v15463_v40 = vld [vmem:[%s20619_s10 + $0x8a4] ss:$24 sps:$4 sm:$0xff]  }
 0x647   :  { %11224 = vmatprep.subr.bf16.mxu1 %v15415_v16  ;;  %11388 = vmatprep.subr.bf16.mxu0 %v15418_v22  ;;  %v15466_v43 = vld [vmem:[%s20619_s10 + $0x8ac] ss:$24 sps:$4 sm:$0xff]   ;;  %v15728_v16 = vpop.eup %15727  ;;  %v15461_v22 = vld [vmem:[%s20619_s10 + $0x8a0] ss:$24 sps:$4 sm:$0xff]  }
 0x64a   :  { %11225 = vmatpush1.bf16.msra.mxu1 %v15413_v50  ;;  %11389 = vmatpush1.bf16.msra.mxu0 %v15416_v31  ;;  %v15464_v50 = vld [vmem:[%s20619_s10 + $0x8a8] ss:$24 sps:$4 sm:$0xff]   ;;  %v9065_v31 = vadd.f32 1.0, %v15728_v16 }
 0x64b   :  { %11226 = vmatprep.subr.bf16.mxu1 %v15421_v51  ;;  %11390 = vmatprep.subr.bf16.mxu0 %v15424_v54  ;;  %v15469_v51 = vld [vmem:[%s20619_s10 + $0x8d4] ss:$24 sps:$4 sm:$0xff]   ;;  %v15512_v16 = vld [vmem:[%s20619_s10 + $0xa28] ss:$24 sps:$4 sm:$0xff]  }
 0x64c   :  { %v15472_v54 = vld [vmem:[%s20619_s10 + $0x8dc] ss:$24 sps:$4 sm:$0xff]  }
 0x64e   :  { %11227 = vmatpush1.bf16.msra.mxu1 %v15419_v57  ;;  %11391 = vmatpush1.bf16.msra.mxu0 %v15422_v55  ;;  %v9044_v57 = vmul.f32 0.5, %v13413_v63  ;;  %v15467_v55 = vld [vmem:[%s20619_s10 + $0x8d0] ss:$24 sps:$4 sm:$0xff]   ;;  %v15481_v63 = vld [vmem:[%s20619_s10 + $0x934] ss:$24 sps:$4 sm:$0xff]  }
 0x64f   :  { %11228 = vmatprep.subr.bf16.mxu1 %v15427_v56  ;;  %11392 = vmatprep.subr.bf16.mxu0 %v15430_v58  ;;  %v15470_v56 = vld [vmem:[%s20619_s10 + $0x8d8] ss:$24 sps:$4 sm:$0xff]  }
 0x650   :  { %v9072_v58 = vmul.f32 %v9065_v31, %v9044_v57  ;;  %v15515_v31 = vld [vmem:[%s20619_s10 + $0xa50] ss:$24 sps:$4 sm:$0xff]  }
 0x652   :  { %11229 = vmatpush1.bf16.msra.mxu1 %v15425_v46  ;;  %11393 = vmatpush1.bf16.msra.mxu0 %v15428_v2  ;;  %v15478_v46 = vld [vmem:[%s20619_s10 + $0x90c] ss:$24 sps:$4 sm:$0xff]   ;;  %v15473_v2 = vld [vmem:[%s20619_s10 + $0x900] ss:$24 sps:$4 sm:$0xff]  }
 0x653   :  { %11230 = vmatprep.subr.bf16.mxu1 %v15433_v41  ;;  %11394 = vmatprep.subr.bf16.mxu0 %v15436_v18  ;;  %v15476_v41 = vld [vmem:[%s20619_s10 + $0x908] ss:$24 sps:$4 sm:$0xff]   ;;  %v20087_v18 = vpack.c.bf16 %v9072_v58, %v9072_v58 }
 0x656   :  { %11231 = vmatpush1.bf16.msra.mxu1 %v15431_v4  ;;  %11395 = vmatpush1.bf16.msra.mxu0 %v15434_v5  ;;  %v15484_v4 = vld [vmem:[%s20619_s10 + $0x93c] ss:$24 sps:$4 sm:$0xff]   ;;  %v15479_v5 = vld [vmem:[%s20619_s10 + $0x930] ss:$24 sps:$4 sm:$0xff]  }
 0x657   :  { %11232 = vmatprep.subr.bf16.mxu1 %v15439_v6  ;;  %11396 = vmatprep.subr.bf16.mxu0 %v15442_v48  ;;  %v15482_v6 = vld [vmem:[%s20619_s10 + $0x938] ss:$24 sps:$4 sm:$0xff]   ;;  %v15487_v48 = vld [vmem:[%s20619_s10 + $0x964] ss:$24 sps:$4 sm:$0xff]  }
 0x659   :  { %v13316_v35 = vpop.f32.mrb[36].mxu1 }
 0x65a   :  { %v13317_v21 = vpop.f32.mrb[37].mxu1  ;;  %11233 = vmatpush1.bf16.msra.mxu1 %v15437_v17  ;;  %11397 = vmatpush1.bf16.msra.mxu0 %v15440_v19  ;;  %v15488_v17 = vld [vmem:[%s20619_s10 + $0x968] ss:$24 sps:$4 sm:$0xff]   ;;  %v15493_v19 = vld [vmem:[%s20619_s10 + $0x994] ss:$24 sps:$4 sm:$0xff]  }
 0x65b   :  { %v13318_v26 = vadd.f32 %v13317_v21, %v13316_v35  ;;  %v13319_v27 = vpop.f32.mrb[38].mxu1  ;;  %11234 = vmatprep.subr.bf16.mxu1 %v15445_v20  ;;  %11398 = vmatprep.subr.bf16.mxu0 %v15448_v14  ;;  %v15496_v20 = vld [vmem:[%s20619_s10 + $0x99c] ss:$24 sps:$4 sm:$0xff]  }
 0x65c   :  { %v13320_v29 = vpop.f32.mrb[39].mxu1  ;;  %v15494_v27 = vld [vmem:[%s20619_s10 + $0x998] ss:$24 sps:$4 sm:$0xff]  }
 0x65d   :  { %v20031_v33 = vadd.f32 %v13318_v26, %v8915_v23  ;;  %v15491_v26 = vld [vmem:[%s20619_s10 + $0x990] ss:$24 sps:$4 sm:$0xff]   ;;  %v15502_v29 = vld [vmem:[%s20619_s10 + $0x9cc] ss:$24 sps:$4 sm:$0xff]  }
 0x65e   :  { %11235 = vmatpush1.bf16.msra.mxu1 %v15443_v28  ;;  %11399 = vmatpush1.bf16.msra.mxu0 %v15446_v44  ;;  %v15499_v44 = vld [vmem:[%s20619_s10 + $0x9c4] ss:$24 sps:$4 sm:$0xff]  }
 0x65f   :  { %11236 = vmatprep.subr.bf16.mxu1 %v15451_v30  ;;  %11400 = vmatprep.subr.bf16.mxu0 %v15454_v59 }
 0x662   :  { %11237 = vmatpush1.bf16.msra.mxu1 %v15449_v37  ;;  %11401 = vmatpush1.bf16.msra.mxu0 %v15452_v38  ;;  %v15497_v37 = vld [vmem:[%s20619_s10 + $0x9c0] ss:$24 sps:$4 sm:$0xff]  }
 0x663   :  { %11238 = vmatprep.subr.bf16.mxu1 %v15457_v42  ;;  %11402 = vmatprep.subr.bf16.mxu0 %v15460_v39  ;;  %v15500_v38 = vld [vmem:[%s20619_s10 + $0x9c8] ss:$24 sps:$4 sm:$0xff]   ;;  %v15505_v42 = vld [vmem:[%s20619_s10 + $0x9f4] ss:$24 sps:$4 sm:$0xff]  }
 0x664   :  { %v15503_v39 = vld [vmem:[%s20619_s10 + $0x9f0] ss:$24 sps:$4 sm:$0xff]  }
 0x666   :  { %11239 = vmatpush1.bf16.msra.mxu1 %v15455_v3  ;;  %11403 = vmatpush1.bf16.msra.mxu0 %v15458_v24  ;;  %v15506_v3 = vld [vmem:[%s20619_s10 + $0x9f8] ss:$24 sps:$4 sm:$0xff]   ;;  %v15511_v24 = vld [vmem:[%s20619_s10 + $0xa24] ss:$24 sps:$4 sm:$0xff]  }
 0x667   :  { %11240 = vmatprep.subr.bf16.mxu1 %v15463_v40  ;;  %11404 = vmatprep.subr.bf16.mxu0 %v15466_v43  ;;  %v15514_v40 = vld [vmem:[%s20619_s10 + $0xa2c] ss:$24 sps:$4 sm:$0xff]   ;;  %v15509_v43 = vld [vmem:[%s20619_s10 + $0xa20] ss:$24 sps:$4 sm:$0xff]  }
 0x66a   :  { %11241 = vmatpush1.bf16.msra.mxu1 %v15461_v22  ;;  %11405 = vmatpush1.bf16.msra.mxu0 %v15464_v50  ;;  %v15517_v22 = vld [vmem:[%s20619_s10 + $0xa54] ss:$24 sps:$4 sm:$0xff]  }
 0x66b   :  { %11242 = vmatprep.subr.bf16.mxu1 %v15469_v51  ;;  %11406 = vmatprep.subr.bf16.mxu0 %v15472_v54  ;;  %v15520_v50 = vld [vmem:[%s20619_s10 + $0xa5c] ss:$24 sps:$4 sm:$0xff]   ;;  %v15518_v51 = vld [vmem:[%s20619_s10 + $0xa58] ss:$24 sps:$4 sm:$0xff]  }
 0x66c   :  { %v15523_v54 = vld [vmem:[%s20619_s10 + $0x14] ss:$24 sps:$4 sm:$0xff]  }
 0x66e   :  { %11243 = vmatpush1.bf16.msra.mxu1 %v15467_v55  ;;  %11407 = vmatpush1.bf16.msra.mxu0 %v15470_v56 }
 0x66f   :  { %11253 = vmatprep.subr.bf16.mxu1 %v15475_v45  ;;  %11417 = vmatprep.subr.bf16.mxu0 %v15478_v46  ;;  %v15521_v45 = vld [vmem:[%s20619_s10 + $0x10] ss:$24 sps:$4 sm:$0xff]  }
 0x671   :  { %11245 = vmatmul.mubr.bf16.vlgmr.msra.gmra.mrb[44].mxu1 %v20087_v18  ;;  %11409 = vmatmul.mubr.bf16.vlgmr.msra.gmra.mrb[32].mxu0 %v20087_v18 }
 0x672   :  { %11254 = vmatpush1.bf16.msra.mxu1 %v15473_v2  ;;  %11418 = vmatpush1.bf16.msra.mxu0 %v15476_v41  ;;  %v15526_v2 = vld [vmem:[%s20619_s10 + $0x44] ss:$24 sps:$4 sm:$0xff]   ;;  %v15524_v41 = vld [vmem:[%s20619_s10 + $0x40] ss:$24 sps:$4 sm:$0xff]  }
 0x673   :  { %11255 = vmatprep.subr.bf16.mxu1 %v15481_v63  ;;  %11419 = vmatprep.subr.bf16.mxu0 %v15484_v4  ;;  %v15529_v63 = vld [vmem:[%s20619_s10 + $0x74] ss:$24 sps:$4 sm:$0xff]   ;;  %v15527_v4 = vld [vmem:[%s20619_s10 + $0x70] ss:$24 sps:$4 sm:$0xff]  }
 0x674   :  { %11285 = vmatprep.mubr.bf16.mxu1 %v15781_v0  ;;  %11449 = vmatprep.mubr.bf16.mxu0 %v15781_v0 }
 0x676   :  { %11256 = vmatpush1.bf16.msra.mxu1 %v15479_v5  ;;  %11420 = vmatpush1.bf16.msra.mxu0 %v15482_v6  ;;  %v15532_v5 = vld [vmem:[%s20619_s10 + $0xa4] ss:$24 sps:$4 sm:$0xff]   ;;  %v15535_v6 = vld [vmem:[%s20619_s10 + $0xd4] ss:$24 sps:$4 sm:$0xff]  }
 0x677   :  { %11257 = vmatprep.subr.bf16.mxu1 %v15487_v48  ;;  %11421 = vmatprep.subr.bf16.mxu0 %v15490_v52  ;;  %v15533_v48 = vld [vmem:[%s20619_s10 + $0xd0] ss:$24 sps:$4 sm:$0xff]   ;;  %v15538_v52 = vld [vmem:[%s20619_s10 + $0x104] ss:$24 sps:$4 sm:$0xff]  }
 0x679   :  { %v13338_v14 = vpop.f32.mrb[40].mxu1 }
 0x67a   :  { %v13339_v35 = vpop.f32.mrb[41].mxu1  ;;  %11258 = vmatpush1.bf16.msra.mxu1 %v15485_v15  ;;  %11422 = vmatpush1.bf16.msra.mxu0 %v15488_v17  ;;  %v15536_v15 = vld [vmem:[%s20619_s10 + $0x100] ss:$24 sps:$4 sm:$0xff]   ;;  %v15541_v17 = vld [vmem:[%s20619_s10 + $0x134] ss:$24 sps:$4 sm:$0xff]  }
 0x67b   :  { %v13340_v21 = vadd.f32 %v13339_v35, %v13338_v14  ;;  %v13341_v23 = vpop.f32.mrb[42].mxu1  ;;  %11259 = vmatprep.subr.bf16.mxu1 %v15493_v19  ;;  %11423 = vmatprep.subr.bf16.mxu0 %v15496_v20  ;;  %v15539_v19 = vld [vmem:[%s20619_s10 + $0x130] ss:$24 sps:$4 sm:$0xff]   ;;  %v15544_v20 = vld [vmem:[%s20619_s10 + $0x164] ss:$24 sps:$4 sm:$0xff]  }
 0x67c   :  { %v13342_v28 = vpop.f32.mrb[43].mxu1  ;;  %v15542_v14 = vld [vmem:[%s20619_s10 + $0x160] ss:$24 sps:$4 sm:$0xff]   ;;  %v15547_v35 = vld [vmem:[%s20619_s10 + $0x194] ss:$24 sps:$4 sm:$0xff]  }
 0x67d   :  { %v8995_v30 = vadd.f32 %v13340_v21, %v20031_v33  ;;  %v15545_v21 = vld [vmem:[%s20619_s10 + $0x190] ss:$24 sps:$4 sm:$0xff]   ;;  %v15550_v23 = vld [vmem:[%s20619_s10 + $0x1c4] ss:$24 sps:$4 sm:$0xff]  }
 0x67e   :  { %11260 = vmatpush1.bf16.msra.mxu1 %v15491_v26  ;;  %11424 = vmatpush1.bf16.msra.mxu0 %v15494_v27  ;;  %v15548_v26 = vld [vmem:[%s20619_s10 + $0x1c0] ss:$24 sps:$4 sm:$0xff]   ;;  %v15553_v27 = vld [vmem:[%s20619_s10 + $0x1f4] ss:$24 sps:$4 sm:$0xff]   ;;  %v15551_v28 = vld [vmem:[%s20619_s10 + $0x1f0] ss:$24 sps:$4 sm:$0xff]  }
 0x67f   :  { %v9035_v59 = vadd.f32 %v19913_v11, %v8995_v30  ;;  %11261 = vmatprep.subr.bf16.mxu1 %v15499_v44  ;;  %11425 = vmatprep.subr.bf16.mxu0 %v15502_v29  ;;  %v15508_v11 = vld [vmem:[%s20619_s10 + $0x9fc] ss:$24 sps:$4 sm:$0xff]   ;;  %v15554_v29 = vld [vmem:[%s20619_s10 + $0x220] ss:$24 sps:$4 sm:$0xff]  }
 0x680   :  { %v15556_v44 = vld [vmem:[%s20619_s10 + $0x224] ss:$24 sps:$4 sm:$0xff]   ;;  %v15559_v30 = vld [vmem:[%s20619_s10 + $0x254] ss:$24 sps:$4 sm:$0xff]  }
 0x681   :  { %v9053_v33 = vmul.f32 0.70710677, %v9035_v59  ;;  %v9046_v55 = vmul.f32 0.5, %v9035_v59  ;;  %v15557_v59 = vld [vmem:[%s20619_s10 + $0x250] ss:$24 sps:$4 sm:$0xff]  }
 0x682   :  { %11262 = vmatpush1.bf16.msra.mxu1 %v15497_v37  ;;  %11426 = vmatpush1.bf16.msra.mxu0 %v15500_v38  ;;  %v15562_v37 = vld [vmem:[%s20619_s10 + $0x284] ss:$24 sps:$4 sm:$0xff]   ;;  %v15560_v38 = vld [vmem:[%s20619_s10 + $0x280] ss:$24 sps:$4 sm:$0xff]  }
 0x683   :  { %15729 = verf.f32 %v9053_v33  ;;  %11263 = vmatprep.subr.bf16.mxu1 %v15505_v42  ;;  %11427 = vmatprep.subr.bf16.mxu0 %v15508_v11  ;;  %v15565_v42 = vld [vmem:[%s20619_s10 + $0x2b4] ss:$24 sps:$4 sm:$0xff]   ;;  %v15563_v11 = vld [vmem:[%s20619_s10 + $0x2b0] ss:$24 sps:$4 sm:$0xff]   ;;  %v15568_v33 = vld [vmem:[%s20619_s10 + $0x2e4] ss:$24 sps:$4 sm:$0xff]  }
 0x686   :  { %11264 = vmatpush1.bf16.msra.mxu1 %v15503_v39  ;;  %11428 = vmatpush1.bf16.msra.mxu0 %v15506_v3  ;;  %v15566_v39 = vld [vmem:[%s20619_s10 + $0x2e0] ss:$24 sps:$4 sm:$0xff]   ;;  %v15571_v3 = vld [vmem:[%s20619_s10 + $0x314] ss:$24 sps:$4 sm:$0xff]  }
 0x687   :  { %11265 = vmatprep.subr.bf16.mxu1 %v15511_v24  ;;  %11429 = vmatprep.subr.bf16.mxu0 %v15514_v40  ;;  %v15569_v24 = vld [vmem:[%s20619_s10 + $0x310] ss:$24 sps:$4 sm:$0xff]   ;;  %v15574_v40 = vld [vmem:[%s20619_s10 + $0x344] ss:$24 sps:$4 sm:$0xff]  }
 0x68a   :  { %11266 = vmatpush1.bf16.msra.mxu1 %v15509_v43  ;;  %11430 = vmatpush1.bf16.msra.mxu0 %v15512_v16  ;;  %v15572_v43 = vld [vmem:[%s20619_s10 + $0x340] ss:$24 sps:$4 sm:$0xff]   ;;  %v15577_v16 = vld [vmem:[%s20619_s10 + $0x374] ss:$24 sps:$4 sm:$0xff]  }
 0x68b   :  { %11267 = vmatprep.subr.bf16.mxu1 %v15517_v22  ;;  %11431 = vmatprep.subr.bf16.mxu0 %v15520_v50  ;;  %v15575_v22 = vld [vmem:[%s20619_s10 + $0x370] ss:$24 sps:$4 sm:$0xff]   ;;  %v15583_v50 = vld [vmem:[%s20619_s10 + $0x3d4] ss:$24 sps:$4 sm:$0xff]  }
 0x68d   :  { %v15730_v57 = vpop.eup %15729 }
 0x68e   :  { %v9067_v56 = vadd.f32 1.0, %v15730_v57  ;;  %11268 = vmatpush1.bf16.msra.mxu1 %v15515_v31  ;;  %11432 = vmatpush1.bf16.msra.mxu0 %v15518_v51  ;;  %v15581_v31 = vld [vmem:[%s20619_s10 + $0x3d0] ss:$24 sps:$4 sm:$0xff]   ;;  %v15586_v51 = vld [vmem:[%s20619_s10 + $0x404] ss:$24 sps:$4 sm:$0xff]  }
 0x68f   :  { %11458 = vmatprep.subr.bf16.mxu1 %v15523_v54  ;;  %v15584_v54 = vld [vmem:[%s20619_s10 + $0x400] ss:$24 sps:$4 sm:$0xff]   ;;  %v15589_v57 = vld [vmem:[%s20619_s10 + $0x434] ss:$24 sps:$4 sm:$0xff]  }
 0x690   :  { %v9074_v58 = vmul.f32 %v9067_v56, %v9046_v55  ;;  %v15587_v55 = vld [vmem:[%s20619_s10 + $0x430] ss:$24 sps:$4 sm:$0xff]   ;;  %v15592_v56 = vld [vmem:[%s20619_s10 + $0x464] ss:$24 sps:$4 sm:$0xff]  }
 0x692   :  { %v20185_v46 = vpack.c.bf16 %v9074_v58, %v9074_v58  ;;  %v15590_v58 = vld [vmem:[%s20619_s10 + $0x460] ss:$24 sps:$4 sm:$0xff]  }
 0x694   :  { %11286 = vmatmul.mubr.bf16.vlgmr.msra.gmra.mrb[44].mxu1 %v20185_v46  ;;  %11450 = vmatmul.mubr.bf16.vlgmr.msra.gmra.mrb[32].mxu0 %v20185_v46 }
 0x695   :  { %11459 = vmatpush1.bf16.msra.mxu1 %v15521_v45  ;;  %11490 = vmatprep.mubr.bf16.mxu1 %v19369_v60  ;;  %v15530_v60 = vld [vmem:[%s20619_s10 + $0xa0] ss:$24 sps:$4 sm:$0xff]   ;;  %v15595_v45 = vld [vmem:[%s20619_s10 + $0x494] ss:$24 sps:$4 sm:$0xff]  }
 0x696   :  { %11460 = vmatprep.subr.bf16.mxu1 %v15526_v2  ;;  %v15593_v2 = vld [vmem:[%s20619_s10 + $0x490] ss:$24 sps:$4 sm:$0xff]  }
 0x699   :  { %11461 = vmatpush1.bf16.msra.mxu1 %v15524_v41  ;;  %v15598_v41 = vld [vmem:[%s20619_s10 + $0x4c4] ss:$24 sps:$4 sm:$0xff]  }
 0x69a   :  { %11462 = vmatprep.subr.bf16.mxu1 %v15529_v63  ;;  %v15596_v63 = vld [vmem:[%s20619_s10 + $0x4c0] ss:$24 sps:$4 sm:$0xff]  }
 0x69d   :  { %11463 = vmatpush1.bf16.msra.mxu1 %v15527_v4  ;;  %v15601_v4 = vld [vmem:[%s20619_s10 + $0x4f4] ss:$24 sps:$4 sm:$0xff]  }
 0x69e   :  { %11464 = vmatprep.subr.bf16.mxu1 %v15532_v5  ;;  %v15599_v5 = vld [vmem:[%s20619_s10 + $0x4f0] ss:$24 sps:$4 sm:$0xff]  }
 0x6a1   :  { %11465 = vmatpush1.bf16.msra.mxu1 %v15530_v60  ;;  %v15604_v60 = vld [vmem:[%s20619_s10 + $0x524] ss:$24 sps:$4 sm:$0xff]  }
 0x6a2   :  { %11466 = vmatprep.subr.bf16.mxu1 %v15535_v6  ;;  %v15602_v6 = vld [vmem:[%s20619_s10 + $0x520] ss:$24 sps:$4 sm:$0xff]  }
 0x6a5   :  { %11467 = vmatpush1.bf16.msra.mxu1 %v15533_v48  ;;  %v15607_v48 = vld [vmem:[%s20619_s10 + $0x554] ss:$24 sps:$4 sm:$0xff]  }
 0x6a6   :  { %11468 = vmatprep.subr.bf16.mxu1 %v15538_v52  ;;  %v15605_v52 = vld [vmem:[%s20619_s10 + $0x550] ss:$24 sps:$4 sm:$0xff]  }
 0x6a9   :  { %11469 = vmatpush1.bf16.msra.mxu1 %v15536_v15  ;;  %v15610_v15 = vld [vmem:[%s20619_s10 + $0x584] ss:$24 sps:$4 sm:$0xff]  }
 0x6aa   :  { %11470 = vmatprep.subr.bf16.mxu1 %v15541_v17  ;;  %v15608_v17 = vld [vmem:[%s20619_s10 + $0x580] ss:$24 sps:$4 sm:$0xff]  }
 0x6ad   :  { %11471 = vmatpush1.bf16.msra.mxu1 %v15539_v19  ;;  %v15613_v19 = vld [vmem:[%s20619_s10 + $0x5b4] ss:$24 sps:$4 sm:$0xff]  }
 0x6ae   :  { %11472 = vmatprep.subr.bf16.mxu1 %v15544_v20  ;;  %v15611_v20 = vld [vmem:[%s20619_s10 + $0x5b0] ss:$24 sps:$4 sm:$0xff]  }
 0x6b1   :  { %11473 = vmatpush1.bf16.msra.mxu1 %v15542_v14  ;;  %v15616_v14 = vld [vmem:[%s20619_s10 + $0x5e4] ss:$24 sps:$4 sm:$0xff]  }
 0x6b2   :  { %11474 = vmatprep.subr.bf16.mxu1 %v15547_v35  ;;  %v15614_v35 = vld [vmem:[%s20619_s10 + $0x5e0] ss:$24 sps:$4 sm:$0xff]  }
 0x6b5   :  { %11475 = vmatpush1.bf16.msra.mxu1 %v15545_v21  ;;  %v15619_v21 = vld [vmem:[%s20619_s10 + $0x614] ss:$24 sps:$4 sm:$0xff]  }
 0x6b6   :  { %11476 = vmatprep.subr.bf16.mxu1 %v15550_v23  ;;  %v15617_v23 = vld [vmem:[%s20619_s10 + $0x610] ss:$24 sps:$4 sm:$0xff]  }
 0x6b9   :  { %11477 = vmatpush1.bf16.msra.mxu1 %v15548_v26  ;;  %v15622_v26 = vld [vmem:[%s20619_s10 + $0x644] ss:$24 sps:$4 sm:$0xff]  }
 0x6ba   :  { %11478 = vmatprep.subr.bf16.mxu1 %v15553_v27  ;;  %v15620_v27 = vld [vmem:[%s20619_s10 + $0x640] ss:$24 sps:$4 sm:$0xff]  }
 0x6bd   :  { %11479 = vmatpush1.bf16.msra.mxu1 %v15551_v28  ;;  %v15625_v28 = vld [vmem:[%s20619_s10 + $0x674] ss:$24 sps:$4 sm:$0xff]  }
 0x6be   :  { %11480 = vmatprep.subr.bf16.mxu1 %v15556_v44  ;;  %v15623_v44 = vld [vmem:[%s20619_s10 + $0x670] ss:$24 sps:$4 sm:$0xff]  }
 0x6c1   :  { %11481 = vmatpush1.bf16.msra.mxu1 %v15554_v29  ;;  %v15631_v29 = vld [vmem:[%s20619_s10 + $0x6d4] ss:$24 sps:$4 sm:$0xff]  }
 0x6c2   :  { %11482 = vmatprep.subr.bf16.mxu1 %v15559_v30  ;;  %v15629_v30 = vld [vmem:[%s20619_s10 + $0x6d0] ss:$24 sps:$4 sm:$0xff]  }
 0x6c5   :  { %11483 = vmatpush1.bf16.msra.mxu1 %v15557_v59  ;;  %v15634_v59 = vld [vmem:[%s20619_s10 + $0x704] ss:$24 sps:$4 sm:$0xff]  }
 0x6c6   :  { %11484 = vmatprep.subr.bf16.mxu1 %v15562_v37  ;;  %v15632_v37 = vld [vmem:[%s20619_s10 + $0x700] ss:$24 sps:$4 sm:$0xff]  }
 0x6c9   :  { %11485 = vmatpush1.bf16.msra.mxu1 %v15560_v38  ;;  %v15637_v38 = vld [vmem:[%s20619_s10 + $0x734] ss:$24 sps:$4 sm:$0xff]  }
 0x6ca   :  { %11486 = vmatprep.subr.bf16.mxu1 %v15565_v42  ;;  %v15635_v42 = vld [vmem:[%s20619_s10 + $0x730] ss:$24 sps:$4 sm:$0xff]  }
 0x6cd   :  { %11487 = vmatpush1.bf16.msra.mxu1 %v15563_v11  ;;  %v15640_v11 = vld [vmem:[%s20619_s10 + $0x764] ss:$24 sps:$4 sm:$0xff]  }
 0x6ce   :  { %11488 = vmatprep.subr.bf16.mxu1 %v15568_v33  ;;  %v15638_v33 = vld [vmem:[%s20619_s10 + $0x760] ss:$24 sps:$4 sm:$0xff]  }
 0x6d1   :  { %11489 = vmatpush1.bf16.msra.mxu1 %v15566_v39  ;;  %v15643_v39 = vld [vmem:[%s20619_s10 + $0x794] ss:$24 sps:$4 sm:$0xff]  }
 0x6d2   :  { %11499 = vmatprep.subr.bf16.mxu1 %v15571_v3  ;;  %v15641_v3 = vld [vmem:[%s20619_s10 + $0x790] ss:$24 sps:$4 sm:$0xff]  }
 0x6d4   :  { %11491 = vmatmul.mubr.bf16.vlgmr.msra.gmra.mrb[48].mxu1 %v19564_v25  ;;  %v15580_v25 = vld [vmem:[%s20619_s10 + $0x3a4] ss:$24 sps:$4 sm:$0xff]  }
 0x6d5   :  { %11500 = vmatpush1.bf16.msra.mxu1 %v15569_v24  ;;  %11531 = vmatprep.mubr.bf16.mxu1 %v19865_v61  ;;  %v15578_v61 = vld [vmem:[%s20619_s10 + $0x3a0] ss:$24 sps:$4 sm:$0xff]   ;;  %v15646_v24 = vld [vmem:[%s20619_s10 + $0x7c4] ss:$24 sps:$4 sm:$0xff]  }
 0x6d6   :  { %11501 = vmatprep.subr.bf16.mxu1 %v15574_v40  ;;  %v15644_v40 = vld [vmem:[%s20619_s10 + $0x7c0] ss:$24 sps:$4 sm:$0xff]  }
 0x6d9   :  { %11502 = vmatpush1.bf16.msra.mxu1 %v15572_v43  ;;  %v15649_v43 = vld [vmem:[%s20619_s10 + $0x7f4] ss:$24 sps:$4 sm:$0xff]  }
 0x6da   :  { %11503 = vmatprep.subr.bf16.mxu1 %v15577_v16  ;;  %v15647_v16 = vld [vmem:[%s20619_s10 + $0x7f0] ss:$24 sps:$4 sm:$0xff]  }
 0x6dd   :  { %11504 = vmatpush1.bf16.msra.mxu1 %v15575_v22  ;;  %v15652_v22 = vld [vmem:[%s20619_s10 + $0x824] ss:$24 sps:$4 sm:$0xff]  }
 0x6de   :  { %11505 = vmatprep.subr.bf16.mxu1 %v15580_v25  ;;  %v15650_v25 = vld [vmem:[%s20619_s10 + $0x820] ss:$24 sps:$4 sm:$0xff]  }
 0x6e1   :  { %11506 = vmatpush1.bf16.msra.mxu1 %v15578_v61  ;;  %v15655_v61 = vld [vmem:[%s20619_s10 + $0x854] ss:$24 sps:$4 sm:$0xff]  }
 0x6e2   :  { %11507 = vmatprep.subr.bf16.mxu1 %v15583_v50  ;;  %v15653_v50 = vld [vmem:[%s20619_s10 + $0x850] ss:$24 sps:$4 sm:$0xff]  }
 0x6e5   :  { %11508 = vmatpush1.bf16.msra.mxu1 %v15581_v31  ;;  %v15658_v31 = vld [vmem:[%s20619_s10 + $0x884] ss:$24 sps:$4 sm:$0xff]  }
 0x6e6   :  { %11509 = vmatprep.subr.bf16.mxu1 %v15586_v51  ;;  %v15656_v51 = vld [vmem:[%s20619_s10 + $0x880] ss:$24 sps:$4 sm:$0xff]  }
 0x6e9   :  { %11510 = vmatpush1.bf16.msra.mxu1 %v15584_v54  ;;  %v15661_v54 = vld [vmem:[%s20619_s10 + $0x8b4] ss:$24 sps:$4 sm:$0xff]  }
 0x6ea   :  { %11511 = vmatprep.subr.bf16.mxu1 %v15589_v57  ;;  %v15659_v57 = vld [vmem:[%s20619_s10 + $0x8b0] ss:$24 sps:$4 sm:$0xff]  }
 0x6ed   :  { %11512 = vmatpush1.bf16.msra.mxu1 %v15587_v55  ;;  %v15664_v55 = vld [vmem:[%s20619_s10 + $0x8e4] ss:$24 sps:$4 sm:$0xff]  }
 0x6ee   :  { %11513 = vmatprep.subr.bf16.mxu1 %v15592_v56  ;;  %v15662_v56 = vld [vmem:[%s20619_s10 + $0x8e0] ss:$24 sps:$4 sm:$0xff]  }
 0x6f1   :  { %11514 = vmatpush1.bf16.msra.mxu1 %v15590_v58  ;;  %v15667_v58 = vld [vmem:[%s20619_s10 + $0x914] ss:$24 sps:$4 sm:$0xff]  }
 0x6f2   :  { %11515 = vmatprep.subr.bf16.mxu1 %v15595_v45  ;;  %v15665_v45 = vld [vmem:[%s20619_s10 + $0x910] ss:$24 sps:$4 sm:$0xff]  }
 0x6f5   :  { %11516 = vmatpush1.bf16.msra.mxu1 %v15593_v2  ;;  %v15670_v2 = vld [vmem:[%s20619_s10 + $0x944] ss:$24 sps:$4 sm:$0xff]  }
 0x6f6   :  { %11517 = vmatprep.subr.bf16.mxu1 %v15598_v41  ;;  %v15668_v41 = vld [vmem:[%s20619_s10 + $0x940] ss:$24 sps:$4 sm:$0xff]  }
 0x6f9   :  { %11518 = vmatpush1.bf16.msra.mxu1 %v15596_v63  ;;  %v15673_v63 = vld [vmem:[%s20619_s10 + $0x974] ss:$24 sps:$4 sm:$0xff]  }
 0x6fa   :  { %11519 = vmatprep.subr.bf16.mxu1 %v15601_v4  ;;  %v15671_v4 = vld [vmem:[%s20619_s10 + $0x970] ss:$24 sps:$4 sm:$0xff]  }
 0x6fd   :  { %11520 = vmatpush1.bf16.msra.mxu1 %v15599_v5  ;;  %v15679_v5 = vld [vmem:[%s20619_s10 + $0x9d4] ss:$24 sps:$4 sm:$0xff]  }
 0x6fe   :  { %11521 = vmatprep.subr.bf16.mxu1 %v15604_v60  ;;  %v15677_v60 = vld [vmem:[%s20619_s10 + $0x9d0] ss:$24 sps:$4 sm:$0xff]  }
 0x701   :  { %11522 = vmatpush1.bf16.msra.mxu1 %v15602_v6  ;;  %v20511_v6 = vld [vmem:[%s20621_s11] sm:$0x3f] }
 0x702   :  { %11523 = vmatprep.subr.bf16.mxu1 %v15607_v48  ;;  %v15682_v48 = vld [vmem:[%s20619_s10 + $0xa04] ss:$24 sps:$4 sm:$0xff]  }
 0x705   :  { %11524 = vmatpush1.bf16.msra.mxu1 %v15605_v52  ;;  %v9423_v52 = vrot.slane %v20511_v6, %v16051_v7 }
 0x706   :  { %11525 = vmatprep.subr.bf16.mxu1 %v15610_v15  ;;  %v9431_v15 = vrot.slane %v20511_v6, %v16055_v9 }
 0x709   :  { %11526 = vmatpush1.bf16.msra.mxu1 %v15608_v17  ;;  %v15680_v17 = vld [vmem:[%s20619_s10 + $0xa00] ss:$24 sps:$4 sm:$0xff]  }
 0x70a   :  { %11527 = vmatprep.subr.bf16.mxu1 %v15613_v19  ;;  %v9427_v19 = vrot.slane %v20511_v6, %v16053_v8 }
 0x70d   :  { %11528 = vmatpush1.bf16.msra.mxu1 %v15611_v20  ;;  %v9435_v20 = vrot.slane %v20511_v6, %v16057_v10 }
 0x70e   :  { %11529 = vmatprep.subr.bf16.mxu1 %v15616_v14  ;;  %v15685_v14 = vld [vmem:[%s20619_s10 + $0xa34] ss:$24 sps:$4 sm:$0xff]  }
 0x711   :  { %11530 = vmatpush1.bf16.msra.mxu1 %v15614_v35 }
 0x712   :  { %11540 = vmatprep.subr.bf16.mxu1 %v15619_v21 }
 0x714   :  { %11532 = vmatmul.mubr.bf16.vlgmr.msra.gmra.mrb[48].mxu1 %v19873_v62  ;;  %v15628_v62 = vld [vmem:[%s20619_s10 + $0x6a4] ss:$24 sps:$4 sm:$0xff]  }
 0x715   :  { %11541 = vmatpush1.bf16.msra.mxu1 %v15617_v23  ;;  %11572 = vmatprep.mubr.bf16.mxu1 %v19885_v1  ;;  %v15626_v1 = vld [vmem:[%s20619_s10 + $0x6a0] ss:$24 sps:$4 sm:$0xff]  }
 0x716   :  { %11542 = vmatprep.subr.bf16.mxu1 %v15622_v26 }
 0x719   :  { %11543 = vmatpush1.bf16.msra.mxu1 %v15620_v27 }
 0x71a   :  { %11544 = vmatprep.subr.bf16.mxu1 %v15625_v28 }
 0x71d   :  { %11545 = vmatpush1.bf16.msra.mxu1 %v15623_v44 }
 0x71e   :  { %11546 = vmatprep.subr.bf16.mxu1 %v15628_v62 }
 0x721   :  { %11547 = vmatpush1.bf16.msra.mxu1 %v15626_v1 }
 0x722   :  { %11548 = vmatprep.subr.bf16.mxu1 %v15631_v29 }
 0x725   :  { %11549 = vmatpush1.bf16.msra.mxu1 %v15629_v30  ;;  %v15683_v30 = vld [vmem:[%s20619_s10 + $0xa30] ss:$24 sps:$4 sm:$0xff]  }
 0x726   :  { %11550 = vmatprep.subr.bf16.mxu1 %v15634_v59 }
 0x729   :  { %11551 = vmatpush1.bf16.msra.mxu1 %v15632_v37 }
 0x72a   :  { %11552 = vmatprep.subr.bf16.mxu1 %v15637_v38 }
 0x72d   :  { %11553 = vmatpush1.bf16.msra.mxu1 %v15635_v42 }
 0x72e   :  { %11554 = vmatprep.subr.bf16.mxu1 %v15640_v11  ;;  %v15688_v11 = vld [vmem:[%s20619_s10 + $0xa64] ss:$24 sps:$4 sm:$0xff]  }
 0x731   :  { %11555 = vmatpush1.bf16.msra.mxu1 %v15638_v33 }
 0x732   :  { %11556 = vmatprep.subr.bf16.mxu1 %v15643_v39 }
 0x735   :  { %11557 = vmatpush1.bf16.msra.mxu1 %v15641_v3 }
 0x736   :  { %11558 = vmatprep.subr.bf16.mxu1 %v15646_v24 }
 0x739   :  { %11559 = vmatpush1.bf16.msra.mxu1 %v15644_v40 }
 0x73a   :  { %11560 = vmatprep.subr.bf16.mxu1 %v15649_v43  ;;  %v15686_v43 = vld [vmem:[%s20619_s10 + $0xa60] ss:$24 sps:$4 sm:$0xff]  }
 0x73d   :  { %11561 = vmatpush1.bf16.msra.mxu1 %v15647_v16 }
 0x73e   :  { %11562 = vmatprep.subr.bf16.mxu1 %v15652_v22 }
 0x741   :  { %11563 = vmatpush1.bf16.msra.mxu1 %v15650_v25 }
 0x742   :  { %11564 = vmatprep.subr.bf16.mxu1 %v15655_v61 }
 0x745   :  { %11565 = vmatpush1.bf16.msra.mxu1 %v15653_v50 }
 0x746   :  { %11566 = vmatprep.subr.bf16.mxu1 %v15658_v31 }
 0x749   :  { %11567 = vmatpush1.bf16.msra.mxu1 %v15656_v51 }
 0x74a   :  { %11568 = vmatprep.subr.bf16.mxu1 %v15661_v54 }
 0x74d   :  { %11569 = vmatpush1.bf16.msra.mxu1 %v15659_v57 }
 0x74e   :  { %11570 = vmatprep.subr.bf16.mxu1 %v15664_v55  ;;  %v20555_v55 = vld [vmem:[%s20622_s7] sm:$0x3f] }
 0x751   :  { %11571 = vmatpush1.bf16.msra.mxu1 %v15662_v56 }
 0x752   :  { %11581 = vmatprep.subr.bf16.mxu1 %v15667_v58 }
 0x754   :  { %11573 = vmatmul.mubr.bf16.vlgmr.msra.gmra.mrb[48].mxu1 %v20087_v18  ;;  %v15676_v18 = vld [vmem:[%s20619_s10 + $0x9a4] ss:$24 sps:$4 sm:$0xff]  }
 0x755   :  { %11582 = vmatpush1.bf16.msra.mxu1 %v15665_v45  ;;  %11613 = vmatprep.mubr.bf16.mxu1 %v15781_v0  ;;  %v15674_v0 = vld [vmem:[%s20619_s10 + $0x9a0] ss:$24 sps:$4 sm:$0xff]   ;;  %v3696_v45 = vrot.slane %v20555_v55, %v16055_v9 }
 0x756   :  { %11583 = vmatprep.subr.bf16.mxu1 %v15670_v2  ;;  %v3692_v2 = vrot.slane %v20555_v55, %v16053_v8 }
 0x759   :  { %11584 = vmatpush1.bf16.msra.mxu1 %v15668_v41 }
 0x75a   :  { %11585 = vmatprep.subr.bf16.mxu1 %v15673_v63 }
 0x75d   :  { %11586 = vmatpush1.bf16.msra.mxu1 %v15671_v4 }
 0x75e   :  { %11587 = vmatprep.subr.bf16.mxu1 %v15676_v18 }
 0x761   :  { %11588 = vmatpush1.bf16.msra.mxu1 %v15674_v0 }
 0x762   :  { %11589 = vmatprep.subr.bf16.mxu1 %v15679_v5 }
 0x765   :  { %11590 = vmatpush1.bf16.msra.mxu1 %v15677_v60 }
 0x766   :  { %11591 = vmatprep.subr.bf16.mxu1 %v15682_v48 }
 0x767   :  { %v11287_v35 = vpop.f32.mrb[44].mxu1  ;;  %v11451_v21 = vpop.f32.mrb[32].mxu0 }
 0x768   :  { %v20530_v23 = vadd.f32 %v11287_v35, %v9423_v52  ;;  %v20532_v26 = vadd.f32 %v11451_v21, %v9431_v15  ;;  %v11289_v27 = vpop.f32.mrb[45].mxu1  ;;  %v11453_v28 = vpop.f32.mrb[33].mxu0 }
 0x769   :  { %v20534_v44 = vadd.f32 %v11289_v27, %v9427_v19  ;;  %v20536_v62 = vadd.f32 %v11453_v28, %v9435_v20  ;;  %11592 = vmatpush1.bf16.msra.mxu1 %v15680_v17  ;;  %v11291_v1 = vpop.f32.mrb[46].mxu1  ;;  %v11455_v29 = vpop.f32.mrb[34].mxu0  ;;  %v11682_v19 = vld [vmem:[%s20623_s1] sm:$0xff]  ;;  %v13405_v20 = vadd.f32 %v18536_v32, %v3696_v45  ;;  %v11685_v27 = vld [vmem:[%s20623_s1 + $0x18] sm:$0xff] }
 0x76a   :  { %v11622_v59 = vmin.f32 %v20530_v23, 20.0  ;;  %v11624_v37 = vmin.f32 %v20532_v26, 20.0  ;;  %v11292_v38 = vpop.f32.mrb[47].mxu1  ;;  %v11456_v42 = vpop.f32.mrb[35].mxu0  ;;  %11593 = vmatprep.subr.bf16.mxu1 %v15685_v14  ;;  %vm11640_vm1 = vcmp.gt.f32.partialorder %v20530_v23, 20.0  ;;  %vm11646_vm2 = vcmp.lt.f32.partialorder %v20530_v23, -15.0 }
 0x76b   :  { %v11623_v33 = vmin.f32 %v20534_v44, 20.0  ;;  %v11625_v24 = vmin.f32 %v20536_v62, 20.0  ;;  %vm11642_vm3 = vcmp.gt.f32.partialorder %v20532_v26, 20.0  ;;  %vm11648_vm4 = vcmp.lt.f32.partialorder %v20532_v26, -15.0 }
 0x76c   :  { %v11628_v39 = vmul.f32 1.442695, %v11622_v59  ;;  %v11632_v3 = vmul.f32 1.442695, %v11624_v37  ;;  %vm11641_vm5 = vcmp.gt.f32.partialorder %v20534_v44, 20.0  ;;  %vm11647_vm6 = vcmp.lt.f32.partialorder %v20534_v44, -15.0 }
 0x76d   :  { %v11630_v40 = vmul.f32 1.442695, %v11623_v33  ;;  %11594 = vmatpush1.bf16.msra.mxu1 %v15683_v30  ;;  %v11634_v16 = vmul.f32 1.442695, %v11625_v24  ;;  %vm11649_vm7 = vcmp.lt.f32.partialorder %v20536_v62, -15.0  ;;  %vm11643_vm8 = vcmp.gt.f32.partialorder %v20536_v62, 20.0 }
 0x76e   :  { %15731 = vpow2.f32 %v11628_v39  ;;  %11595 = vmatprep.subr.bf16.mxu1 %v15688_v11  ;;  %v3700_v14 = vrot.slane %v20555_v55, %v16057_v10 }
 0x76f   :  { %15733 = vpow2.f32 %v11632_v3 }
 0x770   :  { %15735 = vpow2.f32 %v11630_v40  ;;  %v13406_v10 = vadd.f32 %v18543_v36, %v3700_v14 }
 0x771   :  { %15737 = vpow2.f32 %v11634_v16  ;;  %11596 = vmatpush1.bf16.msra.mxu1 %v15686_v43 }
 0x774   :  { %11614 = vmatmul.mubr.bf16.vlgmr.msra.gmra.mrb[48].mxu1 %v20185_v46  ;;  %v3688_v46 = vrot.slane %v20555_v55, %v16051_v7 }
 0x776   :  { %v13403_v52 = vadd.f32 %v18534_v49, %v3688_v46  ;;  %v11684_v49 = vld [vmem:[%s20623_s1 + $0x10] sm:$0xff] }
 0x777   :  { %v11690_v32 = vsub.f32 %v11684_v49, %v13405_v20  ;;  %v3708_v20 = vrot.slane %v20555_v55, %v16064_v13 }
 0x778   :  { %v15732_v22 = vpop.eup %15731  ;;  %v11688_v21 = vsub.f32 %v11682_v19, %v13403_v52 }
 0x779   :  { %v15734_v25 = vpop.eup %15733  ;;  %v11652_v61 = vadd.f32 1.0, %v15732_v22  ;;  %v11702_v29 = vmul.f32 %v11690_v32, %v11690_v32 }
 0x77a   :  { %v15736_v50 = vpop.eup %15735  ;;  %v11654_v31 = vadd.f32 1.0, %v15734_v25  ;;  %v11700_v28 = vmul.f32 %v11688_v21, %v11688_v21 }
 0x77b   :  { %v15738_v51 = vpop.eup %15737  ;;  %15739 = vlog2.f32 %v11652_v61  ;;  %v11653_v54 = vadd.f32 1.0, %v15736_v50 }
 0x77c   :  { %15741 = vlog2.f32 %v11654_v31  ;;  %v11655_v57 = vadd.f32 1.0, %v15738_v51 }
 0x77d   :  { %15743 = vlog2.f32 %v11653_v54 }
 0x77e   :  { %15745 = vlog2.f32 %v11655_v57 }
 0x785   :  { %v15740_v56 = vpop.eup %15739 }
 0x786   :  { %v15742_v58 = vpop.eup %15741  ;;  %v11659_v41 = vmul.f32 0.6931472, %v15740_v56  ;;  %v9439_v56 = vrot.slane %v20511_v6, %v16062_v12 }
 0x787   :  { %v15744_v63 = vpop.eup %15743  ;;  %v11663_v4 = vmul.f32 0.6931472, %v15742_v58  ;;  %v9443_v58 = vrot.slane %v20511_v6, %v16064_v13  ;;  %v11687_v13 = vld [vmem:[%s20623_s1 + $0x28] sm:$0xff] }
 0x788   :  { %v15746_v18 = vpop.eup %15745  ;;  %v11670_v0 = vsel %vm11646_vm2, %v15732_v22, %v11659_v41  ;;  %v11661_v7 = vmul.f32 0.6931472, %v15744_v63 }
 0x789   :  { %v11676_v9 = vsel %vm11640_vm1, %v20530_v23, %v11670_v0  ;;  %v11672_v5 = vsel %vm11648_vm4, %v15734_v25, %v11663_v4  ;;  %v11665_v8 = vmul.f32 0.6931472, %v15746_v18  ;;  %v13404_v23 = vadd.f32 %v18541_v34, %v3692_v2 }
 0x78a   :  { %15747 = vrcp.f32 %v11676_v9  ;;  %v11678_v60 = vsel %vm11642_vm3, %v20532_v26, %v11672_v5  ;;  %v11671_v48 = vsel %vm11647_vm6, %v15736_v50, %v11661_v7  ;;  %v11683_v26 = vld [vmem:[%s20623_s1 + $0x8] sm:$0xff]  ;;  %v11691_v34 = vsub.f32 %v11685_v27, %v13406_v10 }
 0x78b   :  { %15749 = vlog2.f32 %v11676_v9  ;;  %v11677_v15 = vsel %vm11641_vm5, %v20534_v44, %v11671_v48  ;;  %v11673_v17 = vsel %vm11649_vm7, %v15738_v51, %v11665_v8  ;;  %v11689_v44 = vsub.f32 %v11683_v26, %v13404_v23 }
 0x78c   :  { %15751 = vrcp.f32 %v11678_v60  ;;  %v11679_v35 = vsel %vm11643_vm8, %v20536_v62, %v11673_v17  ;;  %v11703_v36 = vmul.f32 %v11691_v34, %v11691_v34  ;;  %v3704_v17 = vrot.slane %v20555_v55, %v16062_v12  ;;  %v11686_v12 = vld [vmem:[%s20623_s1 + $0x20] sm:$0xff] }
 0x78d   :  { %15753 = vlog2.f32 %v11678_v60  ;;  %v11701_v38 = vmul.f32 %v11689_v44, %v11689_v44  ;;  %v13408_v26 = vadd.f32 %v19240_v53, %v3708_v20 }
 0x78e   :  { %15755 = vrcp.f32 %v11677_v15  ;;  %v13407_v23 = vadd.f32 %v19233_v47, %v3704_v17 }
 0x78f   :  { %15757 = vlog2.f32 %v11677_v15  ;;  %v11693_v32 = vsub.f32 %v11687_v13, %v13408_v26 }
 0x790   :  { %15759 = vrcp.f32 %v11679_v35  ;;  %v11692_v55 = vsub.f32 %v11686_v12, %v13407_v23 }
 0x791   :  { %15761 = vlog2.f32 %v11679_v35 }
 0x792   :  { %v11704_v10 = vmul.f32 %v11692_v55, %v11692_v55 }
 0x794   :  { %v15748_v62 = vpop.eup %15747 }
 0x795   :  { %v15750_v1 = vpop.eup %15749  ;;  %v11706_v30 = vmul.f32 %v15748_v62, %v11700_v28  ;;  %v11705_v28 = vmul.f32 %v11693_v32, %v11693_v32 }
 0x796   :  { %v15752_v59 = vpop.eup %15751  ;;  %v11720_v33 = vmul.f32 0.6931472, %v15750_v1 }
 0x797   :  { %v15754_v37 = vpop.eup %15753  ;;  %v11708_v42 = vmul.f32 %v15752_v59, %v11702_v29 }
 0x798   :  { %v15756_v11 = vpop.eup %15755  ;;  %v11724_v25 = vmul.f32 0.6931472, %v15754_v37 }
 0x799   :  { %v15758_v39 = vpop.eup %15757  ;;  %v11707_v3 = vmul.f32 %v15756_v11, %v11701_v38 }
 0x79a   :  { %v15760_v24 = vpop.eup %15759  ;;  %v11722_v40 = vmul.f32 0.6931472, %v15758_v39 }
 0x79b   :  { %v15762_v43 = vpop.eup %15761  ;;  %v11709_v16 = vmul.f32 %v15760_v24, %v11703_v36  ;;  %v11712_v22 = vadd.f32 %v11707_v3, %v11706_v30 }
 0x79c   :  { %v11731_v61 = vadd.f32 %v11722_v40, %v11720_v33  ;;  %v11726_v31 = vmul.f32 0.6931472, %v15762_v43 }
 0x79d   :  { %v11713_v50 = vadd.f32 %v11712_v22, %v11708_v42 }
 0x79e   :  { %v11732_v51 = vadd.f32 %v11731_v61, %v11724_v25 }
 0x79f   :  { %v11714_v54 = vadd.f32 %v11713_v50, %v11709_v16 }
 0x7a0   :  { %v11733_v57 = vadd.f32 %v11732_v51, %v11726_v31 }
 0x847   :  { %v11615_v46 = vpop.f32.mrb[48].mxu1 }
 0x848   :  { %v13419_v45 = vadd.f32 %v11615_v46, %v9439_v56  ;;  %v11617_v2 = vpop.f32.mrb[49].mxu1 }
 0x849   :  { %v13420_v41 = vadd.f32 %v11617_v2, %v9443_v58  ;;  %v11619_v63 = vpop.f32.mrb[50].mxu1 }
 0x84a   :  { %v11626_v4 = vmin.f32 %v13419_v45, 20.0  ;;  %v11620_v18 = vpop.f32.mrb[51].mxu1  ;;  %vm11650_vm9 = vcmp.lt.f32.partialorder %v13419_v45, -15.0  ;;  %vm11644_vm10 = vcmp.gt.f32.partialorder %v13419_v45, 20.0 }
 0x84b   :  { %v11627_v0 = vmin.f32 %v13420_v41, 20.0  ;;  %vm11651_vm11 = vcmp.lt.f32.partialorder %v13420_v41, -15.0  ;;  %vm11645_vm12 = vcmp.gt.f32.partialorder %v13420_v41, 20.0 }
 0x84c   :  { %v11636_v7 = vmul.f32 1.442695, %v11626_v4 }
 0x84d   :  { %v11638_v9 = vmul.f32 1.442695, %v11627_v0 }
 0x84e   :  { %15763 = vpow2.f32 %v11636_v7 }
 0x84f   :  { %15765 = vpow2.f32 %v11638_v9 }
 0x858   :  { %v15764_v5 = vpop.eup %15763 }
 0x859   :  { %v15766_v8 = vpop.eup %15765  ;;  %v11656_v60 = vadd.f32 1.0, %v15764_v5 }
 0x85a   :  { %v11657_v48 = vadd.f32 1.0, %v15766_v8 }
 0x85b   :  { %15767 = vlog2.f32 %v11656_v60 }
 0x85c   :  { %15769 = vlog2.f32 %v11657_v48 }
 0x865   :  { %v15768_v52 = vpop.eup %15767 }
 0x866   :  { %v15770_v6 = vpop.eup %15769  ;;  %v11667_v15 = vmul.f32 0.6931472, %v15768_v52 }
 0x867   :  { %v11669_v19 = vmul.f32 0.6931472, %v15770_v6 }
 0x868   :  { %v11674_v14 = vsel %vm11650_vm9, %v15764_v5, %v11667_v15 }
 0x869   :  { %v11675_v35 = vsel %vm11651_vm11, %v15766_v8, %v11669_v19  ;;  %v11680_v49 = vsel %vm11644_vm10, %v13419_v45, %v11674_v14 }
 0x86a   :  { %v11681_v21 = vsel %vm11645_vm12, %v13420_v41, %v11675_v35  ;;  %15771 = vrcp.f32 %v11680_v49 }
 0x86b   :  { %15773 = vrcp.f32 %v11681_v21 }
 0x86c   :  { %15775 = vlog2.f32 %v11680_v49 }
 0x86d   :  { %15777 = vlog2.f32 %v11681_v21 }
 0x874   :  { %v15772_v27 = vpop.eup %15771 }
 0x875   :  { %v15774_v44 = vpop.eup %15773  ;;  %v11710_v47 = vmul.f32 %v15772_v27, %v11704_v10 }
 0x876   :  { %v15776_v62 = vpop.eup %15775  ;;  %v11711_v1 = vmul.f32 %v15774_v44, %v11705_v28 }
 0x877   :  { %v15778_v29 = vpop.eup %15777  ;;  %v11728_v34 = vmul.f32 0.6931472, %v15776_v62  ;;  %v11715_v30 = vadd.f32 %v11714_v54, %v11710_v47 }
 0x878   :  { %v11730_v59 = vmul.f32 0.6931472, %v15778_v29 }
 0x879   :  { %v11734_v53 = vadd.f32 %v11733_v57, %v11728_v34  ;;  %v11716_v37 = vadd.f32 %v11715_v30, %v11711_v1 }
 0x87b   :  { %v11735_v38 = vadd.f32 %v11734_v53, %v11730_v59  ;;  %11717 = vadd.xlane.f32.xlu0 %v11716_v37 }
 0x87d   :  { %11736 = vadd.xlane.f32.xlu1 %v11735_v38 }
 0x908   :  { %v11718_v42 = vpop.xlane.xlu0 %11717 }
 0x90a   :  { %v11737_v11 = vpop.xlane.xlu1 %11736 }
 0x90b   :  { %v11738_v33 = vadd.f32 %v11737_v11, %v11718_v42 }
 0x90d   :  { %v11739_v39 = vadd.f32 1411.4896, %v11738_v33 }
 0x90f   :  { %v11740_v36 = vmul.f32 -0.5, %v11739_v39 }
 0x911   :  { %11742 = vst.msk [vmem:[%s20624_s12] sm:$0xff] %vm11741_vm13, %v11740_v36 }

</bundles_post_ra>
